<compile_context>
chip_gen: v6e
topology: v6e:2x2x1
jax: 0.10.0
libtpu: 0.0.40
codegen_flags: <defaults>
</compile_context>

<pallas_src>
from functools import partial

import numpy as np
import jax
import jax.numpy as jnp
from jax import lax
from jax.experimental import pallas as pl
from jax.experimental.pallas import tpu as pltpu

BN_EPS = 1e-5
LANES = 128


def _vmem_limit_bytes():
    cap = 64 * 1024 * 1024
    try:
        cap = int(getattr(pltpu.get_tpu_info(), "vmem_capacity_bytes", cap))
    except Exception:
        pass
    return int(min(cap * 3 // 4, 100 * 1024 * 1024))


VMEM_LIMIT = _vmem_limit_bytes()


# ------------------------------ kernels ------------------------------

def _conv1_shortcut_kernel(x_ref, mask_ref, w1_ref, wsc_ref,
                           y1_ref, ysc_ref, s1_ref, ssc_ref, *, wp, m):
    """Pass 1 (grid over N, parallel): conv1 as 9 contiguous-offset MXU
    matmuls over the flattened padded image + 1x1 projection shortcut +
    per-image BN (sum, sumsq) partials."""
    valid = mask_ref[...] > 0.0                      # (m, 1) -> lane-broadcast

    # conv1: value-carried f32 accumulation (no VMEM RMW).
    acc = jnp.dot(x_ref[0, 0:m, :], w1_ref[0],
                  preferred_element_type=jnp.float32)
    for t in range(1, 9):
        dy, dx = divmod(t, 3)
        off = dy * wp + dx
        acc = acc + jnp.dot(x_ref[0, off:off + m, :], w1_ref[t],
                            preferred_element_type=jnp.float32)
    y1 = jnp.where(valid, acc, 0.0)                  # zero the 2 garbage cols
    y1_ref[0] = y1.astype(jnp.bfloat16)
    s1_ref[0, 0:1, :] = jnp.sum(y1, axis=0, keepdims=True)
    s1_ref[0, 1:2, :] = jnp.sum(y1 * y1, axis=0, keepdims=True)

    # 1x1 projection shortcut over the interior rows (halo rows give exact 0,
    # so no masking is needed for its statistics or its store).
    ysc = jnp.dot(x_ref[0, wp + 1:wp + 1 + m, :], wsc_ref[...],
                  preferred_element_type=jnp.float32)
    ysc_ref[0] = ysc.astype(jnp.bfloat16)
    ssc_ref[0, 0:1, :] = jnp.sum(ysc, axis=0, keepdims=True)
    ssc_ref[0, 1:2, :] = jnp.sum(ysc * ysc, axis=0, keepdims=True)


def _bn1_relu_conv2_kernel(y1_ref, mask_ref, ab1_ref, w2_ref,
                           y2_ref, s2_ref, pad_ref, *, wp, m, s_off):
    """Pass 2 (grid over N, parallel): bn1 (pre-folded scale/shift) + ReLU +
    conv2 fused; padded activation built in a bf16 VMEM scratch with aligned
    stores; per-image bn2 (sum, sumsq) partials."""
    cp = pad_ref.shape[-1]
    pad_rows = pad_ref.shape[0]
    valid = mask_ref[...] > 0.0

    y1 = y1_ref[0].astype(jnp.float32)
    act = jnp.maximum(y1 * ab1_ref[0:1, :] + ab1_ref[1:2, :], 0.0)
    act = jnp.where(valid, act, 0.0)                 # re-zero halo columns

    # Padded bf16 activation: small border zeros + one aligned interior store
    # (borders rewritten every step -> safe under megacore grid sharding).
    pad_ref[0:s_off, :] = jnp.zeros((s_off, cp), jnp.bfloat16)
    pad_ref[s_off:s_off + m, :] = act.astype(jnp.bfloat16)
    pad_ref[s_off + m:pad_rows, :] = jnp.zeros((pad_rows - s_off - m, cp),
                                               jnp.bfloat16)

    base = s_off - (wp + 1)
    acc = jnp.dot(pad_ref[base:base + m, :], w2_ref[0],
                  preferred_element_type=jnp.float32)
    for t in range(1, 9):
        dy, dx = divmod(t, 3)
        off = base + dy * wp + dx
        acc = acc + jnp.dot(pad_ref[off:off + m, :], w2_ref[t],
                            preferred_element_type=jnp.float32)
    y2 = jnp.where(valid, acc, 0.0)
    y2_ref[0] = y2.astype(jnp.bfloat16)
    s2_ref[0, 0:1, :] = jnp.sum(y2, axis=0, keepdims=True)
    s2_ref[0, 1:2, :] = jnp.sum(y2 * y2, axis=0, keepdims=True)


def _bn2_add_relu_kernel(y2_ref, ysc_ref, a2_ref, asc_ref, b_ref, o_ref):
    """Pass 3 (tiled over N*H*(W+2) rows, parallel): bn2 + bn_sc + add + ReLU
    with pre-folded scales and a combined shift."""
    o = (y2_ref[...].astype(jnp.float32) * a2_ref[...]
         + ysc_ref[...].astype(jnp.float32) * asc_ref[...]
         + b_ref[...])
    o_ref[...] = jnp.maximum(o, 0.0).astype(o_ref.dtype)


# ------------------------------ wrapper ------------------------------

def _round_up(v, mod):
    return (v + mod - 1) // mod * mod


def _pick_row_tile(p, target):
    """Largest multiple of 8 <= target that divides p (fallback: whole p)."""
    if p <= target:
        return p
    tm = target - target % 8
    while tm >= 8:
        if p % tm == 0:
            return tm
        tm -= 8
    return p


def _prep_w3x3(w, cin_p, cout_p):
    """(Cout, Cin, 3, 3) -> (9, cin_p, cout_p) bf16, tap-major (dy, dx)."""
    cout, cin = w.shape[0], w.shape[1]
    wm = jnp.transpose(w, (2, 3, 1, 0)).reshape(9, cin, cout)
    wm = jnp.pad(wm, ((0, 0), (0, cin_p - cin), (0, cout_p - cout)))
    return wm.astype(jnp.bfloat16)


def _prep_w1x1(w, cin_p, cout_p):
    """(Cout, Cin, 1, 1) -> (cin_p, cout_p) bf16."""
    cout, cin = w.shape[0], w.shape[1]
    wm = jnp.transpose(w[:, :, 0, 0], (1, 0))
    wm = jnp.pad(wm, ((0, cin_p - cin), (0, cout_p - cout)))
    return wm.astype(jnp.bfloat16)


def _fold_bn(stats, count, g, b, cp):
    """Per-image (sum, sumsq) partials -> folded (scale, shift), each (cp,)."""
    s = jnp.sum(stats, axis=0)                        # (2, cp)
    mean = s[0] / count
    var = jnp.maximum(s[1] / count - mean * mean, 0.0)
    inv = lax.rsqrt(var + BN_EPS)
    gp = jnp.pad(g.astype(jnp.float32), (0, cp - g.shape[0]), constant_values=1.0)
    bp = jnp.pad(b.astype(jnp.float32), (0, cp - b.shape[0]))
    scale = inv * gp
    shift = bp - mean * scale
    return scale, shift


@jax.jit
def res_block(x, w1, w2, wsc, g1, b1, g2, b2, gsc, bsc):
    """ResBlock forward (stride=1, projection shortcut). x is NCHW."""
    n, cin, h, w = x.shape
    cout = w1.shape[0]
    cin_p = _round_up(cin, LANES)        # lane-dense contraction dim
    cp = _round_up(cout, LANES)          # lane-dense output dim
    wp = w + 2                           # padded row width
    m = h * wp                           # flat conv-output rows per image
    p2 = (h + 2) * wp                    # flat padded-image rows
    p2e = _round_up(p2 + 2, 8)           # + slack so every tap slice is in range
    s_off = _round_up(wp + 1, 8)         # aligned interior start in pad scratch
    pad_rows = _round_up(s_off + m + wp + 1, 8)
    count = float(n * h * w)

    # NCHW -> NHWC, channel pad to 128 lanes, +1 spatial halo, flatten, bf16.
    x_nhwc = jnp.transpose(x, (0, 2, 3, 1))
    x_nhwc = jnp.pad(x_nhwc, ((0, 0), (0, 0), (0, 0), (0, cin_p - cin)))
    xp = jnp.pad(x_nhwc, ((0, 0), (1, 1), (1, 1), (0, 0)))
    xf = jnp.pad(xp.reshape(n, p2, cin_p), ((0, 0), (0, p2e - p2), (0, 0)))
    xf = xf.astype(jnp.bfloat16)         # cast once; MXU consumes bf16 natively

    # 0/1 interior-column mask for the flat (h, w+2) row layout.
    mask = (jnp.arange(m, dtype=jnp.int32) % wp < w).astype(jnp.float32)
    mask = mask.reshape(m, 1)

    w1m = _prep_w3x3(w1, cin_p, cp)
    w2m = _prep_w3x3(w2, cp, cp)
    wscm = _prep_w1x1(wsc, cin_p, cp)

    const2 = lambda i: (0, 0)
    const3 = lambda i: (0, 0, 0)

    # ---- pass 1: conv1 + 1x1 shortcut + per-image BN partial sums ----
    y1, ysc, s1, ssc = pl.pallas_call(
        partial(_conv1_shortcut_kernel, wp=wp, m=m),
        grid=(n,),
        in_specs=[
            pl.BlockSpec((1, p2e, cin_p), lambda i: (i, 0, 0)),
            pl.BlockSpec((m, 1), const2),
            pl.BlockSpec((9, cin_p, cp), const3),    # resident weights
            pl.BlockSpec((cin_p, cp), const2),       # resident weights
        ],
        out_specs=[
            pl.BlockSpec((1, m, cp), lambda i: (i, 0, 0)),
            pl.BlockSpec((1, m, cp), lambda i: (i, 0, 0)),
            pl.BlockSpec((1, 2, cp), lambda i: (i, 0, 0)),
            pl.BlockSpec((1, 2, cp), lambda i: (i, 0, 0)),
        ],
        out_shape=(
            jax.ShapeDtypeStruct((n, m, cp), jnp.bfloat16),
            jax.ShapeDtypeStruct((n, m, cp), jnp.bfloat16),
            jax.ShapeDtypeStruct((n, 2, cp), jnp.float32),
            jax.ShapeDtypeStruct((n, 2, cp), jnp.float32),
        ),
        compiler_params=pltpu.CompilerParams(
            dimension_semantics=("parallel",),
            vmem_limit_bytes=VMEM_LIMIT),
    )(xf, mask, w1m, wscm)

    scale1, shift1 = _fold_bn(s1, count, g1, b1, cp)
    ab1 = jnp.stack([scale1, shift1], axis=0)        # (2, cp)

    # ---- pass 2: bn1 + ReLU + conv2 fused + per-image bn2 partial sums ----
    y2, s2 = pl.pallas_call(
        partial(_bn1_relu_conv2_kernel, wp=wp, m=m, s_off=s_off),
        grid=(n,),
        in_specs=[
            pl.BlockSpec((1, m, cp), lambda i: (i, 0, 0)),
            pl.BlockSpec((m, 1), const2),
            pl.BlockSpec((2, cp), const2),
            pl.BlockSpec((9, cp, cp), const3),       # resident weights
        ],
        out_specs=[
            pl.BlockSpec((1, m, cp), lambda i: (i, 0, 0)),
            pl.BlockSpec((1, 2, cp), lambda i: (i, 0, 0)),
        ],
        out_shape=(
            jax.ShapeDtypeStruct((n, m, cp), jnp.bfloat16),
            jax.ShapeDtypeStruct((n, 2, cp), jnp.float32),
        ),
        scratch_shapes=[pltpu.VMEM((pad_rows, cp), jnp.bfloat16)],
        compiler_params=pltpu.CompilerParams(
            dimension_semantics=("parallel",),
            vmem_limit_bytes=VMEM_LIMIT),
    )(y1, mask, ab1, w2m)

    scale2, shift2 = _fold_bn(s2, count, g2, b2, cp)
    scalesc, shiftsc = _fold_bn(ssc, count, gsc, bsc, cp)
    a2 = scale2.reshape(1, cp)
    asc = scalesc.reshape(1, cp)
    b_sum = (shift2 + shiftsc).reshape(1, cp)

    # ---- pass 3: bn2 + bn_sc + add + ReLU, tiled over N*H*(W+2) rows ----
    p3 = n * m
    target = 2048 if VMEM_LIMIT >= (80 << 20) else 1024
    tm = _pick_row_tile(p3, target)
    out_f = pl.pallas_call(
        _bn2_add_relu_kernel,
        grid=(p3 // tm,),
        in_specs=[
            pl.BlockSpec((tm, cp), lambda i: (i, 0)),
            pl.BlockSpec((tm, cp), lambda i: (i, 0)),
            pl.BlockSpec((1, cp), const2),
            pl.BlockSpec((1, cp), const2),
            pl.BlockSpec((1, cp), const2),
        ],
        out_specs=pl.BlockSpec((tm, cp), lambda i: (i, 0)),
        out_shape=jax.ShapeDtypeStruct((p3, cp), jnp.float32),
        compiler_params=pltpu.CompilerParams(
            dimension_semantics=("parallel",),       # shards over v7x's 2 TCs
            vmem_limit_bytes=VMEM_LIMIT),
    )(y2.reshape(p3, cp), ysc.reshape(p3, cp), a2, asc, b_sum)

    # Drop the 2 garbage columns and the padded lanes, back to NCHW.
    out = out_f.reshape(n, h, wp, cp)[:, :, :w, :cout]
    return jnp.transpose(out, (0, 3, 1, 2))


# ------------------------------ reference ------------------------------

def _reference(x, w1, w2, wsc, g1, b1, g2, b2, gsc, bsc):
    dn = ("NCHW", "OIHW", "NCHW")

    def bn_train(y, g, b):
        mean = jnp.mean(y, axis=(0, 2, 3), keepdims=True)
        var = jnp.mean((y - mean) ** 2, axis=(0, 2, 3), keepdims=True)
        yn = (y - mean) * lax.rsqrt(var + BN_EPS)
        return yn * g.reshape(1, -1, 1, 1) + b.reshape(1, -1, 1, 1)

    y = lax.conv_general_dilated(x, w1, (1, 1), [(1, 1), (1, 1)],
                                 dimension_numbers=dn)
    y = jnp.maximum(bn_train(y, g1, b1), 0.0)
    y = lax.conv_general_dilated(y, w2, (1, 1), [(1, 1), (1, 1)],
                                 dimension_numbers=dn)
    y = bn_train(y, g2, b2)
    sc = lax.conv_general_dilated(x, wsc, (1, 1), [(0, 0), (0, 0)],
                                  dimension_numbers=dn)
    sc = bn_train(sc, gsc, bsc)
    return jnp.maximum(y + sc, 0.0)


# ------------------------------ main ------------------------------

if __name__ == "__main__":
    in_planes, planes = 4, 8
    N, H, W = 2, 16, 16

    key = jax.random.PRNGKey(0)
    kx, k1, k2, k3 = jax.random.split(key, 4)

    # kaiming_normal_(mode='fan_out', nonlinearity='relu'): std = sqrt(2 / (Cout*kh*kw))
    w1 = jax.random.normal(k1, (planes, in_planes, 3, 3), jnp.float32) * float(np.sqrt(2.0 / (planes * 9)))
    w2 = jax.random.normal(k2, (planes, planes, 3, 3), jnp.float32) * float(np.sqrt(2.0 / (planes * 9)))
    wsc = jax.random.normal(k3, (planes, in_planes, 1, 1), jnp.float32) * float(np.sqrt(2.0 / planes))
    ones = jnp.ones((planes,), jnp.float32)    # BN weight = 1
    zeros = jnp.zeros((planes,), jnp.float32)  # BN bias = 0

    x = jax.random.normal(kx, (N, in_planes, H, W), jnp.float32)

    out = jax.block_until_ready(
        res_block(x, w1, w2, wsc, ones, zeros, ones, zeros, ones, zeros))
    ref = jax.block_until_ready(
        _reference(x, w1, w2, wsc, ones, zeros, ones, zeros, ones, zeros))

    assert out.shape == (N, planes, H, W), out.shape
    # bf16 operands/intermediates (f32 accumulation) vs f32 reference.
    np.testing.assert_allclose(np.asarray(out), np.asarray(ref),
                               rtol=5e-2, atol=5e-2)
    print("KERNEL_OK")
</pallas_src>

<mosaic_0001>
module attributes {stable_mosaic.version = 11 : i64} {
  func.func @_conv1_shortcut_kernel(%arg0: i32, %arg1: memref<1x328x128xbf16, #tpu.memory_space<vmem>>, %arg2: memref<288x1xf32, #tpu.memory_space<vmem>>, %arg3: memref<9x128x128xbf16, #tpu.memory_space<vmem>>, %arg4: memref<128x128xbf16, #tpu.memory_space<vmem>>, %arg5: memref<1x288x128xbf16, #tpu.memory_space<vmem>>, %arg6: memref<1x288x128xbf16, #tpu.memory_space<vmem>>, %arg7: memref<1x2x128xf32, #tpu.memory_space<vmem>>, %arg8: memref<1x2x128xf32, #tpu.memory_space<vmem>>) attributes {dimension_semantics = [#tpu.dimension_semantics<parallel>], iteration_bounds = array<i64: 2>, scalar_prefetch = 0 : i64, scratch_operands = 0 : i64, tpu.core_type = #tpu.core_type<tc>, window_params = [{transform_indices = @transform_0, window_bounds = array<i64: 1, 328, 128>}, {pipeline_mode = #tpu.pipeline_mode<synchronous>, transform_indices = @transform_1, window_bounds = array<i64: 288, 1>}, {pipeline_mode = #tpu.pipeline_mode<synchronous>, transform_indices = @transform_2, window_bounds = array<i64: 9, 128, 128>}, {pipeline_mode = #tpu.pipeline_mode<synchronous>, transform_indices = @transform_3, window_bounds = array<i64: 128, 128>}, {transform_indices = @transform_4, window_bounds = array<i64: 1, 288, 128>}, {transform_indices = @transform_5, window_bounds = array<i64: 1, 288, 128>}, {transform_indices = @transform_6, window_bounds = array<i64: 1, 2, 128>}, {transform_indices = @transform_7, window_bounds = array<i64: 1, 2, 128>}]} {
    %c0 = arith.constant 0 : index
    %c0_0 = arith.constant 0 : index
    %0 = vector.load %arg2[%c0, %c0_0] : memref<288x1xf32, #tpu.memory_space<vmem>>, vector<288x1xf32>
    %cst = arith.constant 0.000000e+00 : f32
    %1 = vector.broadcast %cst : f32 to vector<288x1xf32>
    %2 = arith.cmpf ogt, %0, %1 : vector<288x1xf32>
    %c0_1 = arith.constant 0 : index
    %c0_2 = arith.constant 0 : index
    %c0_3 = arith.constant 0 : index
    %3 = vector.load %arg1[%c0_1, %c0_2, %c0_3] : memref<1x328x128xbf16, #tpu.memory_space<vmem>>, vector<1x288x128xbf16>
    %4 = vector.shape_cast %3 : vector<1x288x128xbf16> to vector<288x128xbf16>
    %c0_4 = arith.constant 0 : index
    %c0_5 = arith.constant 0 : index
    %c0_6 = arith.constant 0 : index
    %5 = vector.load %arg3[%c0_4, %c0_5, %c0_6] : memref<9x128x128xbf16, #tpu.memory_space<vmem>>, vector<1x128x128xbf16>
    %6 = vector.shape_cast %5 : vector<1x128x128xbf16> to vector<128x128xbf16>
    %cst_7 = arith.constant dense<0.000000e+00> : vector<288x128xf32>
    %7 = tpu.matmul %4, %6, %cst_7 {dimension_numbers = #tpu.dot_dimension_numbers<[1], [0], [0], [1], [0, 0, 1, 1], [], []>} : vector<288x128xbf16>, vector<128x128xbf16>, vector<288x128xf32> -> vector<288x128xf32>
    %c0_8 = arith.constant 0 : index
    %c1 = arith.constant 1 : index
    %c0_9 = arith.constant 0 : index
    %8 = vector.load %arg1[%c0_8, %c1, %c0_9] : memref<1x328x128xbf16, #tpu.memory_space<vmem>>, vector<1x288x128xbf16>
    %9 = vector.shape_cast %8 : vector<1x288x128xbf16> to vector<288x128xbf16>
    %c1_10 = arith.constant 1 : index
    %c0_11 = arith.constant 0 : index
    %c0_12 = arith.constant 0 : index
    %10 = vector.load %arg3[%c1_10, %c0_11, %c0_12] : memref<9x128x128xbf16, #tpu.memory_space<vmem>>, vector<1x128x128xbf16>
    %11 = vector.shape_cast %10 : vector<1x128x128xbf16> to vector<128x128xbf16>
    %cst_13 = arith.constant dense<0.000000e+00> : vector<288x128xf32>
    %12 = tpu.matmul %9, %11, %cst_13 {dimension_numbers = #tpu.dot_dimension_numbers<[1], [0], [0], [1], [0, 0, 1, 1], [], []>} : vector<288x128xbf16>, vector<128x128xbf16>, vector<288x128xf32> -> vector<288x128xf32>
    %13 = arith.addf %7, %12 : vector<288x128xf32>
    %c0_14 = arith.constant 0 : index
    %c2 = arith.constant 2 : index
    %c0_15 = arith.constant 0 : index
    %14 = vector.load %arg1[%c0_14, %c2, %c0_15] : memref<1x328x128xbf16, #tpu.memory_space<vmem>>, vector<1x288x128xbf16>
    %15 = vector.shape_cast %14 : vector<1x288x128xbf16> to vector<288x128xbf16>
    %c2_16 = arith.constant 2 : index
    %c0_17 = arith.constant 0 : index
    %c0_18 = arith.constant 0 : index
    %16 = vector.load %arg3[%c2_16, %c0_17, %c0_18] : memref<9x128x128xbf16, #tpu.memory_space<vmem>>, vector<1x128x128xbf16>
    %17 = vector.shape_cast %16 : vector<1x128x128xbf16> to vector<128x128xbf16>
    %cst_19 = arith.constant dense<0.000000e+00> : vector<288x128xf32>
    %18 = tpu.matmul %15, %17, %cst_19 {dimension_numbers = #tpu.dot_dimension_numbers<[1], [0], [0], [1], [0, 0, 1, 1], [], []>} : vector<288x128xbf16>, vector<128x128xbf16>, vector<288x128xf32> -> vector<288x128xf32>
    %19 = arith.addf %13, %18 : vector<288x128xf32>
    %c0_20 = arith.constant 0 : index
    %c18 = arith.constant 18 : index
    %c0_21 = arith.constant 0 : index
    %20 = vector.load %arg1[%c0_20, %c18, %c0_21] : memref<1x328x128xbf16, #tpu.memory_space<vmem>>, vector<1x288x128xbf16>
    %21 = vector.shape_cast %20 : vector<1x288x128xbf16> to vector<288x128xbf16>
    %c3 = arith.constant 3 : index
    %c0_22 = arith.constant 0 : index
    %c0_23 = arith.constant 0 : index
    %22 = vector.load %arg3[%c3, %c0_22, %c0_23] : memref<9x128x128xbf16, #tpu.memory_space<vmem>>, vector<1x128x128xbf16>
    %23 = vector.shape_cast %22 : vector<1x128x128xbf16> to vector<128x128xbf16>
    %cst_24 = arith.constant dense<0.000000e+00> : vector<288x128xf32>
    %24 = tpu.matmul %21, %23, %cst_24 {dimension_numbers = #tpu.dot_dimension_numbers<[1], [0], [0], [1], [0, 0, 1, 1], [], []>} : vector<288x128xbf16>, vector<128x128xbf16>, vector<288x128xf32> -> vector<288x128xf32>
    %25 = arith.addf %19, %24 : vector<288x128xf32>
    %c0_25 = arith.constant 0 : index
    %c19 = arith.constant 19 : index
    %c0_26 = arith.constant 0 : index
    %26 = vector.load %arg1[%c0_25, %c19, %c0_26] : memref<1x328x128xbf16, #tpu.memory_space<vmem>>, vector<1x288x128xbf16>
    %27 = vector.shape_cast %26 : vector<1x288x128xbf16> to vector<288x128xbf16>
    %c4 = arith.constant 4 : index
    %c0_27 = arith.constant 0 : index
    %c0_28 = arith.constant 0 : index
    %28 = vector.load %arg3[%c4, %c0_27, %c0_28] : memref<9x128x128xbf16, #tpu.memory_space<vmem>>, vector<1x128x128xbf16>
    %29 = vector.shape_cast %28 : vector<1x128x128xbf16> to vector<128x128xbf16>
    %cst_29 = arith.constant dense<0.000000e+00> : vector<288x128xf32>
    %30 = tpu.matmul %27, %29, %cst_29 {dimension_numbers = #tpu.dot_dimension_numbers<[1], [0], [0], [1], [0, 0, 1, 1], [], []>} : vector<288x128xbf16>, vector<128x128xbf16>, vector<288x128xf32> -> vector<288x128xf32>
    %31 = arith.addf %25, %30 : vector<288x128xf32>
    %c0_30 = arith.constant 0 : index
    %c20 = arith.constant 20 : index
    %c0_31 = arith.constant 0 : index
    %32 = vector.load %arg1[%c0_30, %c20, %c0_31] : memref<1x328x128xbf16, #tpu.memory_space<vmem>>, vector<1x288x128xbf16>
    %33 = vector.shape_cast %32 : vector<1x288x128xbf16> to vector<288x128xbf16>
    %c5 = arith.constant 5 : index
    %c0_32 = arith.constant 0 : index
    %c0_33 = arith.constant 0 : index
    %34 = vector.load %arg3[%c5, %c0_32, %c0_33] : memref<9x128x128xbf16, #tpu.memory_space<vmem>>, vector<1x128x128xbf16>
    %35 = vector.shape_cast %34 : vector<1x128x128xbf16> to vector<128x128xbf16>
    %cst_34 = arith.constant dense<0.000000e+00> : vector<288x128xf32>
    %36 = tpu.matmul %33, %35, %cst_34 {dimension_numbers = #tpu.dot_dimension_numbers<[1], [0], [0], [1], [0, 0, 1, 1], [], []>} : vector<288x128xbf16>, vector<128x128xbf16>, vector<288x128xf32> -> vector<288x128xf32>
    %37 = arith.addf %31, %36 : vector<288x128xf32>
    %c0_35 = arith.constant 0 : index
    %c36 = arith.constant 36 : index
    %c0_36 = arith.constant 0 : index
    %38 = vector.load %arg1[%c0_35, %c36, %c0_36] : memref<1x328x128xbf16, #tpu.memory_space<vmem>>, vector<1x288x128xbf16>
    %39 = vector.shape_cast %38 : vector<1x288x128xbf16> to vector<288x128xbf16>
    %c6 = arith.constant 6 : index
    %c0_37 = arith.constant 0 : index
    %c0_38 = arith.constant 0 : index
    %40 = vector.load %arg3[%c6, %c0_37, %c0_38] : memref<9x128x128xbf16, #tpu.memory_space<vmem>>, vector<1x128x128xbf16>
    %41 = vector.shape_cast %40 : vector<1x128x128xbf16> to vector<128x128xbf16>
    %cst_39 = arith.constant dense<0.000000e+00> : vector<288x128xf32>
    %42 = tpu.matmul %39, %41, %cst_39 {dimension_numbers = #tpu.dot_dimension_numbers<[1], [0], [0], [1], [0, 0, 1, 1], [], []>} : vector<288x128xbf16>, vector<128x128xbf16>, vector<288x128xf32> -> vector<288x128xf32>
    %43 = arith.addf %37, %42 : vector<288x128xf32>
    %c0_40 = arith.constant 0 : index
    %c37 = arith.constant 37 : index
    %c0_41 = arith.constant 0 : index
    %44 = vector.load %arg1[%c0_40, %c37, %c0_41] : memref<1x328x128xbf16, #tpu.memory_space<vmem>>, vector<1x288x128xbf16>
    %45 = vector.shape_cast %44 : vector<1x288x128xbf16> to vector<288x128xbf16>
    %c7 = arith.constant 7 : index
    %c0_42 = arith.constant 0 : index
    %c0_43 = arith.constant 0 : index
    %46 = vector.load %arg3[%c7, %c0_42, %c0_43] : memref<9x128x128xbf16, #tpu.memory_space<vmem>>, vector<1x128x128xbf16>
    %47 = vector.shape_cast %46 : vector<1x128x128xbf16> to vector<128x128xbf16>
    %cst_44 = arith.constant dense<0.000000e+00> : vector<288x128xf32>
    %48 = tpu.matmul %45, %47, %cst_44 {dimension_numbers = #tpu.dot_dimension_numbers<[1], [0], [0], [1], [0, 0, 1, 1], [], []>} : vector<288x128xbf16>, vector<128x128xbf16>, vector<288x128xf32> -> vector<288x128xf32>
    %49 = arith.addf %43, %48 : vector<288x128xf32>
    %c0_45 = arith.constant 0 : index
    %c38 = arith.constant 38 : index
    %c0_46 = arith.constant 0 : index
    %50 = vector.load %arg1[%c0_45, %c38, %c0_46] : memref<1x328x128xbf16, #tpu.memory_space<vmem>>, vector<1x288x128xbf16>
    %51 = vector.shape_cast %50 : vector<1x288x128xbf16> to vector<288x128xbf16>
    %c8 = arith.constant 8 : index
    %c0_47 = arith.constant 0 : index
    %c0_48 = arith.constant 0 : index
    %52 = vector.load %arg3[%c8, %c0_47, %c0_48] : memref<9x128x128xbf16, #tpu.memory_space<vmem>>, vector<1x128x128xbf16>
    %53 = vector.shape_cast %52 : vector<1x128x128xbf16> to vector<128x128xbf16>
    %cst_49 = arith.constant dense<0.000000e+00> : vector<288x128xf32>
    %54 = tpu.matmul %51, %53, %cst_49 {dimension_numbers = #tpu.dot_dimension_numbers<[1], [0], [0], [1], [0, 0, 1, 1], [], []>} : vector<288x128xbf16>, vector<128x128xbf16>, vector<288x128xf32> -> vector<288x128xf32>
    %55 = arith.addf %49, %54 : vector<288x128xf32>
    %cst_50 = arith.constant 0.000000e+00 : f32
    %56 = vector.shape_cast %2 : vector<288x1xi1> to vector<288x1xi1>
    %57 = vector.broadcast %56 : vector<288x1xi1> to vector<288x128xi1>
    %58 = vector.broadcast %cst_50 : f32 to vector<288x128xf32>
    %59 = arith.select %57, %55, %58 : vector<288x128xi1>, vector<288x128xf32>
    %60 = arith.truncf %59 : vector<288x128xf32> to vector<288x128xbf16>
    %c0_51 = arith.constant 0 : index
    %c0_52 = arith.constant 0 : index
    %c0_53 = arith.constant 0 : index
    %61 = vector.load %arg5[%c0_51, %c0_52, %c0_53] : memref<1x288x128xbf16, #tpu.memory_space<vmem>>, vector<1x288x128xbf16>
    %62 = vector.shape_cast %61 : vector<1x288x128xbf16> to vector<288x128xbf16>
    %63 = vector.shape_cast %60 : vector<288x128xbf16> to vector<1x288x128xbf16>
    tpu.vector_store %arg5[%c0_51, %c0_52, %c0_53], %63 {strides = array<i32>} : memref<1x288x128xbf16, #tpu.memory_space<vmem>>, vector<1x288x128xbf16>,
    %cst_54 = arith.constant dense<0.000000e+00> : vector<128xf32>
    %64 = vector.multi_reduction <add>, %59, %cst_54 [0] : vector<288x128xf32> to vector<128xf32>
    %65 = vector.shape_cast %64 : vector<128xf32> to vector<1x128xf32>
    %c0_55 = arith.constant 0 : index
    %c0_56 = arith.constant 0 : index
    %c0_57 = arith.constant 0 : index
    %66 = vector.load %arg7[%c0_55, %c0_56, %c0_57] : memref<1x2x128xf32, #tpu.memory_space<vmem>>, vector<1x1x128xf32>
    %67 = vector.shape_cast %66 : vector<1x1x128xf32> to vector<1x128xf32>
    %68 = vector.shape_cast %65 : vector<1x128xf32> to vector<1x1x128xf32>
    tpu.vector_store %arg7[%c0_55, %c0_56, %c0_57], %68 {strides = array<i32>} : memref<1x2x128xf32, #tpu.memory_space<vmem>>, vector<1x1x128xf32>,
    %69 = arith.mulf %59, %59 : vector<288x128xf32>
    %cst_58 = arith.constant dense<0.000000e+00> : vector<128xf32>
    %70 = vector.multi_reduction <add>, %69, %cst_58 [0] : vector<288x128xf32> to vector<128xf32>
    %71 = vector.shape_cast %70 : vector<128xf32> to vector<1x128xf32>
    %c0_59 = arith.constant 0 : index
    %c1_60 = arith.constant 1 : index
    %c0_61 = arith.constant 0 : index
    %72 = vector.load %arg7[%c0_59, %c1_60, %c0_61] : memref<1x2x128xf32, #tpu.memory_space<vmem>>, vector<1x1x128xf32>
    %73 = vector.shape_cast %72 : vector<1x1x128xf32> to vector<1x128xf32>
    %74 = vector.shape_cast %71 : vector<1x128xf32> to vector<1x1x128xf32>
    tpu.vector_store %arg7[%c0_59, %c1_60, %c0_61], %74 {strides = array<i32>} : memref<1x2x128xf32, #tpu.memory_space<vmem>>, vector<1x1x128xf32>,
    %c0_62 = arith.constant 0 : index
    %c19_63 = arith.constant 19 : index
    %c0_64 = arith.constant 0 : index
    %75 = vector.load %arg1[%c0_62, %c19_63, %c0_64] : memref<1x328x128xbf16, #tpu.memory_space<vmem>>, vector<1x288x128xbf16>
    %76 = vector.shape_cast %75 : vector<1x288x128xbf16> to vector<288x128xbf16>
    %c0_65 = arith.constant 0 : index
    %c0_66 = arith.constant 0 : index
    %77 = vector.load %arg4[%c0_65, %c0_66] : memref<128x128xbf16, #tpu.memory_space<vmem>>, vector<128x128xbf16>
    %cst_67 = arith.constant dense<0.000000e+00> : vector<288x128xf32>
    %78 = tpu.matmul %76, %77, %cst_67 {dimension_numbers = #tpu.dot_dimension_numbers<[1], [0], [0], [1], [0, 0, 1, 1], [], []>} : vector<288x128xbf16>, vector<128x128xbf16>, vector<288x128xf32> -> vector<288x128xf32>
    %79 = arith.truncf %78 : vector<288x128xf32> to vector<288x128xbf16>
    %c0_68 = arith.constant 0 : index
    %c0_69 = arith.constant 0 : index
    %c0_70 = arith.constant 0 : index
    %80 = vector.load %arg6[%c0_68, %c0_69, %c0_70] : memref<1x288x128xbf16, #tpu.memory_space<vmem>>, vector<1x288x128xbf16>
    %81 = vector.shape_cast %80 : vector<1x288x128xbf16> to vector<288x128xbf16>
    %82 = vector.shape_cast %79 : vector<288x128xbf16> to vector<1x288x128xbf16>
    tpu.vector_store %arg6[%c0_68, %c0_69, %c0_70], %82 {strides = array<i32>} : memref<1x288x128xbf16, #tpu.memory_space<vmem>>, vector<1x288x128xbf16>,
    %cst_71 = arith.constant dense<0.000000e+00> : vector<128xf32>
    %83 = vector.multi_reduction <add>, %78, %cst_71 [0] : vector<288x128xf32> to vector<128xf32>
    %84 = vector.shape_cast %83 : vector<128xf32> to vector<1x128xf32>
    %c0_72 = arith.constant 0 : index
    %c0_73 = arith.constant 0 : index
    %c0_74 = arith.constant 0 : index
    %85 = vector.load %arg8[%c0_72, %c0_73, %c0_74] : memref<1x2x128xf32, #tpu.memory_space<vmem>>, vector<1x1x128xf32>
    %86 = vector.shape_cast %85 : vector<1x1x128xf32> to vector<1x128xf32>
    %87 = vector.shape_cast %84 : vector<1x128xf32> to vector<1x1x128xf32>
    tpu.vector_store %arg8[%c0_72, %c0_73, %c0_74], %87 {strides = array<i32>} : memref<1x2x128xf32, #tpu.memory_space<vmem>>, vector<1x1x128xf32>,
    %88 = arith.mulf %78, %78 : vector<288x128xf32>
    %cst_75 = arith.constant dense<0.000000e+00> : vector<128xf32>
    %89 = vector.multi_reduction <add>, %88, %cst_75 [0] : vector<288x128xf32> to vector<128xf32>
    %90 = vector.shape_cast %89 : vector<128xf32> to vector<1x128xf32>
    %c0_76 = arith.constant 0 : index
    %c1_77 = arith.constant 1 : index
    %c0_78 = arith.constant 0 : index
    %91 = vector.load %arg8[%c0_76, %c1_77, %c0_78] : memref<1x2x128xf32, #tpu.memory_space<vmem>>, vector<1x1x128xf32>
    %92 = vector.shape_cast %91 : vector<1x1x128xf32> to vector<1x128xf32>
    %93 = vector.shape_cast %90 : vector<1x128xf32> to vector<1x1x128xf32>
    tpu.vector_store %arg8[%c0_76, %c1_77, %c0_78], %93 {strides = array<i32>} : memref<1x2x128xf32, #tpu.memory_space<vmem>>, vector<1x1x128xf32>,
    return
  }
  func.func @transform_0(%arg0: i32) -> (i32, i32, i32) {
    %c0_i32 = arith.constant 0 : i32
    %c0_i32_0 = arith.constant 0 : i32
    %c0_i32_1 = arith.constant 0 : i32
    return %arg0, %c0_i32, %c0_i32_0 : i32, i32, i32
  }
  func.func @transform_1(%arg0: i32) -> (i32, i32) {
    %c0_i32 = arith.constant 0 : i32
    %c0_i32_0 = arith.constant 0 : i32
    %c0_i32_1 = arith.constant 0 : i32
    return %c0_i32, %c0_i32_0 : i32, i32
  }
  func.func @transform_2(%arg0: i32) -> (i32, i32, i32) {
    %c0_i32 = arith.constant 0 : i32
    %c0_i32_0 = arith.constant 0 : i32
    %c0_i32_1 = arith.constant 0 : i32
    %c0_i32_2 = arith.constant 0 : i32
    return %c0_i32, %c0_i32_0, %c0_i32_1 : i32, i32, i32
  }
  func.func @transform_3(%arg0: i32) -> (i32, i32) {
    %c0_i32 = arith.constant 0 : i32
    %c0_i32_0 = arith.constant 0 : i32
    %c0_i32_1 = arith.constant 0 : i32
    return %c0_i32, %c0_i32_0 : i32, i32
  }
  func.func @transform_4(%arg0: i32) -> (i32, i32, i32) {
    %c0_i32 = arith.constant 0 : i32
    %c0_i32_0 = arith.constant 0 : i32
    %c0_i32_1 = arith.constant 0 : i32
    return %arg0, %c0_i32, %c0_i32_0 : i32, i32, i32
  }
  func.func @transform_5(%arg0: i32) -> (i32, i32, i32) {
    %c0_i32 = arith.constant 0 : i32
    %c0_i32_0 = arith.constant 0 : i32
    %c0_i32_1 = arith.constant 0 : i32
    return %arg0, %c0_i32, %c0_i32_0 : i32, i32, i32
  }
  func.func @transform_6(%arg0: i32) -> (i32, i32, i32) {
    %c0_i32 = arith.constant 0 : i32
    %c0_i32_0 = arith.constant 0 : i32
    %c0_i32_1 = arith.constant 0 : i32
    return %arg0, %c0_i32, %c0_i32_0 : i32, i32, i32
  }
  func.func @transform_7(%arg0: i32) -> (i32, i32, i32) {
    %c0_i32 = arith.constant 0 : i32
    %c0_i32_0 = arith.constant 0 : i32
    %c0_i32_1 = arith.constant 0 : i32
    return %arg0, %c0_i32, %c0_i32_0 : i32, i32, i32
  }
}

module attributes {stable_mosaic.version = 11 : i64} {
  func.func @_bn1_relu_conv2_kernel(%arg0: i32, %arg1: memref<1x288x128xbf16, #tpu.memory_space<vmem>>, %arg2: memref<288x1xf32, #tpu.memory_space<vmem>>, %arg3: memref<2x128xf32, #tpu.memory_space<vmem>>, %arg4: memref<9x128x128xbf16, #tpu.memory_space<vmem>>, %arg5: memref<1x288x128xbf16, #tpu.memory_space<vmem>>, %arg6: memref<1x2x128xf32, #tpu.memory_space<vmem>>, %arg7: memref<336x128xbf16, #tpu.memory_space<vmem>>) attributes {dimension_semantics = [#tpu.dimension_semantics<parallel>], iteration_bounds = array<i64: 2>, scalar_prefetch = 0 : i64, scratch_operands = 1 : i64, tpu.core_type = #tpu.core_type<tc>, window_params = [{transform_indices = @transform_0, window_bounds = array<i64: 1, 288, 128>}, {pipeline_mode = #tpu.pipeline_mode<synchronous>, transform_indices = @transform_1, window_bounds = array<i64: 288, 1>}, {pipeline_mode = #tpu.pipeline_mode<synchronous>, transform_indices = @transform_2, window_bounds = array<i64: 2, 128>}, {pipeline_mode = #tpu.pipeline_mode<synchronous>, transform_indices = @transform_3, window_bounds = array<i64: 9, 128, 128>}, {transform_indices = @transform_4, window_bounds = array<i64: 1, 288, 128>}, {transform_indices = @transform_5, window_bounds = array<i64: 1, 2, 128>}]} {
    %c0 = arith.constant 0 : index
    %c0_0 = arith.constant 0 : index
    %0 = vector.load %arg2[%c0, %c0_0] : memref<288x1xf32, #tpu.memory_space<vmem>>, vector<288x1xf32>
    %cst = arith.constant 0.000000e+00 : f32
    %1 = vector.broadcast %cst : f32 to vector<288x1xf32>
    %2 = arith.cmpf ogt, %0, %1 : vector<288x1xf32>
    %c0_1 = arith.constant 0 : index
    %c0_2 = arith.constant 0 : index
    %c0_3 = arith.constant 0 : index
    %3 = vector.load %arg1[%c0_1, %c0_2, %c0_3] : memref<1x288x128xbf16, #tpu.memory_space<vmem>>, vector<1x288x128xbf16>
    %4 = vector.shape_cast %3 : vector<1x288x128xbf16> to vector<288x128xbf16>
    %5 = arith.extf %4 : vector<288x128xbf16> to vector<288x128xf32>
    %c0_4 = arith.constant 0 : index
    %c0_5 = arith.constant 0 : index
    %6 = vector.load %arg3[%c0_4, %c0_5] : memref<2x128xf32, #tpu.memory_space<vmem>>, vector<1x128xf32>
    %7 = vector.broadcast %6 : vector<1x128xf32> to vector<288x128xf32>
    %8 = arith.mulf %5, %7 : vector<288x128xf32>
    %c1 = arith.constant 1 : index
    %c0_6 = arith.constant 0 : index
    %9 = vector.load %arg3[%c1, %c0_6] : memref<2x128xf32, #tpu.memory_space<vmem>>, vector<1x128xf32>
    %10 = vector.broadcast %9 : vector<1x128xf32> to vector<288x128xf32>
    %11 = arith.addf %8, %10 : vector<288x128xf32>
    %cst_7 = arith.constant 0.000000e+00 : f32
    %12 = vector.broadcast %cst_7 : f32 to vector<288x128xf32>
    %13 = arith.maximumf %11, %12 : vector<288x128xf32>
    %cst_8 = arith.constant 0.000000e+00 : f32
    %14 = vector.shape_cast %2 : vector<288x1xi1> to vector<288x1xi1>
    %15 = vector.broadcast %14 : vector<288x1xi1> to vector<288x128xi1>
    %16 = vector.broadcast %cst_8 : f32 to vector<288x128xf32>
    %17 = arith.select %15, %13, %16 : vector<288x128xi1>, vector<288x128xf32>
    %cst_9 = arith.constant 0.000000e+00 : bf16
    %18 = vector.broadcast %cst_9 : bf16 to vector<24x128xbf16>
    %c0_10 = arith.constant 0 : index
    %c0_11 = arith.constant 0 : index
    %19 = vector.load %arg7[%c0_10, %c0_11] : memref<336x128xbf16, #tpu.memory_space<vmem>>, vector<24x128xbf16>
    tpu.vector_store %arg7[%c0_10, %c0_11], %18 {strides = array<i32>} : memref<336x128xbf16, #tpu.memory_space<vmem>>, vector<24x128xbf16>,
    %20 = arith.truncf %17 : vector<288x128xf32> to vector<288x128xbf16>
    %c24 = arith.constant 24 : index
    %c0_12 = arith.constant 0 : index
    %21 = vector.load %arg7[%c24, %c0_12] : memref<336x128xbf16, #tpu.memory_space<vmem>>, vector<288x128xbf16>
    tpu.vector_store %arg7[%c24, %c0_12], %20 {strides = array<i32>} : memref<336x128xbf16, #tpu.memory_space<vmem>>, vector<288x128xbf16>,
    %cst_13 = arith.constant 0.000000e+00 : bf16
    %22 = vector.broadcast %cst_13 : bf16 to vector<24x128xbf16>
    %c312 = arith.constant 312 : index
    %c0_14 = arith.constant 0 : index
    %23 = vector.load %arg7[%c312, %c0_14] : memref<336x128xbf16, #tpu.memory_space<vmem>>, vector<24x128xbf16>
    tpu.vector_store %arg7[%c312, %c0_14], %22 {strides = array<i32>} : memref<336x128xbf16, #tpu.memory_space<vmem>>, vector<24x128xbf16>,
    %c5 = arith.constant 5 : index
    %c0_15 = arith.constant 0 : index
    %24 = vector.load %arg7[%c5, %c0_15] : memref<336x128xbf16, #tpu.memory_space<vmem>>, vector<288x128xbf16>
    %c0_16 = arith.constant 0 : index
    %c0_17 = arith.constant 0 : index
    %c0_18 = arith.constant 0 : index
    %25 = vector.load %arg4[%c0_16, %c0_17, %c0_18] : memref<9x128x128xbf16, #tpu.memory_space<vmem>>, vector<1x128x128xbf16>
    %26 = vector.shape_cast %25 : vector<1x128x128xbf16> to vector<128x128xbf16>
    %cst_19 = arith.constant dense<0.000000e+00> : vector<288x128xf32>
    %27 = tpu.matmul %24, %26, %cst_19 {dimension_numbers = #tpu.dot_dimension_numbers<[1], [0], [0], [1], [0, 0, 1, 1], [], []>} : vector<288x128xbf16>, vector<128x128xbf16>, vector<288x128xf32> -> vector<288x128xf32>
    %c6 = arith.constant 6 : index
    %c0_20 = arith.constant 0 : index
    %28 = vector.load %arg7[%c6, %c0_20] : memref<336x128xbf16, #tpu.memory_space<vmem>>, vector<288x128xbf16>
    %c1_21 = arith.constant 1 : index
    %c0_22 = arith.constant 0 : index
    %c0_23 = arith.constant 0 : index
    %29 = vector.load %arg4[%c1_21, %c0_22, %c0_23] : memref<9x128x128xbf16, #tpu.memory_space<vmem>>, vector<1x128x128xbf16>
    %30 = vector.shape_cast %29 : vector<1x128x128xbf16> to vector<128x128xbf16>
    %cst_24 = arith.constant dense<0.000000e+00> : vector<288x128xf32>
    %31 = tpu.matmul %28, %30, %cst_24 {dimension_numbers = #tpu.dot_dimension_numbers<[1], [0], [0], [1], [0, 0, 1, 1], [], []>} : vector<288x128xbf16>, vector<128x128xbf16>, vector<288x128xf32> -> vector<288x128xf32>
    %32 = arith.addf %27, %31 : vector<288x128xf32>
    %c7 = arith.constant 7 : index
    %c0_25 = arith.constant 0 : index
    %33 = vector.load %arg7[%c7, %c0_25] : memref<336x128xbf16, #tpu.memory_space<vmem>>, vector<288x128xbf16>
    %c2 = arith.constant 2 : index
    %c0_26 = arith.constant 0 : index
    %c0_27 = arith.constant 0 : index
    %34 = vector.load %arg4[%c2, %c0_26, %c0_27] : memref<9x128x128xbf16, #tpu.memory_space<vmem>>, vector<1x128x128xbf16>
    %35 = vector.shape_cast %34 : vector<1x128x128xbf16> to vector<128x128xbf16>
    %cst_28 = arith.constant dense<0.000000e+00> : vector<288x128xf32>
    %36 = tpu.matmul %33, %35, %cst_28 {dimension_numbers = #tpu.dot_dimension_numbers<[1], [0], [0], [1], [0, 0, 1, 1], [], []>} : vector<288x128xbf16>, vector<128x128xbf16>, vector<288x128xf32> -> vector<288x128xf32>
    %37 = arith.addf %32, %36 : vector<288x128xf32>
    %c23 = arith.constant 23 : index
    %c0_29 = arith.constant 0 : index
    %38 = vector.load %arg7[%c23, %c0_29] : memref<336x128xbf16, #tpu.memory_space<vmem>>, vector<288x128xbf16>
    %c3 = arith.constant 3 : index
    %c0_30 = arith.constant 0 : index
    %c0_31 = arith.constant 0 : index
    %39 = vector.load %arg4[%c3, %c0_30, %c0_31] : memref<9x128x128xbf16, #tpu.memory_space<vmem>>, vector<1x128x128xbf16>
    %40 = vector.shape_cast %39 : vector<1x128x128xbf16> to vector<128x128xbf16>
    %cst_32 = arith.constant dense<0.000000e+00> : vector<288x128xf32>
    %41 = tpu.matmul %38, %40, %cst_32 {dimension_numbers = #tpu.dot_dimension_numbers<[1], [0], [0], [1], [0, 0, 1, 1], [], []>} : vector<288x128xbf16>, vector<128x128xbf16>, vector<288x128xf32> -> vector<288x128xf32>
    %42 = arith.addf %37, %41 : vector<288x128xf32>
    %c24_33 = arith.constant 24 : index
    %c0_34 = arith.constant 0 : index
    %43 = vector.load %arg7[%c24_33, %c0_34] : memref<336x128xbf16, #tpu.memory_space<vmem>>, vector<288x128xbf16>
    %c4 = arith.constant 4 : index
    %c0_35 = arith.constant 0 : index
    %c0_36 = arith.constant 0 : index
    %44 = vector.load %arg4[%c4, %c0_35, %c0_36] : memref<9x128x128xbf16, #tpu.memory_space<vmem>>, vector<1x128x128xbf16>
    %45 = vector.shape_cast %44 : vector<1x128x128xbf16> to vector<128x128xbf16>
    %cst_37 = arith.constant dense<0.000000e+00> : vector<288x128xf32>
    %46 = tpu.matmul %43, %45, %cst_37 {dimension_numbers = #tpu.dot_dimension_numbers<[1], [0], [0], [1], [0, 0, 1, 1], [], []>} : vector<288x128xbf16>, vector<128x128xbf16>, vector<288x128xf32> -> vector<288x128xf32>
    %47 = arith.addf %42, %46 : vector<288x128xf32>
    %c25 = arith.constant 25 : index
    %c0_38 = arith.constant 0 : index
    %48 = vector.load %arg7[%c25, %c0_38] : memref<336x128xbf16, #tpu.memory_space<vmem>>, vector<288x128xbf16>
    %c5_39 = arith.constant 5 : index
    %c0_40 = arith.constant 0 : index
    %c0_41 = arith.constant 0 : index
    %49 = vector.load %arg4[%c5_39, %c0_40, %c0_41] : memref<9x128x128xbf16, #tpu.memory_space<vmem>>, vector<1x128x128xbf16>
    %50 = vector.shape_cast %49 : vector<1x128x128xbf16> to vector<128x128xbf16>
    %cst_42 = arith.constant dense<0.000000e+00> : vector<288x128xf32>
    %51 = tpu.matmul %48, %50, %cst_42 {dimension_numbers = #tpu.dot_dimension_numbers<[1], [0], [0], [1], [0, 0, 1, 1], [], []>} : vector<288x128xbf16>, vector<128x128xbf16>, vector<288x128xf32> -> vector<288x128xf32>
    %52 = arith.addf %47, %51 : vector<288x128xf32>
    %c41 = arith.constant 41 : index
    %c0_43 = arith.constant 0 : index
    %53 = vector.load %arg7[%c41, %c0_43] : memref<336x128xbf16, #tpu.memory_space<vmem>>, vector<288x128xbf16>
    %c6_44 = arith.constant 6 : index
    %c0_45 = arith.constant 0 : index
    %c0_46 = arith.constant 0 : index
    %54 = vector.load %arg4[%c6_44, %c0_45, %c0_46] : memref<9x128x128xbf16, #tpu.memory_space<vmem>>, vector<1x128x128xbf16>
    %55 = vector.shape_cast %54 : vector<1x128x128xbf16> to vector<128x128xbf16>
    %cst_47 = arith.constant dense<0.000000e+00> : vector<288x128xf32>
    %56 = tpu.matmul %53, %55, %cst_47 {dimension_numbers = #tpu.dot_dimension_numbers<[1], [0], [0], [1], [0, 0, 1, 1], [], []>} : vector<288x128xbf16>, vector<128x128xbf16>, vector<288x128xf32> -> vector<288x128xf32>
    %57 = arith.addf %52, %56 : vector<288x128xf32>
    %c42 = arith.constant 42 : index
    %c0_48 = arith.constant 0 : index
    %58 = vector.load %arg7[%c42, %c0_48] : memref<336x128xbf16, #tpu.memory_space<vmem>>, vector<288x128xbf16>
    %c7_49 = arith.constant 7 : index
    %c0_50 = arith.constant 0 : index
    %c0_51 = arith.constant 0 : index
    %59 = vector.load %arg4[%c7_49, %c0_50, %c0_51] : memref<9x128x128xbf16, #tpu.memory_space<vmem>>, vector<1x128x128xbf16>
    %60 = vector.shape_cast %59 : vector<1x128x128xbf16> to vector<128x128xbf16>
    %cst_52 = arith.constant dense<0.000000e+00> : vector<288x128xf32>
    %61 = tpu.matmul %58, %60, %cst_52 {dimension_numbers = #tpu.dot_dimension_numbers<[1], [0], [0], [1], [0, 0, 1, 1], [], []>} : vector<288x128xbf16>, vector<128x128xbf16>, vector<288x128xf32> -> vector<288x128xf32>
    %62 = arith.addf %57, %61 : vector<288x128xf32>
    %c43 = arith.constant 43 : index
    %c0_53 = arith.constant 0 : index
    %63 = vector.load %arg7[%c43, %c0_53] : memref<336x128xbf16, #tpu.memory_space<vmem>>, vector<288x128xbf16>
    %c8 = arith.constant 8 : index
    %c0_54 = arith.constant 0 : index
    %c0_55 = arith.constant 0 : index
    %64 = vector.load %arg4[%c8, %c0_54, %c0_55] : memref<9x128x128xbf16, #tpu.memory_space<vmem>>, vector<1x128x128xbf16>
    %65 = vector.shape_cast %64 : vector<1x128x128xbf16> to vector<128x128xbf16>
    %cst_56 = arith.constant dense<0.000000e+00> : vector<288x128xf32>
    %66 = tpu.matmul %63, %65, %cst_56 {dimension_numbers = #tpu.dot_dimension_numbers<[1], [0], [0], [1], [0, 0, 1, 1], [], []>} : vector<288x128xbf16>, vector<128x128xbf16>, vector<288x128xf32> -> vector<288x128xf32>
    %67 = arith.addf %62, %66 : vector<288x128xf32>
    %cst_57 = arith.constant 0.000000e+00 : f32
    %68 = vector.shape_cast %2 : vector<288x1xi1> to vector<288x1xi1>
    %69 = vector.broadcast %68 : vector<288x1xi1> to vector<288x128xi1>
    %70 = vector.broadcast %cst_57 : f32 to vector<288x128xf32>
    %71 = arith.select %69, %67, %70 : vector<288x128xi1>, vector<288x128xf32>
    %72 = arith.truncf %71 : vector<288x128xf32> to vector<288x128xbf16>
    %c0_58 = arith.constant 0 : index
    %c0_59 = arith.constant 0 : index
    %c0_60 = arith.constant 0 : index
    %73 = vector.load %arg5[%c0_58, %c0_59, %c0_60] : memref<1x288x128xbf16, #tpu.memory_space<vmem>>, vector<1x288x128xbf16>
    %74 = vector.shape_cast %73 : vector<1x288x128xbf16> to vector<288x128xbf16>
    %75 = vector.shape_cast %72 : vector<288x128xbf16> to vector<1x288x128xbf16>
    tpu.vector_store %arg5[%c0_58, %c0_59, %c0_60], %75 {strides = array<i32>} : memref<1x288x128xbf16, #tpu.memory_space<vmem>>, vector<1x288x128xbf16>,
    %cst_61 = arith.constant dense<0.000000e+00> : vector<128xf32>
    %76 = vector.multi_reduction <add>, %71, %cst_61 [0] : vector<288x128xf32> to vector<128xf32>
    %77 = vector.shape_cast %76 : vector<128xf32> to vector<1x128xf32>
    %c0_62 = arith.constant 0 : index
    %c0_63 = arith.constant 0 : index
    %c0_64 = arith.constant 0 : index
    %78 = vector.load %arg6[%c0_62, %c0_63, %c0_64] : memref<1x2x128xf32, #tpu.memory_space<vmem>>, vector<1x1x128xf32>
    %79 = vector.shape_cast %78 : vector<1x1x128xf32> to vector<1x128xf32>
    %80 = vector.shape_cast %77 : vector<1x128xf32> to vector<1x1x128xf32>
    tpu.vector_store %arg6[%c0_62, %c0_63, %c0_64], %80 {strides = array<i32>} : memref<1x2x128xf32, #tpu.memory_space<vmem>>, vector<1x1x128xf32>,
    %81 = arith.mulf %71, %71 : vector<288x128xf32>
    %cst_65 = arith.constant dense<0.000000e+00> : vector<128xf32>
    %82 = vector.multi_reduction <add>, %81, %cst_65 [0] : vector<288x128xf32> to vector<128xf32>
    %83 = vector.shape_cast %82 : vector<128xf32> to vector<1x128xf32>
    %c0_66 = arith.constant 0 : index
    %c1_67 = arith.constant 1 : index
    %c0_68 = arith.constant 0 : index
    %84 = vector.load %arg6[%c0_66, %c1_67, %c0_68] : memref<1x2x128xf32, #tpu.memory_space<vmem>>, vector<1x1x128xf32>
    %85 = vector.shape_cast %84 : vector<1x1x128xf32> to vector<1x128xf32>
    %86 = vector.shape_cast %83 : vector<1x128xf32> to vector<1x1x128xf32>
    tpu.vector_store %arg6[%c0_66, %c1_67, %c0_68], %86 {strides = array<i32>} : memref<1x2x128xf32, #tpu.memory_space<vmem>>, vector<1x1x128xf32>,
    return
  }
  func.func @transform_0(%arg0: i32) -> (i32, i32, i32) {
    %c0_i32 = arith.constant 0 : i32
    %c0_i32_0 = arith.constant 0 : i32
    %c0_i32_1 = arith.constant 0 : i32
    return %arg0, %c0_i32, %c0_i32_0 : i32, i32, i32
  }
  func.func @transform_1(%arg0: i32) -> (i32, i32) {
    %c0_i32 = arith.constant 0 : i32
    %c0_i32_0 = arith.constant 0 : i32
    %c0_i32_1 = arith.constant 0 : i32
    return %c0_i32, %c0_i32_0 : i32, i32
  }
  func.func @transform_2(%arg0: i32) -> (i32, i32) {
    %c0_i32 = arith.constant 0 : i32
    %c0_i32_0 = arith.constant 0 : i32
    %c0_i32_1 = arith.constant 0 : i32
    return %c0_i32, %c0_i32_0 : i32, i32
  }
  func.func @transform_3(%arg0: i32) -> (i32, i32, i32) {
    %c0_i32 = arith.constant 0 : i32
    %c0_i32_0 = arith.constant 0 : i32
    %c0_i32_1 = arith.constant 0 : i32
    %c0_i32_2 = arith.constant 0 : i32
    return %c0_i32, %c0_i32_0, %c0_i32_1 : i32, i32, i32
  }
  func.func @transform_4(%arg0: i32) -> (i32, i32, i32) {
    %c0_i32 = arith.constant 0 : i32
    %c0_i32_0 = arith.constant 0 : i32
    %c0_i32_1 = arith.constant 0 : i32
    return %arg0, %c0_i32, %c0_i32_0 : i32, i32, i32
  }
  func.func @transform_5(%arg0: i32) -> (i32, i32, i32) {
    %c0_i32 = arith.constant 0 : i32
    %c0_i32_0 = arith.constant 0 : i32
    %c0_i32_1 = arith.constant 0 : i32
    return %arg0, %c0_i32, %c0_i32_0 : i32, i32, i32
  }
}

module attributes {stable_mosaic.version = 11 : i64} {
  func.func @_bn2_add_relu_kernel(%arg0: i32, %arg1: memref<576x128xbf16, #tpu.memory_space<vmem>>, %arg2: memref<576x128xbf16, #tpu.memory_space<vmem>>, %arg3: memref<1x128xf32, #tpu.memory_space<vmem>>, %arg4: memref<1x128xf32, #tpu.memory_space<vmem>>, %arg5: memref<1x128xf32, #tpu.memory_space<vmem>>, %arg6: memref<576x128xf32, #tpu.memory_space<vmem>>) attributes {dimension_semantics = [#tpu.dimension_semantics<parallel>], iteration_bounds = array<i64: 1>, scalar_prefetch = 0 : i64, scratch_operands = 0 : i64, tpu.core_type = #tpu.core_type<tc>, window_params = [{transform_indices = @transform_0, window_bounds = array<i64: 576, 128>}, {transform_indices = @transform_1, window_bounds = array<i64: 576, 128>}, {pipeline_mode = #tpu.pipeline_mode<synchronous>, transform_indices = @transform_2, window_bounds = array<i64: 1, 128>}, {pipeline_mode = #tpu.pipeline_mode<synchronous>, transform_indices = @transform_3, window_bounds = array<i64: 1, 128>}, {pipeline_mode = #tpu.pipeline_mode<synchronous>, transform_indices = @transform_4, window_bounds = array<i64: 1, 128>}, {transform_indices = @transform_5, window_bounds = array<i64: 576, 128>}]} {
    %c0 = arith.constant 0 : index
    %c0_0 = arith.constant 0 : index
    %0 = vector.load %arg1[%c0, %c0_0] : memref<576x128xbf16, #tpu.memory_space<vmem>>, vector<576x128xbf16>
    %1 = arith.extf %0 : vector<576x128xbf16> to vector<576x128xf32>
    %c0_1 = arith.constant 0 : index
    %c0_2 = arith.constant 0 : index
    %2 = vector.load %arg3[%c0_1, %c0_2] : memref<1x128xf32, #tpu.memory_space<vmem>>, vector<1x128xf32>
    %3 = vector.broadcast %2 : vector<1x128xf32> to vector<576x128xf32>
    %4 = arith.mulf %1, %3 : vector<576x128xf32>
    %c0_3 = arith.constant 0 : index
    %c0_4 = arith.constant 0 : index
    %5 = vector.load %arg2[%c0_3, %c0_4] : memref<576x128xbf16, #tpu.memory_space<vmem>>, vector<576x128xbf16>
    %6 = arith.extf %5 : vector<576x128xbf16> to vector<576x128xf32>
    %c0_5 = arith.constant 0 : index
    %c0_6 = arith.constant 0 : index
    %7 = vector.load %arg4[%c0_5, %c0_6] : memref<1x128xf32, #tpu.memory_space<vmem>>, vector<1x128xf32>
    %8 = vector.broadcast %7 : vector<1x128xf32> to vector<576x128xf32>
    %9 = arith.mulf %6, %8 : vector<576x128xf32>
    %10 = arith.addf %4, %9 : vector<576x128xf32>
    %c0_7 = arith.constant 0 : index
    %c0_8 = arith.constant 0 : index
    %11 = vector.load %arg5[%c0_7, %c0_8] : memref<1x128xf32, #tpu.memory_space<vmem>>, vector<1x128xf32>
    %12 = vector.broadcast %11 : vector<1x128xf32> to vector<576x128xf32>
    %13 = arith.addf %10, %12 : vector<576x128xf32>
    %cst = arith.constant 0.000000e+00 : f32
    %14 = vector.broadcast %cst : f32 to vector<576x128xf32>
    %15 = arith.maximumf %13, %14 : vector<576x128xf32>
    %c0_9 = arith.constant 0 : index
    %c0_10 = arith.constant 0 : index
    %16 = vector.load %arg6[%c0_9, %c0_10] : memref<576x128xf32, #tpu.memory_space<vmem>>, vector<576x128xf32>
    tpu.vector_store %arg6[%c0_9, %c0_10], %15 {strides = array<i32>} : memref<576x128xf32, #tpu.memory_space<vmem>>, vector<576x128xf32>,
    return
  }
  func.func @transform_0(%arg0: i32) -> (i32, i32) {
    %c0_i32 = arith.constant 0 : i32
    %c0_i32_0 = arith.constant 0 : i32
    return %arg0, %c0_i32 : i32, i32
  }
  func.func @transform_1(%arg0: i32) -> (i32, i32) {
    %c0_i32 = arith.constant 0 : i32
    %c0_i32_0 = arith.constant 0 : i32
    return %arg0, %c0_i32 : i32, i32
  }
  func.func @transform_2(%arg0: i32) -> (i32, i32) {
    %c0_i32 = arith.constant 0 : i32
    %c0_i32_0 = arith.constant 0 : i32
    %c0_i32_1 = arith.constant 0 : i32
    return %c0_i32, %c0_i32_0 : i32, i32
  }
  func.func @transform_3(%arg0: i32) -> (i32, i32) {
    %c0_i32 = arith.constant 0 : i32
    %c0_i32_0 = arith.constant 0 : i32
    %c0_i32_1 = arith.constant 0 : i32
    return %c0_i32, %c0_i32_0 : i32, i32
  }
  func.func @transform_4(%arg0: i32) -> (i32, i32) {
    %c0_i32 = arith.constant 0 : i32
    %c0_i32_0 = arith.constant 0 : i32
    %c0_i32_1 = arith.constant 0 : i32
    return %c0_i32, %c0_i32_0 : i32, i32
  }
  func.func @transform_5(%arg0: i32) -> (i32, i32) {
    %c0_i32 = arith.constant 0 : i32
    %c0_i32_0 = arith.constant 0 : i32
    return %arg0, %c0_i32 : i32, i32
  }
}

</mosaic_0001>

<bundles_post_ra>
// kernel: res_block.5
= control target key start
LH: loop header
LB: loop body
LE: loop exit
PB: predicated region body
PF: predicated region fallthrough
CT: control target
= control target key end

     0   :  { %s1837_s0 = inlined_call_operand.vmem [shape: bf16[576,128], index: 0, kind: input, shape index: {}]   ;;  %s1838_s1 = inlined_call_operand.vmem [shape: bf16[576,128], index: 1, kind: input, shape index: {}]   ;;  %s1839_s2 = inlined_call_operand.vmem [shape: f32[1,128], index: 2, kind: input, shape index: {}]   ;;  %s1840_s3 = inlined_call_operand.vmem [shape: f32[1,128], index: 3, kind: input, shape index: {}]   ;;  %s1841_s4 = inlined_call_operand.vmem [shape: f32[1,128], index: 4, kind: input, shape index: {}]   ;;  %s1842_s5 = inlined_call_operand.vmem [shape: f32[576,128], index: 5, kind: output, shape index: {}]  }
   0x1   :  { %v769_v0 = vld [vmem:[%s1837_s0] sm:$0xff]   ;;  %v1056_v8 = vld [vmem:[%s1837_s0 + $0x8] sm:$0xff]   ;;  %v1057_v12 = vld [vmem:[%s1837_s0 + $0x10] sm:$0xff]  }
   0x2   :  { %v1165_v1 = vld [vmem:[%s1839_s2] ss:$0 sm:$0xff]  ;;  %v770_v3 = vunpack.c.l.bf16 %v769_v0  ;;  %v771_v6 = vunpack.c.h.bf16 %v769_v0  ;;  %v774_v9 = vunpack.c.l.bf16 %v1056_v8  ;;  %v1091_v10 = vld [vmem:[%s1838_s1 + $0x8] sm:$0xff]   ;;  %v775_v11 = vunpack.c.h.bf16 %v1056_v8  ;;  %v1092_v13 = vld [vmem:[%s1838_s1 + $0x10] sm:$0xff]  }
   0x3   :  { %v913_v2 = vld [vmem:[%s1838_s1] sm:$0xff]   ;;  %v918_v20 = vunpack.c.l.bf16 %v1091_v10  ;;  %v919_v22 = vunpack.c.h.bf16 %v1091_v10  ;;  %v778_v25 = vunpack.c.l.bf16 %v1057_v12  ;;  %v922_v26 = vunpack.c.l.bf16 %v1092_v13  ;;  %v1058_v31 = vld [vmem:[%s1837_s0 + $0x18] sm:$0xff]   ;;  %v1060_v59 = vld [vmem:[%s1837_s0 + $0x28] sm:$0xff]  }
   0x4   :  { %v914_v4 = vunpack.c.l.bf16 %v913_v2  ;;  %v1173_v5 = vld [vmem:[%s1840_s3] ss:$0 sm:$0xff]  ;;  %v915_v7 = vunpack.c.h.bf16 %v913_v2  ;;  %v171_v14 = vmul.f32 %v770_v3, %v1165_v1  ;;  %v172_v16 = vmul.f32 %v771_v6, %v1165_v1  ;;  %v1093_v36 = vld [vmem:[%s1838_s1 + $0x18] sm:$0xff]   ;;  %v1095_v0 = vld [vmem:[%s1838_s1 + $0x28] sm:$0xff]  }
   0x5   :  { %v1194_v18 = vld [vmem:[%s1841_s4] ss:$0 sm:$0xff]  ;;  %v173_v19 = vmul.f32 %v774_v9, %v1165_v1  ;;  %v174_v21 = vmul.f32 %v775_v11, %v1165_v1  ;;  %v396_v27 = vmul.f32 %v918_v20, %v1173_v5  ;;  %v397_v28 = vmul.f32 %v919_v22, %v1173_v5 }
   0x6   :  { %v394_v15 = vmul.f32 %v914_v4, %v1173_v5  ;;  %v395_v17 = vmul.f32 %v915_v7, %v1173_v5  ;;  %v779_v29 = vunpack.c.h.bf16 %v1057_v12  ;;  %v923_v30 = vunpack.c.h.bf16 %v1092_v13  ;;  %v1059_v49 = vld [vmem:[%s1837_s0 + $0x20] sm:$0xff]  }
   0x7   :  { %v175_v34 = vmul.f32 %v778_v25, %v1165_v1  ;;  %v398_v35 = vmul.f32 %v922_v26, %v1173_v5  ;;  %v468_v37 = vadd.f32 %v396_v27, %v173_v19  ;;  %v469_v38 = vadd.f32 %v397_v28, %v174_v21  ;;  %v1094_v54 = vld [vmem:[%s1838_s1 + $0x20] sm:$0xff]   ;;  %v1096_v21 = vld [vmem:[%s1838_s1 + $0x30] sm:$0xff]  }
   0x8   :  { %v466_v23 = vadd.f32 %v394_v15, %v171_v14  ;;  %v467_v24 = vadd.f32 %v395_v17, %v172_v16  ;;  %v176_v39 = vmul.f32 %v779_v29, %v1165_v1  ;;  %v399_v40 = vmul.f32 %v923_v30, %v1173_v5  ;;  %v1061_v15 = vld [vmem:[%s1837_s0 + $0x30] sm:$0xff]  }
   0x9   :  { %v470_v43 = vadd.f32 %v398_v35, %v175_v34  ;;  %v782_v44 = vunpack.c.l.bf16 %v1058_v31  ;;  %v547_v45 = vadd.f32 %v1194_v18, %v468_v37  ;;  %v548_v46 = vadd.f32 %v1194_v18, %v469_v38  ;;  %v1062_v34 = vld [vmem:[%s1837_s0 + $0x38] sm:$0xff]  }
   0xa   :  { %v545_v32 = vadd.f32 %v1194_v18, %v466_v23  ;;  %v546_v33 = vadd.f32 %v1194_v18, %v467_v24  ;;  %v471_v47 = vadd.f32 %v399_v40, %v176_v39  ;;  %v926_v48 = vunpack.c.l.bf16 %v1093_v36  ;;  %v1097_v39 = vld [vmem:[%s1838_s1 + $0x38] sm:$0xff]  }
   0xb   :  { %v549_v50 = vadd.f32 %v1194_v18, %v470_v43  ;;  %v177_v51 = vmul.f32 %v782_v44, %v1165_v1  ;;  %v783_v52 = vunpack.c.h.bf16 %v1058_v31  ;;  %v927_v53 = vunpack.c.h.bf16 %v1093_v36 }
   0xc   :  { %v617_v41 = vmax.f32 %v545_v32, 0.0  ;;  %v618_v42 = vmax.f32 %v546_v33, 0.0  ;;  %v619_v55 = vmax.f32 %v547_v45, 0.0  ;;  %v620_v56 = vmax.f32 %v548_v46, 0.0 }
   0xd   :  { %v550_v57 = vadd.f32 %v1194_v18, %v471_v47  ;;  %v400_v58 = vmul.f32 %v926_v48, %v1173_v5  ;;  %v621_v60 = vmax.f32 %v549_v50, 0.0  ;;  %v178_v61 = vmul.f32 %v783_v52, %v1165_v1  ;;  %v1063_v48 = vld [vmem:[%s1837_s0 + $0x40] sm:$0xff]  }
   0xe   :  { %689 = vst [vmem:[%s1842_s5] sm:$0xff] %v617_v41  ;;  %690 = vst [vmem:[%s1842_s5 + $0x8] sm:$0xff] %v618_v42  ;;  %v401_v62 = vmul.f32 %v927_v53, %v1173_v5  ;;  %v786_v63 = vunpack.c.l.bf16 %v1059_v49  ;;  %v930_v4 = vunpack.c.l.bf16 %v1094_v54  ;;  %v787_v6 = vunpack.c.h.bf16 %v1059_v49  ;;  %v1098_v53 = vld [vmem:[%s1838_s1 + $0x40] sm:$0xff]  }
   0xf   :  { %691 = vst [vmem:[%s1842_s5 + $0x10] sm:$0xff] %v619_v55  ;;  %692 = vst [vmem:[%s1842_s5 + $0x18] sm:$0xff] %v620_v56  ;;  %v622_v2 = vmax.f32 %v550_v57, 0.0  ;;  %v472_v3 = vadd.f32 %v400_v58, %v177_v51  ;;  %v931_v9 = vunpack.c.h.bf16 %v1094_v54  ;;  %v790_v10 = vunpack.c.l.bf16 %v1060_v59 }
  0x10   :  { %693 = vst [vmem:[%s1842_s5 + $0x20] sm:$0xff] %v621_v60  ;;  %v473_v7 = vadd.f32 %v401_v62, %v178_v61  ;;  %v179_v8 = vmul.f32 %v786_v63, %v1165_v1  ;;  %v402_v12 = vmul.f32 %v930_v4, %v1173_v5  ;;  %v180_v13 = vmul.f32 %v787_v6, %v1165_v1  ;;  %v1099_v4 = vld [vmem:[%s1838_s1 + $0x48] sm:$0xff]  }
  0x11   :  { %694 = vst [vmem:[%s1842_s5 + $0x28] sm:$0xff] %v622_v2  ;;  %v551_v11 = vadd.f32 %v1194_v18, %v472_v3  ;;  %v934_v14 = vunpack.c.l.bf16 %v1095_v0  ;;  %v403_v17 = vmul.f32 %v931_v9, %v1173_v5  ;;  %v181_v19 = vmul.f32 %v790_v10, %v1165_v1  ;;  %v1064_v3 = vld [vmem:[%s1837_s0 + $0x48] sm:$0xff]  }
  0x12   :  { %v552_v16 = vadd.f32 %v1194_v18, %v473_v7  ;;  %v791_v20 = vunpack.c.h.bf16 %v1060_v59  ;;  %v474_v23 = vadd.f32 %v402_v12, %v179_v8  ;;  %v935_v25 = vunpack.c.h.bf16 %v1095_v0 }
  0x13   :  { %v623_v22 = vmax.f32 %v551_v11, 0.0  ;;  %v404_v24 = vmul.f32 %v934_v14, %v1173_v5  ;;  %v475_v27 = vadd.f32 %v403_v17, %v180_v13  ;;  %v794_v29 = vunpack.c.l.bf16 %v1061_v15 }
  0x14   :  { %v624_v26 = vmax.f32 %v552_v16, 0.0  ;;  %v182_v28 = vmul.f32 %v791_v20, %v1165_v1  ;;  %v553_v30 = vadd.f32 %v1194_v18, %v474_v23  ;;  %v405_v32 = vmul.f32 %v935_v25, %v1173_v5  ;;  %v1065_v23 = vld [vmem:[%s1837_s0 + $0x50] sm:$0xff]  }
  0x15   :  { %695 = vst [vmem:[%s1842_s5 + $0x30] sm:$0xff] %v623_v22  ;;  %v476_v31 = vadd.f32 %v404_v24, %v181_v19  ;;  %v938_v33 = vunpack.c.l.bf16 %v1096_v21  ;;  %v554_v35 = vadd.f32 %v1194_v18, %v475_v27  ;;  %v183_v36 = vmul.f32 %v794_v29, %v1165_v1  ;;  %v1100_v24 = vld [vmem:[%s1838_s1 + $0x50] sm:$0xff]  }
  0x16   :  { %696 = vst [vmem:[%s1842_s5 + $0x38] sm:$0xff] %v624_v26  ;;  %v795_v37 = vunpack.c.h.bf16 %v1061_v15  ;;  %v939_v38 = vunpack.c.h.bf16 %v1096_v21  ;;  %v625_v40 = vmax.f32 %v553_v30, 0.0  ;;  %v477_v42 = vadd.f32 %v405_v32, %v182_v28 }
  0x17   :  { %v555_v41 = vadd.f32 %v1194_v18, %v476_v31  ;;  %v406_v43 = vmul.f32 %v938_v33, %v1173_v5  ;;  %v626_v44 = vmax.f32 %v554_v35, 0.0  ;;  %v798_v47 = vunpack.c.l.bf16 %v1062_v34 }
  0x18   :  { %v184_v45 = vmul.f32 %v795_v37, %v1165_v1  ;;  %v407_v46 = vmul.f32 %v939_v38, %v1173_v5  ;;  %697 = vst [vmem:[%s1842_s5 + $0x40] sm:$0xff] %v625_v40  ;;  %v556_v50 = vadd.f32 %v1194_v18, %v477_v42  ;;  %v942_v52 = vunpack.c.l.bf16 %v1097_v39  ;;  %v1066_v37 = vld [vmem:[%s1837_s0 + $0x58] sm:$0xff]  }
  0x19   :  { %v627_v49 = vmax.f32 %v555_v41, 0.0  ;;  %v478_v51 = vadd.f32 %v406_v43, %v183_v36  ;;  %698 = vst [vmem:[%s1842_s5 + $0x48] sm:$0xff] %v626_v44  ;;  %v185_v55 = vmul.f32 %v798_v47, %v1165_v1  ;;  %v799_v56 = vunpack.c.h.bf16 %v1062_v34  ;;  %v1101_v42 = vld [vmem:[%s1838_s1 + $0x58] sm:$0xff]  }
  0x1a   :  { %v479_v54 = vadd.f32 %v407_v46, %v184_v45  ;;  %v943_v57 = vunpack.c.h.bf16 %v1097_v39  ;;  %v628_v58 = vmax.f32 %v556_v50, 0.0  ;;  %v408_v60 = vmul.f32 %v942_v52, %v1173_v5 }
  0x1b   :  { %699 = vst [vmem:[%s1842_s5 + $0x50] sm:$0xff] %v627_v49  ;;  %v557_v59 = vadd.f32 %v1194_v18, %v478_v51  ;;  %v802_v61 = vunpack.c.l.bf16 %v1063_v48  ;;  %v186_v63 = vmul.f32 %v799_v56, %v1165_v1  ;;  %v946_v2 = vunpack.c.l.bf16 %v1098_v53  ;;  %v1067_v51 = vld [vmem:[%s1837_s0 + $0x60] sm:$0xff]  }
  0x1c   :  { %v558_v62 = vadd.f32 %v1194_v18, %v479_v54  ;;  %v409_v0 = vmul.f32 %v943_v57, %v1173_v5  ;;  %700 = vst [vmem:[%s1842_s5 + $0x58] sm:$0xff] %v628_v58  ;;  %v480_v7 = vadd.f32 %v408_v60, %v185_v55  ;;  %v803_v9 = vunpack.c.h.bf16 %v1063_v48  ;;  %v1102_v56 = vld [vmem:[%s1838_s1 + $0x60] sm:$0xff]  }
  0x1d   :  { %v629_v6 = vmax.f32 %v557_v59, 0.0  ;;  %v187_v8 = vmul.f32 %v802_v61, %v1165_v1  ;;  %v410_v12 = vmul.f32 %v946_v2, %v1173_v5  ;;  %v947_v13 = vunpack.c.h.bf16 %v1098_v53 }
  0x1e   :  { %v630_v10 = vmax.f32 %v558_v62, 0.0  ;;  %v481_v11 = vadd.f32 %v409_v0, %v186_v63  ;;  %v559_v14 = vadd.f32 %v1194_v18, %v480_v7  ;;  %v188_v15 = vmul.f32 %v803_v9, %v1165_v1  ;;  %v1068_v7 = vld [vmem:[%s1837_s0 + $0x68] sm:$0xff]  }
  0x1f   :  { %701 = vst [vmem:[%s1842_s5 + $0x60] sm:$0xff] %v629_v6  ;;  %v806_v16 = vunpack.c.l.bf16 %v1064_v3  ;;  %v950_v17 = vunpack.c.l.bf16 %v1099_v4  ;;  %v482_v20 = vadd.f32 %v410_v12, %v187_v8  ;;  %v411_v21 = vmul.f32 %v947_v13, %v1173_v5  ;;  %v1103_v8 = vld [vmem:[%s1838_s1 + $0x68] sm:$0xff]  }
  0x20   :  { %702 = vst [vmem:[%s1842_s5 + $0x68] sm:$0xff] %v630_v10  ;;  %v560_v19 = vadd.f32 %v1194_v18, %v481_v11  ;;  %v807_v22 = vunpack.c.h.bf16 %v1064_v3  ;;  %v631_v25 = vmax.f32 %v559_v14, 0.0  ;;  %v951_v28 = vunpack.c.h.bf16 %v1099_v4 }
  0x21   :  { %v189_v26 = vmul.f32 %v806_v16, %v1165_v1  ;;  %v412_v27 = vmul.f32 %v950_v17, %v1173_v5  ;;  %v561_v30 = vadd.f32 %v1194_v18, %v482_v20  ;;  %v483_v31 = vadd.f32 %v411_v21, %v188_v15 }
  0x22   :  { %v632_v29 = vmax.f32 %v560_v19, 0.0  ;;  %v190_v32 = vmul.f32 %v807_v22, %v1165_v1  ;;  %703 = vst [vmem:[%s1842_s5 + $0x70] sm:$0xff] %v631_v25  ;;  %v413_v34 = vmul.f32 %v951_v28, %v1173_v5  ;;  %v810_v35 = vunpack.c.l.bf16 %v1065_v23 }
  0x23   :  { %v484_v33 = vadd.f32 %v412_v27, %v189_v26  ;;  %v954_v36 = vunpack.c.l.bf16 %v1100_v24  ;;  %v633_v38 = vmax.f32 %v561_v30, 0.0  ;;  %v562_v39 = vadd.f32 %v1194_v18, %v483_v31  ;;  %v1069_v26 = vld [vmem:[%s1837_s0 + $0x70] sm:$0xff]  }
  0x24   :  { %704 = vst [vmem:[%s1842_s5 + $0x78] sm:$0xff] %v632_v29  ;;  %v811_v40 = vunpack.c.h.bf16 %v1065_v23  ;;  %v955_v41 = vunpack.c.h.bf16 %v1100_v24  ;;  %v485_v44 = vadd.f32 %v413_v34, %v190_v32  ;;  %v191_v45 = vmul.f32 %v810_v35, %v1165_v1  ;;  %v1104_v27 = vld [vmem:[%s1838_s1 + $0x70] sm:$0xff]  }
  0x25   :  { %v563_v43 = vadd.f32 %v1194_v18, %v484_v33  ;;  %v414_v46 = vmul.f32 %v954_v36, %v1173_v5  ;;  %705 = vst [vmem:[%s1842_s5 + $0x80] sm:$0xff] %v633_v38  ;;  %v634_v47 = vmax.f32 %v562_v39, 0.0  ;;  %v814_v50 = vunpack.c.l.bf16 %v1066_v37 }
  0x26   :  { %v192_v48 = vmul.f32 %v811_v40, %v1165_v1  ;;  %v415_v49 = vmul.f32 %v955_v41, %v1173_v5  ;;  %v564_v53 = vadd.f32 %v1194_v18, %v485_v44  ;;  %v958_v55 = vunpack.c.l.bf16 %v1101_v42  ;;  %v1070_v40 = vld [vmem:[%s1837_s0 + $0x78] sm:$0xff]  }
  0x27   :  { %v635_v52 = vmax.f32 %v563_v43, 0.0  ;;  %v486_v54 = vadd.f32 %v414_v46, %v191_v45  ;;  %706 = vst [vmem:[%s1842_s5 + $0x88] sm:$0xff] %v634_v47  ;;  %v193_v58 = vmul.f32 %v814_v50, %v1165_v1  ;;  %v815_v59 = vunpack.c.h.bf16 %v1066_v37  ;;  %v1105_v45 = vld [vmem:[%s1838_s1 + $0x78] sm:$0xff]  }
  0x28   :  { %v487_v57 = vadd.f32 %v415_v49, %v192_v48  ;;  %v959_v60 = vunpack.c.h.bf16 %v1101_v42  ;;  %v636_v61 = vmax.f32 %v564_v53, 0.0  ;;  %v416_v63 = vmul.f32 %v958_v55, %v1173_v5 }
  0x29   :  { %707 = vst [vmem:[%s1842_s5 + $0x90] sm:$0xff] %v635_v52  ;;  %v565_v62 = vadd.f32 %v1194_v18, %v486_v54  ;;  %v818_v0 = vunpack.c.l.bf16 %v1067_v51  ;;  %v194_v3 = vmul.f32 %v815_v59, %v1165_v1  ;;  %v962_v6 = vunpack.c.l.bf16 %v1102_v56  ;;  %v1071_v54 = vld [vmem:[%s1837_s0 + $0x80] sm:$0xff]  }
  0x2a   :  { %v566_v2 = vadd.f32 %v1194_v18, %v487_v57  ;;  %v417_v4 = vmul.f32 %v959_v60, %v1173_v5  ;;  %708 = vst [vmem:[%s1842_s5 + $0x98] sm:$0xff] %v636_v61  ;;  %v488_v10 = vadd.f32 %v416_v63, %v193_v58  ;;  %v819_v12 = vunpack.c.h.bf16 %v1067_v51  ;;  %v1106_v59 = vld [vmem:[%s1838_s1 + $0x80] sm:$0xff]  }
  0x2b   :  { %v637_v9 = vmax.f32 %v565_v62, 0.0  ;;  %v195_v11 = vmul.f32 %v818_v0, %v1165_v1  ;;  %v418_v15 = vmul.f32 %v962_v6, %v1173_v5  ;;  %v963_v16 = vunpack.c.h.bf16 %v1102_v56 }
  0x2c   :  { %v638_v13 = vmax.f32 %v566_v2, 0.0  ;;  %v489_v14 = vadd.f32 %v417_v4, %v194_v3  ;;  %v567_v17 = vadd.f32 %v1194_v18, %v488_v10  ;;  %v196_v19 = vmul.f32 %v819_v12, %v1165_v1  ;;  %v1072_v10 = vld [vmem:[%s1837_s0 + $0x88] sm:$0xff]  }
  0x2d   :  { %709 = vst [vmem:[%s1842_s5 + $0xa0] sm:$0xff] %v637_v9  ;;  %v822_v20 = vunpack.c.l.bf16 %v1068_v7  ;;  %v966_v21 = vunpack.c.l.bf16 %v1103_v8  ;;  %v490_v23 = vadd.f32 %v418_v15, %v195_v11  ;;  %v419_v24 = vmul.f32 %v963_v16, %v1173_v5  ;;  %v1107_v11 = vld [vmem:[%s1838_s1 + $0x88] sm:$0xff]  }
  0x2e   :  { %710 = vst [vmem:[%s1842_s5 + $0xa8] sm:$0xff] %v638_v13  ;;  %v568_v22 = vadd.f32 %v1194_v18, %v489_v14  ;;  %v823_v25 = vunpack.c.h.bf16 %v1068_v7  ;;  %v639_v28 = vmax.f32 %v567_v17, 0.0  ;;  %v967_v31 = vunpack.c.h.bf16 %v1103_v8 }
  0x2f   :  { %v197_v29 = vmul.f32 %v822_v20, %v1165_v1  ;;  %v420_v30 = vmul.f32 %v966_v21, %v1173_v5  ;;  %v569_v33 = vadd.f32 %v1194_v18, %v490_v23  ;;  %v491_v34 = vadd.f32 %v419_v24, %v196_v19 }
  0x30   :  { %v640_v32 = vmax.f32 %v568_v22, 0.0  ;;  %v198_v35 = vmul.f32 %v823_v25, %v1165_v1  ;;  %711 = vst [vmem:[%s1842_s5 + $0xb0] sm:$0xff] %v639_v28  ;;  %v421_v37 = vmul.f32 %v967_v31, %v1173_v5  ;;  %v826_v38 = vunpack.c.l.bf16 %v1069_v26 }
  0x31   :  { %v492_v36 = vadd.f32 %v420_v30, %v197_v29  ;;  %v970_v39 = vunpack.c.l.bf16 %v1104_v27  ;;  %v641_v41 = vmax.f32 %v569_v33, 0.0  ;;  %v570_v42 = vadd.f32 %v1194_v18, %v491_v34  ;;  %v1073_v29 = vld [vmem:[%s1837_s0 + $0x90] sm:$0xff]  }
  0x32   :  { %712 = vst [vmem:[%s1842_s5 + $0xb8] sm:$0xff] %v640_v32  ;;  %v827_v43 = vunpack.c.h.bf16 %v1069_v26  ;;  %v971_v44 = vunpack.c.h.bf16 %v1104_v27  ;;  %v493_v47 = vadd.f32 %v421_v37, %v198_v35  ;;  %v199_v48 = vmul.f32 %v826_v38, %v1165_v1  ;;  %v1108_v30 = vld [vmem:[%s1838_s1 + $0x90] sm:$0xff]  }
  0x33   :  { %v571_v46 = vadd.f32 %v1194_v18, %v492_v36  ;;  %v422_v49 = vmul.f32 %v970_v39, %v1173_v5  ;;  %713 = vst [vmem:[%s1842_s5 + $0xc0] sm:$0xff] %v641_v41  ;;  %v642_v50 = vmax.f32 %v570_v42, 0.0  ;;  %v830_v53 = vunpack.c.l.bf16 %v1070_v40 }
  0x34   :  { %v200_v51 = vmul.f32 %v827_v43, %v1165_v1  ;;  %v423_v52 = vmul.f32 %v971_v44, %v1173_v5  ;;  %v572_v56 = vadd.f32 %v1194_v18, %v493_v47  ;;  %v974_v58 = vunpack.c.l.bf16 %v1105_v45  ;;  %v1074_v43 = vld [vmem:[%s1837_s0 + $0x98] sm:$0xff]  }
  0x35   :  { %v643_v55 = vmax.f32 %v571_v46, 0.0  ;;  %v494_v57 = vadd.f32 %v422_v49, %v199_v48  ;;  %714 = vst [vmem:[%s1842_s5 + $0xc8] sm:$0xff] %v642_v50  ;;  %v201_v61 = vmul.f32 %v830_v53, %v1165_v1  ;;  %v831_v62 = vunpack.c.h.bf16 %v1070_v40  ;;  %v1109_v48 = vld [vmem:[%s1838_s1 + $0x98] sm:$0xff]  }
  0x36   :  { %v495_v60 = vadd.f32 %v423_v52, %v200_v51  ;;  %v975_v63 = vunpack.c.h.bf16 %v1105_v45  ;;  %v644_v0 = vmax.f32 %v572_v56, 0.0  ;;  %v424_v3 = vmul.f32 %v974_v58, %v1173_v5 }
  0x37   :  { %715 = vst [vmem:[%s1842_s5 + $0xd0] sm:$0xff] %v643_v55  ;;  %v573_v2 = vadd.f32 %v1194_v18, %v494_v57  ;;  %v834_v4 = vunpack.c.l.bf16 %v1071_v54  ;;  %v202_v7 = vmul.f32 %v831_v62, %v1165_v1  ;;  %v978_v9 = vunpack.c.l.bf16 %v1106_v59  ;;  %v1075_v57 = vld [vmem:[%s1837_s0 + $0xa0] sm:$0xff]  }
  0x38   :  { %v574_v6 = vadd.f32 %v1194_v18, %v495_v60  ;;  %v425_v8 = vmul.f32 %v975_v63, %v1173_v5  ;;  %716 = vst [vmem:[%s1842_s5 + $0xd8] sm:$0xff] %v644_v0  ;;  %v496_v13 = vadd.f32 %v424_v3, %v201_v61  ;;  %v835_v15 = vunpack.c.h.bf16 %v1071_v54  ;;  %v1110_v62 = vld [vmem:[%s1838_s1 + $0xa0] sm:$0xff]  }
  0x39   :  { %v645_v12 = vmax.f32 %v573_v2, 0.0  ;;  %v203_v14 = vmul.f32 %v834_v4, %v1165_v1  ;;  %v426_v19 = vmul.f32 %v978_v9, %v1173_v5  ;;  %v979_v20 = vunpack.c.h.bf16 %v1106_v59 }
  0x3a   :  { %v646_v16 = vmax.f32 %v574_v6, 0.0  ;;  %v497_v17 = vadd.f32 %v425_v8, %v202_v7  ;;  %v575_v21 = vadd.f32 %v1194_v18, %v496_v13  ;;  %v204_v22 = vmul.f32 %v835_v15, %v1165_v1  ;;  %v1076_v13 = vld [vmem:[%s1837_s0 + $0xa8] sm:$0xff]  }
  0x3b   :  { %717 = vst [vmem:[%s1842_s5 + $0xe0] sm:$0xff] %v645_v12  ;;  %v838_v23 = vunpack.c.l.bf16 %v1072_v10  ;;  %v982_v24 = vunpack.c.l.bf16 %v1107_v11  ;;  %v498_v26 = vadd.f32 %v426_v19, %v203_v14  ;;  %v427_v27 = vmul.f32 %v979_v20, %v1173_v5  ;;  %v1111_v14 = vld [vmem:[%s1838_s1 + $0xa8] sm:$0xff]  }
  0x3c   :  { %718 = vst [vmem:[%s1842_s5 + $0xe8] sm:$0xff] %v646_v16  ;;  %v576_v25 = vadd.f32 %v1194_v18, %v497_v17  ;;  %v839_v28 = vunpack.c.h.bf16 %v1072_v10  ;;  %v647_v31 = vmax.f32 %v575_v21, 0.0  ;;  %v983_v34 = vunpack.c.h.bf16 %v1107_v11 }
  0x3d   :  { %v205_v32 = vmul.f32 %v838_v23, %v1165_v1  ;;  %v428_v33 = vmul.f32 %v982_v24, %v1173_v5  ;;  %v577_v36 = vadd.f32 %v1194_v18, %v498_v26  ;;  %v499_v37 = vadd.f32 %v427_v27, %v204_v22 }
  0x3e   :  { %v648_v35 = vmax.f32 %v576_v25, 0.0  ;;  %v206_v38 = vmul.f32 %v839_v28, %v1165_v1  ;;  %719 = vst [vmem:[%s1842_s5 + $0xf0] sm:$0xff] %v647_v31  ;;  %v429_v40 = vmul.f32 %v983_v34, %v1173_v5  ;;  %v842_v41 = vunpack.c.l.bf16 %v1073_v29 }
  0x3f   :  { %v500_v39 = vadd.f32 %v428_v33, %v205_v32  ;;  %v986_v42 = vunpack.c.l.bf16 %v1108_v30  ;;  %v649_v44 = vmax.f32 %v577_v36, 0.0  ;;  %v578_v45 = vadd.f32 %v1194_v18, %v499_v37  ;;  %v1077_v32 = vld [vmem:[%s1837_s0 + $0xb0] sm:$0xff]  }
  0x40   :  { %720 = vst [vmem:[%s1842_s5 + $0xf8] sm:$0xff] %v648_v35  ;;  %v843_v46 = vunpack.c.h.bf16 %v1073_v29  ;;  %v987_v47 = vunpack.c.h.bf16 %v1108_v30  ;;  %v501_v50 = vadd.f32 %v429_v40, %v206_v38  ;;  %v207_v51 = vmul.f32 %v842_v41, %v1165_v1  ;;  %v1112_v33 = vld [vmem:[%s1838_s1 + $0xb0] sm:$0xff]  }
  0x41   :  { %v579_v49 = vadd.f32 %v1194_v18, %v500_v39  ;;  %v430_v52 = vmul.f32 %v986_v42, %v1173_v5  ;;  %721 = vst [vmem:[%s1842_s5 + $0x100] sm:$0xff] %v649_v44  ;;  %v650_v53 = vmax.f32 %v578_v45, 0.0  ;;  %v846_v56 = vunpack.c.l.bf16 %v1074_v43 }
  0x42   :  { %v208_v54 = vmul.f32 %v843_v46, %v1165_v1  ;;  %v431_v55 = vmul.f32 %v987_v47, %v1173_v5  ;;  %v580_v59 = vadd.f32 %v1194_v18, %v501_v50  ;;  %v990_v61 = vunpack.c.l.bf16 %v1109_v48  ;;  %v1078_v46 = vld [vmem:[%s1837_s0 + $0xb8] sm:$0xff]  }
  0x43   :  { %v651_v58 = vmax.f32 %v579_v49, 0.0  ;;  %v502_v60 = vadd.f32 %v430_v52, %v207_v51  ;;  %722 = vst [vmem:[%s1842_s5 + $0x108] sm:$0xff] %v650_v53  ;;  %v209_v0 = vmul.f32 %v846_v56, %v1165_v1  ;;  %v847_v2 = vunpack.c.h.bf16 %v1074_v43  ;;  %v1113_v51 = vld [vmem:[%s1838_s1 + $0xb8] sm:$0xff]  }
  0x44   :  { %v503_v63 = vadd.f32 %v431_v55, %v208_v54  ;;  %v991_v3 = vunpack.c.h.bf16 %v1109_v48  ;;  %v652_v4 = vmax.f32 %v580_v59, 0.0  ;;  %v432_v7 = vmul.f32 %v990_v61, %v1173_v5 }
  0x45   :  { %723 = vst [vmem:[%s1842_s5 + $0x110] sm:$0xff] %v651_v58  ;;  %v581_v6 = vadd.f32 %v1194_v18, %v502_v60  ;;  %v850_v8 = vunpack.c.l.bf16 %v1075_v57  ;;  %v210_v10 = vmul.f32 %v847_v2, %v1165_v1  ;;  %v994_v12 = vunpack.c.l.bf16 %v1110_v62  ;;  %v1079_v60 = vld [vmem:[%s1837_s0 + $0xc0] sm:$0xff]  }
  0x46   :  { %v582_v9 = vadd.f32 %v1194_v18, %v503_v63  ;;  %v433_v11 = vmul.f32 %v991_v3, %v1173_v5  ;;  %724 = vst [vmem:[%s1842_s5 + $0x118] sm:$0xff] %v652_v4  ;;  %v504_v16 = vadd.f32 %v432_v7, %v209_v0  ;;  %v851_v19 = vunpack.c.h.bf16 %v1075_v57  ;;  %v1114_v2 = vld [vmem:[%s1838_s1 + $0xc0] sm:$0xff]  }
  0x47   :  { %v653_v15 = vmax.f32 %v581_v6, 0.0  ;;  %v211_v17 = vmul.f32 %v850_v8, %v1165_v1  ;;  %v434_v22 = vmul.f32 %v994_v12, %v1173_v5  ;;  %v995_v23 = vunpack.c.h.bf16 %v1110_v62 }
  0x48   :  { %v654_v20 = vmax.f32 %v582_v9, 0.0  ;;  %v505_v21 = vadd.f32 %v433_v11, %v210_v10  ;;  %v583_v24 = vadd.f32 %v1194_v18, %v504_v16  ;;  %v212_v25 = vmul.f32 %v851_v19, %v1165_v1  ;;  %v1080_v16 = vld [vmem:[%s1837_s0 + $0xc8] sm:$0xff]  }
  0x49   :  { %725 = vst [vmem:[%s1842_s5 + $0x120] sm:$0xff] %v653_v15  ;;  %v854_v26 = vunpack.c.l.bf16 %v1076_v13  ;;  %v998_v27 = vunpack.c.l.bf16 %v1111_v14  ;;  %v506_v29 = vadd.f32 %v434_v22, %v211_v17  ;;  %v435_v30 = vmul.f32 %v995_v23, %v1173_v5  ;;  %v1115_v17 = vld [vmem:[%s1838_s1 + $0xc8] sm:$0xff]  }
  0x4a   :  { %726 = vst [vmem:[%s1842_s5 + $0x128] sm:$0xff] %v654_v20  ;;  %v584_v28 = vadd.f32 %v1194_v18, %v505_v21  ;;  %v855_v31 = vunpack.c.h.bf16 %v1076_v13  ;;  %v655_v34 = vmax.f32 %v583_v24, 0.0  ;;  %v999_v37 = vunpack.c.h.bf16 %v1111_v14 }
  0x4b   :  { %v213_v35 = vmul.f32 %v854_v26, %v1165_v1  ;;  %v436_v36 = vmul.f32 %v998_v27, %v1173_v5  ;;  %v585_v39 = vadd.f32 %v1194_v18, %v506_v29  ;;  %v507_v40 = vadd.f32 %v435_v30, %v212_v25 }
  0x4c   :  { %v656_v38 = vmax.f32 %v584_v28, 0.0  ;;  %v214_v41 = vmul.f32 %v855_v31, %v1165_v1  ;;  %727 = vst [vmem:[%s1842_s5 + $0x130] sm:$0xff] %v655_v34  ;;  %v437_v43 = vmul.f32 %v999_v37, %v1173_v5  ;;  %v858_v44 = vunpack.c.l.bf16 %v1077_v32 }
  0x4d   :  { %v508_v42 = vadd.f32 %v436_v36, %v213_v35  ;;  %v1002_v45 = vunpack.c.l.bf16 %v1112_v33  ;;  %v657_v47 = vmax.f32 %v585_v39, 0.0  ;;  %v586_v48 = vadd.f32 %v1194_v18, %v507_v40  ;;  %v1081_v35 = vld [vmem:[%s1837_s0 + $0xd0] sm:$0xff]  }
  0x4e   :  { %728 = vst [vmem:[%s1842_s5 + $0x138] sm:$0xff] %v656_v38  ;;  %v859_v49 = vunpack.c.h.bf16 %v1077_v32  ;;  %v1003_v50 = vunpack.c.h.bf16 %v1112_v33  ;;  %v509_v53 = vadd.f32 %v437_v43, %v214_v41  ;;  %v215_v54 = vmul.f32 %v858_v44, %v1165_v1  ;;  %v1116_v36 = vld [vmem:[%s1838_s1 + $0xd0] sm:$0xff]  }
  0x4f   :  { %v587_v52 = vadd.f32 %v1194_v18, %v508_v42  ;;  %v438_v55 = vmul.f32 %v1002_v45, %v1173_v5  ;;  %729 = vst [vmem:[%s1842_s5 + $0x140] sm:$0xff] %v657_v47  ;;  %v658_v56 = vmax.f32 %v586_v48, 0.0  ;;  %v862_v59 = vunpack.c.l.bf16 %v1078_v46 }
  0x50   :  { %v216_v57 = vmul.f32 %v859_v49, %v1165_v1  ;;  %v439_v58 = vmul.f32 %v1003_v50, %v1173_v5  ;;  %v588_v62 = vadd.f32 %v1194_v18, %v509_v53  ;;  %v1006_v0 = vunpack.c.l.bf16 %v1113_v51  ;;  %v1082_v49 = vld [vmem:[%s1837_s0 + $0xd8] sm:$0xff]  }
  0x51   :  { %v659_v61 = vmax.f32 %v587_v52, 0.0  ;;  %v510_v63 = vadd.f32 %v438_v55, %v215_v54  ;;  %730 = vst [vmem:[%s1842_s5 + $0x148] sm:$0xff] %v658_v56  ;;  %v217_v4 = vmul.f32 %v862_v59, %v1165_v1  ;;  %v863_v6 = vunpack.c.h.bf16 %v1078_v46  ;;  %v1117_v54 = vld [vmem:[%s1838_s1 + $0xd8] sm:$0xff]  }
  0x52   :  { %v511_v3 = vadd.f32 %v439_v58, %v216_v57  ;;  %v1007_v7 = vunpack.c.h.bf16 %v1113_v51  ;;  %v660_v8 = vmax.f32 %v588_v62, 0.0  ;;  %v440_v10 = vmul.f32 %v1006_v0, %v1173_v5 }
  0x53   :  { %731 = vst [vmem:[%s1842_s5 + $0x150] sm:$0xff] %v659_v61  ;;  %v589_v9 = vadd.f32 %v1194_v18, %v510_v63  ;;  %v866_v11 = vunpack.c.l.bf16 %v1079_v60  ;;  %v218_v13 = vmul.f32 %v863_v6, %v1165_v1  ;;  %v1010_v15 = vunpack.c.l.bf16 %v1114_v2  ;;  %v1083_v63 = vld [vmem:[%s1837_s0 + $0xe0] sm:$0xff]  }
  0x54   :  { %v590_v12 = vadd.f32 %v1194_v18, %v511_v3  ;;  %v441_v14 = vmul.f32 %v1007_v7, %v1173_v5  ;;  %732 = vst [vmem:[%s1842_s5 + $0x158] sm:$0xff] %v660_v8  ;;  %v512_v20 = vadd.f32 %v440_v10, %v217_v4  ;;  %v867_v22 = vunpack.c.h.bf16 %v1079_v60  ;;  %v1118_v6 = vld [vmem:[%s1838_s1 + $0xe0] sm:$0xff]  }
  0x55   :  { %v661_v19 = vmax.f32 %v589_v9, 0.0  ;;  %v219_v21 = vmul.f32 %v866_v11, %v1165_v1  ;;  %v442_v25 = vmul.f32 %v1010_v15, %v1173_v5  ;;  %v1011_v26 = vunpack.c.h.bf16 %v1114_v2 }
  0x56   :  { %v662_v23 = vmax.f32 %v590_v12, 0.0  ;;  %v513_v24 = vadd.f32 %v441_v14, %v218_v13  ;;  %v591_v27 = vadd.f32 %v1194_v18, %v512_v20  ;;  %v220_v28 = vmul.f32 %v867_v22, %v1165_v1  ;;  %v1084_v20 = vld [vmem:[%s1837_s0 + $0xe8] sm:$0xff]  }
  0x57   :  { %733 = vst [vmem:[%s1842_s5 + $0x160] sm:$0xff] %v661_v19  ;;  %v870_v29 = vunpack.c.l.bf16 %v1080_v16  ;;  %v1014_v30 = vunpack.c.l.bf16 %v1115_v17  ;;  %v514_v32 = vadd.f32 %v442_v25, %v219_v21  ;;  %v443_v33 = vmul.f32 %v1011_v26, %v1173_v5  ;;  %v1119_v21 = vld [vmem:[%s1838_s1 + $0xe8] sm:$0xff]  }
  0x58   :  { %734 = vst [vmem:[%s1842_s5 + $0x168] sm:$0xff] %v662_v23  ;;  %v592_v31 = vadd.f32 %v1194_v18, %v513_v24  ;;  %v871_v34 = vunpack.c.h.bf16 %v1080_v16  ;;  %v663_v37 = vmax.f32 %v591_v27, 0.0  ;;  %v1015_v40 = vunpack.c.h.bf16 %v1115_v17 }
  0x59   :  { %v221_v38 = vmul.f32 %v870_v29, %v1165_v1  ;;  %v444_v39 = vmul.f32 %v1014_v30, %v1173_v5  ;;  %v593_v42 = vadd.f32 %v1194_v18, %v514_v32  ;;  %v515_v43 = vadd.f32 %v443_v33, %v220_v28 }
  0x5a   :  { %v664_v41 = vmax.f32 %v592_v31, 0.0  ;;  %v222_v44 = vmul.f32 %v871_v34, %v1165_v1  ;;  %735 = vst [vmem:[%s1842_s5 + $0x170] sm:$0xff] %v663_v37  ;;  %v445_v46 = vmul.f32 %v1015_v40, %v1173_v5  ;;  %v874_v47 = vunpack.c.l.bf16 %v1081_v35  ;;  %v1685_v31 = vld [vmem:[%s1839_s2] ss:$0 sm:$0xff] }
  0x5b   :  { %v516_v45 = vadd.f32 %v444_v39, %v221_v38  ;;  %v1018_v48 = vunpack.c.l.bf16 %v1116_v36  ;;  %v665_v50 = vmax.f32 %v593_v42, 0.0  ;;  %v594_v51 = vadd.f32 %v1194_v18, %v515_v43  ;;  %v1085_v38 = vld [vmem:[%s1837_s0 + $0xf0] sm:$0xff]  }
  0x5c   :  { %736 = vst [vmem:[%s1842_s5 + $0x178] sm:$0xff] %v664_v41  ;;  %v875_v52 = vunpack.c.h.bf16 %v1081_v35  ;;  %v1019_v53 = vunpack.c.h.bf16 %v1116_v36  ;;  %v517_v56 = vadd.f32 %v445_v46, %v222_v44  ;;  %v223_v57 = vmul.f32 %v874_v47, %v1165_v1  ;;  %v1695_v35 = vld [vmem:[%s1840_s3] ss:$0 sm:$0xff]  ;;  %v1120_v39 = vld [vmem:[%s1838_s1 + $0xf0] sm:$0xff]  }
  0x5d   :  { %v595_v55 = vadd.f32 %v1194_v18, %v516_v45  ;;  %v446_v58 = vmul.f32 %v1018_v48, %v1173_v5  ;;  %737 = vst [vmem:[%s1842_s5 + $0x180] sm:$0xff] %v665_v50  ;;  %v666_v59 = vmax.f32 %v594_v51, 0.0  ;;  %v878_v62 = vunpack.c.l.bf16 %v1082_v49 }
  0x5e   :  { %v224_v60 = vmul.f32 %v875_v52, %v1165_v1  ;;  %v447_v61 = vmul.f32 %v1019_v53, %v1173_v5  ;;  %v596_v2 = vadd.f32 %v1194_v18, %v517_v56  ;;  %v1022_v4 = vunpack.c.l.bf16 %v1117_v54  ;;  %v1086_v52 = vld [vmem:[%s1837_s0 + $0xf8] sm:$0xff]   ;;  %v1721_v53 = vld [vmem:[%s1841_s4] ss:$0 sm:$0xff] }
  0x5f   :  { %v667_v0 = vmax.f32 %v595_v55, 0.0  ;;  %v518_v3 = vadd.f32 %v446_v58, %v223_v57  ;;  %738 = vst [vmem:[%s1842_s5 + $0x188] sm:$0xff] %v666_v59  ;;  %v225_v8 = vmul.f32 %v878_v62, %v1165_v1  ;;  %v879_v9 = vunpack.c.h.bf16 %v1082_v49  ;;  %v1121_v57 = vld [vmem:[%s1838_s1 + $0xf8] sm:$0xff]  }
  0x60   :  { %v519_v7 = vadd.f32 %v447_v61, %v224_v60  ;;  %v1023_v10 = vunpack.c.h.bf16 %v1117_v54  ;;  %v668_v11 = vmax.f32 %v596_v2, 0.0  ;;  %v448_v13 = vmul.f32 %v1022_v4, %v1173_v5 }
  0x61   :  { %739 = vst [vmem:[%s1842_s5 + $0x190] sm:$0xff] %v667_v0  ;;  %v597_v12 = vadd.f32 %v1194_v18, %v518_v3  ;;  %v882_v14 = vunpack.c.l.bf16 %v1083_v63  ;;  %v226_v16 = vmul.f32 %v879_v9, %v1165_v1  ;;  %v1026_v19 = vunpack.c.l.bf16 %v1118_v6  ;;  %v1087_v3 = vld [vmem:[%s1837_s0 + $0x100] sm:$0xff]  }
  0x62   :  { %v598_v15 = vadd.f32 %v1194_v18, %v519_v7  ;;  %v449_v17 = vmul.f32 %v1023_v10, %v1173_v5  ;;  %740 = vst [vmem:[%s1842_s5 + $0x198] sm:$0xff] %v668_v11  ;;  %v520_v23 = vadd.f32 %v448_v13, %v225_v8  ;;  %v883_v25 = vunpack.c.h.bf16 %v1083_v63  ;;  %v1122_v9 = vld [vmem:[%s1838_s1 + $0x100] sm:$0xff]  }
  0x63   :  { %v669_v22 = vmax.f32 %v597_v12, 0.0  ;;  %v227_v24 = vmul.f32 %v882_v14, %v1165_v1  ;;  %v450_v28 = vmul.f32 %v1026_v19, %v1173_v5  ;;  %v1027_v29 = vunpack.c.h.bf16 %v1118_v6 }
  0x64   :  { %v670_v26 = vmax.f32 %v598_v15, 0.0  ;;  %v521_v27 = vadd.f32 %v449_v17, %v226_v16  ;;  %v599_v30 = vadd.f32 %v1194_v18, %v520_v23  ;;  %v228_v32 = vmul.f32 %v1685_v31, %v883_v25  ;;  %v1088_v23 = vld [vmem:[%s1837_s0 + $0x108] sm:$0xff]  }
  0x65   :  { %741 = vst [vmem:[%s1842_s5 + $0x1a0] sm:$0xff] %v669_v22  ;;  %v886_v1 = vunpack.c.l.bf16 %v1084_v20  ;;  %v1030_v33 = vunpack.c.l.bf16 %v1119_v21  ;;  %v522_v34 = vadd.f32 %v450_v28, %v227_v24  ;;  %v451_v36 = vmul.f32 %v1695_v35, %v1027_v29  ;;  %v1123_v24 = vld [vmem:[%s1838_s1 + $0x108] sm:$0xff]  }
  0x66   :  { %742 = vst [vmem:[%s1842_s5 + $0x1a8] sm:$0xff] %v670_v26  ;;  %v600_v5 = vadd.f32 %v1194_v18, %v521_v27  ;;  %v887_v37 = vunpack.c.h.bf16 %v1084_v20  ;;  %v671_v40 = vmax.f32 %v599_v30, 0.0  ;;  %v1031_v43 = vunpack.c.h.bf16 %v1119_v21 }
  0x67   :  { %v229_v41 = vmul.f32 %v1685_v31, %v886_v1  ;;  %v452_v42 = vmul.f32 %v1695_v35, %v1030_v33  ;;  %v601_v45 = vadd.f32 %v1194_v18, %v522_v34  ;;  %v523_v46 = vadd.f32 %v451_v36, %v228_v32 }
  0x68   :  { %v672_v44 = vmax.f32 %v600_v5, 0.0  ;;  %v230_v47 = vmul.f32 %v1685_v31, %v887_v37  ;;  %743 = vst [vmem:[%s1842_s5 + $0x1b0] sm:$0xff] %v671_v40  ;;  %v453_v49 = vmul.f32 %v1695_v35, %v1031_v43  ;;  %v890_v50 = vunpack.c.l.bf16 %v1085_v38 }
  0x69   :  { %v524_v48 = vadd.f32 %v452_v42, %v229_v41  ;;  %v1034_v51 = vunpack.c.l.bf16 %v1120_v39  ;;  %v673_v18 = vmax.f32 %v601_v45, 0.0  ;;  %v602_v54 = vadd.f32 %v1721_v53, %v523_v46  ;;  %v1089_v41 = vld [vmem:[%s1837_s0 + $0x110] sm:$0xff]  }
  0x6a   :  { %744 = vst [vmem:[%s1842_s5 + $0x1b8] sm:$0xff] %v672_v44  ;;  %v891_v55 = vunpack.c.h.bf16 %v1085_v38  ;;  %v1035_v56 = vunpack.c.h.bf16 %v1120_v39  ;;  %v525_v59 = vadd.f32 %v453_v49, %v230_v47  ;;  %v231_v60 = vmul.f32 %v1685_v31, %v890_v50  ;;  %v1124_v42 = vld [vmem:[%s1838_s1 + $0x110] sm:$0xff]  }
  0x6b   :  { %v603_v58 = vadd.f32 %v1721_v53, %v524_v48  ;;  %v454_v61 = vmul.f32 %v1695_v35, %v1034_v51  ;;  %745 = vst [vmem:[%s1842_s5 + $0x1c0] sm:$0xff] %v673_v18  ;;  %v674_v62 = vmax.f32 %v602_v54, 0.0  ;;  %v894_v2 = vunpack.c.l.bf16 %v1086_v52 }
  0x6c   :  { %v232_v63 = vmul.f32 %v1685_v31, %v891_v55  ;;  %v455_v0 = vmul.f32 %v1695_v35, %v1035_v56  ;;  %v604_v6 = vadd.f32 %v1721_v53, %v525_v59  ;;  %v1038_v8 = vunpack.c.l.bf16 %v1121_v57  ;;  %v1090_v55 = vld [vmem:[%s1837_s0 + $0x118] sm:$0xff]  }
  0x6d   :  { %v675_v4 = vmax.f32 %v603_v58, 0.0  ;;  %v526_v7 = vadd.f32 %v454_v61, %v231_v60  ;;  %746 = vst [vmem:[%s1842_s5 + $0x1c8] sm:$0xff] %v674_v62  ;;  %v233_v11 = vmul.f32 %v1685_v31, %v894_v2  ;;  %v895_v12 = vunpack.c.h.bf16 %v1086_v52  ;;  %v1125_v60 = vld [vmem:[%s1838_s1 + $0x118] sm:$0xff]  }
  0x6e   :  { %v527_v10 = vadd.f32 %v455_v0, %v232_v63  ;;  %v1039_v13 = vunpack.c.h.bf16 %v1121_v57  ;;  %v676_v14 = vmax.f32 %v604_v6, 0.0  ;;  %v456_v16 = vmul.f32 %v1695_v35, %v1038_v8 }
  0x6f   :  { %747 = vst [vmem:[%s1842_s5 + $0x1d0] sm:$0xff] %v675_v4  ;;  %v605_v15 = vadd.f32 %v1721_v53, %v526_v7  ;;  %v898_v17 = vunpack.c.l.bf16 %v1087_v3  ;;  %v234_v20 = vmul.f32 %v1685_v31, %v895_v12  ;;  %v1042_v22 = vunpack.c.l.bf16 %v1122_v9 }
  0x70   :  { %v606_v19 = vadd.f32 %v1721_v53, %v527_v10  ;;  %v457_v21 = vmul.f32 %v1695_v35, %v1039_v13  ;;  %748 = vst [vmem:[%s1842_s5 + $0x1d8] sm:$0xff] %v676_v14  ;;  %v528_v26 = vadd.f32 %v456_v16, %v233_v11  ;;  %v899_v28 = vunpack.c.h.bf16 %v1087_v3 }
  0x71   :  { %v677_v25 = vmax.f32 %v605_v15, 0.0  ;;  %v235_v27 = vmul.f32 %v1685_v31, %v898_v17  ;;  %v458_v32 = vmul.f32 %v1695_v35, %v1042_v22  ;;  %v1043_v1 = vunpack.c.h.bf16 %v1122_v9 }
  0x72   :  { %v678_v29 = vmax.f32 %v606_v19, 0.0  ;;  %v529_v30 = vadd.f32 %v457_v21, %v234_v20  ;;  %v607_v33 = vadd.f32 %v1721_v53, %v528_v26  ;;  %v236_v5 = vmul.f32 %v1685_v31, %v899_v28 }
  0x73   :  { %749 = vst [vmem:[%s1842_s5 + $0x1e0] sm:$0xff] %v677_v25  ;;  %v902_v34 = vunpack.c.l.bf16 %v1088_v23  ;;  %v1046_v36 = vunpack.c.l.bf16 %v1123_v24  ;;  %v530_v38 = vadd.f32 %v458_v32, %v235_v27  ;;  %v459_v39 = vmul.f32 %v1695_v35, %v1043_v1 }
  0x74   :  { %750 = vst [vmem:[%s1842_s5 + $0x1e8] sm:$0xff] %v678_v29  ;;  %v608_v37 = vadd.f32 %v1721_v53, %v529_v30  ;;  %v903_v40 = vunpack.c.h.bf16 %v1088_v23  ;;  %v679_v43 = vmax.f32 %v607_v33, 0.0  ;;  %v1047_v46 = vunpack.c.h.bf16 %v1123_v24 }
  0x75   :  { %v237_v44 = vmul.f32 %v1685_v31, %v902_v34  ;;  %v460_v45 = vmul.f32 %v1695_v35, %v1046_v36  ;;  %v609_v48 = vadd.f32 %v1721_v53, %v530_v38  ;;  %v531_v49 = vadd.f32 %v459_v39, %v236_v5 }
  0x76   :  { %v680_v47 = vmax.f32 %v608_v37, 0.0  ;;  %v238_v50 = vmul.f32 %v1685_v31, %v903_v40  ;;  %751 = vst [vmem:[%s1842_s5 + $0x1f0] sm:$0xff] %v679_v43  ;;  %v461_v52 = vmul.f32 %v1695_v35, %v1047_v46  ;;  %v906_v18 = vunpack.c.l.bf16 %v1089_v41 }
  0x77   :  { %v532_v51 = vadd.f32 %v460_v45, %v237_v44  ;;  %v1050_v54 = vunpack.c.l.bf16 %v1124_v42  ;;  %v681_v56 = vmax.f32 %v609_v48, 0.0  ;;  %v610_v57 = vadd.f32 %v1721_v53, %v531_v49 }
  0x78   :  { %752 = vst [vmem:[%s1842_s5 + $0x1f8] sm:$0xff] %v680_v47  ;;  %v907_v58 = vunpack.c.h.bf16 %v1089_v41  ;;  %v1051_v59 = vunpack.c.h.bf16 %v1124_v42  ;;  %v533_v62 = vadd.f32 %v461_v52, %v238_v50  ;;  %v239_v63 = vmul.f32 %v1685_v31, %v906_v18 }
  0x79   :  { %v611_v61 = vadd.f32 %v1721_v53, %v532_v51  ;;  %v462_v0 = vmul.f32 %v1695_v35, %v1050_v54  ;;  %753 = vst [vmem:[%s1842_s5 + $0x200] sm:$0xff] %v681_v56  ;;  %v682_v2 = vmax.f32 %v610_v57, 0.0  ;;  %v910_v6 = vunpack.c.l.bf16 %v1090_v55 }
  0x7a   :  { %v240_v3 = vmul.f32 %v1685_v31, %v907_v58  ;;  %v463_v4 = vmul.f32 %v1695_v35, %v1051_v59  ;;  %v612_v8 = vadd.f32 %v1721_v53, %v533_v62  ;;  %v1054_v10 = vunpack.c.l.bf16 %v1125_v60 }
  0x7b   :  { %v683_v7 = vmax.f32 %v611_v61, 0.0  ;;  %v534_v9 = vadd.f32 %v462_v0, %v239_v63  ;;  %754 = vst [vmem:[%s1842_s5 + $0x208] sm:$0xff] %v682_v2  ;;  %v241_v12 = vmul.f32 %v1685_v31, %v910_v6  ;;  %v911_v13 = vunpack.c.h.bf16 %v1090_v55 }
  0x7c   :  { %v535_v11 = vadd.f32 %v463_v4, %v240_v3  ;;  %v1055_v14 = vunpack.c.h.bf16 %v1125_v60  ;;  %v684_v15 = vmax.f32 %v612_v8, 0.0  ;;  %v464_v17 = vmul.f32 %v1695_v35, %v1054_v10 }
  0x7d   :  { %755 = vst [vmem:[%s1842_s5 + $0x210] sm:$0xff] %v683_v7  ;;  %v613_v16 = vadd.f32 %v1721_v53, %v534_v9  ;;  %v242_v20 = vmul.f32 %v1685_v31, %v911_v13 }
  0x7e   :  { %v614_v19 = vadd.f32 %v1721_v53, %v535_v11  ;;  %v465_v21 = vmul.f32 %v1695_v35, %v1055_v14  ;;  %756 = vst [vmem:[%s1842_s5 + $0x218] sm:$0xff] %v684_v15  ;;  %v536_v23 = vadd.f32 %v464_v17, %v241_v12 }
  0x7f   :  { %v685_v22 = vmax.f32 %v613_v16, 0.0 }
  0x80   :  { %v686_v24 = vmax.f32 %v614_v19, 0.0  ;;  %v537_v25 = vadd.f32 %v465_v21, %v242_v20  ;;  %v615_v26 = vadd.f32 %v1721_v53, %v536_v23 }
  0x81   :  { %757 = vst [vmem:[%s1842_s5 + $0x220] sm:$0xff] %v685_v22 }
  0x82   :  { %758 = vst [vmem:[%s1842_s5 + $0x228] sm:$0xff] %v686_v24  ;;  %v616_v31 = vadd.f32 %v1721_v53, %v537_v25  ;;  %v687_v35 = vmax.f32 %v615_v26, 0.0 }
  0x84   :  { %v688_v27 = vmax.f32 %v616_v31, 0.0  ;;  %759 = vst [vmem:[%s1842_s5 + $0x230] sm:$0xff] %v687_v35 }
  0x86   :  { %760 = vst [vmem:[%s1842_s5 + $0x238] sm:$0xff] %v688_v27 }

// kernel: res_block.4
= control target key start
LH: loop header
LB: loop body
LE: loop exit
PB: predicated region body
PF: predicated region fallthrough
CT: control target
= control target key end

     0   :  { %s7046_s18 = smov 0   ;;  %s9524_s0 = inlined_call_operand.vmem [shape: bf16[2,288,128], index: 0, kind: input, shape index: {}]   ;;  %s9525_s1 = inlined_call_operand.vmem [shape: f32[288,1], index: 1, kind: input, shape index: {}]   ;;  %s9526_s2 = inlined_call_operand.vmem [shape: f32[2,128], index: 2, kind: input, shape index: {}]   ;;  %s9527_s3 = inlined_call_operand.vmem [shape: bf16[9,128,128], index: 3, kind: input, shape index: {}]   ;;  %s9528_s4 = inlined_call_operand.vmem [shape: bf16[2,288,128], index: 4, kind: output, shape index: {0}]   ;;  %s9529_s5 = inlined_call_operand.vmem [shape: f32[2,2,128], index: 5, kind: output, shape index: {1}]  }
   0x1 LB: > { %s5354_s19 = sadd.s32 4294967295, %s7013_s18   ;;  %p5358_p0 = scmp.ge.s32.totalorder %s7013_s18, 1  ;;  %s7013_s18 = sphi %s7046_s18, %s16_s18  }
   0x2   : > { %p190_p1 = scmp.lt.s32.totalorder %s7013_s18, 3 }
   0x4   : > { %p191_p2 = pnand %p5358_p0, %p190_p1 }
   0x6   : > { %194 = sbr.rel (%p191_p2) target bundleno = 748 (0x2ec), region = 36 }
   0xb   : > { %v252_v0 = vld [vmem:[%s9525_s1 + $0x78] sm:$0xff]  ;;  %v250_v1 = vld [vmem:[%s9525_s1 + $0x68] sm:$0xff]  ;;  %v253_v2 = vld [vmem:[%s9525_s1 + $0x80] sm:$0xff]  ;;  %v7015_v3 = vmov 0   ;;  %p7167_p3 = scmp.lt.s32.totalorder %s5354_s19, 1 }
   0xc   : > { %6835 = vset.pattern.permute.xlu1 %v7015_v3  ;;  %715 = vst [vmem:[#allocation2] sm:$0xf] %v7015_v3  ;;  %716 = vst [vmem:[#allocation2 + $0x4] sm:$0xf] %v7015_v3  ;;  %6834 = vset.pattern.permute.xlu0 %v7015_v3  ;;  %vm288_vm0 = vcmp.gt.f32.partialorder %v252_v0, 0.0  ;;  %vm286_vm1 = vcmp.gt.f32.partialorder %v250_v1, 0.0 }
   0xd   : > { %717 = vst [vmem:[#allocation2 + $0x8] sm:$0xf] %v7015_v3  ;;  %898 = vst [vmem:[#allocation2 + $0x9c] sm:$0xf] %v7015_v3  ;;  %vm289_vm2 = vcmp.gt.f32.partialorder %v253_v2, 0.0  ;;  %v251_v4 = vld [vmem:[%s9525_s1 + $0x70] sm:$0xff] }
   0xe   : > { %899 = vst [vmem:[#allocation2 + $0xa0] sm:$0xf] %v7015_v3  ;;  %900 = vst [vmem:[#allocation2 + $0xa4] sm:$0xf] %v7015_v3  ;;  %v514_v5 = vsel %vm288_vm0, 1, %v7015_v3  ;;  %v512_v6 = vsel %vm286_vm1, 1, %v7015_v3 }
   0xf   : > { %vm287_vm3 = vcmp.gt.f32.partialorder %v251_v4, 0.0  ;;  %v255_v7 = vld [vmem:[%s9525_s1 + $0x90] sm:$0xff]  ;;  %v254_v8 = vld [vmem:[%s9525_s1 + $0x88] sm:$0xff]  ;;  %581 = vperm.xlu1 %6835, %v514_v5   ;;  %575 = vperm.xlu0 %6834, %v512_v6   ;;  %v515_v9 = vsel %vm289_vm2, 1, %v7015_v3  ;;  %v257_v11 = vld [vmem:[%s9525_s1 + $0xa0] sm:$0xff]  ;;  %s9928_s19 = smov (!%p7167_p3, %s5354_s19), 1 }
  0x10   : > { %v513_v10 = vsel %vm287_vm3, 1, %v7015_v3  ;;  %vm291_vm4 = vcmp.gt.f32.partialorder %v255_v7, 0.0  ;;  %vm290_vm5 = vcmp.gt.f32.partialorder %v254_v8, 0.0  ;;  %v256_v12 = vld [vmem:[%s9525_s1 + $0x98] sm:$0xff]  ;;  %vm293_vm6 = vcmp.gt.f32.partialorder %v257_v11, 0.0  ;;  %v259_v15 = vld [vmem:[%s9525_s1 + $0xb0] sm:$0xff] }
  0x11   : > { %v517_v13 = vsel %vm291_vm4, 1, %v7015_v3  ;;  %v516_v14 = vsel %vm290_vm5, 1, %v7015_v3  ;;  %vm292_vm7 = vcmp.gt.f32.partialorder %v256_v12, 0.0  ;;  %v258_v16 = vld [vmem:[%s9525_s1 + $0xa8] sm:$0xff]  ;;  %v519_v17 = vsel %vm293_vm6, 1, %v7015_v3  ;;  %v237_v20 = vld [vmem:[%s9525_s1] sm:$0xff] }
  0x12   : > { %v518_v18 = vsel %vm292_vm7, 1, %v7015_v3  ;;  %vm295_vm8 = vcmp.gt.f32.partialorder %v259_v15, 0.0  ;;  %vm294_vm9 = vcmp.gt.f32.partialorder %v258_v16, 0.0  ;;  %v238_v19 = vld [vmem:[%s9525_s1 + $0x8] sm:$0xff]  ;;  %vm273_vm11 = vcmp.gt.f32.partialorder %v237_v20, 0.0  ;;  %v260_v23 = vld [vmem:[%s9525_s1 + $0xb8] sm:$0xff] }
  0x13   : > { %584 = vperm.xlu1 %6835, %v515_v9   ;;  %578 = vperm.xlu0 %6834, %v513_v10   ;;  %v521_v21 = vsel %vm295_vm8, 1, %v7015_v3  ;;  %v520_v22 = vsel %vm294_vm9, 1, %v7015_v3  ;;  %vm274_vm10 = vcmp.gt.f32.partialorder %v238_v19, 0.0  ;;  %v239_v24 = vld [vmem:[%s9525_s1 + $0x10] sm:$0xff]  ;;  %v6836_v25 = vld [vmem:[%s9527_s3 + $0x78] sm:$0xff]   ;;  %v499_v27 = vsel %vm273_vm11, 1, %v7015_v3 }
  0x14   : > { %v500_v26 = vsel %vm274_vm10, 1, %v7015_v3  ;;  %vm296_vm12 = vcmp.gt.f32.partialorder %v260_v23, 0.0  ;;  %v262_v28 = vld [vmem:[%s9525_s1 + $0xc8] sm:$0xff]  ;;  %v6837_v29 = vld [vmem:[%s9527_s3 + $0x70] sm:$0xff]   ;;  %vm275_vm13 = vcmp.gt.f32.partialorder %v239_v24, 0.0  ;;  %6808 = vmatprep.subr.bf16.mxu1 %v6836_v25  ;;  %6340 = vmatprep.subr.bf16.mxu0 %v6836_v25  ;;  %v261_v30 = vld [vmem:[%s9525_s1 + $0xc0] sm:$0xff] }
  0x15   : > { %6816 = vmatpush3.bf16.msra.mxu1 %v6836_v25  ;;  %6341 = vmatpush3.bf16.msra.mxu0 %v6836_v25  ;;  %v522_v31 = vsel %vm296_vm12, 1, %v7015_v3  ;;  %vm298_vm14 = vcmp.gt.f32.partialorder %v262_v28, 0.0  ;;  %v501_v32 = vsel %vm275_vm13, 1, %v7015_v3  ;;  %v6838_v33 = vld [vmem:[%s9527_s3 + $0x68] sm:$0xff]   ;;  %vm297_vm15 = vcmp.gt.f32.partialorder %v261_v30, 0.0  ;;  %v240_v34 = vld [vmem:[%s9525_s1 + $0x18] sm:$0xff] }
  0x16   : > { %6809 = vmatprep.subr.bf16.mxu1 %v6837_v29  ;;  %6342 = vmatprep.subr.bf16.mxu0 %v6837_v29  ;;  %v263_v35 = vld [vmem:[%s9525_s1 + $0xd0] sm:$0xff]  ;;  %v524_v36 = vsel %vm298_vm14, 1, %v7015_v3  ;;  %v242_v37 = vld [vmem:[%s9525_s1 + $0x28] sm:$0xff]  ;;  %v523_v38 = vsel %vm297_vm15, 1, %v7015_v3  ;;  %v6839_v39 = vld [vmem:[%s9527_s3 + $0x60] sm:$0xff]   ;;  %vm276_vm0 = vcmp.gt.f32.partialorder %v240_v34, 0.0 }
  0x17   : > { %590 = vperm.xlu1 %6835, %v517_v13   ;;  %587 = vperm.xlu0 %6834, %v516_v14   ;;  %vm299_vm1 = vcmp.gt.f32.partialorder %v263_v35, 0.0  ;;  %v241_v40 = vld [vmem:[%s9525_s1 + $0x20] sm:$0xff]  ;;  %vm278_vm2 = vcmp.gt.f32.partialorder %v242_v37, 0.0  ;;  %v502_v41 = vsel %vm276_vm0, 1, %v7015_v3  ;;  %v264_v43 = vld [vmem:[%s9525_s1 + $0xd8] sm:$0xff]  ;;  %v243_v46 = vld [vmem:[%s9525_s1 + $0x30] sm:$0xff] }
  0x18   : > { %v525_v42 = vsel %vm299_vm1, 1, %v7015_v3  ;;  %vm277_vm3 = vcmp.gt.f32.partialorder %v241_v40, 0.0  ;;  %v6840_v44 = vld [vmem:[%s9527_s3 + $0x58] sm:$0xff]   ;;  %v504_v45 = vsel %vm278_vm2, 1, %v7015_v3  ;;  %v266_v47 = vld [vmem:[%s9525_s1 + $0xe8] sm:$0xff]  ;;  %vm300_vm4 = vcmp.gt.f32.partialorder %v264_v43, 0.0 }
  0x19   : > { %6817 = vmatpush3.bf16.msra.mxu1 %v6837_v29  ;;  %6343 = vmatpush3.bf16.msra.mxu0 %v6837_v29  ;;  %v503_v48 = vsel %vm277_vm3, 1, %v7015_v3  ;;  %vm279_vm5 = vcmp.gt.f32.partialorder %v243_v46, 0.0  ;;  %v6841_v49 = vld [vmem:[%s9527_s3 + $0x50] sm:$0xff]   ;;  %vm302_vm6 = vcmp.gt.f32.partialorder %v266_v47, 0.0  ;;  %v265_v50 = vld [vmem:[%s9525_s1 + $0xe0] sm:$0xff]  ;;  %v526_v51 = vsel %vm300_vm4, 1, %v7015_v3 }
  0x1a   : > { %6810 = vmatprep.subr.bf16.mxu1 %v6838_v33  ;;  %6344 = vmatprep.subr.bf16.mxu0 %v6838_v33  ;;  %v505_v52 = vsel %vm279_vm5, 1, %v7015_v3  ;;  %v244_v53 = vld [vmem:[%s9525_s1 + $0x38] sm:$0xff]  ;;  %v6842_v54 = vld [vmem:[%s9527_s3 + $0x48] sm:$0xff]   ;;  %v528_v55 = vsel %vm302_vm6, 1, %v7015_v3  ;;  %vm301_vm7 = vcmp.gt.f32.partialorder %v265_v50, 0.0  ;;  %v267_v56 = vld [vmem:[%s9525_s1 + $0xf0] sm:$0xff] }
  0x1b   : > { %596 = vperm.xlu1 %6835, %v519_v17   ;;  %593 = vperm.xlu0 %6834, %v518_v18   ;;  %v246_v57 = vld [vmem:[%s9525_s1 + $0x48] sm:$0xff]  ;;  %v527_v58 = vsel %vm301_vm7, 1, %v7015_v3  ;;  %vm280_vm8 = vcmp.gt.f32.partialorder %v244_v53, 0.0  ;;  %vm303_vm9 = vcmp.gt.f32.partialorder %v267_v56, 0.0  ;;  %v245_v59 = vld [vmem:[%s9525_s1 + $0x40] sm:$0xff]  ;;  %v268_v61 = vld [vmem:[%s9525_s1 + $0xf8] sm:$0xff] }
  0x1c   : > { %v6843_v60 = vld [vmem:[%s9527_s3 + $0x40] sm:$0xff]   ;;  %vm282_vm10 = vcmp.gt.f32.partialorder %v246_v57, 0.0  ;;  %v506_v62 = vsel %vm280_vm8, 1, %v7015_v3  ;;  %v529_v63 = vsel %vm303_vm9, 1, %v7015_v3  ;;  %v247_v1 = vld [vmem:[%s9525_s1 + $0x50] sm:$0xff]  ;;  %vm281_vm11 = vcmp.gt.f32.partialorder %v245_v59, 0.0 }
  0x1d   : > { %6818 = vmatpush3.bf16.msra.mxu1 %v6838_v33  ;;  %6345 = vmatpush3.bf16.msra.mxu0 %v6838_v33  ;;  %v508_v0 = vsel %vm282_vm10, 1, %v7015_v3  ;;  %v270_v2 = vld [vmem:[%s9525_s1 + $0x108] sm:$0xff]  ;;  %s6824_s30 = smul.u32 144, %s9928_s19  ;;  %v7222_v4 = vld [vmem:[%s9527_s3 + $0x38] sm:$0xff]   ;;  %v507_v5 = vsel %vm281_vm11, 1, %v7015_v3  ;;  %vm304_vm12 = vcmp.gt.f32.partialorder %v268_v61, 0.0 }
  0x1e   : > { %6811 = vmatprep.subr.bf16.mxu1 %v6839_v39  ;;  %6346 = vmatprep.subr.bf16.mxu0 %v6839_v39  ;;  %v269_v6 = vld [vmem:[%s9525_s1 + $0x100] sm:$0xff]  ;;  %vm283_vm13 = vcmp.gt.f32.partialorder %v247_v1, 0.0  ;;  %vm306_vm14 = vcmp.gt.f32.partialorder %v270_v2, 0.0  ;;  %v530_v7 = vsel %vm304_vm12, 1, %v7015_v3  ;;  %v248_v9 = vld [vmem:[%s9525_s1 + $0x58] sm:$0xff]  ;;  %v271_v11 = vld [vmem:[%s9525_s1 + $0x110] sm:$0xff] }
  0x1f   : > { %602 = vperm.xlu1 %6835, %v521_v21   ;;  %599 = vperm.xlu0 %6834, %v520_v22   ;;  %s7234_s12 = scalar_lea.vmem %s9524_s0, %s6824_s30  ;;  %v509_v8 = vsel %vm283_vm13, 1, %v7015_v3  ;;  %vm305_vm15 = vcmp.gt.f32.partialorder %v269_v6, 0.0  ;;  %v272_v13 = vld [vmem:[%s9525_s1 + $0x118] sm:$0xff]  ;;  %v7254_v14 = vld [vmem:[%s9526_s2] ss:$0 sm:$0xff]  ;;  %v532_v15 = vsel %vm306_vm14, 1, %v7015_v3  ;;  %s9397_s25 = scalar_lea.vmem %s9528_s4, %s6824_s30 }
  0x20   : > { %v7242_v10 = vld [vmem:[%s7234_s12 + $0x28] sm:$0xff]   ;;  %v7261_v16 = vld [vmem:[%s9526_s2 + $0x1] ss:$0 sm:$0xff]  ;;  %v7266_v17 = vld [vmem:[%s9527_s3 + $0xb8] sm:$0xff]   ;;  %v531_v19 = vsel %vm305_vm15, 1, %v7015_v3  ;;  %vm284_vm0 = vcmp.gt.f32.partialorder %v248_v9, 0.0 }
  0x21   : > { %6819 = vmatpush3.bf16.msra.mxu1 %v6839_v39  ;;  %6347 = vmatpush3.bf16.msra.mxu0 %v6839_v39  ;;  %v5831_v12 = vunpack.c.h.bf16 %v7242_v10  ;;  %v6060_v20 = vld [vmem:[%s7234_s12 + $0x30] sm:$0xff]   ;;  %v7272_v21 = vld [vmem:[%s7234_s12 + $0x88] sm:$0xff]   ;;  %vm307_vm1 = vcmp.gt.f32.partialorder %v271_v11, 0.0  ;;  %v249_v22 = vld [vmem:[%s9525_s1 + $0x60] sm:$0xff]  ;;  %vm308_vm2 = vcmp.gt.f32.partialorder %v272_v13, 0.0  ;;  %vm1065_vm10 = vcmask 1044480  }
  0x22   : > { %6812 = vmatprep.subr.bf16.mxu1 %v6840_v44  ;;  %6348 = vmatprep.subr.bf16.mxu0 %v6840_v44  ;;  %v5879_v24 = vunpack.c.h.bf16 %v7272_v21  ;;  %v5834_v25 = vunpack.c.l.bf16 %v6060_v20  ;;  %v533_v29 = vsel %vm307_vm1, 1, %v7015_v3  ;;  %vm285_vm3 = vcmp.gt.f32.partialorder %v249_v22, 0.0  ;;  %v6061_v34 = vld [vmem:[%s7234_s12 + $0x38] sm:$0xff]   ;;  %v6062_v35 = vld [vmem:[%s7234_s12 + $0x40] sm:$0xff]   ;;  %s5361_s30 = sshll.u32 %s9928_s19, 1 }
  0x23   : > { %539 = vperm.xlu1 %6835, %v500_v26   ;;  %536 = vperm.xlu0 %6834, %v499_v27   ;;  %v397_v18 = vmul.f32 %v5831_v12, %v7254_v14  ;;  %v510_v26 = vsel %vm284_vm0, 1, %v7015_v3  ;;  %v511_v33 = vsel %vm285_vm3, 1, %v7015_v3  ;;  %v5839_v37 = vunpack.c.h.bf16 %v6061_v34  ;;  %v7305_v50 = vld [vmem:[%s7234_s12 + $0x60] sm:$0xff]   ;;  %s235_s28 = scalar_lea.vmem %s9529_s5, %s5361_s30 }
  0x24   : > { %v421_v27 = vmul.f32 %v5879_v24, %v7254_v14  ;;  %v398_v28 = vmul.f32 %v5834_v25, %v7254_v14  ;;  %v5842_v39 = vunpack.c.l.bf16 %v6062_v35  ;;  %v5838_v40 = vunpack.c.l.bf16 %v6061_v34 }
  0x25   : > { %6820 = vmatpush3.bf16.msra.mxu1 %v6840_v44  ;;  %6349 = vmatpush3.bf16.msra.mxu0 %v6840_v44  ;;  %v7279_v23 = vadd.f32 %v7261_v16, %v397_v18  ;;  %v5843_v44 = vunpack.c.h.bf16 %v6062_v35  ;;  %v401_v46 = vmul.f32 %v5839_v37, %v7254_v14  ;;  %v5859_v61 = vunpack.c.h.bf16 %v7305_v50  ;;  %v6067_v35 = vld [vmem:[%s7234_s12 + $0x68] sm:$0xff]  }
  0x26   : > { %6813 = vmatprep.subr.bf16.mxu1 %v6841_v49  ;;  %6350 = vmatprep.subr.bf16.mxu0 %v6841_v49  ;;  %v7287_v30 = vadd.f32 %v7261_v16, %v421_v27  ;;  %v400_v53 = vmul.f32 %v5838_v40, %v7254_v14  ;;  %v5858_v40 = vunpack.c.l.bf16 %v7305_v50  ;;  %vm1349_vm15 = vsmask.f32 5376 }
  0x27   : > { %605 = vperm.xlu1 %6835, %v522_v31   ;;  %542 = vperm.xlu0 %6834, %v501_v32   ;;  %v7290_v31 = vadd.f32 %v7261_v16, %v398_v28  ;;  %v534_v32 = vsel %vm308_vm2, 1, %v7015_v3  ;;  %v403_v56 = vmul.f32 %v5843_v44, %v7254_v14  ;;  %v411_v18 = vmul.f32 %v5859_v61, %v7254_v14 }
  0x28   : > { %v7325_v6 = vadd.f32 %v7261_v16, %v400_v53  ;;  %v6068_v53 = vld [vmem:[%s7234_s12 + $0x70] sm:$0xff]   ;;  %vm1784_vm0 = vsmask.f32 4352 }
  0x29   : > { %6821 = vmatpush3.bf16.msra.mxu1 %v6841_v49  ;;  %6351 = vmatpush3.bf16.msra.mxu0 %v6841_v49  ;;  %v7302_v49 = vld [vmem:[%s7234_s12 + $0x8] sm:$0xff]   ;;  %v7332_v9 = vadd.f32 %v7261_v16, %v403_v56  ;;  %v5867_v61 = vunpack.c.h.bf16 %v6068_v53 }
  0x2a   : > { %6814 = vmatprep.subr.bf16.mxu1 %v6842_v54  ;;  %6352 = vmatprep.subr.bf16.mxu0 %v6842_v54  ;;  %v477_v27 = vmax.f32 %v7325_v6, 0.0  ;;  %v5815_v44 = vunpack.c.h.bf16 %v7302_v49  ;;  %v7405_v6 = vld [vmem:[#allocation2 + $0x4] sm:$0xf] }
  0x2b   : > { %611 = vperm.xlu1 %6835, %v524_v36   ;;  %608 = vperm.xlu0 %6834, %v523_v38   ;;  %v6063_v36 = vld [vmem:[%s7234_s12 + $0x48] sm:$0xff]   ;;  %v5835_v38 = vunpack.c.h.bf16 %v6060_v20 }
  0x2c   : > { %v5846_v43 = vunpack.c.l.bf16 %v6063_v36  ;;  %v5847_v3 = vunpack.c.h.bf16 %v6063_v36  ;;  %v6056_v36 = vld [vmem:[%s7234_s12 + $0x10] sm:$0xff]  }
  0x2d   : > { %6822 = vmatpush3.bf16.msra.mxu1 %v6842_v54  ;;  %6353 = vmatpush3.bf16.msra.mxu0 %v6842_v54 }
  0x2e   : > { %6815 = vmatprep.subr.bf16.mxu1 %v6843_v60  ;;  %6354 = vmatprep.subr.bf16.mxu0 %v6843_v60 }
  0x2f   : > { %545 = vperm.xlu1 %6835, %v502_v41   ;;  %614 = vperm.xlu0 %6834, %v525_v42   ;;  %v6064_v41 = vld [vmem:[%s7234_s12 + $0x50] sm:$0xff]   ;;  %v6065_v42 = vld [vmem:[%s7234_s12 + $0x58] sm:$0xff]  }
  0x30   : > { %v5850_v47 = vunpack.c.l.bf16 %v6064_v41  ;;  %v5851_v54 = vunpack.c.h.bf16 %v6064_v41  ;;  %v5855_v59 = vunpack.c.h.bf16 %v6065_v42 }
  0x31   : > { %6823 = vmatpush3.bf16.msra.mxu1 %v6843_v60  ;;  %6355 = vmatpush3.bf16.msra.mxu0 %v6843_v60  ;;  %v5814_v60 = vunpack.c.l.bf16 %v7302_v49 }
  0x32   : > { %6392 = vmatprep.subr.bf16.mxu1 %v7222_v4  ;;  %6444 = vmatprep.subr.bf16.mxu0 %v7266_v17  ;;  %v409_v13 = vmul.f32 %v5855_v59, %v7254_v14  ;;  %v389_v59 = vmul.f32 %v5815_v44, %v7254_v14  ;;  %v415_v44 = vmul.f32 %v5867_v61, %v7254_v14 }
  0x33   : > { %551 = vperm.xlu1 %6835, %v504_v45   ;;  %548 = vperm.xlu0 %6834, %v503_v48   ;;  %v5809_v45 = vld [vmem:[%s7234_s12] sm:$0xff]   ;;  %v5854_v48 = vunpack.c.l.bf16 %v6065_v42 }
  0x34   : > { %v5811_v57 = vunpack.c.h.bf16 %v5809_v45  ;;  %v7365_v37 = vadd.f32 %v7261_v16, %v409_v13 }
  0x35   : > { %v408_v1 = vmul.f32 %v5854_v48, %v7254_v14  ;;  %v5819_v48 = vunpack.c.h.bf16 %v6056_v36 }
  0x36   : > { %v387_v11 = vmul.f32 %v5811_v57, %v7254_v14 }
  0x37   : > { %617 = vperm.xlu1 %6835, %v526_v51   ;;  %554 = vperm.xlu0 %6834, %v505_v52   ;;  %v399_v51 = vmul.f32 %v5835_v38, %v7254_v14  ;;  %v402_v52 = vmul.f32 %v5842_v39, %v7254_v14  ;;  %v7346_v24 = vadd.f32 %v7261_v16, %v408_v1 }
  0x38   : > { %v7371_v39 = vadd.f32 %v7261_v16, %v411_v18 }
  0x39   : > { %v7319_v2 = vadd.f32 %v7261_v16, %v399_v51  ;;  %v5818_v51 = vunpack.c.l.bf16 %v6056_v36 }
  0x3b   : > { %623 = vperm.xlu1 %6835, %v528_v55   ;;  %620 = vperm.xlu0 %6834, %v527_v58   ;;  %v404_v55 = vmul.f32 %v5846_v43, %v7254_v14  ;;  %v5810_v58 = vunpack.c.l.bf16 %v5809_v45  ;;  %v476_v25 = vmax.f32 %v7319_v2, 0.0  ;;  %v485_v43 = vmax.f32 %v7346_v24, 0.0 }
  0x3c   : > { %v391_v2 = vmul.f32 %v5819_v48, %v7254_v14 }
  0x3d   : > { %v386_v12 = vmul.f32 %v5810_v58, %v7254_v14  ;;  %v410_v58 = vmul.f32 %v5858_v40, %v7254_v14 }
  0x3f   : > { %557 = vperm.xlu1 %6835, %v506_v62   ;;  %626 = vperm.xlu0 %6834, %v529_v63   ;;  %v442_v62 = vadd.f32 %v7261_v16, %v401_v46  ;;  %v406_v63 = vmul.f32 %v5850_v47, %v7254_v14  ;;  %v7360_v34 = vadd.f32 %v7261_v16, %v386_v12  ;;  %v5866_v12 = vunpack.c.l.bf16 %v6068_v53 }
  0x41   : > { %v7340_v20 = vadd.f32 %v7261_v16, %v406_v63 }
  0x43   : > { %563 = vperm.xlu1 %6835, %v508_v0   ;;  %560 = vperm.xlu0 %6834, %v507_v5   ;;  %v405_v0 = vmul.f32 %v5847_v3, %v7254_v14  ;;  %v7322_v5 = vadd.f32 %v7261_v16, %v402_v52  ;;  %v483_v41 = vmax.f32 %v7340_v20, 0.0  ;;  %v5862_v3 = vunpack.c.l.bf16 %v6067_v35  ;;  %v6057_v52 = vld [vmem:[%s7234_s12 + $0x18] sm:$0xff]  }
  0x45   : > { %v7343_v22 = vadd.f32 %v7261_v16, %v405_v0  ;;  %v412_v1 = vmul.f32 %v5862_v3, %v7254_v14 }
  0x47   : > { %629 = vperm.xlu1 %6835, %v530_v7   ;;  %566 = vperm.xlu0 %6834, %v509_v8   ;;  %v407_v7 = vmul.f32 %v5851_v54, %v7254_v14  ;;  %v7329_v8 = vadd.f32 %v7261_v16, %v404_v55  ;;  %v482_v42 = vmax.f32 %v7343_v22, 0.0  ;;  %v463_v54 = vmax.f32 %v7360_v34, 0.0 }
  0x48   : > { %v5863_v55 = vunpack.c.h.bf16 %v6067_v35 }
  0x49   : > { %v7352_v28 = vadd.f32 %v7261_v16, %v407_v7  ;;  %v954_v7 = vld [vmem:[#allocation2] sm:$0x8] }
  0x4b   : > { %635 = vperm.xlu1 %6835, %v532_v15   ;;  %632 = vperm.xlu0 %6834, %v531_v19   ;;  %v388_v15 = vmul.f32 %v5814_v60, %v7254_v14  ;;  %v478_v19 = vmax.f32 %v442_v62, 0.0  ;;  %v484_v47 = vmax.f32 %v7352_v28, 0.0  ;;  %v5822_v60 = vunpack.c.l.bf16 %v6057_v52 }
  0x4d   : > { %v7368_v38 = vadd.f32 %v7261_v16, %v388_v15  ;;  %v392_v40 = vmul.f32 %v5822_v60, %v7254_v14 }
  0x4f   : > { %569 = vperm.xlu1 %6835, %v510_v26   ;;  %638 = vperm.xlu0 %6834, %v533_v29   ;;  %v479_v26 = vmax.f32 %v7322_v5, 0.0  ;;  %v481_v29 = vmax.f32 %v7329_v8, 0.0  ;;  %v465_v56 = vmax.f32 %v7368_v38, 0.0  ;;  %v390_v5 = vmul.f32 %v5818_v51, %v7254_v14 }
  0x50   : > { %v7421_v51 = vadd.f32 %v7261_v16, %v410_v58  ;;  %v7457_v8 = vadd.f32 %v7261_v16, %v415_v44  ;;  %v7492_v44 = vld [vmem:[%s7234_s12 + $0x20] sm:$0xff]  }
  0x51   : > { %v7438_v53 = vadd.f32 %v7261_v16, %v390_v5  ;;  %v5827_v28 = vunpack.c.h.bf16 %v7492_v44 }
  0x53   : > { %641 = vperm.xlu1 %6835, %v534_v32   ;;  %572 = vperm.xlu0 %6834, %v511_v33   ;;  %v480_v32 = vmax.f32 %v7332_v9, 0.0  ;;  %v7357_v33 = vadd.f32 %v7261_v16, %v387_v11  ;;  %v413_v11 = vmul.f32 %v5863_v55, %v7254_v14 }
  0x55   : > { %v464_v50 = vmax.f32 %v7357_v33, 0.0 }
  0x8a   : > { %v7378_v45 = vpop.permute.xlu1 %581  ;;  %v7380_v46 = vpop.permute.xlu0 %575 }
  0x8b   : > { %9617 = vst [vmem:[#allocation3_spill] sm:$0xff] %v7378_v45  ;;  %9618 = vst [vmem:[#allocation4_spill] sm:$0xff] %v7380_v46  ;;  %vm9566_vm4 = vcmp.eq.s32.totalorder %v7378_v45, 1  ;;  %vm9564_vm5 = vcmp.eq.s32.totalorder %v7380_v46, 1 }
  0x8c   : > { %v694_v62 = vsel %vm9566_vm4, %v478_v19, 0.0  ;;  %v692_v13 = vsel %vm9564_vm5, %v476_v25, 0.0  ;;  %v5823_v19 = vunpack.c.h.bf16 %v6057_v52  ;;  %v7424_v25 = vadd.f32 %v7261_v16, %v389_v59 }
  0x8d   : > { %v7435_v52 = vadd.f32 %v7261_v16, %v391_v2  ;;  %v414_v59 = vmul.f32 %v5866_v12, %v7254_v14 }
  0x8e   : > { %v7396_v63 = vpop.permute.xlu1 %584  ;;  %v7398_v0 = vpop.permute.xlu0 %578  ;;  %v393_v60 = vmul.f32 %v5823_v19, %v7254_v14 }
  0x8f   : > { %9619 = vst [vmem:[#allocation5_spill] sm:$0xff] %v7396_v63  ;;  %9620 = vst [vmem:[#allocation6_spill] sm:$0xff] %v7398_v0  ;;  %vm9555_vm6 = vcmp.eq.s32.totalorder %v7396_v63, 1  ;;  %vm9567_vm7 = vcmp.eq.s32.totalorder %v7398_v0, 1 }
  0x90   : > { %v695_v15 = vsel %vm9555_vm6, %v479_v26, 0.0  ;;  %v693_v18 = vsel %vm9567_vm7, %v477_v27, 0.0  ;;  %v7427_v26 = vadd.f32 %v7261_v16, %v412_v1  ;;  %v7430_v27 = vcombine.low %v954_v7, %v7405_v6 }
  0x91   : > { %v5918_v35 = vpack.c.bf16 %v695_v15, %v694_v62  ;;  %v5913_v36 = vpack.c.bf16 %v693_v18, %v692_v13  ;;  %v7451_v62 = vadd.f32 %v7261_v16, %v413_v11  ;;  %v7454_v1 = vadd.f32 %v7261_v16, %v392_v40 }
  0x92   : > { %v7416_v3 = vpop.permute.xlu1 %590  ;;  %v7418_v48 = vpop.permute.xlu0 %587  ;;  %v7480_v18 = vadd.f32 %v7261_v16, %v414_v59  ;;  %v7483_v19 = vadd.f32 %v7261_v16, %v393_v60 }
  0x93   : > { %9621 = vst [vmem:[#allocation7_spill] sm:$0xff] %v7416_v3  ;;  %9622 = vst [vmem:[#allocation8_spill] sm:$0xff] %v7418_v48  ;;  %vm9552_vm8 = vcmp.eq.s32.totalorder %v7416_v3, 1  ;;  %vm9549_vm9 = vcmp.eq.s32.totalorder %v7418_v48, 1  ;;  %v6868_v3 = vld [vmem:[%s9527_s3 + $0xa0] sm:$0xff]  }
  0x94   : > { %6079 = vst [vmem:[#allocation2 + $0x48] sm:$0xff] %v5918_v35   ;;  %6078 = vst [vmem:[#allocation2 + $0x40] sm:$0xff] %v5913_v36   ;;  %v697_v55 = vsel %vm9552_vm8, %v481_v29, 0.0  ;;  %v696_v58 = vsel %vm9549_vm9, %v480_v32, 0.0  ;;  %v7486_v35 = vld [vmem:[%s7234_s12 + $0x78] sm:$0xff]  }
  0x95   : > { %v5923_v61 = vpack.c.bf16 %v697_v55, %v696_v58  ;;  %v5870_v59 = vunpack.c.l.bf16 %v7486_v35 }
  0x96   : > { %v7459_v9 = vpop.permute.xlu1 %596  ;;  %v7461_v29 = vpop.permute.xlu0 %593 }
  0x97   : > { %9623 = vst [vmem:[#allocation9_spill] sm:$0xff] %v7459_v9  ;;  %9624 = vst [vmem:[#allocation10_spill] sm:$0xff] %v7461_v29  ;;  %vm9535_vm11 = vcmp.eq.s32.totalorder %v7459_v9, 1  ;;  %vm9551_vm12 = vcmp.eq.s32.totalorder %v7461_v29, 1 }
  0x98   : > { %6080 = vst [vmem:[#allocation2 + $0x50] sm:$0xff] %v5923_v61   ;;  %v699_v13 = vsel %vm9535_vm11, %v483_v41, 0.0  ;;  %v698_v15 = vsel %vm9551_vm12, %v482_v42, 0.0 }
  0x99   : > { %v5928_v36 = vpack.c.bf16 %v699_v13, %v698_v15  ;;  %v5871_v13 = vunpack.c.h.bf16 %v7486_v35 }
  0x9a   : > { %v7494_v22 = vpop.permute.xlu1 %602  ;;  %v7496_v42 = vpop.permute.xlu0 %599 }
  0x9b   : > { %9625 = vst [vmem:[#allocation11_spill] sm:$0xff] %v7494_v22  ;;  %9626 = vst [vmem:[#allocation12_spill] sm:$0xff] %v7496_v42  ;;  %vm9534_vm13 = vcmp.eq.s32.totalorder %v7494_v22, 1  ;;  %vm9531_vm14 = vcmp.eq.s32.totalorder %v7496_v42, 1  ;;  %v7500_v55 = vld [vmem:[#allocation2 + $0x40] sm:$0xff]   ;;  %v6845_v58 = vld [vmem:[#allocation2 + $0x48] sm:$0xff]  }
  0x9c   : > { %6081 = vst [vmem:[#allocation2 + $0x58] sm:$0xff] %v5928_v36   ;;  %v701_v60 = vsel %vm9534_vm13, %v485_v43, 0.0  ;;  %v700_v61 = vsel %vm9531_vm14, %v484_v47, 0.0  ;;  %v9530_v41 = vrot.slane %v7500_v55, 3  ;;  %v1083_v40 = vrot.slane %v6845_v58, 3 }
  0x9d   : > { %v5933_v36 = vpack.c.bf16 %v701_v60, %v700_v61  ;;  %v1422_v20 = vshrl.u32 %v7500_v55, 16  ;;  %v5826_v47 = vunpack.c.l.bf16 %v7492_v44  ;;  %v1425_v60 = vshll.u32 %v7500_v55, 16 }
  0x9e   : > { %v7515_v24 = vpop.permute.xlu1 %539  ;;  %v7517_v11 = vpop.permute.xlu0 %536  ;;  %v1084_v61 = vsel %vm1065_vm10, %v9530_v41, %v1083_v40  ;;  %v6856_v41 = vld [vmem:[%s9527_s3 + $0x30] sm:$0xff]   ;;  %v1431_v7 = vshrl.u32 %v6845_v58, 16  ;;  %v1434_v5 = vshll.u32 %v6845_v58, 16 }
  0x9f   : > { %9627 = vst [vmem:[#allocation13_spill] sm:$0xff] %v7515_v24  ;;  %9628 = vst [vmem:[#allocation14_spill] sm:$0xff] %v7517_v11  ;;  %v7519_v43 = vld [vmem:[#allocation2 + $0x50] sm:$0xff]   ;;  %vm644_vm1 = vcmp.eq.s32.totalorder %v7515_v24, 1  ;;  %vm643_vm2 = vcmp.eq.s32.totalorder %v7517_v11, 1  ;;  %v1424_v15 = vrot.slane %v1422_v20, 2  ;;  %6372 = vmatprep.mubr.bf16.mxu1 %v1084_v61  ;;  %v5830_v61 = vunpack.c.l.bf16 %v7242_v10 }
  0xa0   : > { %6082 = vst [vmem:[#allocation2 + $0x60] sm:$0xff] %v5933_v36   ;;  %v680_v44 = vsel %vm644_vm1, %v464_v50, 0.0  ;;  %v679_v35 = vsel %vm643_vm2, %v463_v54, 0.0  ;;  %v1085_v36 = vrot.slane %v7519_v43, 3  ;;  %v1427_v12 = vrot.slane %v1425_v60, 3 }
  0xa1   : > { %v5736_v2 = vpack.c.bf16 %v679_v35, %v679_v35  ;;  %v1821_v33 = vrot.slane %v1422_v20, 3  ;;  %v416_v54 = vmul.f32 %v5870_v59, %v7254_v14  ;;  %v1822_v35 = vrot.slane %v1425_v60, 4 }
  0xa2   : > { %v7542_v57 = vpop.permute.xlu1 %605  ;;  %v7544_v50 = vpop.permute.xlu0 %542  ;;  %v1086_v34 = vsel %vm1065_vm10, %v1083_v40, %v1085_v36  ;;  %v7552_v49 = vor.u32 %v1427_v12, %v1424_v15  ;;  %v1433_v20 = vrot.slane %v1431_v7, 2  ;;  %v1436_v58 = vrot.slane %v1434_v5, 3  ;;  %v6859_v12 = vld [vmem:[%s9527_s3 + $0x28] sm:$0xff]  }
  0xa3   : > { %9629 = vst [vmem:[#allocation15_spill] sm:$0xff] %v7542_v57  ;;  %9630 = vst [vmem:[#allocation16_spill] sm:$0xff] %v7544_v50  ;;  %v7547_v32 = vld [vmem:[#allocation2 + $0x58] sm:$0xff]   ;;  %vm645_vm3 = vcmp.eq.s32.totalorder %v7544_v50, 1  ;;  %6373 = vmatmul.mubr.bf16.vlgmr.msra.gmra.mxu1 %v1086_v34  ;;  %vm9539_vm14 = vcmp.eq.s32.totalorder %v7542_v57, 1  ;;  %v7561_v10 = vor.u32 %v1822_v35, %v1821_v33  ;;  %v1825_v60 = vrot.slane %v1431_v7, 3 }
  0xa4   : > { %862 = vst [vmem:[#allocation2 + $0xc] sm:$0xf] %v5736_v2  ;;  %v681_v40 = vsel %vm645_vm3, %v465_v56, 0.0  ;;  %v1087_v59 = vrot.slane %v7547_v32, 3  ;;  %6393 = vmatpush3.bf16.msra.mxu1 %v7222_v4  ;;  %v7566_v15 = vor.u32 %v1436_v58, %v1433_v20  ;;  %v1826_v34 = vrot.slane %v1434_v5, 4  ;;  %v6863_v7 = vld [vmem:[%s9527_s3 + $0x20] sm:$0xff]  }
  0xa5   : > { %v5883_v2 = vpack.c.bf16 %v681_v40, %v680_v44  ;;  %6394 = vmatprep.subr.bf16.mxu1 %v6856_v41  ;;  %v395_v4 = vmul.f32 %v5827_v28, %v7254_v14  ;;  %v394_v44 = vmul.f32 %v5826_v47, %v7254_v14  ;;  %v9538_v33 = vshrl.u32 %v7519_v43, 16 }
  0xa6   : > { %v7568_v38 = vpop.permute.xlu1 %611  ;;  %v7570_v42 = vpop.permute.xlu0 %608  ;;  %v1088_v56 = vsel %vm1065_vm10, %v1085_v36, %v1087_v59  ;;  %v417_v5 = vmul.f32 %v5871_v13, %v7254_v14  ;;  %v7586_v36 = vsel %vm1349_vm15, %v7552_v49, %v7566_v15  ;;  %v7588_v28 = vor.u32 %v1826_v34, %v1825_v60 }
  0xa7   : > { %9631 = vst [vmem:[#allocation17_spill] sm:$0xff] %v7568_v38  ;;  %9632 = vst [vmem:[#allocation18_spill] sm:$0xff] %v7570_v42  ;;  %v7573_v22 = vld [vmem:[#allocation2 + $0x60] sm:$0xff]   ;;  %vm9536_vm13 = vcmp.eq.s32.totalorder %v7570_v42, 1  ;;  %6376 = vmatprep.mubr.bf16.mxu1 %v1088_v56  ;;  %v9633_v47 = vmax.f32 %v7365_v37, 0.0  ;;  %vm9545_vm11 = vcmp.eq.s32.totalorder %v7568_v38, 1  ;;  %v7623_v60 = vadd.f32 %v7261_v16, %v416_v54 }
  0xa8   : > { %6072 = vst [vmem:[#allocation2 + $0x10] sm:$0xff] %v5883_v2   ;;  %v9634_v13 = vmax.f32 %v7421_v51, 0.0  ;;  %v9537_v58 = vrot.slane %v7573_v22, 3  ;;  %6395 = vmatpush3.bf16.msra.mxu1 %v6856_v41  ;;  %v7603_v37 = vsel %vm1784_vm0, %v7561_v10, %v7588_v28  ;;  %v7626_v2 = vadd.f32 %v7261_v16, %v395_v4  ;;  %v6866_v4 = vld [vmem:[%s9527_s3 + $0x18] sm:$0xff]  }
  0xa9   : > { %v702_v35 = vsel %vm9539_vm14, %v9633_v47, 0.0  ;;  %6396 = vmatprep.subr.bf16.mxu1 %v6859_v12  ;;  %v396_v47 = vmul.f32 %v5830_v61, %v7254_v14  ;;  %v9638_v61 = vmax.f32 %v7371_v39, 0.0  ;;  %v7640_v54 = vadd.f32 %v7261_v16, %v394_v44 }
  0xaa   : > { %v703_v20 = vsel %vm9536_vm13, %v9634_v13, 0.0  ;;  %v7607_v34 = vpop.permute.xlu1 %545  ;;  %v7609_v51 = vpop.permute.xlu0 %614  ;;  %v1090_v56 = vsel %vm1065_vm10, %v1087_v59, %v9537_v58  ;;  %v1442_v13 = vrot.slane %v9538_v33, 2  ;;  %v9637_v59 = vshll.u32 %v7519_v43, 16 }
  0xab   : > { %v5938_v40 = vpack.c.bf16 %v703_v20, %v702_v35  ;;  %9635 = vst [vmem:[#allocation19_spill] sm:$0xff] %v7607_v34  ;;  %9636 = vst [vmem:[#allocation20_spill] sm:$0xff] %v7609_v51  ;;  %v7614_v41 = vld [vmem:[#allocation2 + $0x8] sm:$0xff]   ;;  %v6070_v35 = vld [vmem:[%s7234_s12 + $0x80] sm:$0xff]   ;;  %vm9548_vm13 = vcmp.eq.s32.totalorder %v7609_v51, 1  ;;  %6377 = vmatmul.mubr.bf16.gmra.mxu1 %v1090_v56  ;;  %v704_v33 = vsel %vm9545_vm11, %v9638_v61, 0.0  ;;  %v7658_v57 = vadd.f32 %v7261_v16, %v417_v5 }
  0xac   : > { %v1445_v58 = vrot.slane %v9637_v59, 3  ;;  %v9639_v20 = vmax.f32 %v7427_v26, 0.0  ;;  %v1067_v56 = vrot.slane %v7614_v41, 3  ;;  %6397 = vmatpush3.bf16.msra.mxu1 %v6859_v12  ;;  %v901_v59 = vld [vmem:[#allocation2] sm:$0xc]  ;;  %vm646_vm14 = vcmp.eq.s32.totalorder %v7607_v34, 1 }
  0xad   : > { %6083 = vst [vmem:[#allocation2 + $0x68] sm:$0xff] %v5938_v40   ;;  %v5875_v61 = vunpack.c.h.bf16 %v6070_v35  ;;  %6398 = vmatprep.subr.bf16.mxu1 %v6863_v7  ;;  %v9640_v26 = vshrl.u32 %v7547_v32, 16  ;;  %v9643_v44 = vrot.slane %v7430_v27, 3  ;;  %v7665_v48 = vadd.f32 %v7261_v16, %v396_v47  ;;  %v6862_v47 = vld [vmem:[%s9527_s3 + $0xb0] sm:$0xff]  }
  0xae   : > { %v705_v40 = vsel %vm9548_vm13, %v9639_v20, 0.0  ;;  %v7648_v20 = vpop.permute.xlu1 %551  ;;  %v7650_v51 = vpop.permute.xlu0 %548  ;;  %v1446_v9 = vor.u32 %v1445_v58, %v1442_v13  ;;  %v5874_v29 = vunpack.c.l.bf16 %v6070_v35  ;;  %v9646_v58 = vmax.f32 %v7438_v53, 0.0  ;;  %v6869_v53 = vld [vmem:[%s9527_s3 + $0x10] sm:$0xff]  }
  0xaf   : > { %v5943_v39 = vpack.c.bf16 %v705_v40, %v704_v33  ;;  %v1451_v38 = vrot.slane %v9640_v26, 2  ;;  %9641 = vst [vmem:[#allocation21_spill] sm:$0xff] %v7648_v20  ;;  %9642 = vst [vmem:[#allocation22_spill] sm:$0xff] %v7650_v51  ;;  %v1068_v12 = vsel %vm1065_vm10, %v9643_v44, %v1067_v56  ;;  %v7655_v42 = vld [vmem:[#allocation2 + $0x10] sm:$0xff]   ;;  %v9644_v33 = vshll.u32 %v7547_v32, 16 }
  0xb0   : > { %vm647_vm11 = vcmp.eq.s32.totalorder %v7650_v51, 1  ;;  %6356 = vmatprep.mubr.bf16.mxu0 %v1068_v12  ;;  %v9645_v44 = vmax.f32 %v7424_v25, 0.0  ;;  %6399 = vmatpush3.bf16.msra.mxu1 %v6863_v7  ;;  %vm648_vm13 = vcmp.eq.s32.totalorder %v7648_v20, 1  ;;  %v419_v35 = vmul.f32 %v5875_v61, %v7254_v14 }
  0xb1   : > { %v1454_v40 = vrot.slane %v9644_v33, 3  ;;  %6084 = vst [vmem:[#allocation2 + $0x70] sm:$0xff] %v5943_v39   ;;  %v683_v13 = vsel %vm647_vm11, %v9646_v58, 0.0  ;;  %v9550_v39 = vrot.slane %v7655_v42, 3  ;;  %6400 = vmatprep.subr.bf16.mxu1 %v6866_v4  ;;  %v7686_v33 = vcombine.low %v901_v59, %v7405_v6 }
  0xb2   : > { %v682_v5 = vsel %vm646_vm14, %v9645_v44, 0.0  ;;  %v7688_v44 = vpop.permute.xlu1 %617  ;;  %v7690_v58 = vpop.permute.xlu0 %554  ;;  %v9655_v59 = vshll.u32 %v7519_v43, 16  ;;  %v9683_v45 = vshll.u32 %v7573_v22, 16 }
  0xb3   : > { %v5888_v25 = vpack.c.bf16 %v683_v13, %v682_v5  ;;  %9647 = vst [vmem:[#allocation23_spill] sm:$0xff] %v7688_v44  ;;  %9648 = vst [vmem:[#allocation24_spill] sm:$0xff] %v7690_v58  ;;  %v1070_v7 = vsel %vm1065_vm10, %v1067_v56, %v9550_v39  ;;  %v7700_v5 = vsel %vm1349_vm15, %v7566_v15, %v1446_v9  ;;  %vm649_vm9 = vcmp.eq.s32.totalorder %v7690_v58, 1 }
  0xb4   : > { %v7695_v12 = vld [vmem:[#allocation2 + $0x68] sm:$0xff]   ;;  %v7702_v13 = vor.u32 %v1454_v40, %v1451_v38  ;;  %6357 = vmatmul.mubr.bf16.vlgmr.msra.gmra.mxu0 %v1070_v7  ;;  %v418_v56 = vmul.f32 %v5874_v29, %v7254_v14  ;;  %v9649_v39 = vmax.f32 %v7435_v52, 0.0  ;;  %v9650_v15 = vmax.f32 %v7454_v1, 0.0  ;;  %6401 = vmatpush3.bf16.msra.mxu1 %v6866_v4 }
  0xb5   : > { %6073 = vst [vmem:[#allocation2 + $0x18] sm:$0xff] %v5888_v25   ;;  %v1091_v40 = vrot.slane %v7695_v12, 3  ;;  %6445 = vmatpush3.bf16.msra.mxu0 %v7266_v17  ;;  %v9651_v25 = vshrl.u32 %v7519_v43, 16  ;;  %vm9558_vm12 = vcmp.eq.s32.totalorder %v7688_v44, 1  ;;  %v7722_v52 = vadd.f32 %v7261_v16, %v419_v35  ;;  %v6865_v1 = vld [vmem:[%s9527_s3 + $0xa8] sm:$0xff]   ;;  %6402 = vmatprep.subr.bf16.mxu1 %v6869_v53 }
  0xb6   : > { %v684_v61 = vsel %vm648_vm13, %v9649_v39, 0.0  ;;  %v685_v38 = vsel %vm649_vm9, %v9650_v15, 0.0  ;;  %6446 = vmatprep.subr.bf16.mxu0 %v6862_v47  ;;  %v6873_v17 = vld [vmem:[%s9527_s3 + $0x8] sm:$0xff]   ;;  %v1351_v4 = vshrl.u32 %v7686_v33, 16  ;;  %v7731_v39 = vpop.permute.xlu1 %623  ;;  %v7733_v15 = vpop.permute.xlu0 %620  ;;  %v7743_v6 = vsel %vm1349_vm15, %v1446_v9, %v7702_v13 }
  0xb7   : > { %v1829_v7 = vrot.slane %v9651_v25, 3  ;;  %v5893_v29 = vpack.c.bf16 %v685_v38, %v684_v61  ;;  %9652 = vst [vmem:[#allocation25_spill] sm:$0xff] %v7731_v39  ;;  %9653 = vst [vmem:[#allocation26_spill] sm:$0xff] %v7733_v15  ;;  %v9654_v61 = vrot.slane %v7573_v22, 3  ;;  %v5878_v25 = vunpack.c.l.bf16 %v7272_v21 }
  0xb8   : > { %v7738_v38 = vld [vmem:[#allocation2 + $0x70] sm:$0xff]   ;;  %v1830_v26 = vrot.slane %v9655_v59, 4  ;;  %vm9556_vm8 = vcmp.eq.s32.totalorder %v7733_v15, 1  ;;  %v9656_v9 = vmax.f32 %v7451_v62, 0.0  ;;  %v9657_v59 = vmax.f32 %v7480_v18, 0.0  ;;  %6403 = vmatpush3.bf16.msra.mxu1 %v6869_v53 }
  0xb9   : > { %v1092_v35 = vsel %vm1065_vm10, %v9654_v61, %v1091_v40  ;;  %6074 = vst [vmem:[#allocation2 + $0x20] sm:$0xff] %v5893_v29   ;;  %v1354_v61 = vshll.u32 %v7686_v33, 16  ;;  %6447 = vmatpush3.bf16.msra.mxu0 %v6862_v47  ;;  %v6877_v33 = vld [vmem:[%s9527_s3] sm:$0xff]   ;;  %vm9559_vm6 = vcmp.eq.s32.totalorder %v7731_v39, 1  ;;  %6404 = vmatprep.subr.bf16.mxu1 %v6873_v17  ;;  %v9658_v18 = vshrl.u32 %v7547_v32, 16 }
  0xba   : > { %6380 = vmatprep.mubr.bf16.mxu1 %v1092_v35  ;;  %v706_v43 = vsel %vm9558_vm12, %v9656_v9, 0.0  ;;  %v707_v29 = vsel %vm9556_vm8, %v9657_v59, 0.0  ;;  %v9557_v35 = vrot.slane %v7738_v38, 3  ;;  %v7766_v63 = vor.u32 %v1830_v26, %v1829_v7  ;;  %6448 = vmatprep.subr.bf16.mxu0 %v6865_v1  ;;  %v7771_v21 = vpop.permute.xlu1 %557  ;;  %v7773_v59 = vpop.permute.xlu0 %626 }
  0xbb   : > { %v5948_v62 = vpack.c.bf16 %v707_v29, %v706_v43  ;;  %v1833_v9 = vrot.slane %v9658_v18, 3  ;;  %9659 = vst [vmem:[#allocation27_spill] sm:$0xff] %v7771_v21  ;;  %9660 = vst [vmem:[#allocation28_spill] sm:$0xff] %v7773_v59  ;;  %v7781_v26 = vadd.f32 %v7261_v16, %v418_v56  ;;  %v9661_v43 = vshll.u32 %v7547_v32, 16 }
  0xbc   : > { %v1094_v47 = vsel %vm1065_vm10, %v1091_v40, %v9557_v35  ;;  %v7778_v53 = vld [vmem:[#allocation2 + $0x18] sm:$0xff]   ;;  %v7786_v7 = vsel %vm1784_vm0, %v7588_v28, %v7766_v63  ;;  %vm9563_vm8 = vcmp.eq.s32.totalorder %v7773_v59, 1  ;;  %v420_v40 = vmul.f32 %v5878_v25, %v7254_v14  ;;  %6405 = vmatpush3.bf16.msra.mxu1 %v6873_v17 }
  0xbd   : > { %v1834_v29 = vrot.slane %v9661_v43, 4  ;;  %6085 = vst [vmem:[#allocation2 + $0x78] sm:$0xff] %v5948_v62   ;;  %6381 = vmatmul.mubr.bf16.gmra.mxu1 %v1094_v47  ;;  %v9561_v35 = vshll.u32 %v7573_v22, 16  ;;  %v9662_v16 = vmax.f32 %v7457_v8, 0.0  ;;  %v9663_v28 = vmax.f32 %v7623_v60, 0.0  ;;  %6449 = vmatpush3.bf16.msra.mxu0 %v6865_v1  ;;  %v6871_v8 = vld [vmem:[%s9527_s3 + $0x98] sm:$0xff]  }
  0xbe   : > { %v1071_v62 = vrot.slane %v7778_v53, 3  ;;  %v7803_v47 = vrot.slane %v1351_v4, 2  ;;  %vm650_vm12 = vcmp.eq.s32.totalorder %v7771_v21, 1  ;;  %6450 = vmatprep.subr.bf16.mxu0 %v6868_v3  ;;  %6406 = vmatprep.subr.bf16.mxu1 %v6877_v33  ;;  %v7812_v60 = vld [vmem:[%s9527_s3 + $0xf8] sm:$0xff]   ;;  %v9664_v25 = vshrl.u32 %v7573_v22, 16  ;;  %v7816_v17 = vpop.permute.xlu1 %563  ;;  %v7818_v4 = vpop.permute.xlu0 %560 }
  0xbf   : > { %v708_v56 = vsel %vm9559_vm6, %v9662_v16, 0.0  ;;  %v709_v32 = vsel %vm9563_vm8, %v9663_v28, 0.0  ;;  %9665 = vst [vmem:[#allocation29_spill] sm:$0xff] %v7816_v17  ;;  %9666 = vst [vmem:[#allocation30_spill] sm:$0xff] %v7818_v4  ;;  %v9667_v43 = vrot.slane %v7655_v42, 3  ;;  %v7825_v28 = vor.u32 %v1834_v29, %v1833_v9 }
  0xc0   : > { %v5953_v14 = vpack.c.bf16 %v709_v32, %v708_v56  ;;  %v1460_v1 = vrot.slane %v9664_v25, 2  ;;  %v7823_v56 = vld [vmem:[#allocation2 + $0x20] sm:$0xff]   ;;  %v1463_v32 = vrot.slane %v9561_v35, 3  ;;  %vm651_vm6 = vcmp.eq.s32.totalorder %v7818_v4, 1  ;;  %6407 = vmatpush3.bf16.msra.mxu1 %v6877_v33 }
  0xc1   : > { %v1072_v16 = vsel %vm1065_vm10, %v9667_v43, %v1071_v62  ;;  %v7006_v25 = vld [vmem:[%s9526_s2 + $0x1] ss:$0 sm:$0xff]  ;;  %v7835_v39 = vrot.slane %v1354_v61, 3  ;;  %v1789_v43 = vshll.u32 %v7430_v27, 16  ;;  %v9668_v9 = vmax.f32 %v7483_v19, 0.0  ;;  %6451 = vmatpush3.bf16.msra.mxu0 %v6868_v3  ;;  %v6874_v19 = vld [vmem:[%s9527_s3 + $0x90] sm:$0xff]   ;;  %6496 = vmatprep.subr.bf16.mxu1 %v7812_v60 }
  0xc2   : > { %6086 = vst [vmem:[#allocation2 + $0x80] sm:$0xff] %v5953_v14   ;;  %6360 = vmatprep.mubr.bf16.mxu0 %v1072_v16  ;;  %v7833_v18 = vadd.f32 %v7006_v25, %v420_v40  ;;  %v9669_v14 = vmax.f32 %v7640_v54, 0.0  ;;  %v9565_v35 = vrot.slane %v7823_v56, 3  ;;  %v495_v59 = vmax.f32 %v7781_v26, 0.0  ;;  %6452 = vmatprep.subr.bf16.mxu0 %v6871_v8  ;;  %v7860_v3 = vpop.permute.xlu0 %566 }
  0xc3   : > { %v686_v29 = vsel %vm650_vm12, %v9668_v9, 0.0  ;;  %vm9571_vm8 = vcmp.eq.s32.totalorder %v7816_v17, 1  ;;  %v1359_v40 = vshrl.u32 %v7614_v41, 16  ;;  %v9670_v54 = vshrl.u32 %v7430_v27, 16  ;;  %v7858_v9 = vpop.permute.xlu1 %629  ;;  %9672 = vst [vmem:[#allocation32_spill] sm:$0xff] %v7860_v3 }
  0xc4   : > { %v687_v16 = vsel %vm651_vm6, %v9669_v14, 0.0  ;;  %9671 = vst [vmem:[#allocation31_spill] sm:$0xff] %v7858_v9  ;;  %v1074_v33 = vsel %vm1065_vm10, %v1071_v62, %v9565_v35  ;;  %v7865_v26 = vld [vmem:[#allocation2 + $0x78] sm:$0xff]   ;;  %v7871_v27 = vsel %vm1784_vm0, %v7766_v63, %v7825_v28  ;;  %v7873_v14 = vor.u32 %v1463_v32, %v1460_v1 }
  0xc5   : > { %v5898_v61 = vpack.c.bf16 %v687_v16, %v686_v29  ;;  %v7855_v25 = vrot.slane %v9670_v54, 3  ;;  %vm653_vm5 = vcmp.eq.s32.totalorder %v7860_v3, 1  ;;  %6361 = vmatmul.mubr.bf16.gmra.mxu0 %v1074_v33  ;;  %v497_v16 = vmax.f32 %v7833_v18, 0.0  ;;  %v8303_v51 = vld [vmem:[#allocation2 + $0x78] sm:$0xf] }
  0xc6   : > { %v1362_v54 = vshll.u32 %v7614_v41, 16  ;;  %v7878_v62 = vrot.slane %v1789_v43, 4  ;;  %v9673_v35 = vmax.f32 %v7626_v2, 0.0  ;;  %v9674_v63 = vmax.f32 %v7665_v48, 0.0  ;;  %6453 = vmatpush3.bf16.msra.mxu0 %v6871_v8  ;;  %v7897_v43 = vpop.permute.xlu0 %632  ;;  %v8306_v24 = vld [vmem:[#allocation2 + $0x7c] sm:$0xf] }
  0xc7   : > { %6075 = vst [vmem:[#allocation2 + $0x28] sm:$0xff] %v5898_v61   ;;  %v1095_v32 = vrot.slane %v7865_v26, 3  ;;  %vm9578_vm4 = vcmp.eq.s32.totalorder %v7858_v9, 1  ;;  %6454 = vmatprep.subr.bf16.mxu0 %v6874_v19  ;;  %v1361_v2 = vrot.slane %v1359_v40, 2  ;;  %v7895_v48 = vpop.permute.xlu1 %635  ;;  %9676 = vst [vmem:[#allocation34_spill] sm:$0xff] %v7897_v43  ;;  %v9677_v33 = vrot.slane %v7738_v38, 3 }
  0xc8   : > { %v688_v29 = vsel %vm9571_vm8, %v9673_v35, 0.0  ;;  %v689_v1 = vsel %vm653_vm5, %v9674_v63, 0.0  ;;  %v6878_v35 = vld [vmem:[%s9527_s3 + $0x88] sm:$0xff]   ;;  %9675 = vst [vmem:[#allocation33_spill] sm:$0xff] %v7895_v48  ;;  %vm9573_vm7 = vcmp.eq.s32.totalorder %v7897_v43, 1  ;;  %v1364_v18 = vrot.slane %v1362_v54, 3 }
  0xc9   : > { %v5903_v41 = vpack.c.bf16 %v689_v1, %v688_v29  ;;  %v1096_v63 = vsel %vm1065_vm10, %v9677_v33, %v1095_v32  ;;  %v7902_v8 = vld [vmem:[#allocation2 + $0x80] sm:$0xff]   ;;  %v7907_v29 = vsel %vm1349_vm15, %v7702_v13, %v7873_v14  ;;  %v1793_v61 = vrot.slane %v1359_v40, 3 }
  0xca   : > { %6384 = vmatprep.mubr.bf16.mxu1 %v1096_v63  ;;  %v1794_v15 = vrot.slane %v1362_v54, 4  ;;  %v9678_v44 = vmax.f32 %v7658_v57, 0.0  ;;  %v711_v46 = vsel %vm9573_vm7, %v495_v59, 0.0  ;;  %v9575_v13 = vrot.slane %v7902_v8, 3  ;;  %6455 = vmatpush3.bf16.msra.mxu0 %v6874_v19 }
  0xcb   : > { %6076 = vst [vmem:[#allocation2 + $0x30] sm:$0xff] %v5903_v41   ;;  %v1368_v1 = vshrl.u32 %v7655_v42, 16  ;;  %v6879_v41 = vld [vmem:[%s9527_s3 + $0x80] sm:$0xff]   ;;  %vm9581_vm8 = vcmp.eq.s32.totalorder %v7895_v48, 1  ;;  %6456 = vmatprep.subr.bf16.mxu0 %v6878_v35  ;;  %v9579_v57 = vshll.u32 %v7695_v12, 16  ;;  %v7924_v54 = vpop.permute.xlu1 %569  ;;  %v1357_v63 = vor.u32 %v7835_v39, %v7803_v47 }
  0xcc   : > { %v710_v33 = vsel %vm9578_vm4, %v9678_v44, 0.0  ;;  %9679 = vst [vmem:[#allocation35_spill] sm:$0xff] %v7924_v54  ;;  %v7926_v44 = vpop.permute.xlu0 %638  ;;  %v1098_v59 = vsel %vm1065_vm10, %v1095_v32, %v9575_v13  ;;  %v1792_v43 = vor.u32 %v7878_v62, %v7855_v25  ;;  %v9682_v32 = vshrl.u32 %v7573_v22, 16 }
  0xcd   : > { %v5958_v40 = vpack.c.bf16 %v711_v46, %v710_v33  ;;  %9680 = vst [vmem:[#allocation36_spill] sm:$0xff] %v7926_v44  ;;  %v9681_v46 = vshrl.u32 %v7695_v12, 16  ;;  %vm9582_vm7 = vcmp.eq.s32.totalorder %v7926_v44, 1  ;;  %6385 = vmatmul.mubr.bf16.gmra.mxu1 %v1098_v59  ;;  %v1472_v9 = vrot.slane %v9579_v57, 3  ;;  %v7957_v59 = vld [vmem:[%s9527_s3 + $0x138] sm:$0xff]  }
  0xce   : > { %v7931_v19 = vld [vmem:[#allocation2 + $0x28] sm:$0xff]   ;;  %v1837_v13 = vrot.slane %v9682_v32, 3  ;;  %v1838_v0 = vrot.slane %v9683_v45, 4  ;;  %v9684_v39 = vmax.f32 %v7722_v52, 0.0  ;;  %v713_v25 = vsel %vm9582_vm7, %v497_v16, 0.0  ;;  %6457 = vmatpush3.bf16.msra.mxu0 %v6878_v35 }
  0xcf   : > { %v1469_v33 = vrot.slane %v9681_v46, 2  ;;  %6087 = vst [vmem:[#allocation2 + $0x88] sm:$0xff] %v5958_v40   ;;  %v1075_v62 = vrot.slane %v7931_v19, 3  ;;  %v1371_v40 = vshll.u32 %v7655_v42, 16  ;;  %vm654_vm4 = vcmp.eq.s32.totalorder %v7924_v54, 1  ;;  %6458 = vmatprep.subr.bf16.mxu0 %v6879_v41  ;;  %v7962_v46 = vpop.permute.xlu1 %641 }
  0xd0   : > { %v712_v47 = vsel %vm9581_vm8, %v9684_v39, 0.0  ;;  %v7960_v22 = vor.u32 %v1364_v18, %v1361_v2  ;;  %v1370_v52 = vrot.slane %v1368_v1, 2  ;;  %9685 = vst [vmem:[#allocation37_spill] sm:$0xff] %v7962_v46  ;;  %v7964_v16 = vpop.permute.xlu0 %572  ;;  %v9687_v35 = vrot.slane %v7823_v56, 3 }
  0xd1   : > { %v5963_v45 = vpack.c.bf16 %v713_v25, %v712_v47  ;;  %9686 = vst [vmem:[#allocation38_spill] sm:$0xff] %v7964_v16  ;;  %v1795_v39 = vor.u32 %v1794_v15, %v1793_v61  ;;  %v1377_v57 = vshrl.u32 %v7778_v53, 16  ;;  %v1473_v48 = vor.u32 %v1472_v9, %v1469_v33 }
  0xd2   : > { %v1076_v42 = vsel %vm1065_vm10, %v9687_v35, %v1075_v62  ;;  %v7969_v32 = vld [vmem:[#allocation2 + $0x30] sm:$0xff]   ;;  %vm9615_vm8 = vcmp.eq.s32.totalorder %v7962_v46, 1  ;;  %vm655_vm7 = vcmp.eq.s32.totalorder %v7964_v16, 1  ;;  %v1380_v18 = vshll.u32 %v7778_v53, 16  ;;  %6459 = vmatpush3.bf16.msra.mxu0 %v6879_v41 }
  0xd3   : > { %6088 = vst [vmem:[#allocation2 + $0x90] sm:$0xff] %v5963_v45   ;;  %6364 = vmatprep.mubr.bf16.mxu0 %v1076_v42  ;;  %v1839_v2 = vor.u32 %v1838_v0, %v1837_v13  ;;  %v9688_v47 = vmax.f32 %v7279_v23, 0.0  ;;  %v9689_v35 = vmax.f32 %v7287_v30, 0.0  ;;  %v9690_v9 = vmax.f32 %v7290_v31, 0.0  ;;  %6548 = vmatprep.subr.bf16.mxu0 %v7957_v59 }
  0xd4   : > { %v9583_v33 = vrot.slane %v7969_v32, 3  ;;  %v1373_v13 = vrot.slane %v1371_v40, 3  ;;  %v1797_v23 = vrot.slane %v1368_v1, 3  ;;  %v1798_v42 = vrot.slane %v1371_v40, 4 }
  0xd5   : > { %v690_v25 = vsel %vm654_vm4, %v9688_v47, 0.0  ;;  %v714_v15 = vsel %vm9615_vm8, %v9689_v35, 0.0  ;;  %v691_v61 = vsel %vm655_vm7, %v9690_v9, 0.0  ;;  %v7996_v31 = vsel %vm1349_vm15, %v7873_v14, %v1473_v48 }
  0xd6   : > { %v5771_v53 = vpack.c.bf16 %v714_v15, %v714_v15  ;;  %v5908_v0 = vpack.c.bf16 %v691_v61, %v690_v25  ;;  %v1078_v30 = vsel %vm1065_vm10, %v1075_v62, %v9583_v33  ;;  %v7992_v45 = vld [vmem:[#allocation2 + $0x88] sm:$0xff]   ;;  %v1366_v41 = vsel %vm1349_vm15, %v1357_v63, %v7960_v22 }
  0xd7   : > { %6365 = vmatmul.mubr.bf16.gmra.mxu0 %v1078_v30  ;;  %v1796_v47 = vsel %vm1784_vm0, %v1792_v43, %v1795_v39  ;;  %v1379_v1 = vrot.slane %v1377_v57, 2  ;;  %v8003_v25 = vsel %vm1784_vm0, %v7825_v28, %v1839_v2  ;;  %v1099_v62 = vrot.slane %v7992_v45, 3 }
  0xd8   : > { %897 = vst [vmem:[#allocation2 + $0x98] sm:$0xf] %v5771_v53  ;;  %6077 = vst [vmem:[#allocation2 + $0x38] sm:$0xff] %v5908_v0   ;;  %v1382_v40 = vrot.slane %v1380_v18, 3  ;;  %v1801_v35 = vrot.slane %v1377_v57, 3  ;;  %v1802_v15 = vrot.slane %v1380_v18, 4  ;;  %v1374_v33 = vor.u32 %v1373_v13, %v1370_v52 }
  0xd9   : > { %v9691_v14 = vshrl.u32 %v7695_v12, 16  ;;  %v9692_v61 = vshll.u32 %v7695_v12, 16  ;;  %v1476_v63 = vshrl.u32 %v7738_v38, 16  ;;  %v1479_v43 = vshll.u32 %v7738_v38, 16 }
  0xda   : > { %v9693_v0 = vrot.slane %v7902_v8, 3  ;;  %v8015_v30 = vld [vmem:[#allocation2 + $0x90] ss:$0 sps:$4 sm:$0x77]   ;;  %v8017_v46 = vor.u32 %v1798_v42, %v1797_v23  ;;  %v1485_v57 = vshrl.u32 %v7865_v26, 16  ;;  %v1386_v38 = vshrl.u32 %v7823_v56, 16 }
  0xdb   : > { %v1841_v9 = vrot.slane %v9691_v14, 3  ;;  %v1842_v53 = vrot.slane %v9692_v61, 4  ;;  %v1478_v14 = vrot.slane %v1476_v63, 2  ;;  %v1481_v12 = vrot.slane %v1479_v43, 3 }
  0xdc   : > { %v1100_v28 = vsel %vm1065_vm10, %v9693_v0, %v1099_v62  ;;  %v1488_v61 = vshll.u32 %v7865_v26, 16  ;;  %v1101_v44 = vrot.slane %v8015_v30, 3  ;;  %v1389_v16 = vshll.u32 %v7823_v56, 16 }
  0xdd   : > { %6388 = vmatprep.mubr.bf16.mxu1 %v1100_v28  ;;  %v1843_v18 = vor.u32 %v1842_v53, %v1841_v9  ;;  %v1487_v0 = vrot.slane %v1485_v57, 2  ;;  %v1482_v52 = vor.u32 %v1481_v12, %v1478_v14  ;;  %v1845_v23 = vrot.slane %v1476_v63, 3 }
  0xde   : > { %v1490_v13 = vrot.slane %v1488_v61, 3  ;;  %v1102_v42 = vsel %vm1065_vm10, %v1099_v62, %v1101_v44  ;;  %v1375_v26 = vsel %vm1349_vm15, %v7960_v22, %v1374_v33  ;;  %v8034_v53 = vsel %vm1784_vm0, %v1795_v39, %v8017_v46 }
  0xdf   : > { %v8025_v17 = vsel %vm1784_vm0, %v1839_v2, %v1843_v18  ;;  %v8028_v9 = vld [vmem:[#allocation2 + $0x38] sm:$0xff]   ;;  %v1846_v28 = vrot.slane %v1479_v43, 4  ;;  %6389 = vmatmul.mubr.bf16.gmra.mxu1 %v1102_v42  ;;  %v8037_v56 = vsel %vm1349_vm15, %v1473_v48, %v1482_v52  ;;  %v1849_v14 = vrot.slane %v1485_v57, 3 }
  0xe0   : > { %v1491_v2 = vor.u32 %v1490_v13, %v1487_v0  ;;  %v1850_v12 = vrot.slane %v1488_v61, 4  ;;  %6408 = vmatprep.mubr.bf16.mxu1 %v1366_v41  ;;  %v1079_v44 = vrot.slane %v8028_v9, 3  ;;  %v1395_v62 = vshrl.u32 %v7931_v19, 16 }
  0xe1   : > { %v1398_v63 = vshll.u32 %v7931_v19, 16  ;;  %v1847_v22 = vor.u32 %v1846_v28, %v1845_v23  ;;  %v1494_v43 = vshrl.u32 %v7902_v8, 16  ;;  %v1497_v48 = vshll.u32 %v7902_v8, 16  ;;  %v6882_v23 = vld [vmem:[%s9527_s3 + $0xf0] sm:$0xff]  }
  0xe2   : > { %v8043_v54 = vsel %vm1349_vm15, %v1482_v52, %v1491_v2  ;;  %v1851_v39 = vor.u32 %v1850_v12, %v1849_v14  ;;  %v9694_v0 = vrot.slane %v7969_v32, 3  ;;  %v9695_v41 = vrot.slane %v7500_v55, 3 }
  0xe3   : > { %v1383_v13 = vor.u32 %v1382_v40, %v1379_v1  ;;  %v8053_v42 = vor.u32 %v1802_v15, %v1801_v35  ;;  %v1388_v19 = vrot.slane %v1386_v38, 2  ;;  %v1391_v52 = vrot.slane %v1389_v16, 3 }
  0xe4   : > { %v1080_v57 = vsel %vm1065_vm10, %v9694_v0, %v1079_v44  ;;  %v1082_v61 = vsel %vm1065_vm10, %v1079_v44, %v9695_v41  ;;  %v8059_v8 = vsel %vm1784_vm0, %v1843_v18, %v1847_v22  ;;  %v8062_v28 = vsel %vm1784_vm0, %v1847_v22, %v1851_v39 }
  0xe5   : > { %6368 = vmatprep.mubr.bf16.mxu0 %v1080_v57  ;;  %v1397_v55 = vrot.slane %v1395_v62, 2  ;;  %v1496_v14 = vrot.slane %v1494_v43, 2  ;;  %v1499_v12 = vrot.slane %v1497_v48, 3  ;;  %v1503_v1 = vshrl.u32 %v7992_v45, 16 }
  0xe6   : > { %6369 = vmatmul.mubr.bf16.gmra.mxu0 %v1082_v61  ;;  %v1400_v40 = vrot.slane %v1398_v63, 3  ;;  %v1506_v35 = vshll.u32 %v7992_v45, 16  ;;  %v1853_v15 = vrot.slane %v1494_v43, 3  ;;  %v1854_v44 = vrot.slane %v1497_v48, 4 }
  0xe7   : > { %6460 = vmatprep.mubr.bf16.mxu0 %v1796_v47  ;;  %v1384_v0 = vsel %vm1349_vm15, %v1374_v33, %v1383_v13  ;;  %v1805_v57 = vrot.slane %v1386_v38, 3  ;;  %v1500_v18 = vor.u32 %v1499_v12, %v1496_v14  ;;  %v1505_v41 = vrot.slane %v1503_v1, 2  ;;  %6409 = vmatmul.mubr.bf16.vlgmr.msra.gmra.mxu1 %v1375_v26  ;;  %v6883_v33 = vld [vmem:[%s9527_s3 + $0x130] sm:$0xff]  }
  0xe8   : > { %v1392_v22 = vor.u32 %v1391_v52, %v1388_v19  ;;  %v1806_v3 = vrot.slane %v1389_v16, 4  ;;  %v1508_v61 = vrot.slane %v1506_v35, 3  ;;  %v1855_v4 = vor.u32 %v1854_v44, %v1853_v15  ;;  %6412 = vmatprep.mubr.bf16.mxu1 %v1384_v0  ;;  %6497 = vmatpush3.bf16.msra.mxu1 %v7812_v60  ;;  %v6884_v19 = vld [vmem:[%s9527_s3 + $0xe8] sm:$0xff]  }
  0xe9   : > { %v8069_v47 = vsel %vm1349_vm15, %v1491_v2, %v1500_v18  ;;  %v1857_v20 = vrot.slane %v1503_v1, 3  ;;  %v1858_v45 = vrot.slane %v1506_v35, 4  ;;  %v1512_v43 = vshrl.u32 %v8015_v30, 16  ;;  %6498 = vmatprep.subr.bf16.mxu1 %v6882_v23 }
  0xea   : > { %v1401_v48 = vor.u32 %v1400_v40, %v1397_v55  ;;  %v1509_v38 = vor.u32 %v1508_v61, %v1505_v41  ;;  %v8076_v16 = vsel %vm1784_vm0, %v1851_v39, %v1855_v4  ;;  %v1515_v26 = vshll.u32 %v8015_v30, 16 }
  0xeb   : > { %v1404_v60 = vshrl.u32 %v7969_v32, 16  ;;  %v1407_v2 = vshll.u32 %v7969_v32, 16  ;;  %v8084_v52 = vor.u32 %v1858_v45, %v1857_v20  ;;  %v1514_v55 = vrot.slane %v1512_v43, 2 }
  0xec   : > { %v1413_v14 = vshrl.u32 %v8028_v9, 16  ;;  %v1416_v12 = vshll.u32 %v8028_v9, 16  ;;  %v8089_v39 = vsel %vm1349_vm15, %v1500_v18, %v1509_v38  ;;  %v1517_v1 = vrot.slane %v1515_v26, 3  ;;  %6499 = vmatpush3.bf16.msra.mxu1 %v6882_v23  ;;  %v6886_v9 = vld [vmem:[%s9527_s3 + $0xe0] sm:$0xff]  }
  0xed   : > { %v1804_v32 = vsel %vm1784_vm0, %v8017_v46, %v8053_v42  ;;  %v1809_v30 = vrot.slane %v1395_v62, 3  ;;  %v1810_v40 = vrot.slane %v1398_v63, 4  ;;  %v8097_v20 = vsel %vm1784_vm0, %v1855_v4, %v8084_v52  ;;  %6500 = vmatprep.subr.bf16.mxu1 %v6884_v19  ;;  %v6885_v4 = vld [vmem:[%s9527_s3 + $0x128] sm:$0xff]  }
  0xee   : > { %6461 = vmatmul.mubr.bf16.vlgmr.msra.gmra.mxu0 %v8034_v53  ;;  %v1518_v35 = vor.u32 %v1517_v1, %v1514_v55  ;;  %v1393_v53 = vsel %vm1349_vm15, %v1383_v13, %v1392_v22  ;;  %v1807_v15 = vor.u32 %v1806_v3, %v1805_v57  ;;  %v1406_v46 = vrot.slane %v1404_v60, 2  ;;  %v6887_v13 = vld [vmem:[%s9527_s3 + $0x120] sm:$0xff]   ;;  %v6888_v57 = vld [vmem:[%s9527_s3 + $0xd8] sm:$0xff]   ;;  %v6892_v55 = vld [vmem:[%s9527_s3 + $0xc8] sm:$0xff]  }
  0xef   : > { %6549 = vmatpush3.bf16.msra.mxu0 %v7957_v59  ;;  %6464 = vmatprep.mubr.bf16.mxu0 %v1804_v32  ;;  %v1409_v23 = vrot.slane %v1407_v2, 3  ;;  %v1402_v59 = vsel %vm1349_vm15, %v1392_v22, %v1401_v48  ;;  %v1415_v62 = vrot.slane %v1413_v14, 2  ;;  %v1418_v63 = vrot.slane %v1416_v12, 3  ;;  %v6894_v1 = vld [vmem:[%s9527_s3 + $0xc0] sm:$0xff]  }
  0xf0   : > { %6550 = vmatprep.subr.bf16.mxu0 %v6883_v33  ;;  %6413 = vmatmul.mubr.bf16.gmra.mxu1 %v1393_v53  ;;  %v8109_v44 = vsel %vm1349_vm15, %v1509_v38, %v1518_v35  ;;  %v1811_v0 = vor.u32 %v1810_v40, %v1809_v30  ;;  %v1808_v18 = vsel %vm1784_vm0, %v8053_v42, %v1807_v15  ;;  %v1813_v22 = vrot.slane %v1404_v60, 3  ;;  %v6890_v38 = vld [vmem:[%s9527_s3 + $0xd0] sm:$0xff]   ;;  %v6889_v42 = vld [vmem:[%s9527_s3 + $0x118] sm:$0xff]   ;;  %v6893_v30 = vld [vmem:[%s9527_s3 + $0x108] sm:$0xff]  }
  0xf1   : > { %6416 = vmatprep.mubr.bf16.mxu1 %v1402_v59  ;;  %6501 = vmatpush3.bf16.msra.mxu1 %v6884_v19  ;;  %v1410_v3 = vor.u32 %v1409_v23, %v1406_v46  ;;  %v1419_v41 = vor.u32 %v1418_v63, %v1415_v62  ;;  %v1814_v61 = vrot.slane %v1407_v2, 4  ;;  %v1817_v43 = vrot.slane %v1413_v14, 3  ;;  %v6897_v40 = vld [vmem:[%s9527_s3 + $0x100] sm:$0xff]   ;;  %v2149_v53 = vld [vmem:[#allocation2 + $0x8] sm:$0x8] }
  0xf2   : > { %6502 = vmatprep.subr.bf16.mxu1 %v6886_v9  ;;  %v1812_v45 = vsel %vm1784_vm0, %v1807_v15, %v1811_v0  ;;  %v8172_v35 = vld [vmem:[#allocation2 + $0x24] sm:$0xff]   ;;  %v8179_v15 = vld [vmem:[#allocation2 + $0xc] sm:$0xf]  ;;  %v8195_v63 = vld [vmem:[#allocation2 + $0x40] sm:$0xf]  ;;  %vm4229_vm10 = vcmask 1046528  }
  0xf3   : > { %6551 = vmatpush3.bf16.msra.mxu0 %v6883_v33  ;;  %v1818_v33 = vrot.slane %v1416_v12, 4  ;;  %v1411_v26 = vsel %vm1349_vm15, %v1401_v48, %v1410_v3  ;;  %v1420_v60 = vsel %vm1349_vm15, %v1410_v3, %v1419_v41  ;;  %v1815_v2 = vor.u32 %v1814_v61, %v1813_v22  ;;  %v6891_v48 = vld [vmem:[%s9527_s3 + $0x110] sm:$0xff]   ;;  %v8191_v59 = vld [vmem:[#allocation2 + $0x24] sm:$0xf]  ;;  %v8193_v62 = vld [vmem:[#allocation2 + $0x28] sm:$0xf] }
  0xf4   : > { %6552 = vmatprep.subr.bf16.mxu0 %v6885_v4  ;;  %v1429_v32 = vsel %vm1349_vm15, %v1419_v41, %v7552_v49  ;;  %v8151_v49 = vld [vmem:[%s9527_s3 + $0x178] sm:$0xff]   ;;  %v9593_v46 = vshll.u32 %v8172_v35, 16  ;;  %v9592_v23 = vshrl.u32 %v8172_v35, 16  ;;  %v8200_v3 = vld [vmem:[#allocation2 + $0x2c] sm:$0xf] }
  0xf5   : > { %6503 = vmatpush3.bf16.msra.mxu1 %v6886_v9  ;;  %v1819_v19 = vor.u32 %v1818_v33, %v1817_v43  ;;  %v1816_v14 = vsel %vm1784_vm0, %v1811_v0, %v1815_v2  ;;  %v8197_v0 = vld [vmem:[#allocation2 + $0x44] sm:$0xf]  ;;  %vm4567_vm15 = vsmask.f32 6400  ;;  %vm3206_vm8 = vsmask.f32 7424 }
  0xf6   : > { %6465 = vmatmul.mubr.bf16.gmra.mxu0 %v1808_v18  ;;  %6504 = vmatprep.subr.bf16.mxu1 %v6888_v57 }
  0xf7   : > { %6468 = vmatprep.mubr.bf16.mxu0 %v1812_v45  ;;  %6553 = vmatpush3.bf16.msra.mxu0 %v6885_v4  ;;  %v1820_v12 = vsel %vm1784_vm0, %v1815_v2, %v1819_v19  ;;  %v1824_v9 = vsel %vm1784_vm0, %v1819_v19, %v7561_v10  ;;  %v8168_v10 = vld [vmem:[#allocation2 + $0x10] sm:$0xf]  ;;  %v8189_v4 = vld [vmem:[#allocation2 + $0x20] sm:$0xf]  ;;  %v8208_v45 = vld [vmem:[#allocation2 + $0x34] sm:$0xf]  ;;  %v5497_v2 = vcombine.low %v8193_v62, %v8200_v3 }
  0xf8   : > { %6554 = vmatprep.subr.bf16.mxu0 %v6887_v13  ;;  %6417 = vmatmul.mubr.bf16.gmra.mxu1 %v1411_v26  ;;  %v5496_v33 = vcombine.low %v8189_v4, %v8191_v59 }
  0xf9   : > { %6420 = vmatprep.mubr.bf16.mxu1 %v1420_v60  ;;  %6505 = vmatpush3.bf16.msra.mxu1 %v6888_v57  ;;  %v4581_v57 = vrot.slane %v9593_v46, 2  ;;  %v8216_v60 = vld [vmem:[#allocation2 + $0x48] sm:$0xf] }
  0xfa   : > { %6506 = vmatprep.subr.bf16.mxu1 %v6890_v38  ;;  %9696 = vst [vmem:[#allocation39_spill] sm:$0xff] %v8216_v60 }
  0xfb   : > { %6555 = vmatpush3.bf16.msra.mxu0 %v6887_v13  ;;  %v8202_v13 = vld [vmem:[#allocation2 + $0x30] sm:$0xf] }
  0xfc   : > { %6556 = vmatprep.subr.bf16.mxu0 %v6889_v42  ;;  %v5498_v19 = vcombine.low %v8202_v13, %v8208_v45 }
  0xfd   : > { %6507 = vmatpush3.bf16.msra.mxu1 %v6890_v38 }
  0xfe   : > { %6469 = vmatmul.mubr.bf16.gmra.mxu0 %v1816_v14  ;;  %6508 = vmatprep.subr.bf16.mxu1 %v6892_v55  ;;  %v8230_v14 = vld [vmem:[#allocation2 + $0x54] sm:$0xf] }
  0xff   : > { %6472 = vmatprep.mubr.bf16.mxu0 %v1820_v12  ;;  %6557 = vmatpush3.bf16.msra.mxu0 %v6889_v42 }
 0x100   : > { %6558 = vmatprep.subr.bf16.mxu0 %v6891_v48  ;;  %6421 = vmatmul.mubr.bf16.gmra.mxu1 %v1429_v32 }
 0x101   : > { %6424 = vmatprep.mubr.bf16.mxu1 %v7586_v36  ;;  %6509 = vmatpush3.bf16.msra.mxu1 %v6892_v55  ;;  %v8160_v36 = vld [vmem:[%s9527_s3 + $0x1b8] sm:$0xff]   ;;  %v8228_v55 = vld [vmem:[#allocation2 + $0x50] sm:$0xf] }
 0x102   : > { %6510 = vmatprep.subr.bf16.mxu1 %v6894_v1  ;;  %9698 = vst [vmem:[#allocation41_spill] sm:$0xff] %v8228_v55 }
 0x103   : > { %6559 = vmatpush3.bf16.msra.mxu0 %v6891_v48  ;;  %v8226_v48 = vld [vmem:[#allocation2 + $0x4c] sm:$0xf] }
 0x104   : > { %6560 = vmatprep.subr.bf16.mxu0 %v6893_v30  ;;  %9697 = vst [vmem:[#allocation40_spill] sm:$0xff] %v8226_v48 }
 0x105   : > { %6511 = vmatpush3.bf16.msra.mxu1 %v6894_v1 }
 0x106   : > { %6473 = vmatmul.mubr.bf16.gmra.mxu0 %v1824_v9  ;;  %6600 = vmatprep.subr.bf16.mxu1 %v8151_v49  ;;  %v2323_v9 = vshrl.u32 %v5496_v33, 16 }
 0x107   : > { %6476 = vmatprep.mubr.bf16.mxu0 %v7603_v37  ;;  %6561 = vmatpush3.bf16.msra.mxu0 %v6893_v30  ;;  %v8170_v37 = vld [vmem:[#allocation2 + $0x14] sm:$0xf] }
 0x108   : > { %6562 = vmatprep.subr.bf16.mxu0 %v6897_v40  ;;  %6425 = vmatmul.mubr.bf16.gmra.mxu1 %v7700_v5  ;;  %v8175_v5 = vld [vmem:[#allocation2 + $0x18] sm:$0xf] }
 0x109   : > { %6428 = vmatprep.mubr.bf16.mxu1 %v7743_v6  ;;  %v8177_v6 = vld [vmem:[#allocation2 + $0x1c] sm:$0xf] }
 0x10b   : > { %6563 = vmatpush3.bf16.msra.mxu0 %v6897_v40 }
 0x10c   : > { %6652 = vmatprep.subr.bf16.mxu0 %v8160_v36 }
 0x10e   : > { %6477 = vmatmul.mubr.bf16.gmra.mxu0 %v7786_v7  ;;  %v5494_v7 = vcombine.low %v8168_v10, %v8170_v37 }
 0x10f   : > { %6480 = vmatprep.mubr.bf16.mxu0 %v7871_v27  ;;  %v6898_v27 = vld [vmem:[#allocation2 + $0x90] ss:$0 sps:$4 sm:$0xff]  }
 0x110   : > { %6429 = vmatmul.mubr.bf16.gmra.mxu1 %v7907_v29  ;;  %v5495_v29 = vcombine.low %v8175_v5, %v8177_v6  ;;  %v2305_v18 = vshrl.u32 %v5494_v7, 16  ;;  %v2308_v41 = vshll.u32 %v5494_v7, 16  ;;  %v1862_v22 = vshrl.u32 %v6898_v27, 16 }
 0x111   : > { %6432 = vmatprep.mubr.bf16.mxu1 %v7996_v31  ;;  %v5493_v31 = vcombine.low %v2149_v53, %v8179_v15  ;;  %v1865_v61 = vshll.u32 %v6898_v27, 16  ;;  %v2326_v53 = vshll.u32 %v5496_v33, 16  ;;  %v2341_v33 = vshrl.u32 %v5498_v19, 16 }
 0x112   : > { %v2314_v43 = vshrl.u32 %v5495_v29, 16  ;;  %v2310_v12 = vrot.slane %v2308_v41, 4  ;;  %v1864_v1 = vrot.slane %v1862_v22, 3  ;;  %v8244_v41 = vld [vmem:[#allocation2 + $0x3c] sm:$0xf] }
 0x113   : > { %v2297_v26 = vshrl.u32 %v5493_v31, 16  ;;  %v2300_v42 = vshll.u32 %v5493_v31, 16  ;;  %v1867_v32 = vrot.slane %v1865_v61, 4  ;;  %v8239_v31 = vcombine.low %v8228_v55, %v8230_v14  ;;  %v8266_v22 = vld [vmem:[#allocation2 + $0x60] sm:$0xf] }
 0x114   : > { %v2316_v30 = vrot.slane %v2314_v43, 3 }
 0x115   : > { %v2299_v7 = vrot.slane %v2297_v26, 3  ;;  %v2302_v27 = vrot.slane %v2300_v42, 4  ;;  %v1868_v43 = vor.u32 %v1867_v32, %v1864_v1  ;;  %v8252_v26 = vld [vmem:[#allocation2 + $0x58] sm:$0xf]  ;;  %v2344_v1 = vshll.u32 %v5498_v19, 16 }
 0x116   : > { %6481 = vmatmul.mubr.bf16.gmra.mxu0 %v8003_v25  ;;  %v4580_v25 = vrot.slane %v9592_v23, 1  ;;  %v2328_v23 = vrot.slane %v2326_v53, 4  ;;  %v8274_v53 = vld [vmem:[#allocation2 + $0x68] sm:$0xf] }
 0x117   : > { %6484 = vmatprep.mubr.bf16.mxu0 %v8025_v17  ;;  %v2317_v17 = vshll.u32 %v5495_v29, 16  ;;  %v8235_v29 = vcombine.low %v8216_v60, %v8226_v48  ;;  %9700 = vst [vmem:[#allocation43_spill] sm:$0xff] %v8274_v53 }
 0x118   : > { %6433 = vmatmul.mubr.bf16.gmra.mxu1 %v8037_v56  ;;  %v8213_v38 = vor.u32 %v4581_v57, %v4580_v25  ;;  %v8224_v56 = vcombine.low %v8195_v63, %v8197_v0  ;;  %v2332_v25 = vshrl.u32 %v5497_v2, 16  ;;  %v2335_v57 = vshll.u32 %v5497_v2, 16 }
 0x119   : > { %6436 = vmatprep.mubr.bf16.mxu1 %v8043_v54  ;;  %v2307_v54 = vrot.slane %v2305_v18, 3  ;;  %v2319_v40 = vrot.slane %v2317_v17, 4  ;;  %v8242_v18 = vld [vmem:[#allocation2 + $0x38] sm:$0xf]  ;;  %v2325_v2 = vrot.slane %v2323_v9, 3 }
 0x11a   : > { %v5499_v32 = vcombine.low %v8242_v18, %v8244_v41  ;;  %v2359_v17 = vshrl.u32 %v8224_v56, 16  ;;  %v2362_v58 = vshll.u32 %v8224_v56, 16 }
 0x11b   : > { %v2311_v61 = vor.u32 %v2310_v12, %v2307_v54  ;;  %v8257_v42 = vor.u32 %v2319_v40, %v2316_v30  ;;  %v2303_v54 = vor.u32 %v2302_v27, %v2299_v7  ;;  %v2334_v30 = vrot.slane %v2332_v25, 3  ;;  %v8276_v7 = vld [vmem:[#allocation2 + $0x6c] sm:$0xf]  ;;  %v8285_v12 = vld [vmem:[#allocation2 + $0x74] sm:$0xf] }
 0x11c   : > { %v2337_v40 = vrot.slane %v2335_v57, 4  ;;  %9701 = vst [vmem:[#allocation44_spill] sm:$0xff] %v8276_v7  ;;  %v1869_v27 = vsel %vm1784_vm0, %v8084_v52, %v1868_v43  ;;  %v8283_v57 = vld [vmem:[#allocation2 + $0x70] sm:$0xf]  ;;  %9703 = vst [vmem:[#allocation46_spill] sm:$0xff] %v8285_v12  ;;  %v2329_v46 = vor.u32 %v2328_v23, %v2325_v2  ;;  %v2346_v52 = vrot.slane %v2344_v1, 4 }
 0x11d   : > { %v2312_v19 = vsel %vm1784_vm0, %v2303_v54, %v2311_v61  ;;  %9702 = vst [vmem:[#allocation45_spill] sm:$0xff] %v8283_v57  ;;  %v2321_v9 = vsel %vm1784_vm0, %v2311_v61, %v8257_v42  ;;  %v2350_v43 = vshrl.u32 %v5499_v32, 16  ;;  %v5505_v25 = vcombine.low %v8274_v53, %v8276_v7  ;;  %v8310_v53 = vld [vmem:[#allocation2 + $0x84] sm:$0xf] }
 0x11e   : > { %6485 = vmatmul.mubr.bf16.gmra.mxu0 %v8059_v8  ;;  %v2343_v8 = vrot.slane %v2341_v33, 3  ;;  %v2353_v33 = vshll.u32 %v5499_v32, 16  ;;  %v2338_v21 = vor.u32 %v2337_v40, %v2334_v30  ;;  %v2368_v23 = vshrl.u32 %v8235_v29, 16  ;;  %9704 = vst [vmem:[#allocation47_spill] sm:$0xff] %v8310_v53 }
 0x11f   : > { %6488 = vmatprep.mubr.bf16.mxu0 %v8062_v28  ;;  %v8254_v28 = vld [vmem:[#allocation2 + $0x5c] sm:$0xf]  ;;  %v5506_v61 = vcombine.low %v8283_v57, %v8285_v12  ;;  %v2371_v2 = vshll.u32 %v8235_v29, 16  ;;  %v2380_v1 = vshll.u32 %v8239_v31, 16  ;;  %v2352_v34 = vrot.slane %v2350_v43, 3 }
 0x120   : > { %6437 = vmatmul.mubr.bf16.gmra.mxu1 %v8069_v47  ;;  %v8268_v47 = vld [vmem:[#allocation2 + $0x64] sm:$0xf]  ;;  %v2355_v11 = vrot.slane %v2353_v33, 4  ;;  %v2404_v50 = vshrl.u32 %v5505_v25, 16  ;;  %v2407_v29 = vshll.u32 %v5505_v25, 16  ;;  %v2364_v7 = vrot.slane %v2362_v58, 4 }
 0x121   : > { %6440 = vmatprep.mubr.bf16.mxu1 %v8089_v39  ;;  %9699 = vst [vmem:[#allocation42_spill] sm:$0xff] %v8268_v47  ;;  %v5503_v39 = vcombine.low %v8252_v26, %v8254_v28  ;;  %v5504_v54 = vcombine.low %v8266_v22, %v8268_v47  ;;  %v8308_v12 = vld [vmem:[#allocation2 + $0x80] sm:$0xf]  ;;  %v2413_v57 = vshrl.u32 %v5506_v61, 16  ;;  %v2416_v47 = vshll.u32 %v5506_v61, 16 }
 0x122   : > { %v2347_v25 = vor.u32 %v2346_v52, %v2343_v8  ;;  %v2406_v43 = vrot.slane %v2404_v50, 3  ;;  %v2409_v33 = vrot.slane %v2407_v29, 4  ;;  %v8316_v58 = vcombine.low %v8308_v12, %v8310_v53 }
 0x123   : > { %v2386_v32 = vshrl.u32 %v5503_v39, 16  ;;  %v2389_v30 = vshll.u32 %v5503_v39, 16  ;;  %v2395_v40 = vshrl.u32 %v5504_v54, 16  ;;  %v2398_v56 = vshll.u32 %v5504_v54, 16 }
 0x124   : > { %v2382_v39 = vrot.slane %v2380_v1, 4  ;;  %v2330_v61 = vsel %vm1784_vm0, %v8257_v42, %v2329_v46  ;;  %v2418_v8 = vrot.slane %v2416_v47, 4  ;;  %v2348_v42 = vsel %vm1784_vm0, %v2338_v21, %v2347_v25 }
 0x125   : > { %v2388_v55 = vrot.slane %v2386_v32, 3  ;;  %v2391_v54 = vrot.slane %v2389_v30, 4  ;;  %v2397_v48 = vrot.slane %v2395_v40, 3  ;;  %v2400_v60 = vrot.slane %v2398_v56, 4 }
 0x126   : > { %6489 = vmatmul.mubr.bf16.gmra.mxu0 %v8076_v16  ;;  %v2377_v16 = vshrl.u32 %v8239_v31, 16  ;;  %v2370_v31 = vrot.slane %v2368_v23, 3  ;;  %v9705_v23 = vcombine.low %v8179_v15, %v8168_v10  ;;  %v2339_v10 = vsel %vm1784_vm0, %v2329_v46, %v2338_v21 }
 0x127   : > { %6492 = vmatprep.mubr.bf16.mxu0 %v8097_v20  ;;  %v2361_v20 = vrot.slane %v2359_v17, 3  ;;  %v2392_v15 = vor.u32 %v2391_v54, %v2388_v55  ;;  %v2401_v30 = vor.u32 %v2400_v60, %v2397_v48  ;;  %v8349_v48 = vld [vmem:[#allocation2 + $0x88] sm:$0xf]  ;;  %v8351_v55 = vld [vmem:[#allocation2 + $0x8c] sm:$0xf]  ;;  %v9710_v53 = vcombine.low %v8191_v59, %v8193_v62 }
 0x128   : > { %6441 = vmatmul.mubr.bf16.gmra.mxu1 %v8109_v44  ;;  %v2373_v44 = vrot.slane %v2371_v2, 4  ;;  %v2379_v17 = vrot.slane %v2377_v16, 3  ;;  %v6908_v2 = vld [vmem:[%s9527_s3 + $0x170] sm:$0xff]   ;;  %v2356_v16 = vor.u32 %v2355_v11, %v2352_v34  ;;  %v2410_v34 = vor.u32 %v2409_v33, %v2406_v43  ;;  %9707 = vst [vmem:[#allocation49_spill] sm:$0xff] %v8351_v55  ;;  %v8381_v33 = vld [vmem:[#allocation2 + $0x44] sm:$0xff]  }
 0x129   : > { %6512 = vmatprep.mubr.bf16.mxu1 %v2312_v19  ;;  %v5507_v19 = vcombine.low %v8303_v51, %v8306_v24  ;;  %v2365_v50 = vor.u32 %v2364_v7, %v2361_v20  ;;  %v8334_v11 = vld [vmem:[%s9527_s3 + $0x1b0] sm:$0xff]   ;;  %v2431_v7 = vshrl.u32 %v8316_v58, 16  ;;  %v6914_v20 = vld [vmem:[%s9527_s3 + $0x168] sm:$0xff]   ;;  %v9711_v21 = vcombine.low %v8200_v3, %v8202_v13 }
 0x12a   : > { %v2374_v1 = vor.u32 %v2373_v44, %v2370_v31  ;;  %v2383_v32 = vor.u32 %v2382_v39, %v2379_v17  ;;  %v8340_v46 = vsel %vm1784_vm0, %v2347_v25, %v2356_v16  ;;  %v8368_v17 = vld [vmem:[#allocation2 + $0x34] sm:$0xff]   ;;  %v8370_v39 = vld [vmem:[#allocation2 + $0x3c] sm:$0xff]  }
 0x12b   : > { %v2422_v40 = vshrl.u32 %v5507_v19, 16  ;;  %v2425_v47 = vshll.u32 %v5507_v19, 16  ;;  %v8343_v60 = vsel %vm1784_vm0, %v2356_v16, %v2365_v50  ;;  %v8376_v19 = vsel %vm1784_vm0, %v2392_v15, %v2401_v30  ;;  %v8431_v43 = vld [vmem:[#allocation2 + $0x74] sm:$0xff]   ;;  %v6923_v44 = vld [vmem:[%s9527_s3 + $0x1a0] sm:$0xff]  }
 0x12c   : > { %v8359_v56 = vsel %vm1784_vm0, %v2365_v50, %v2374_v1  ;;  %v8362_v29 = vsel %vm1784_vm0, %v2374_v1, %v2383_v32  ;;  %v8373_v54 = vsel %vm1784_vm0, %v2383_v32, %v2392_v15  ;;  %v8389_v16 = vsel %vm1784_vm0, %v2401_v30, %v2410_v34  ;;  %v8399_v1 = vld [vmem:[#allocation2 + $0x54] sm:$0xff]   ;;  %v8401_v32 = vld [vmem:[#allocation2 + $0x5c] sm:$0xff]  }
 0x12d   : > { %v8378_v25 = vrot.slane %v2422_v40, 3  ;;  %v8397_v50 = vcombine.low %v8349_v48, %v8351_v55  ;;  %v8414_v15 = vld [vmem:[#allocation2 + $0x18] sm:$0xf]  ;;  %v8468_v55 = vld [vmem:[#allocation2 + $0x9c] sm:$0xff]   ;;  %v6934_v30 = vld [vmem:[%s9527_s3 + $0x150] sm:$0xff]  }
 0x12e   : > { %6493 = vmatmul.mubr.bf16.gmra.mxu0 %v1869_v27  ;;  %v2415_v27 = vrot.slane %v2413_v57, 3  ;;  %v8353_v57 = vld [vmem:[#allocation2 + $0x2c] sm:$0xff]   ;;  %v8447_v31 = vld [vmem:[#allocation2 + $0x94] sm:$0xff]  }
 0x12f   : > { %6564 = vmatprep.mubr.bf16.mxu0 %v9705_v23  ;;  %v8383_v23 = vld [vmem:[#allocation2 + $0x4c] sm:$0xff]  }
 0x130   : > { %6513 = vmatmul.mubr.bf16.vlgmr.msra.gmra.mxu1 %v2321_v9  ;;  %v8337_v9 = vld [vmem:[#allocation2 + $0x1c] sm:$0xff]  }
 0x131   : > { %6516 = vmatprep.mubr.bf16.mxu1 %v2330_v61  ;;  %6601 = vmatpush3.bf16.msra.mxu1 %v8151_v49  ;;  %9706 = vst [vmem:[#allocation48_spill] sm:$0xff] %v8337_v9  ;;  %v8347_v49 = vor.u32 %v2418_v8, %v2415_v27  ;;  %v9708_v61 = vcombine.low %v8170_v37, %v8175_v5  ;;  %v8391_v27 = vrot.slane %v2425_v47, 4  ;;  %v8393_v8 = vrot.slane %v2431_v7, 3  ;;  %v6921_v5 = vld [vmem:[%s9527_s3 + $0x160] sm:$0xff]  }
 0x132   : > { %6602 = vmatprep.subr.bf16.mxu1 %v6908_v2  ;;  %v9709_v37 = vcombine.low %v8177_v6, %v8189_v4  ;;  %v8419_v47 = vld [vmem:[#allocation2 + $0x64] sm:$0xff]   ;;  %v8421_v6 = vld [vmem:[#allocation2 + $0x6c] sm:$0xff]   ;;  %v4231_v7 = vrot.slane %v8337_v9, 1  ;;  %v9713_v13 = vshrl.u32 %v8337_v9, 16 }
 0x133   : > { %v6917_v4 = vld [vmem:[%s9527_s3 + $0x1a8] sm:$0xff]  }
 0x135   : > { %6603 = vmatpush3.bf16.msra.mxu1 %v6908_v2  ;;  %v8412_v2 = vsel %vm1784_vm0, %v2410_v34, %v8347_v49  ;;  %v8439_v34 = vld [vmem:[#allocation2 + $0x84] sm:$0xff]  }
 0x136   : > { %6565 = vmatmul.mubr.bf16.vlgmr.msra.gmra.mxu0 %v9708_v61  ;;  %6604 = vmatprep.subr.bf16.mxu1 %v6914_v20  ;;  %v8445_v61 = vld [vmem:[#allocation2 + $0x8c] sm:$0xff]  }
 0x137   : > { %6653 = vmatpush3.bf16.msra.mxu0 %v8160_v36  ;;  %6568 = vmatprep.mubr.bf16.mxu0 %v9709_v37  ;;  %v8437_v36 = vld [vmem:[#allocation2 + $0x7c] sm:$0xff]   ;;  %v4208_v37 = vld [vmem:[#allocation2 + $0x14] sm:$0xe] }
 0x138   : > { %6654 = vmatprep.subr.bf16.mxu0 %v8334_v11  ;;  %6517 = vmatmul.mubr.bf16.gmra.mxu1 %v2339_v10  ;;  %v6928_v10 = vld [vmem:[%s9527_s3 + $0x158] sm:$0xff]  }
 0x139   : > { %6520 = vmatprep.mubr.bf16.mxu1 %v2348_v42  ;;  %6605 = vmatpush3.bf16.msra.mxu1 %v6914_v20  ;;  %v5664_v20 = vcombine.low %v4208_v37, %v8414_v15 }
 0x13a   : > { %6606 = vmatprep.subr.bf16.mxu1 %v6921_v5 }
 0x13b   : > { %6655 = vmatpush3.bf16.msra.mxu0 %v8334_v11  ;;  %v4230_v37 = vrot.slane %v5664_v20, 1  ;;  %v4569_v62 = vshrl.u32 %v5664_v20, 16  ;;  %v4233_v11 = vrot.slane %v8172_v35, 1 }
 0x13c   : > { %6656 = vmatprep.subr.bf16.mxu0 %v6917_v4 }
 0x13d   : > { %6607 = vmatpush3.bf16.msra.mxu1 %v6921_v5  ;;  %v6930_v5 = vld [vmem:[%s9527_s3 + $0x198] sm:$0xff]   ;;  %v8488_v3 = vsel %vm4229_vm10, %v4230_v37, %v4231_v7  ;;  %v4571_v42 = vrot.slane %v4569_v62, 1  ;;  %v4235_v37 = vrot.slane %v8353_v57, 1  ;;  %v8504_v62 = vsel %vm4229_vm10, %v4231_v7, %v4233_v11 }
 0x13e   : > { %6569 = vmatmul.mubr.bf16.gmra.mxu0 %v9710_v53  ;;  %v4572_v53 = vshll.u32 %v5664_v20, 16  ;;  %6608 = vmatprep.subr.bf16.mxu1 %v6928_v10  ;;  %9712 = vst [vmem:[#allocation50_spill] sm:$0xff] %v8488_v3  ;;  %v9715_v3 = vshrl.u32 %v8353_v57, 16  ;;  %v4239_v7 = vrot.slane %v8370_v39, 1 }
 0x13f   : > { %6572 = vmatprep.mubr.bf16.mxu0 %v9711_v21  ;;  %6657 = vmatpush3.bf16.msra.mxu0 %v6917_v4  ;;  %v4576_v21 = vrot.slane %v9713_v13, 1  ;;  %v9714_v4 = vshll.u32 %v8337_v9, 16  ;;  %v9716_v9 = vshll.u32 %v8353_v57, 16 }
 0x140   : > { %6658 = vmatprep.subr.bf16.mxu0 %v6923_v44  ;;  %6521 = vmatmul.mubr.bf16.gmra.mxu1 %v8340_v46  ;;  %v4574_v40 = vrot.slane %v4572_v53, 2  ;;  %v4584_v13 = vrot.slane %v9715_v3, 1  ;;  %v4237_v53 = vrot.slane %v8368_v17, 1 }
 0x141   : > { %v4577_v59 = vrot.slane %v9714_v4, 2  ;;  %6524 = vmatprep.mubr.bf16.mxu1 %v8343_v60  ;;  %6609 = vmatpush3.bf16.msra.mxu1 %v6928_v10  ;;  %v4585_v4 = vrot.slane %v9716_v9, 2  ;;  %v6937_v60 = vld [vmem:[%s9527_s3 + $0x190] sm:$0xff]   ;;  %v6941_v10 = vld [vmem:[%s9527_s3 + $0x148] sm:$0xff]   ;;  %v8514_v9 = vsel %vm4229_vm10, %v4233_v11, %v4235_v37  ;;  %v9720_v11 = vcombine.low %v8208_v45, %v8242_v18  ;;  %v6947_v45 = vld [vmem:[%s9527_s3 + $0x140] sm:$0xff]  }
 0x142   : > { %6610 = vmatprep.subr.bf16.mxu1 %v6934_v30  ;;  %v4575_v46 = vor.u32 %v4574_v40, %v4571_v42  ;;  %v8526_v3 = vsel %vm4229_vm10, %v4235_v37, %v4237_v53  ;;  %v9724_v37 = vshrl.u32 %v8370_v39, 16 }
 0x143   : > { %v4578_v52 = vor.u32 %v4577_v59, %v4576_v21  ;;  %6659 = vmatpush3.bf16.msra.mxu0 %v6923_v44  ;;  %v4586_v40 = vor.u32 %v4585_v4, %v4584_v13  ;;  %9718 = vst [vmem:[#allocation52_spill] sm:$0xff] %v8526_v3  ;;  %v9719_v21 = vshrl.u32 %v8368_v17, 16  ;;  %v8538_v4 = vsel %vm4229_vm10, %v4237_v53, %v4239_v7 }
 0x144   : > { %6660 = vmatprep.subr.bf16.mxu0 %v6930_v5  ;;  %9722 = vst [vmem:[#allocation54_spill] sm:$0xff] %v8538_v4  ;;  %v4592_v42 = vrot.slane %v9724_v37, 1  ;;  %v4243_v53 = vrot.slane %v8383_v23, 1  ;;  %v9730_v4 = vshll.u32 %v8383_v23, 16 }
 0x145   : > { %v8518_v44 = vsel %vm4567_vm15, %v4578_v52, %v8213_v38  ;;  %v8523_v59 = vsel %vm4567_vm15, %v4575_v46, %v4578_v52  ;;  %v4588_v20 = vrot.slane %v9719_v21, 1  ;;  %6611 = vmatpush3.bf16.msra.mxu1 %v6934_v30  ;;  %v8535_v13 = vsel %vm4567_vm15, %v8213_v38, %v4586_v40 }
 0x146   : > { %9717 = vst [vmem:[#allocation51_spill] sm:$0xff] %v8518_v44  ;;  %6573 = vmatmul.mubr.bf16.gmra.mxu0 %v9720_v11  ;;  %9721 = vst [vmem:[#allocation53_spill] sm:$0xff] %v8535_v13  ;;  %v9723_v52 = vshll.u32 %v8368_v17, 16  ;;  %v9725_v21 = vcombine.low %v8244_v41, %v8195_v63  ;;  %v9726_v38 = vshll.u32 %v8370_v39, 16  ;;  %v4241_v30 = vrot.slane %v8381_v33, 1  ;;  %6612 = vmatprep.subr.bf16.mxu1 %v6941_v10  ;;  %v6943_v63 = vld [vmem:[%s9527_s3 + $0x188] sm:$0xff]  }
 0x147   : > { %6661 = vmatpush3.bf16.msra.mxu0 %v6930_v5  ;;  %v9727_v11 = vshrl.u32 %v8381_v33, 16  ;;  %v9728_v5 = vshll.u32 %v8381_v33, 16  ;;  %v4601_v3 = vrot.slane %v9730_v4, 2  ;;  %v4247_v4 = vrot.slane %v8401_v32, 1 }
 0x148   : > { %v4589_v46 = vrot.slane %v9723_v52, 2  ;;  %6576 = vmatprep.mubr.bf16.mxu0 %v9725_v21  ;;  %v4593_v18 = vrot.slane %v9726_v38, 2  ;;  %6662 = vmatprep.subr.bf16.mxu0 %v6937_v60  ;;  %v9729_v21 = vshrl.u32 %v8383_v23, 16  ;;  %v8570_v44 = vsel %vm4229_vm10, %v4241_v30, %v4243_v53 }
 0x149   : > { %v4596_v52 = vrot.slane %v9727_v11, 1  ;;  %v4597_v37 = vrot.slane %v9728_v5, 2  ;;  %6525 = vmatmul.mubr.bf16.gmra.mxu1 %v8359_v56  ;;  %v8567_v11 = vsel %vm4229_vm10, %v4239_v7, %v4241_v30  ;;  %9732 = vst [vmem:[#allocation56_spill] sm:$0xff] %v8570_v44  ;;  %v9748_v44 = vld [vmem:[#allocation40_spill] sm:$0xff] }
 0x14a   : > { %v4590_v41 = vor.u32 %v4589_v46, %v4588_v20  ;;  %v4600_v38 = vrot.slane %v9729_v21, 1  ;;  %v4594_v13 = vor.u32 %v4593_v18, %v4592_v42  ;;  %9731 = vst [vmem:[#allocation55_spill] sm:$0xff] %v8567_v11  ;;  %v4245_v20 = vrot.slane %v8399_v1, 1  ;;  %6528 = vmatprep.mubr.bf16.mxu1 %v8362_v29  ;;  %6613 = vmatpush3.bf16.msra.mxu1 %v6941_v10  ;;  %v9749_v11 = vld [vmem:[#allocation41_spill] sm:$0xff] }
 0x14b   : > { %v4598_v5 = vor.u32 %v4597_v37, %v4596_v52  ;;  %6663 = vmatpush3.bf16.msra.mxu0 %v6937_v60  ;;  %6614 = vmatprep.subr.bf16.mxu1 %v6947_v45  ;;  %v9735_v42 = vshrl.u32 %v8399_v1, 16  ;;  %v9736_v29 = vshll.u32 %v8399_v1, 16  ;;  %v8594_v60 = vld [vmem:[%s9527_s3 + $0x1f8] sm:$0xff]   ;;  %v9740_v52 = vshrl.u32 %v8401_v32, 16 }
 0x14c   : > { %v8575_v46 = vsel %vm4567_vm15, %v4586_v40, %v4590_v41  ;;  %v4602_v21 = vor.u32 %v4601_v3, %v4600_v38  ;;  %v8579_v56 = vsel %vm4567_vm15, %v4590_v41, %v4594_v13  ;;  %v8582_v7 = vsel %vm4229_vm10, %v4243_v53, %v4245_v20  ;;  %6664 = vmatprep.subr.bf16.mxu0 %v6943_v63  ;;  %v6950_v40 = vld [vmem:[%s9527_s3 + $0x180] sm:$0xff]  }
 0x14d   : > { %9733 = vst [vmem:[#allocation57_spill] sm:$0xff] %v8579_v56  ;;  %9734 = vst [vmem:[#allocation58_spill] sm:$0xff] %v8582_v7  ;;  %v4604_v18 = vrot.slane %v9735_v42, 1  ;;  %v4605_v10 = vrot.slane %v9736_v29, 2  ;;  %v8597_v3 = vsel %vm4567_vm15, %v4594_v13, %v4598_v5  ;;  %v8603_v53 = vsel %vm4229_vm10, %v4245_v20, %v4247_v4  ;;  %v9742_v13 = vld [vmem:[#allocation39_spill] sm:$0xff] }
 0x14e   : > { %9737 = vst [vmem:[#allocation59_spill] sm:$0xff] %v8597_v3  ;;  %v8600_v30 = vsel %vm4567_vm15, %v4598_v5, %v4602_v21  ;;  %9739 = vst [vmem:[#allocation61_spill] sm:$0xff] %v8603_v53  ;;  %v4608_v41 = vrot.slane %v9740_v52, 1  ;;  %v9741_v38 = vshll.u32 %v8401_v32, 16  ;;  %v4249_v29 = vrot.slane %v8419_v47, 1  ;;  %6615 = vmatpush3.bf16.msra.mxu1 %v6947_v45 }
 0x14f   : > { %9738 = vst [vmem:[#allocation60_spill] sm:$0xff] %v8600_v30  ;;  %v4606_v37 = vor.u32 %v4605_v10, %v4604_v18  ;;  %v4251_v7 = vrot.slane %v8421_v6, 1  ;;  %v9743_v3 = vcombine.low %v8197_v0, %v9742_v13  ;;  %v9744_v5 = vshrl.u32 %v8419_v47, 16  ;;  %6665 = vmatpush3.bf16.msra.mxu0 %v6943_v63  ;;  %6704 = vmatprep.subr.bf16.mxu1 %v8594_v60  ;;  %v8636_v13 = vld [vmem:[%s9527_s3 + $0x238] sm:$0xff]  }
 0x150   : > { %v4609_v42 = vrot.slane %v9741_v38, 2  ;;  %v9745_v53 = vshll.u32 %v8419_v47, 16  ;;  %v9746_v18 = vshrl.u32 %v8421_v6, 16  ;;  %v9747_v52 = vshll.u32 %v8421_v6, 16  ;;  %6666 = vmatprep.subr.bf16.mxu0 %v6950_v40 }
 0x151   : > { %6577 = vmatmul.mubr.bf16.gmra.mxu0 %v9743_v3  ;;  %v4612_v20 = vrot.slane %v9744_v5, 1  ;;  %v9750_v56 = vcombine.low %v9748_v44, %v9749_v11  ;;  %v8626_v0 = vsel %vm4567_vm15, %v4602_v21, %v4606_v37  ;;  %v8629_v3 = vsel %vm4229_vm10, %v4247_v4, %v4249_v29  ;;  %6529 = vmatmul.mubr.bf16.gmra.mxu1 %v8373_v54 }
 0x152   : > { %v4613_v30 = vrot.slane %v9745_v53, 2  ;;  %v4616_v10 = vrot.slane %v9746_v18, 1  ;;  %v4617_v38 = vrot.slane %v9747_v52, 2  ;;  %v4610_v45 = vor.u32 %v4609_v42, %v4608_v41  ;;  %6532 = vmatprep.mubr.bf16.mxu1 %v8376_v19 }
 0x153   : > { %6580 = vmatprep.mubr.bf16.mxu0 %v9750_v56  ;;  %v4253_v53 = vrot.slane %v8431_v43, 1  ;;  %v8639_v44 = vsel %vm4229_vm10, %v4249_v29, %v4251_v7  ;;  %v4255_v21 = vrot.slane %v8437_v36, 1  ;;  %v9752_v41 = vshrl.u32 %v8431_v43, 16  ;;  %6667 = vmatpush3.bf16.msra.mxu0 %v6950_v40 }
 0x154   : > { %v4614_v63 = vor.u32 %v4613_v30, %v4612_v20  ;;  %v4618_v11 = vor.u32 %v4617_v38, %v4616_v10  ;;  %v8644_v4 = vsel %vm4567_vm15, %v4606_v37, %v4610_v45  ;;  %v9753_v5 = vshll.u32 %v8431_v43, 16  ;;  %6756 = vmatprep.subr.bf16.mxu0 %v8636_v13 }
 0x155   : > { %v8647_v56 = vsel %vm4229_vm10, %v4251_v7, %v4253_v53  ;;  %v4620_v42 = vrot.slane %v9752_v41, 1  ;;  %v8661_v54 = vsel %vm4229_vm10, %v4253_v53, %v4255_v21  ;;  %v9757_v7 = vshrl.u32 %v8437_v36, 16 }
 0x156   : > { %9751 = vst [vmem:[#allocation39_spill] sm:$0xff] %v8647_v56  ;;  %v4621_v18 = vrot.slane %v9753_v5, 2  ;;  %v8655_v30 = vsel %vm4567_vm15, %v4610_v45, %v4614_v63  ;;  %v8658_v29 = vsel %vm4567_vm15, %v4614_v63, %v4618_v11  ;;  %9756 = vst [vmem:[#allocation62_spill] sm:$0xff] %v8661_v54  ;;  %v9758_v10 = vshll.u32 %v8437_v36, 16 }
 0x157   : > { %9754 = vst [vmem:[#allocation40_spill] sm:$0xff] %v8655_v30  ;;  %9755 = vst [vmem:[#allocation41_spill] sm:$0xff] %v8658_v29  ;;  %v4624_v37 = vrot.slane %v9757_v7, 1  ;;  %v4257_v38 = vrot.slane %v8439_v34, 1  ;;  %v4259_v19 = vrot.slane %v8445_v61, 1  ;;  %v9759_v45 = vshrl.u32 %v8439_v34, 16 }
 0x158   : > { %v4622_v20 = vor.u32 %v4621_v18, %v4620_v42  ;;  %v4625_v52 = vrot.slane %v9758_v10, 2  ;;  %v9760_v53 = vshll.u32 %v8439_v34, 16  ;;  %v9761_v5 = vshrl.u32 %v8445_v61, 16 }
 0x159   : > { %v4628_v63 = vrot.slane %v9759_v45, 1  ;;  %v9762_v40 = vshll.u32 %v8445_v61, 16  ;;  %v8682_v54 = vsel %vm4229_vm10, %v4255_v21, %v4257_v38  ;;  %v8685_v56 = vsel %vm4229_vm10, %v4257_v38, %v4259_v19  ;;  %6533 = vmatmul.mubr.bf16.gmra.mxu1 %v8389_v16  ;;  %v9782_v16 = vld [vmem:[#allocation45_spill] sm:$0xff] }
 0x15a   : > { %v4629_v41 = vrot.slane %v9760_v53, 2  ;;  %v4632_v7 = vrot.slane %v9761_v5, 1  ;;  %v8679_v18 = vsel %vm4567_vm15, %v4618_v11, %v4622_v20  ;;  %v4626_v10 = vor.u32 %v4625_v52, %v4624_v37  ;;  %9764 = vst [vmem:[#allocation64_spill] sm:$0xff] %v8682_v54  ;;  %9765 = vst [vmem:[#allocation65_spill] sm:$0xff] %v8685_v56  ;;  %v8690_v53 = vld [vmem:[#allocation2 + $0x90] sm:$0xf]  ;;  %6536 = vmatprep.mubr.bf16.mxu1 %v8412_v2 }
 0x15b   : > { %v4633_v42 = vrot.slane %v9762_v40, 2  ;;  %9763 = vst [vmem:[#allocation63_spill] sm:$0xff] %v8679_v18  ;;  %v9766_v45 = vcombine.low %v8230_v14, %v8252_v26  ;;  %v8692_v5 = vld [vmem:[#allocation2 + $0x94] sm:$0xf]  ;;  %v4261_v11 = vrot.slane %v8447_v31, 1  ;;  %v9613_v37 = vrot.slane %v8468_v55, 1 }
 0x15c   : > { %v4630_v29 = vor.u32 %v4629_v41, %v4628_v63  ;;  %v9767_v21 = vcombine.low %v8254_v28, %v8266_v22  ;;  %v8700_v52 = vsel %vm4567_vm15, %v4622_v20, %v4626_v10  ;;  %v9769_v14 = vshrl.u32 %v8447_v31, 16  ;;  %v7001_v56 = vld [vmem:[%s9527_s3 + $0x1c0] sm:$0xff]  }
 0x15d   : > { %6581 = vmatmul.mubr.bf16.gmra.mxu0 %v9766_v45  ;;  %v4634_v40 = vor.u32 %v4633_v42, %v4632_v7  ;;  %9768 = vst [vmem:[#allocation66_spill] sm:$0xff] %v8700_v52  ;;  %v9770_v38 = vshll.u32 %v8447_v31, 16  ;;  %v9771_v63 = vshrl.u32 %v8468_v55, 16  ;;  %v8715_v22 = vsel %vm4229_vm10, %v4259_v19, %v4261_v11  ;;  %v9778_v19 = vld [vmem:[#allocation43_spill] sm:$0xff] }
 0x15e   : > { %6584 = vmatprep.mubr.bf16.mxu0 %v9767_v21  ;;  %v4636_v26 = vrot.slane %v9769_v14, 1  ;;  %v8709_v7 = vsel %vm4567_vm15, %v4626_v10, %v4630_v29  ;;  %9774 = vst [vmem:[#allocation69_spill] sm:$0xff] %v8715_v22  ;;  %v8720_v28 = vsel %vm4229_vm10, %v4261_v11, %v9613_v37  ;;  %v9776_v20 = vshll.u32 %v8316_v58, 16  ;;  %v9783_v58 = vld [vmem:[#allocation44_spill] sm:$0xff] }
 0x15f   : > { %v4637_v45 = vrot.slane %v9770_v38, 2  ;;  %v4640_v41 = vrot.slane %v9771_v63, 1  ;;  %9772 = vst [vmem:[#allocation67_spill] sm:$0xff] %v8709_v7  ;;  %v8712_v42 = vsel %vm4567_vm15, %v4630_v29, %v4634_v40  ;;  %9775 = vst [vmem:[#allocation70_spill] sm:$0xff] %v8720_v28  ;;  %v5510_v10 = vcombine.low %v8690_v53, %v8692_v5  ;;  %v9779_v63 = vld [vmem:[#allocation42_spill] sm:$0xff] }
 0x160   : > { %9773 = vst [vmem:[#allocation68_spill] sm:$0xff] %v8712_v42  ;;  %v2436_v21 = vrot.slane %v9776_v20, 4  ;;  %v9777_v29 = vshll.u32 %v8468_v55, 16  ;;  %v5547_v22 = vcombine.low %v9779_v63, %v9778_v19  ;;  %v5548_v20 = vcombine.low %v9783_v58, %v9782_v16  ;;  %v8744_v19 = vld [vmem:[#allocation2 + $0x98] sm:$0xf] }
 0x161   : > { %v4638_v14 = vor.u32 %v4637_v45, %v4636_v26  ;;  %v2428_v28 = vor.u32 %v8391_v27, %v8378_v25  ;;  %v2440_v26 = vshrl.u32 %v8397_v50, 16  ;;  %v2443_v45 = vshll.u32 %v8397_v50, 16 }
 0x162   : > { %v4641_v38 = vrot.slane %v9777_v29, 2  ;;  %v2437_v2 = vor.u32 %v2436_v21, %v8393_v8  ;;  %v2449_v29 = vshrl.u32 %v5510_v10, 16  ;;  %v2452_v42 = vshll.u32 %v5510_v10, 16 }
 0x163   : > { %v8733_v11 = vsel %vm4567_vm15, %v4634_v40, %v4638_v14  ;;  %v2442_v25 = vrot.slane %v2440_v26, 3  ;;  %v2445_v27 = vrot.slane %v2443_v45, 4  ;;  %v5511_v50 = vcombine.low %v8744_v19, %v8744_v19  ;;  %v6949_v26 = vld [vmem:[#allocation2 + $0x14] sm:$0xff]  }
 0x164   : > { %9780 = vst [vmem:[#allocation43_spill] sm:$0xff] %v8733_v11  ;;  %v8735_v37 = vor.u32 %v4641_v38, %v4640_v41  ;;  %v2429_v41 = vsel %vm1784_vm0, %v8347_v49, %v2428_v28  ;;  %v2438_v8 = vsel %vm1784_vm0, %v2428_v28, %v2437_v2  ;;  %v2451_v21 = vrot.slane %v2449_v29, 3  ;;  %v6948_v38 = vld [vmem:[#allocation2 + $0xc] sm:$0xff]   ;;  %v3634_v45 = vld [vmem:[#allocation2 + $0x14] sm:$0xf] }
 0x165   : > { %6585 = vmatmul.mubr.bf16.gmra.mxu0 %v5547_v22  ;;  %6537 = vmatmul.mubr.bf16.gmra.mxu1 %v2429_v41  ;;  %v2454_v10 = vrot.slane %v2452_v42, 4  ;;  %v2446_v22 = vor.u32 %v2445_v27, %v2442_v25  ;;  %v2458_v16 = vshrl.u32 %v5511_v50, 16  ;;  %v2461_v58 = vshll.u32 %v5511_v50, 16  ;;  %v6954_v50 = vld [vmem:[#allocation2 + $0x1c] sm:$0xff]  }
 0x166   : > { %9781 = vst [vmem:[#allocation42_spill] sm:$0xff] %v8735_v37  ;;  %v8748_v40 = vsel %vm4567_vm15, %v4638_v14, %v8735_v37  ;;  %6588 = vmatprep.mubr.bf16.mxu0 %v5548_v20  ;;  %6540 = vmatprep.mubr.bf16.mxu1 %v2438_v8  ;;  %v9785_v14 = vld [vmem:[#allocation46_spill] sm:$0xff]  ;;  %v5550_v49 = vcombine.low %v8306_v24, %v8308_v12  ;;  %v3210_v28 = vshll.u32 %v6948_v38, 16  ;;  %v8761_v37 = vpop.f32.mrf.mxu1  ;;  %v3215_v25 = vshll.u32 %v6949_v26, 16 }
 0x167   : > { %9784 = vst [vmem:[#allocation45_spill] sm:$0xff] %v8748_v40  ;;  %v5549_v63 = vcombine.low %v9785_v14, %v8303_v51  ;;  %v2455_v20 = vor.u32 %v2454_v10, %v2451_v21  ;;  %v5621_v41 = vcombine.low %v3634_v45, %v8414_v15  ;;  %v2447_v42 = vsel %vm1784_vm0, %v2437_v2, %v2446_v22  ;;  %v9786_v15 = vld [vmem:[#allocation47_spill] sm:$0xff]  ;;  %v9787_v2 = vld [vmem:[#allocation49_spill] sm:$0xff] }
 0x168   : > { %v2460_v29 = vrot.slane %v2458_v16, 3  ;;  %v2463_v8 = vrot.slane %v2461_v58, 4  ;;  %v8764_v12 = vpop.f32.mrf.mxu1  ;;  %v3212_v27 = vrot.slane %v3210_v28, 1  ;;  %v5551_v21 = vcombine.low %v9786_v15, %v8349_v48  ;;  %v6955_v58 = vld [vmem:[#allocation2 + $0x24] sm:$0xff]   ;;  %v6978_v40 = vld [vmem:[#allocation2 + $0x5c] sm:$0xff]  }
 0x169   : > { %v2456_v51 = vsel %vm1784_vm0, %v2446_v22, %v2455_v20  ;;  %v3784_v24 = vshll.u32 %v5621_v41, 16  ;;  %v5552_v14 = vcombine.low %v9787_v2, %v8690_v53  ;;  %v3217_v16 = vrot.slane %v3215_v25, 1 }
 0x16a   : > { %v2464_v10 = vor.u32 %v2463_v8, %v2460_v29  ;;  %v8770_v22 = vpop.f32.mrf.mxu1  ;;  %v3231_v29 = vshll.u32 %v6955_v58, 16  ;;  %v3219_v2 = vshrl.u32 %v6949_v26, 16  ;;  %v6962_v26 = vld [vmem:[%s9527_s3 + $0x1f0] sm:$0xff]   ;;  %v3287_v7 = vshll.u32 %v6978_v40, 16 }
 0x16b   : > { %v3291_v54 = vshrl.u32 %v6978_v40, 16  ;;  %v9808_v40 = vshll.u32 %v8419_v47, 16 }
 0x16c   : > { %v2465_v28 = vsel %vm1784_vm0, %v2455_v20, %v2464_v10  ;;  %v8776_v15 = vpop.f32.mrf.mxu1  ;;  %v3227_v20 = vshrl.u32 %v6954_v50, 16  ;;  %v3233_v10 = vrot.slane %v3231_v29, 1 }
 0x16d   : > { %6589 = vmatmul.mubr.bf16.gmra.mxu0 %v5549_v63  ;;  %6541 = vmatmul.mubr.bf16.gmra.mxu1 %v2447_v42  ;;  %v3208_v63 = vshrl.u32 %v6948_v38, 16  ;;  %v3223_v42 = vshll.u32 %v6954_v50, 16  ;;  %v9788_v38 = vld [vmem:[#allocation48_spill] sm:$0xff] }
 0x16e   : > { %6592 = vmatprep.mubr.bf16.mxu0 %v5550_v49  ;;  %6544 = vmatprep.mubr.bf16.mxu1 %v2456_v51  ;;  %v3786_v49 = vrot.slane %v3784_v24, 1  ;;  %v3782_v51 = vshrl.u32 %v5621_v41, 16  ;;  %v9789_v8 = vshll.u32 %v9788_v38, 16  ;;  %v8780_v41 = vld [vmem:[#allocation2 + $0x34] sm:$0xff]  }
 0x16f   : > { %v3213_v45 = vor.u32 %v3212_v27, %v3208_v63  ;;  %v3225_v24 = vrot.slane %v3223_v42, 1  ;;  %v5553_v27 = vcombine.low %v8692_v5, %v8744_v19  ;;  %v9790_v5 = vshll.u32 %v8172_v35, 16 }
 0x170   : > { %v3787_v53 = vor.u32 %v3786_v49, %v3782_v51  ;;  %v3791_v25 = vrot.slane %v9789_v8, 1  ;;  %v8783_v49 = vpop.f32.mrf.mxu1  ;;  %v6966_v51 = vld [vmem:[#allocation2 + $0x3c] sm:$0xff]   ;;  %v9792_v8 = vshrl.u32 %v9788_v38, 16 }
 0x171   : > { %v3218_v48 = vsel %vm3206_vm8, %v3213_v45, %v3217_v16  ;;  %v3229_v45 = vor.u32 %v3227_v20, %v3225_v24  ;;  %v3799_v19 = vrot.slane %v9790_v5, 1 }
 0x172   : > { %v3792_v63 = vsel %vm3206_vm8, %v3787_v53, %v3791_v25  ;;  %v8796_v53 = vpop.f32.mrf.mxu1 }
 0x173   : > { %v3234_v50 = vsel %vm3206_vm8, %v3229_v45, %v3233_v10 }
 0x174   : > { %v8808_v45 = vpop.f32.mrf.mxu0 }
 0x175   : > { %6593 = vmatmul.mubr.bf16.gmra.mxu0 %v5551_v21  ;;  %6545 = vmatmul.mubr.bf16.gmra.mxu1 %v2465_v28  ;;  %v6960_v21 = vld [vmem:[#allocation2 + $0x2c] sm:$0xff]  }
 0x176   : > { %6596 = vmatprep.mubr.bf16.mxu0 %v5552_v14  ;;  %6616 = vmatprep.mubr.bf16.mxu1 %v3218_v48  ;;  %v3221_v14 = vor.u32 %v3219_v2, %v3217_v16  ;;  %v3239_v28 = vshll.u32 %v6960_v21, 16  ;;  %v3247_v16 = vshll.u32 %v8780_v41, 16  ;;  %v9791_v48 = vshll.u32 %v8353_v57, 16 }
 0x177   : > { %v3243_v38 = vshrl.u32 %v6960_v21, 16  ;;  %v6975_v21 = vld [vmem:[%s9527_s3 + $0x1e0] sm:$0xff]  }
 0x178   : > { %v3226_v42 = vsel %vm3206_vm8, %v3221_v14, %v3225_v24  ;;  %v3807_v29 = vrot.slane %v9791_v48, 1  ;;  %v3795_v24 = vor.u32 %v9792_v8, %v3791_v25  ;;  %v3241_v2 = vrot.slane %v3239_v28, 1  ;;  %v8814_v48 = vpop.f32.mrf.mxu1 }
 0x179   : > { %v3235_v14 = vshrl.u32 %v6955_v58, 16  ;;  %v3249_v25 = vrot.slane %v3247_v16, 1  ;;  %v3255_v28 = vshll.u32 %v6966_v51, 16  ;;  %v9794_v58 = vshll.u32 %v8368_v17, 16 }
 0x17a   : > { %v3245_v8 = vor.u32 %v3243_v38, %v3241_v2 }
 0x17b   : > { %v3237_v5 = vor.u32 %v3235_v14, %v3233_v10  ;;  %v6971_v10 = vld [vmem:[%s9527_s3 + $0x228] sm:$0xff]   ;;  %v3257_v16 = vrot.slane %v3255_v28, 1  ;;  %v3251_v14 = vshrl.u32 %v8780_v41, 16  ;;  %v9797_v28 = vshll.u32 %v8370_v39, 16 }
 0x17d   : > { %6597 = vmatmul.mubr.bf16.gmra.mxu0 %v5553_v27  ;;  %6617 = vmatmul.mubr.bf16.vlgmr.msra.gmra.mxu1 %v3226_v42  ;;  %v9793_v27 = vshrl.u32 %v8172_v35, 16  ;;  %v3800_v42 = vsel %vm3206_vm8, %v3795_v24, %v3799_v19  ;;  %v9795_v24 = vshrl.u32 %v8368_v17, 16  ;;  %v6977_v17 = vld [vmem:[%s9527_s3 + $0x220] sm:$0xff]  }
 0x17e   : > { %6668 = vmatprep.mubr.bf16.mxu0 %v3792_v63  ;;  %6620 = vmatprep.mubr.bf16.mxu1 %v3234_v50  ;;  %v6964_v63 = vld [vmem:[%s9527_s3 + $0x230] sm:$0xff]   ;;  %v3815_v50 = vrot.slane %v9794_v58, 1 }
 0x17f   : > { %6705 = vmatpush3.bf16.msra.mxu1 %v8594_v60  ;;  %v3803_v20 = vor.u32 %v9793_v27, %v3799_v19  ;;  %v6968_v60 = vld [vmem:[%s9527_s3 + $0x1e8] sm:$0xff]   ;;  %v3242_v19 = vsel %vm3206_vm8, %v3237_v5, %v3241_v2  ;;  %v8832_v2 = vpop.f32.mrf.mxu1 }
 0x180   : > { %6706 = vmatprep.subr.bf16.mxu1 %v6962_v26  ;;  %v8817_v27 = vld [vmem:[#allocation2 + $0x44] sm:$0xff]   ;;  %v6972_v58 = vld [vmem:[#allocation2 + $0x4c] sm:$0xff]  }
 0x181   : > { %v3808_v35 = vsel %vm3206_vm8, %v3803_v20, %v3807_v29  ;;  %v3819_v20 = vor.u32 %v9795_v24, %v3815_v50  ;;  %v3263_v5 = vshll.u32 %v8817_v27, 16  ;;  %v3271_v24 = vshll.u32 %v6972_v58, 16 }
 0x183   : > { %6707 = vmatpush3.bf16.msra.mxu1 %v6962_v26  ;;  %v8826_v26 = vpop.f32.mrf.mxu0 }
 0x184   : > { %6708 = vmatprep.subr.bf16.mxu1 %v6968_v60 }
 0x185   : > { %6669 = vmatmul.mubr.bf16.vlgmr.msra.gmra.mxu0 %v3800_v42  ;;  %6621 = vmatmul.mubr.bf16.gmra.mxu1 %v3242_v19  ;;  %v9796_v42 = vshrl.u32 %v8353_v57, 16  ;;  %v3253_v19 = vor.u32 %v3251_v14, %v3249_v25  ;;  %v6982_v57 = vld [vmem:[%s9527_s3 + $0x1d8] sm:$0xff]   ;;  %v8845_v41 = vpop.f32.mrf.mxu0  ;;  %v6988_v14 = vld [vmem:[%s9527_s3 + $0x1d0] sm:$0xff]  }
 0x186   : > { %6757 = vmatpush3.bf16.msra.mxu0 %v8636_v13  ;;  %6672 = vmatprep.mubr.bf16.mxu0 %v3808_v35  ;;  %v3250_v13 = vsel %vm3206_vm8, %v3245_v8, %v3249_v25  ;;  %v3259_v35 = vshrl.u32 %v6966_v51, 16  ;;  %v3823_v8 = vrot.slane %v9797_v28, 1  ;;  %v8847_v51 = vpop.f32.mrf.mxu1  ;;  %v9798_v28 = vshll.u32 %v8381_v33, 16 }
 0x187   : > { %6758 = vmatprep.subr.bf16.mxu0 %v6964_v63  ;;  %6624 = vmatprep.mubr.bf16.mxu1 %v3250_v13  ;;  %v3811_v38 = vor.u32 %v9796_v42, %v3807_v29  ;;  %v3265_v13 = vrot.slane %v3263_v5, 1  ;;  %v3258_v42 = vsel %vm3206_vm8, %v3253_v19, %v3257_v16  ;;  %v9800_v19 = vshll.u32 %v8383_v23, 16 }
 0x188   : > { %6709 = vmatpush3.bf16.msra.mxu1 %v6968_v60  ;;  %v8850_v60 = vld [vmem:[#allocation2 + $0x54] sm:$0xff]   ;;  %v3824_v25 = vsel %vm3206_vm8, %v3819_v20, %v3823_v8 }
 0x189   : > { %6710 = vmatprep.subr.bf16.mxu1 %v6975_v21  ;;  %v3816_v29 = vsel %vm3206_vm8, %v3811_v38, %v3815_v50  ;;  %v3831_v50 = vrot.slane %v9798_v28, 1  ;;  %v6984_v20 = vld [vmem:[%s9527_s3 + $0x218] sm:$0xff]   ;;  %v8864_v38 = vpop.f32.mrf.mxu1  ;;  %v3273_v28 = vrot.slane %v3271_v24, 1 }
 0x18a   : > { %6759 = vmatpush3.bf16.msra.mxu0 %v6964_v63  ;;  %v3261_v63 = vor.u32 %v3259_v35, %v3257_v16  ;;  %v9799_v35 = vshrl.u32 %v8370_v39, 16  ;;  %v3279_v16 = vshll.u32 %v8850_v60, 16  ;;  %v6991_v39 = vld [vmem:[%s9527_s3 + $0x210] sm:$0xff]  }
 0x18b   : > { %6760 = vmatprep.subr.bf16.mxu0 %v6971_v10 }
 0x18c   : > { %6711 = vmatpush3.bf16.msra.mxu1 %v6975_v21  ;;  %v8862_v21 = vpop.f32.mrf.mxu0  ;;  %v3827_v5 = vor.u32 %v9799_v35, %v3823_v8  ;;  %v6995_v8 = vld [vmem:[%s9527_s3 + $0x1c8] sm:$0xff]  }
 0x18d   : > { %6673 = vmatmul.mubr.bf16.gmra.mxu0 %v3816_v29  ;;  %6712 = vmatprep.subr.bf16.mxu1 %v6982_v57  ;;  %v3839_v29 = vrot.slane %v9800_v19, 1  ;;  %v8886_v35 = vld [vmem:[#allocation2 + $0x64] sm:$0xff]  }
 0x18e   : > { %6676 = vmatprep.mubr.bf16.mxu0 %v3824_v25  ;;  %6761 = vmatpush3.bf16.msra.mxu0 %v6971_v10  ;;  %v3266_v10 = vsel %vm3206_vm8, %v3261_v63, %v3265_v13  ;;  %v8872_v25 = vpop.f32.mrf.mxu0  ;;  %v3267_v63 = vshrl.u32 %v8817_v27, 16  ;;  %v3832_v24 = vsel %vm3206_vm8, %v3827_v5, %v3831_v50 }
 0x18f   : > { %6762 = vmatprep.subr.bf16.mxu0 %v6977_v17  ;;  %6625 = vmatmul.mubr.bf16.gmra.mxu1 %v3258_v42  ;;  %v9801_v42 = vshrl.u32 %v8381_v33, 16 }
 0x190   : > { %6628 = vmatprep.mubr.bf16.mxu1 %v3266_v10  ;;  %6713 = vmatpush3.bf16.msra.mxu1 %v6982_v57  ;;  %v8883_v57 = vpop.f32.mrf.mxu1  ;;  %v3281_v10 = vrot.slane %v3279_v16, 1  ;;  %v3269_v27 = vor.u32 %v3267_v63, %v3265_v13  ;;  %v8889_v19 = vpop.f32.mrf.mxu0  ;;  %v9803_v16 = vshll.u32 %v8401_v32, 16 }
 0x191   : > { %6714 = vmatprep.subr.bf16.mxu1 %v6988_v14  ;;  %v3835_v11 = vor.u32 %v9801_v42, %v3831_v50  ;;  %v9802_v50 = vshll.u32 %v8399_v1, 16 }
 0x192   : > { %6763 = vmatpush3.bf16.msra.mxu0 %v6977_v17  ;;  %v3275_v17 = vshrl.u32 %v6972_v58, 16  ;;  %v3274_v58 = vsel %vm3206_vm8, %v3269_v27, %v3273_v28  ;;  %v8900_v13 = vpop.f32.mrf.mxu1  ;;  %v8906_v63 = vpop.f32.mrf.mxu0  ;;  %v3289_v27 = vrot.slane %v3287_v7, 1 }
 0x193   : > { %6764 = vmatprep.subr.bf16.mxu0 %v6984_v20  ;;  %v3840_v33 = vsel %vm3206_vm8, %v3835_v11, %v3839_v29  ;;  %v3847_v5 = vrot.slane %v9802_v50, 1  ;;  %v6997_v11 = vld [vmem:[%s9527_s3 + $0x208] sm:$0xff]  }
 0x194   : > { %6715 = vmatpush3.bf16.msra.mxu1 %v6988_v14  ;;  %v3277_v42 = vor.u32 %v3275_v17, %v3273_v28  ;;  %v3855_v28 = vrot.slane %v9803_v16, 1  ;;  %v9805_v17 = vshrl.u32 %v8383_v23, 16  ;;  %v6983_v50 = vld [vmem:[#allocation2 + $0x6c] sm:$0xff]   ;;  %v8919_v23 = vld [vmem:[#allocation2 + $0x74] sm:$0xff]  }
 0x195   : > { %6677 = vmatmul.mubr.bf16.gmra.mxu0 %v3832_v24  ;;  %6716 = vmatprep.subr.bf16.mxu1 %v6995_v8  ;;  %v8908_v24 = vpop.f32.mrf.mxu1 }
 0x196   : > { %6680 = vmatprep.mubr.bf16.mxu0 %v3840_v33  ;;  %6765 = vmatpush3.bf16.msra.mxu0 %v6984_v20  ;;  %v3282_v14 = vsel %vm3206_vm8, %v3277_v42, %v3281_v10  ;;  %v3295_v20 = vshll.u32 %v8886_v35, 16  ;;  %9804 = vst [vmem:[#allocation44_spill] sm:$0xff] %v8908_v24  ;;  %v3843_v33 = vor.u32 %v9805_v17, %v3839_v29  ;;  %v9806_v42 = vshrl.u32 %v8399_v1, 16  ;;  %v8922_v1 = vpop.f32.mrf.mxu0 }
 0x197   : > { %6766 = vmatprep.subr.bf16.mxu0 %v6991_v39  ;;  %6629 = vmatmul.mubr.bf16.gmra.mxu1 %v3274_v58  ;;  %v3303_v17 = vshll.u32 %v6983_v50, 16 }
 0x198   : > { %6632 = vmatprep.mubr.bf16.mxu1 %v3282_v14  ;;  %6717 = vmatpush3.bf16.msra.mxu1 %v6995_v8  ;;  %v3851_v58 = vor.u32 %v9806_v42, %v3847_v5  ;;  %v3283_v14 = vshrl.u32 %v8850_v60, 16  ;;  %v7003_v8 = vld [vmem:[%s9527_s3 + $0x200] sm:$0xff]   ;;  %v3848_v16 = vsel %vm3206_vm8, %v3843_v33, %v3847_v5  ;;  %v3297_v52 = vrot.slane %v3295_v20, 1  ;;  %v8929_v20 = vpop.f32.mrf.mxu0 }
 0x199   : > { %6718 = vmatprep.subr.bf16.mxu1 %v7001_v56  ;;  %v3293_v60 = vor.u32 %v3291_v54, %v3289_v27  ;;  %v3863_v5 = vrot.slane %v9808_v40, 1  ;;  %v9809_v33 = vshll.u32 %v8421_v6, 16 }
 0x19a   : > { %6767 = vmatpush3.bf16.msra.mxu0 %v6991_v39  ;;  %v3856_v7 = vsel %vm3206_vm8, %v3851_v58, %v3855_v28  ;;  %v3285_v29 = vor.u32 %v3283_v14, %v3281_v10  ;;  %v8924_v39 = vpop.f32.mrf.mxu1  ;;  %v3305_v14 = vrot.slane %v3303_v17, 1 }
 0x19b   : > { %6768 = vmatprep.subr.bf16.mxu0 %v6997_v11  ;;  %9807 = vst [vmem:[#allocation46_spill] sm:$0xff] %v8924_v39  ;;  %v3298_v10 = vsel %vm3206_vm8, %v3293_v60, %v3297_v52  ;;  %v3871_v58 = vrot.slane %v9809_v33, 1  ;;  %v3299_v60 = vshrl.u32 %v8886_v35, 16  ;;  %v8945_v33 = vld [vmem:[#allocation2 + $0x84] sm:$0xff]   ;;  %v9814_v35 = vshll.u32 %v8431_v43, 16 }
 0x19c   : > { %6719 = vmatpush3.bf16.msra.mxu1 %v7001_v56  ;;  %v3290_v42 = vsel %vm3206_vm8, %v3285_v29, %v3289_v27  ;;  %v3311_v56 = vshll.u32 %v8919_v23, 16  ;;  %v8935_v54 = vpop.f32.mrf.mxu1  ;;  %v9812_v29 = vshrl.u32 %v8419_v47, 16 }
 0x19d   : > { %6681 = vmatmul.mubr.bf16.gmra.mxu0 %v3848_v16  ;;  %9810 = vst [vmem:[#allocation47_spill] sm:$0xff] %v8935_v54  ;;  %v6989_v16 = vld [vmem:[#allocation2 + $0x7c] sm:$0xff]  }
 0x19e   : > { %6684 = vmatprep.mubr.bf16.mxu0 %v3856_v7  ;;  %6769 = vmatpush3.bf16.msra.mxu0 %v6997_v11  ;;  %v9811_v11 = vshrl.u32 %v8401_v32, 16  ;;  %v8939_v7 = vpop.f32.mrf.mxu0  ;;  %v3313_v18 = vrot.slane %v3311_v56, 1  ;;  %v8948_v17 = vpop.f32.mrf.mxu1 }
 0x19f   : > { %6770 = vmatprep.subr.bf16.mxu0 %v7003_v8  ;;  %6633 = vmatmul.mubr.bf16.gmra.mxu1 %v3290_v42  ;;  %v3867_v42 = vor.u32 %v9812_v29, %v3863_v5  ;;  %9813 = vst [vmem:[#allocation49_spill] sm:$0xff] %v8948_v17  ;;  %v8973_v17 = vld [vmem:[#allocation2 + $0x94] sm:$0xff]  }
 0x1a0   : > { %6636 = vmatprep.mubr.bf16.mxu1 %v3298_v10  ;;  %v3859_v27 = vor.u32 %v9811_v11, %v3855_v28  ;;  %v3307_v10 = vshrl.u32 %v6983_v50, 16  ;;  %v3301_v28 = vor.u32 %v3299_v60, %v3297_v52  ;;  %v3319_v11 = vshll.u32 %v6989_v16, 16  ;;  %v8950_v54 = vpop.f32.mrf.mxu0  ;;  %v8955_v50 = vpop.f32.mrf.mxu1 }
 0x1a1   : > { %v3872_v32 = vsel %vm3206_vm8, %v3867_v42, %v3871_v58  ;;  %9815 = vst [vmem:[#allocation48_spill] sm:$0xff] %v8955_v50  ;;  %v9816_v52 = vshll.u32 %v8437_v36, 16  ;;  %v9818_v60 = vshrl.u32 %v8421_v6, 16  ;;  %v3323_v50 = vshrl.u32 %v6989_v16, 16 }
 0x1a2   : > { %6771 = vmatpush3.bf16.msra.mxu0 %v7003_v8  ;;  %v3864_v40 = vsel %vm3206_vm8, %v3859_v27, %v3863_v5  ;;  %v3309_v8 = vor.u32 %v3307_v10, %v3305_v14  ;;  %v3306_v47 = vsel %vm3206_vm8, %v3301_v28, %v3305_v14  ;;  %v3879_v5 = vrot.slane %v9814_v35, 1  ;;  %v8961_v42 = vpop.f32.mrf.mxu1  ;;  %v6994_v10 = vld [vmem:[#allocation2 + $0x8c] sm:$0xff]  }
 0x1a3   : > { %v3327_v27 = vshll.u32 %v8945_v33, 16  ;;  %v3887_v29 = vrot.slane %v9816_v52, 1  ;;  %9817 = vst [vmem:[#allocation71_spill] sm:$0xff] %v8961_v42  ;;  %v3321_v14 = vrot.slane %v3319_v11, 1  ;;  %v9819_v28 = vshrl.u32 %v8431_v43, 16 }
 0x1a4   : > { %v3314_v56 = vsel %vm3206_vm8, %v3309_v8, %v3313_v18  ;;  %v3315_v8 = vshrl.u32 %v8919_v23, 16  ;;  %v8970_v35 = vpop.f32.mrf.mxu1  ;;  %v9822_v16 = vshll.u32 %v8439_v34, 16  ;;  %v3339_v30 = vshrl.u32 %v6994_v10, 16 }
 0x1a5   : > { %6685 = vmatmul.mubr.bf16.gmra.mxu0 %v3864_v40  ;;  %v3875_v40 = vor.u32 %v9818_v60, %v3871_v58  ;;  %9820 = vst [vmem:[#allocation72_spill] sm:$0xff] %v8970_v35  ;;  %v3329_v52 = vrot.slane %v3327_v27, 1  ;;  %v3325_v43 = vor.u32 %v3323_v50, %v3321_v14  ;;  %v3335_v60 = vshll.u32 %v6994_v10, 16 }
 0x1a6   : > { %6688 = vmatprep.mubr.bf16.mxu0 %v3872_v32  ;;  %v8965_v32 = vpop.f32.mrf.mxu0  ;;  %v3317_v58 = vor.u32 %v3315_v8, %v3313_v18  ;;  %v8978_v11 = vpop.f32.mrf.mxu1  ;;  %v9823_v50 = vshll.u32 %v8445_v61, 16 }
 0x1a7   : > { %6637 = vmatmul.mubr.bf16.gmra.mxu1 %v3306_v47  ;;  %v3883_v47 = vor.u32 %v9819_v28, %v3879_v5  ;;  %9821 = vst [vmem:[#allocation73_spill] sm:$0xff] %v8978_v11  ;;  %v3337_v11 = vrot.slane %v3335_v60, 1  ;;  %v9826_v60 = vshll.u32 %v8447_v31, 16 }
 0x1a8   : > { %6640 = vmatprep.mubr.bf16.mxu1 %v3314_v56  ;;  %v3880_v56 = vsel %vm3206_vm8, %v3875_v40, %v3879_v5  ;;  %v8975_v42 = vpop.f32.mrf.mxu0  ;;  %v3322_v28 = vsel %vm3206_vm8, %v3317_v58, %v3321_v14  ;;  %v3895_v5 = vrot.slane %v9822_v16, 1  ;;  %v6410_v27 = vpop.f32.mrf.mxu1  ;;  %v3330_v40 = vsel %vm3206_vm8, %v3325_v43, %v3329_v52 }
 0x1a9   : > { %v3888_v6 = vsel %vm3206_vm8, %v3883_v47, %v3887_v29  ;;  %v1629_v18 = vadd.f32 %v6410_v27, %v8808_v45  ;;  %v3903_v8 = vrot.slane %v9823_v50, 1  ;;  %v9824_v14 = vshrl.u32 %v8437_v36, 16  ;;  %v7000_v27 = vld [vmem:[#allocation2 + $0x9c] ss:$0 sps:$4 sm:$0x11]  }
 0x1aa   : > { %v8980_v23 = vpop.f32.mrf.mxu0  ;;  %v9825_v43 = vshrl.u32 %v8439_v34, 16  ;;  %v3331_v45 = vshrl.u32 %v8945_v33, 16  ;;  %v3341_v33 = vor.u32 %v3339_v30, %v3337_v11  ;;  %v9827_v30 = vshrl.u32 %v8447_v31, 16 }
 0x1ab   : > { %v3891_v58 = vor.u32 %v9824_v14, %v3887_v29 }
 0x1ac   : > { %v8988_v47 = vpop.f32.mrf.mxu0  ;;  %v3899_v35 = vor.u32 %v9825_v43, %v3895_v5  ;;  %v9007_v43 = vld [vmem:[#allocation2 + $0xa4] ss:$0 sps:$4 sm:$0x11]  }
 0x1ad   : > { %6689 = vmatmul.mubr.bf16.gmra.mxu0 %v3880_v56  ;;  %v3343_v56 = vshll.u32 %v8973_v17, 16 }
 0x1ae   : > { %6692 = vmatprep.mubr.bf16.mxu0 %v3888_v6  ;;  %v1620_v6 = vpop.f32.mrf.mxu1  ;;  %v3904_v29 = vsel %vm3206_vm8, %v3899_v35, %v3903_v8 }
 0x1af   : > { %6641 = vmatmul.mubr.bf16.gmra.mxu1 %v3322_v28  ;;  %v1621_v16 = vadd.f32 %v1620_v6, %v8826_v26  ;;  %v8995_v28 = vpop.f32.mrf.mxu0  ;;  %v3345_v50 = vrot.slane %v3343_v56, 1  ;;  %v3333_v26 = vor.u32 %v3331_v45, %v3329_v52  ;;  %v3911_v6 = vrot.slane %v9826_v60, 1 }
 0x1b0   : > { %6644 = vmatprep.mubr.bf16.mxu1 %v3330_v40  ;;  %v6411_v39 = vpop.f32.mrf.mxu1  ;;  %v3896_v40 = vsel %vm3206_vm8, %v3891_v58, %v3895_v5 }
 0x1b1   : > { %v1632_v24 = vadd.f32 %v6411_v39, %v8845_v41  ;;  %v6462_v36 = vpop.f32.mrf.mxu0  ;;  %v3338_v41 = vsel %vm3206_vm8, %v3333_v26, %v3337_v11  ;;  %v3351_v39 = vshll.u32 %v7000_v27, 16  ;;  %v3346_v52 = vsel %vm3206_vm8, %v3341_v33, %v3345_v50 }
 0x1b2   : > { %v9005_v34 = vadd.f32 %v6462_v36, %v1629_v18  ;;  %v1623_v14 = vpop.f32.mrf.mxu1  ;;  %v3915_v45 = vor.u32 %v9827_v30, %v3911_v6  ;;  %v3347_v36 = vshrl.u32 %v8973_v17, 16  ;;  %v9829_v27 = vshrl.u32 %v8445_v61, 16 }
 0x1b3   : > { %v1624_v10 = vadd.f32 %v1623_v14, %v8862_v21  ;;  %v1970_v5 = vpop.f32.mrf.mxu0  ;;  %v3925_v26 = vshll.u32 %v9007_v43, 16  ;;  %v3353_v33 = vrot.slane %v3351_v39, 1 }
 0x1b4   : > { %v9011_v56 = vadd.f32 %v1970_v5, %v1621_v16  ;;  %v6414_v35 = vpop.f32.mrf.mxu1  ;;  %v3349_v14 = vor.u32 %v3347_v36, %v3345_v50 }
 0x1b5   : > { %6693 = vmatmul.mubr.bf16.gmra.mxu0 %v3896_v40  ;;  %v1645_v18 = vadd.f32 %v6414_v35, %v8872_v25  ;;  %v6463_v58 = vpop.f32.mrf.mxu0  ;;  %v9828_v40 = vshll.u32 %v8468_v55, 16  ;;  %v3927_v50 = vrot.slane %v3925_v26, 1 }
 0x1b6   : > { %6696 = vmatprep.mubr.bf16.mxu0 %v3904_v29  ;;  %v9020_v11 = vadd.f32 %v6463_v58, %v1632_v24  ;;  %v1636_v16 = vpop.f32.mrf.mxu1  ;;  %v3907_v29 = vor.u32 %v9829_v27, %v3903_v8  ;;  %v3354_v58 = vsel %vm3206_vm8, %v3349_v14, %v3353_v33 }
 0x1b7   : > { %6645 = vmatmul.mubr.bf16.gmra.mxu1 %v3338_v41  ;;  %v3919_v21 = vrot.slane %v9828_v40, 1  ;;  %v1637_v25 = vadd.f32 %v1636_v16, %v8889_v19  ;;  %v1973_v60 = vpop.f32.mrf.mxu0  ;;  %v9830_v19 = vshrl.u32 %v8468_v55, 16 }
 0x1b8   : > { %6648 = vmatprep.mubr.bf16.mxu1 %v3346_v52  ;;  %v9026_v31 = vadd.f32 %v1973_v60, %v1624_v10  ;;  %v6415_v5 = vpop.f32.mrf.mxu1  ;;  %v3912_v41 = vsel %vm3206_vm8, %v3907_v29, %v3911_v6 }
 0x1b9   : > { %v1648_v17 = vadd.f32 %v6415_v5, %v8906_v63  ;;  %v6466_v24 = vpop.f32.mrf.mxu0  ;;  %v3920_v35 = vsel %vm3206_vm8, %v3915_v45, %v3919_v21  ;;  %v3923_v52 = vor.u32 %v9830_v19, %v3919_v21 }
 0x1ba   : > { %v9031_v61 = vadd.f32 %v6466_v24, %v1645_v18  ;;  %v1639_v8 = vpop.f32.mrf.mxu1  ;;  %v9831_v18 = vld [vmem:[#allocation50_spill] sm:$0xff] }
 0x1bb   : > { %v1640_v10 = vadd.f32 %v1639_v8, %v8922_v1  ;;  %v1986_v39 = vpop.f32.mrf.mxu0  ;;  %v3928_v21 = vsel %vm3206_vm8, %v3923_v52, %v3927_v50  ;;  %v9832_v50 = vld [vmem:[#allocation51_spill] sm:$0xff] }
 0x1bc   : > { %v9037_v6 = vadd.f32 %v1986_v39, %v1637_v25  ;;  %v6418_v63 = vpop.f32.mrf.mxu1 }
 0x1bd   : > { %6697 = vmatmul.mubr.bf16.gmra.mxu0 %v3912_v41  ;;  %v1661_v30 = vadd.f32 %v6418_v63, %v8929_v20  ;;  %v6467_v45 = vpop.f32.mrf.mxu0  ;;  %v9834_v63 = vld [vmem:[#allocation52_spill] sm:$0xff] }
 0x1be   : > { %6700 = vmatprep.mubr.bf16.mxu0 %v3920_v35  ;;  %v9041_v40 = vadd.f32 %v6467_v45, %v1648_v17  ;;  %v1652_v36 = vpop.f32.mrf.mxu1  ;;  %v9835_v45 = vld [vmem:[#allocation54_spill] sm:$0xff] }
 0x1bf   : > { %6649 = vmatmul.mubr.bf16.gmra.mxu1 %v3354_v58  ;;  %v1653_v16 = vadd.f32 %v1652_v36, %v8939_v7  ;;  %v1989_v1 = vpop.f32.mrf.mxu0 }
 0x1c0   : > { %6720 = vmatprep.mubr.bf16.mxu1 %v9831_v18  ;;  %v9045_v27 = vadd.f32 %v1989_v1, %v1640_v10  ;;  %v6419_v29 = vpop.f32.mrf.mxu1  ;;  %v9833_v10 = vld [vmem:[#allocation53_spill] sm:$0xff] }
 0x1c1   : > { %v1664_v26 = vadd.f32 %v6419_v29, %v8950_v54  ;;  %v6470_v25 = vpop.f32.mrf.mxu0 }
 0x1c2   : > { %v9048_v60 = vadd.f32 %v6470_v25, %v1661_v30  ;;  %v1655_v20 = vpop.f32.mrf.mxu1 }
 0x1c3   : > { %v1656_v14 = vadd.f32 %v1655_v20, %v8965_v32  ;;  %v2002_v33 = vpop.f32.mrf.mxu0  ;;  %v9836_v20 = vld [vmem:[#allocation57_spill] sm:$0xff] }
 0x1c4   : > { %v9052_v5 = vadd.f32 %v2002_v33, %v1653_v16  ;;  %v6422_v41 = vpop.f32.mrf.mxu1 }
 0x1c5   : > { %6701 = vmatmul.mubr.bf16.gmra.mxu0 %v3928_v21  ;;  %v1677_v7 = vadd.f32 %v6422_v41, %v8975_v42  ;;  %v6471_v17 = vpop.f32.mrf.mxu0 }
 0x1c6   : > { %6772 = vmatprep.mubr.bf16.mxu0 %v8523_v59  ;;  %v9057_v54 = vadd.f32 %v6471_v17, %v1664_v26  ;;  %v1668_v24 = vpop.f32.mrf.mxu1 }
 0x1c7   : > { %6721 = vmatmul.mubr.bf16.vlgmr.msra.gmra.mxu1 %v8504_v62  ;;  %v1669_v35 = vadd.f32 %v1668_v24, %v8980_v23  ;;  %v2005_v8 = vpop.f32.mrf.mxu0  ;;  %v9838_v24 = vld [vmem:[#allocation56_spill] sm:$0xff] }
 0x1c8   : > { %6724 = vmatprep.mubr.bf16.mxu1 %v8514_v9  ;;  %v9060_v59 = vadd.f32 %v2005_v8, %v1656_v14  ;;  %v6423_v32 = vpop.f32.mrf.mxu1 }
 0x1c9   : > { %v1680_v19 = vadd.f32 %v6423_v32, %v8988_v47  ;;  %v6474_v52 = vpop.f32.mrf.mxu0 }
 0x1ca   : > { %v9064_v62 = vadd.f32 %v6474_v52, %v1677_v7  ;;  %v1671_v42 = vpop.f32.mrf.mxu1 }
 0x1cb   : > { %v1672_v9 = vadd.f32 %v1671_v42, %v8995_v28  ;;  %v2018_v39 = vpop.f32.mrf.mxu0 }
 0x1cc   : > { %v9068_v58 = vadd.f32 %v2018_v39, %v1669_v35  ;;  %v6426_v23 = vpop.f32.mrf.mxu1  ;;  %v9840_v39 = vld [vmem:[#allocation60_spill] sm:$0xff] }
 0x1cd   : > { %6773 = vmatmul.mubr.bf16.vlgmr.msra.gmra.mxu0 %v9832_v50  ;;  %v6475_v30 = vpop.f32.mrf.mxu0  ;;  %v1693_v21 = vadd.f32 %v6426_v23, %v8761_v37  ;;  %v9837_v37 = vld [vmem:[#allocation55_spill] sm:$0xff] }
 0x1ce   : > { %6776 = vmatprep.mubr.bf16.mxu0 %v9833_v10  ;;  %v9072_v47 = vadd.f32 %v6475_v30, %v1680_v19  ;;  %v1684_v18 = vpop.f32.mrf.mxu1  ;;  %v9839_v50 = vld [vmem:[#allocation59_spill] sm:$0xff] }
 0x1cf   : > { %6725 = vmatmul.mubr.bf16.gmra.mxu1 %v9834_v63  ;;  %v2021_v36 = vpop.f32.mrf.mxu0  ;;  %v1685_v28 = vadd.f32 %v1684_v18, %v8764_v12  ;;  %v9842_v18 = vld [vmem:[#allocation61_spill] sm:$0xff] }
 0x1d0   : > { %6728 = vmatprep.mubr.bf16.mxu1 %v9835_v45  ;;  %v9075_v16 = vadd.f32 %v2021_v36, %v1672_v9  ;;  %v6427_v1 = vpop.f32.mrf.mxu1 }
 0x1d1   : > { %v6478_v29 = vpop.f32.mrf.mxu0  ;;  %v1696_v33 = vadd.f32 %v6427_v1, %v8770_v22 }
 0x1d2   : > { %v9079_v26 = vadd.f32 %v6478_v29, %v1693_v21  ;;  %v1687_v25 = vpop.f32.mrf.mxu1 }
 0x1d3   : > { %v2034_v14 = vpop.f32.mrf.mxu0 }
 0x1d4   : > { %v9083_v41 = vadd.f32 %v2034_v14, %v1685_v28  ;;  %v6430_v7 = vpop.f32.mrf.mxu1 }
 0x1d5   : > { %6777 = vmatmul.mubr.bf16.gmra.mxu0 %v8575_v46  ;;  %v6479_v17 = vpop.f32.mrf.mxu0  ;;  %v1688_v46 = vadd.f32 %v1687_v25, %v8776_v15  ;;  %v1709_v32 = vadd.f32 %v6430_v7, %v8783_v49  ;;  %v9841_v49 = vld [vmem:[#allocation58_spill] sm:$0xff] }
 0x1d6   : > { %6780 = vmatprep.mubr.bf16.mxu0 %v9836_v20  ;;  %v9088_v35 = vadd.f32 %v6479_v17, %v1696_v33  ;;  %v1700_v12 = vpop.f32.mrf.mxu1 }
 0x1d7   : > { %6729 = vmatmul.mubr.bf16.gmra.mxu1 %v9837_v37  ;;  %v2037_v8 = vpop.f32.mrf.mxu0  ;;  %v1701_v42 = vadd.f32 %v1700_v12, %v8796_v53  ;;  %v9843_v12 = vld [vmem:[#allocation44_spill] sm:$0xff] }
 0x1d8   : > { %6732 = vmatprep.mubr.bf16.mxu1 %v9838_v24  ;;  %v9091_v19 = vadd.f32 %v2037_v8, %v1688_v46  ;;  %v6431_v52 = vpop.f32.mrf.mxu1 }
 0x1d9   : > { %v6482_v22 = vpop.f32.mrf.mxu0  ;;  %v1712_v23 = vadd.f32 %v6431_v52, %v8814_v48  ;;  %v9844_v52 = vld [vmem:[#allocation40_spill] sm:$0xff] }
 0x1da   : > { %v9095_v10 = vadd.f32 %v6482_v22, %v1709_v32  ;;  %v1703_v9 = vpop.f32.mrf.mxu1  ;;  %v9845_v22 = vld [vmem:[#allocation46_spill] sm:$0xff] }
 0x1db   : > { %v2050_v15 = vpop.f32.mrf.mxu0  ;;  %v1704_v36 = vadd.f32 %v1703_v9, %v8832_v2  ;;  %v9847_v9 = vld [vmem:[#allocation47_spill] sm:$0xff] }
 0x1dc   : > { %v9099_v63 = vadd.f32 %v2050_v15, %v1701_v42  ;;  %v6434_v30 = vpop.f32.mrf.mxu1 }
 0x1dd   : > { %6781 = vmatmul.mubr.bf16.gmra.mxu0 %v9839_v50  ;;  %v6483_v45 = vpop.f32.mrf.mxu0  ;;  %v1725_v29 = vadd.f32 %v6434_v30, %v8847_v51  ;;  %v9848_v30 = vld [vmem:[#allocation39_spill] sm:$0xff] }
 0x1de   : > { %6784 = vmatprep.mubr.bf16.mxu0 %v9840_v39  ;;  %v9104_v21 = vadd.f32 %v6483_v45, %v1712_v23  ;;  %v1716_v53 = vpop.f32.mrf.mxu1  ;;  %v9849_v45 = vld [vmem:[#allocation62_spill] sm:$0xff] }
 0x1df   : > { %6733 = vmatmul.mubr.bf16.gmra.mxu1 %v9841_v49  ;;  %v2053_v1 = vpop.f32.mrf.mxu0  ;;  %v1717_v20 = vadd.f32 %v1716_v53, %v8864_v38 }
 0x1e0   : > { %6736 = vmatprep.mubr.bf16.mxu1 %v9842_v18  ;;  %v9107_v28 = vadd.f32 %v2053_v1, %v1704_v36  ;;  %v6435_v25 = vpop.f32.mrf.mxu1  ;;  %v9850_v18 = vld [vmem:[#allocation49_spill] sm:$0xff] }
 0x1e1   : > { %v6486_v48 = vpop.f32.mrf.mxu0  ;;  %v1728_v7 = vadd.f32 %v6435_v25, %v8883_v57  ;;  %v9851_v25 = vld [vmem:[#allocation48_spill] sm:$0xff] }
 0x1e2   : > { %v9111_v14 = vadd.f32 %v6486_v48, %v1725_v29  ;;  %v1719_v33 = vpop.f32.mrf.mxu1 }
 0x1e3   : > { %v2066_v2 = vpop.f32.mrf.mxu0 }
 0x1e4   : > { %v9115_v37 = vadd.f32 %v2066_v2, %v1717_v20  ;;  %v6438_v17 = vpop.f32.mrf.mxu1 }
 0x1e5   : > { %6785 = vmatmul.mubr.bf16.gmra.mxu0 %v8626_v0  ;;  %v6487_v51 = vpop.f32.mrf.mxu0  ;;  %v1720_v0 = vadd.f32 %v1719_v33, %v8900_v13  ;;  %v1741_v8 = vadd.f32 %v6438_v17, %v9843_v12  ;;  %v9853_v17 = vld [vmem:[#allocation71_spill] sm:$0xff] }
 0x1e6   : > { %6788 = vmatprep.mubr.bf16.mxu0 %v8644_v4  ;;  %v9120_v24 = vadd.f32 %v6487_v51, %v1728_v7  ;;  %v1732_v38 = vpop.f32.mrf.mxu1  ;;  %v9852_v7 = vld [vmem:[#allocation63_spill] sm:$0xff] }
 0x1e7   : > { %6737 = vmatmul.mubr.bf16.gmra.mxu1 %v8629_v3  ;;  %v2069_v46 = vpop.f32.mrf.mxu0  ;;  %v1733_v50 = vadd.f32 %v1732_v38, %v9845_v22  ;;  %v9856_v22 = vld [vmem:[#allocation64_spill] sm:$0xff] }
 0x1e8   : > { %6740 = vmatprep.mubr.bf16.mxu1 %v8639_v44  ;;  %v9123_v4 = vadd.f32 %v2069_v46, %v1720_v0  ;;  %v6439_v32 = vpop.f32.mrf.mxu1  ;;  %v9846_v44 = vld [vmem:[#allocation41_spill] sm:$0xff]  ;;  %v9854_v46 = vld [vmem:[#allocation66_spill] sm:$0xff] }
 0x1e9   : > { %v6490_v57 = vpop.f32.mrf.mxu0  ;;  %v1744_v39 = vadd.f32 %v6439_v32, %v9847_v9 }
 0x1ea   : > { %v9127_v3 = vadd.f32 %v6490_v57, %v1741_v8  ;;  %v1735_v42 = vpop.f32.mrf.mxu1  ;;  %v9855_v8 = vld [vmem:[#allocation72_spill] sm:$0xff] }
 0x1eb   : > { %v2082_v13 = vpop.f32.mrf.mxu0  ;;  %v1736_v36 = vadd.f32 %v1735_v42, %v9850_v18 }
 0x1ec   : > { %v9131_v15 = vadd.f32 %v2082_v13, %v1733_v50  ;;  %v6442_v23 = vpop.f32.mrf.mxu1  ;;  %v9858_v13 = vld [vmem:[#allocation73_spill] sm:$0xff] }
 0x1ed   : > { %6789 = vmatmul.mubr.bf16.gmra.mxu0 %v9844_v52  ;;  %v6491_v49 = vpop.f32.mrf.mxu0  ;;  %v1757_v48 = vadd.f32 %v6442_v23, %v9851_v25  ;;  %v9859_v25 = vld [vmem:[#allocation67_spill] sm:$0xff] }
 0x1ee   : > { %6792 = vmatprep.mubr.bf16.mxu0 %v9846_v44  ;;  %v9136_v53 = vadd.f32 %v6491_v49, %v1744_v39  ;;  %v1748_v1 = vpop.f32.mrf.mxu1  ;;  %v9857_v44 = vld [vmem:[#allocation65_spill] sm:$0xff] }
 0x1ef   : > { %6741 = vmatmul.mubr.bf16.gmra.mxu1 %v9848_v30  ;;  %v2085_v29 = vpop.f32.mrf.mxu0  ;;  %v1749_v51 = vadd.f32 %v1748_v1, %v9853_v17  ;;  %v7005_v30 = vld [vmem:[#allocation2 + $0xa4] ss:$0 sps:$4 sm:$0x33]  }
 0x1f0   : > { %6744 = vmatprep.mubr.bf16.mxu1 %v9849_v45  ;;  %v9139_v20 = vadd.f32 %v2085_v29, %v1736_v36  ;;  %v6443_v33 = vpop.f32.mrf.mxu1 }
 0x1f1   : > { %v6494_v2 = vpop.f32.mrf.mxu0  ;;  %v1760_v32 = vadd.f32 %v6443_v33, %v9855_v8  ;;  %v9860_v33 = vld [vmem:[#allocation68_spill] sm:$0xff]  ;;  %v9862_v8 = vld [vmem:[#allocation70_spill] sm:$0xff] }
 0x1f2   : > { %v9143_v0 = vadd.f32 %v6494_v2, %v1757_v48  ;;  %v1751_v38 = vpop.f32.mrf.mxu1  ;;  %v4645_v2 = vshrl.u32 %v7005_v30, 16 }
 0x1f3   : > { %v2098_v12 = vpop.f32.mrf.mxu0  ;;  %v1752_v9 = vadd.f32 %v1751_v38, %v9858_v13 }
 0x1f4   : > { %v9147_v57 = vadd.f32 %v2098_v12, %v1749_v51  ;;  %v6514_v52 = vpop.f32.mrf.mxu1 }
 0x1f5   : > { %6793 = vmatmul.mubr.bf16.gmra.mxu0 %v9852_v7  ;;  %v2711_v50 = vadd.f32 %v6514_v52, %v9005_v34  ;;  %v6495_v42 = vpop.f32.mrf.mxu0  ;;  %v4648_v7 = vshll.u32 %v7005_v30, 16 }
 0x1f6   : > { %6796 = vmatprep.mubr.bf16.mxu0 %v9854_v46  ;;  %v9153_v39 = vadd.f32 %v6495_v42, %v1760_v32  ;;  %v2566_v23 = vpop.f32.mrf.mxu1  ;;  %v9861_v46 = vld [vmem:[#allocation69_spill] sm:$0xff]  ;;  %v4265_v32 = vrot.slane %v9007_v43, 1 }
 0x1f7   : > { %6745 = vmatmul.mubr.bf16.gmra.mxu1 %v9856_v22  ;;  %v2709_v49 = vadd.f32 %v2566_v23, %v9011_v56  ;;  %v2101_v45 = vpop.f32.mrf.mxu0  ;;  %v4650_v42 = vrot.slane %v4648_v7, 2 }
 0x1f8   : > { %6748 = vmatprep.mubr.bf16.mxu1 %v9857_v44  ;;  %v9156_v18 = vadd.f32 %v2101_v45, %v1752_v9  ;;  %v6515_v36 = vpop.f32.mrf.mxu1 }
 0x1f9   : > { %v2712_v1 = vadd.f32 %v6515_v36, %v9020_v11  ;;  %v6566_v29 = vpop.f32.mrf.mxu0 }
 0x1fa   : > { %v9160_v34 = vadd.f32 %v6566_v29, %v2711_v50  ;;  %v2569_v48 = vpop.f32.mrf.mxu1  ;;  %v4647_v50 = vrot.slane %v4645_v2, 1 }
 0x1fb   : > { %v2710_v17 = vadd.f32 %v2569_v48, %v9026_v31  ;;  %v2880_v51 = vpop.f32.mrf.mxu0 }
 0x1fc   : > { %v9164_v56 = vadd.f32 %v2880_v51, %v2709_v49  ;;  %v6518_v38 = vpop.f32.mrf.mxu1  ;;  %v9864_v49 = vrot.slane %v8468_v55, 1  ;;  %v4651_v29 = vor.u32 %v4650_v42, %v4647_v50 }
 0x1fd   : > { %6797 = vmatmul.mubr.bf16.gmra.mxu0 %v9859_v25  ;;  %v2715_v11 = vadd.f32 %v6518_v38, %v9031_v61  ;;  %v6567_v12 = vpop.f32.mrf.mxu0  ;;  %v9863_v61 = vld [vmem:[#allocation43_spill] sm:$0xff] }
 0x1fe   : > { %6800 = vmatprep.mubr.bf16.mxu0 %v9860_v33  ;;  %v9170_v52 = vadd.f32 %v6567_v12, %v2712_v1  ;;  %v2582_v22 = vpop.f32.mrf.mxu1  ;;  %v4266_v43 = vsel %vm4229_vm10, %v9864_v49, %v4265_v32  ;;  %v9865_v1 = vld [vmem:[#allocation45_spill] sm:$0xff] }
 0x1ff   : > { %6749 = vmatmul.mubr.bf16.gmra.mxu1 %v9861_v46  ;;  %v2713_v31 = vadd.f32 %v2582_v22, %v9037_v6  ;;  %v2883_v44 = vpop.f32.mrf.mxu0 }
 0x200   : > { %6752 = vmatprep.mubr.bf16.mxu1 %v9862_v8  ;;  %v9173_v13 = vadd.f32 %v2883_v44, %v2710_v17  ;;  %v6519_v9 = vpop.f32.mrf.mxu1  ;;  %v9866_v17 = vld [vmem:[#allocation42_spill] sm:$0xff] }
 0x201   : > { %v2716_v23 = vadd.f32 %v6519_v9, %v9041_v40  ;;  %v6570_v30 = vpop.f32.mrf.mxu0  ;;  %v4652_v51 = vsel %vm4567_vm15, %v9866_v17, %v4651_v29 }
 0x202   : > { %v9180_v45 = vadd.f32 %v6570_v30, %v2715_v11  ;;  %v2585_v36 = vpop.f32.mrf.mxu1 }
 0x203   : > { %v2714_v6 = vadd.f32 %v2585_v36, %v9045_v27  ;;  %v2896_v25 = vpop.f32.mrf.mxu0 }
 0x204   : > { %v9184_v48 = vadd.f32 %v2896_v25, %v2713_v31  ;;  %v6522_v33 = vpop.f32.mrf.mxu1 }
 0x205   : > { %6801 = vmatmul.mubr.bf16.gmra.mxu0 %v9863_v61  ;;  %v2719_v40 = vadd.f32 %v6522_v33, %v9048_v60  ;;  %v6571_v2 = vpop.f32.mrf.mxu0 }
 0x206   : > { %6804 = vmatprep.mubr.bf16.mxu0 %v9865_v1  ;;  %v9187_v7 = vadd.f32 %v6571_v2, %v2716_v23  ;;  %v2598_v55 = vpop.f32.mrf.mxu1 }
 0x207   : > { %6753 = vmatmul.mubr.bf16.gmra.mxu1 %v4266_v43  ;;  %v2717_v38 = vadd.f32 %v2598_v55, %v9052_v5  ;;  %v2899_v46 = vpop.f32.mrf.mxu0 }
 0x208   : > { %v9192_v11 = vadd.f32 %v2899_v46, %v2714_v6  ;;  %v6523_v27 = vpop.f32.mrf.mxu1 }
 0x209   : > { %v2720_v12 = vadd.f32 %v6523_v27, %v9057_v54  ;;  %v6574_v8 = vpop.f32.mrf.mxu0 }
 0x20a   : > { %v9195_v32 = vadd.f32 %v6574_v8, %v2719_v40  ;;  %v2601_v60 = vpop.f32.mrf.mxu1 }
 0x20b   : > { %v2718_v22 = vadd.f32 %v2601_v60, %v9060_v59  ;;  %v2912_v50 = vpop.f32.mrf.mxu0 }
 0x20c   : > { %v9198_v42 = vadd.f32 %v2912_v50, %v2717_v38  ;;  %v6526_v31 = vpop.f32.mrf.mxu1 }
 0x20d   : > { %6805 = vmatmul.mubr.bf16.gmra.mxu0 %v4652_v51  ;;  %v2723_v44 = vadd.f32 %v6526_v31, %v9064_v62  ;;  %v6575_v5 = vpop.f32.mrf.mxu0 }
 0x20e   : > { %v9201_v9 = vadd.f32 %v6575_v5, %v2720_v12  ;;  %v2614_v23 = vpop.f32.mrf.mxu1 }
 0x20f   : > { %v2721_v30 = vadd.f32 %v2614_v23, %v9068_v58  ;;  %v2915_v54 = vpop.f32.mrf.mxu0 }
 0x210   : > { %v9204_v61 = vadd.f32 %v2915_v54, %v2718_v22  ;;  %v6527_v49 = vpop.f32.mrf.mxu1 }
 0x211   : > { %v2724_v43 = vadd.f32 %v6527_v49, %v9072_v47  ;;  %v6578_v36 = vpop.f32.mrf.mxu0 }
 0x212   : > { %v9207_v59 = vadd.f32 %v6578_v36, %v2723_v44  ;;  %v2617_v1 = vpop.f32.mrf.mxu1 }
 0x213   : > { %v2722_v29 = vadd.f32 %v2617_v1, %v9075_v16  ;;  %v2928_v6 = vpop.f32.mrf.mxu0 }
 0x214   : > { %v9210_v62 = vadd.f32 %v2928_v6, %v2721_v30  ;;  %v6530_v25 = vpop.f32.mrf.mxu1 }
 0x215   : > { %v2727_v33 = vadd.f32 %v6530_v25, %v9079_v26  ;;  %v6579_v40 = vpop.f32.mrf.mxu0 }
 0x216   : > { %v9213_v58 = vadd.f32 %v6579_v40, %v2724_v43  ;;  %v2630_v2 = vpop.f32.mrf.mxu1 }
 0x217   : > { %v2725_v55 = vadd.f32 %v2630_v2, %v9083_v41  ;;  %v2931_v17 = vpop.f32.mrf.mxu0 }
 0x218   : > { %v9216_v47 = vadd.f32 %v2931_v17, %v2722_v29  ;;  %v6531_v51 = vpop.f32.mrf.mxu1 }
 0x219   : > { %v2728_v38 = vadd.f32 %v6531_v51, %v9088_v35 }
 0x21a   : > { %v2633_v27 = vpop.f32.mrf.mxu1 }
 0x21b   : > { %v2726_v12 = vadd.f32 %v2633_v27, %v9091_v19 }
 0x21c   : > { %v6534_v60 = vpop.f32.mrf.mxu1 }
 0x21d   : > { %v6582_v46 = vpop.f32.mrf.mxu0  ;;  %v2731_v22 = vadd.f32 %v6534_v60, %v9095_v10 }
 0x21e   : > { %v9219_v16 = vadd.f32 %v6582_v46, %v2727_v33  ;;  %v2646_v31 = vpop.f32.mrf.mxu1 }
 0x21f   : > { %v2944_v8 = vpop.f32.mrf.mxu0  ;;  %v2729_v44 = vadd.f32 %v2646_v31, %v9099_v63 }
 0x220   : > { %v9222_v26 = vadd.f32 %v2944_v8, %v2725_v55  ;;  %v6535_v23 = vpop.f32.mrf.mxu1 }
 0x221   : > { %v6583_v50 = vpop.f32.mrf.mxu0  ;;  %v2732_v30 = vadd.f32 %v6535_v23, %v9104_v21 }
 0x222   : > { %v9225_v41 = vadd.f32 %v6583_v50, %v2728_v38  ;;  %v2649_v49 = vpop.f32.mrf.mxu1 }
 0x223   : > { %v2947_v5 = vpop.f32.mrf.mxu0  ;;  %v2730_v43 = vadd.f32 %v2649_v49, %v9107_v28 }
 0x224   : > { %v9228_v35 = vadd.f32 %v2947_v5, %v2726_v12 }
 0x225   : > { %v6586_v54 = vpop.f32.mrf.mxu0  ;;  %v6538_v1 = vpop.f32.mrf.mxu1 }
 0x226   : > { %v9231_v19 = vadd.f32 %v6586_v54, %v2731_v22  ;;  %v2735_v29 = vadd.f32 %v6538_v1, %v9111_v14 }
 0x227   : > { %v2960_v36 = vpop.f32.mrf.mxu0  ;;  %v2662_v25 = vpop.f32.mrf.mxu1 }
 0x228   : > { %v9234_v10 = vadd.f32 %v2960_v36, %v2729_v44  ;;  %v2733_v33 = vadd.f32 %v2662_v25, %v9115_v37 }
 0x229   : > { %v6587_v6 = vpop.f32.mrf.mxu0  ;;  %v6539_v2 = vpop.f32.mrf.mxu1 }
 0x22a   : > { %v9237_v63 = vadd.f32 %v6587_v6, %v2732_v30  ;;  %v2736_v55 = vadd.f32 %v6539_v2, %v9120_v24 }
 0x22b   : > { %v2963_v40 = vpop.f32.mrf.mxu0  ;;  %v2665_v51 = vpop.f32.mrf.mxu1 }
 0x22c   : > { %v9240_v21 = vadd.f32 %v2963_v40, %v2730_v43  ;;  %v2734_v38 = vadd.f32 %v2665_v51, %v9123_v4 }
 0x22d   : > { %v6590_v17 = vpop.f32.mrf.mxu0  ;;  %v6542_v27 = vpop.f32.mrf.mxu1 }
 0x22e   : > { %v9243_v28 = vadd.f32 %v6590_v17, %v2735_v29  ;;  %v2739_v12 = vadd.f32 %v6542_v27, %v9127_v3 }
 0x22f   : > { %v2976_v46 = vpop.f32.mrf.mxu0  ;;  %v2678_v60 = vpop.f32.mrf.mxu1 }
 0x230   : > { %v9246_v14 = vadd.f32 %v2976_v46, %v2733_v33  ;;  %v2737_v22 = vadd.f32 %v2678_v60, %v9131_v15 }
 0x231   : > { %v6591_v8 = vpop.f32.mrf.mxu0  ;;  %v6543_v31 = vpop.f32.mrf.mxu1 }
 0x232   : > { %v9249_v37 = vadd.f32 %v6591_v8, %v2736_v55  ;;  %v2740_v44 = vadd.f32 %v6543_v31, %v9136_v53 }
 0x233   : > { %v2979_v50 = vpop.f32.mrf.mxu0  ;;  %v2681_v23 = vpop.f32.mrf.mxu1 }
 0x234   : > { %v9252_v24 = vadd.f32 %v2979_v50, %v2734_v38  ;;  %v2738_v30 = vadd.f32 %v2681_v23, %v9139_v20 }
 0x235   : > { %v6594_v5 = vpop.f32.mrf.mxu0  ;;  %v6546_v49 = vpop.f32.mrf.mxu1 }
 0x236   : > { %v9255_v4 = vadd.f32 %v6594_v5, %v2739_v12  ;;  %v2743_v43 = vadd.f32 %v6546_v49, %v9143_v0 }
 0x237   : > { %v2992_v54 = vpop.f32.mrf.mxu0  ;;  %v2694_v1 = vpop.f32.mrf.mxu1 }
 0x238   : > { %v9258_v3 = vadd.f32 %v2992_v54, %v2737_v22  ;;  %v2741_v29 = vadd.f32 %v2694_v1, %v9147_v57 }
 0x239   : > { %v6595_v36 = vpop.f32.mrf.mxu0  ;;  %v6547_v25 = vpop.f32.mrf.mxu1 }
 0x23a   : > { %v9261_v15 = vadd.f32 %v6595_v36, %v2740_v44  ;;  %v2744_v33 = vadd.f32 %v6547_v25, %v9153_v39 }
 0x23b   : > { %v2995_v6 = vpop.f32.mrf.mxu0  ;;  %v2697_v2 = vpop.f32.mrf.mxu1 }
 0x23c   : > { %v9264_v53 = vadd.f32 %v2995_v6, %v2738_v30  ;;  %v2742_v55 = vadd.f32 %v2697_v2, %v9156_v18 }
 0x23d   : > { %v6598_v40 = vpop.f32.mrf.mxu0  ;;  %v6618_v51 = vpop.f32.mrf.mxu1 }
 0x23e   : > { %v9267_v20 = vadd.f32 %v6598_v40, %v2743_v43  ;;  %v3600_v38 = vadd.f32 %v6618_v51, %v9160_v34 }
 0x23f   : > { %v3008_v17 = vpop.f32.mrf.mxu0  ;;  %v3455_v27 = vpop.f32.mrf.mxu1 }
 0x240   : > { %v9270_v0 = vadd.f32 %v3008_v17, %v2741_v29  ;;  %v3598_v12 = vadd.f32 %v3455_v27, %v9164_v56 }
 0x241   : > { %v6599_v46 = vpop.f32.mrf.mxu0  ;;  %v6619_v60 = vpop.f32.mrf.mxu1 }
 0x242   : > { %v9273_v57 = vadd.f32 %v6599_v46, %v2744_v33  ;;  %v3601_v22 = vadd.f32 %v6619_v60, %v9170_v52 }
 0x243   : > { %v3011_v8 = vpop.f32.mrf.mxu0  ;;  %v3458_v31 = vpop.f32.mrf.mxu1 }
 0x244   : > { %v9276_v39 = vadd.f32 %v3011_v8, %v2742_v55  ;;  %v3599_v44 = vadd.f32 %v3458_v31, %v9173_v13 }
 0x245   : > { %v6670_v50 = vpop.f32.mrf.mxu0  ;;  %v6622_v23 = vpop.f32.mrf.mxu1 }
 0x246   : > { %v9279_v18 = vadd.f32 %v6670_v50, %v3600_v38  ;;  %v3604_v30 = vadd.f32 %v6622_v23, %v9180_v45 }
 0x247   : > { %v4029_v5 = vpop.f32.mrf.mxu0  ;;  %v3471_v49 = vpop.f32.mrf.mxu1 }
 0x248   : > { %v9282_v34 = vadd.f32 %v4029_v5, %v3598_v12  ;;  %v3602_v43 = vadd.f32 %v3471_v49, %v9184_v48 }
 0x249   : > { %v6671_v54 = vpop.f32.mrf.mxu0  ;;  %v6623_v1 = vpop.f32.mrf.mxu1 }
 0x24a   : > { %v9285_v56 = vadd.f32 %v6671_v54, %v3601_v22  ;;  %v3605_v29 = vadd.f32 %v6623_v1, %v9187_v7 }
 0x24b   : > { %v4032_v36 = vpop.f32.mrf.mxu0  ;;  %v3474_v25 = vpop.f32.mrf.mxu1 }
 0x24c   : > { %v9288_v52 = vadd.f32 %v4032_v36, %v3599_v44  ;;  %v3603_v33 = vadd.f32 %v3474_v25, %v9192_v11 }
 0x24d   : > { %v6674_v6 = vpop.f32.mrf.mxu0 }
 0x24e   : > { %v9291_v13 = vadd.f32 %v6674_v6, %v3604_v30 }
 0x24f   : > { %v4045_v40 = vpop.f32.mrf.mxu0  ;;  %v6626_v2 = vpop.f32.mrf.mxu1 }
 0x250   : > { %v9294_v45 = vadd.f32 %v4045_v40, %v3602_v43  ;;  %v3608_v55 = vadd.f32 %v6626_v2, %v9195_v32 }
 0x251   : > { %v6675_v17 = vpop.f32.mrf.mxu0  ;;  %v3487_v51 = vpop.f32.mrf.mxu1 }
 0x252   : > { %v9297_v48 = vadd.f32 %v6675_v17, %v3605_v29  ;;  %v3606_v38 = vadd.f32 %v3487_v51, %v9198_v42 }
 0x253   : > { %v4048_v46 = vpop.f32.mrf.mxu0  ;;  %v6627_v27 = vpop.f32.mrf.mxu1 }
 0x254   : > { %v9300_v7 = vadd.f32 %v4048_v46, %v3603_v33  ;;  %v3609_v12 = vadd.f32 %v6627_v27, %v9201_v9 }
 0x255   : > { %v6678_v8 = vpop.f32.mrf.mxu0  ;;  %v3490_v60 = vpop.f32.mrf.mxu1 }
 0x256   : > { %v9303_v11 = vadd.f32 %v6678_v8, %v3608_v55  ;;  %v3607_v22 = vadd.f32 %v3490_v60, %v9204_v61 }
 0x257   : > { %v4061_v50 = vpop.f32.mrf.mxu0  ;;  %v6630_v31 = vpop.f32.mrf.mxu1 }
 0x258   : > { %v9306_v32 = vadd.f32 %v4061_v50, %v3606_v38  ;;  %v3612_v44 = vadd.f32 %v6630_v31, %v9207_v59 }
 0x259   : > { %v6679_v5 = vpop.f32.mrf.mxu0  ;;  %v3503_v23 = vpop.f32.mrf.mxu1 }
 0x25a   : > { %v9309_v42 = vadd.f32 %v6679_v5, %v3609_v12  ;;  %v3610_v30 = vadd.f32 %v3503_v23, %v9210_v62 }
 0x25b   : > { %v4064_v54 = vpop.f32.mrf.mxu0  ;;  %v6631_v49 = vpop.f32.mrf.mxu1 }
 0x25c   : > { %v9312_v9 = vadd.f32 %v4064_v54, %v3607_v22  ;;  %v3613_v43 = vadd.f32 %v6631_v49, %v9213_v58 }
 0x25d   : > { %v6682_v36 = vpop.f32.mrf.mxu0  ;;  %v3506_v1 = vpop.f32.mrf.mxu1 }
 0x25e   : > { %v9315_v61 = vadd.f32 %v6682_v36, %v3612_v44  ;;  %v3611_v29 = vadd.f32 %v3506_v1, %v9216_v47 }
 0x25f   : > { %v4077_v6 = vpop.f32.mrf.mxu0  ;;  %v6634_v25 = vpop.f32.mrf.mxu1 }
 0x260   : > { %v9318_v59 = vadd.f32 %v4077_v6, %v3610_v30  ;;  %v3616_v33 = vadd.f32 %v6634_v25, %v9219_v16 }
 0x261   : > { %v6683_v40 = vpop.f32.mrf.mxu0  ;;  %v3519_v2 = vpop.f32.mrf.mxu1 }
 0x262   : > { %v9321_v62 = vadd.f32 %v6683_v40, %v3613_v43  ;;  %v3614_v55 = vadd.f32 %v3519_v2, %v9222_v26 }
 0x263   : > { %v4080_v17 = vpop.f32.mrf.mxu0  ;;  %v6635_v51 = vpop.f32.mrf.mxu1 }
 0x264   : > { %v9324_v58 = vadd.f32 %v4080_v17, %v3611_v29  ;;  %v3617_v38 = vadd.f32 %v6635_v51, %v9225_v41 }
 0x265   : > { %v6686_v46 = vpop.f32.mrf.mxu0  ;;  %v3522_v27 = vpop.f32.mrf.mxu1 }
 0x266   : > { %v9327_v47 = vadd.f32 %v6686_v46, %v3616_v33  ;;  %v3615_v12 = vadd.f32 %v3522_v27, %v9228_v35 }
 0x267   : > { %v4093_v8 = vpop.f32.mrf.mxu0  ;;  %v6638_v60 = vpop.f32.mrf.mxu1 }
 0x268   : > { %v9330_v16 = vadd.f32 %v4093_v8, %v3614_v55  ;;  %v3620_v22 = vadd.f32 %v6638_v60, %v9231_v19 }
 0x269   : > { %v6687_v50 = vpop.f32.mrf.mxu0  ;;  %v3535_v31 = vpop.f32.mrf.mxu1 }
 0x26a   : > { %v9333_v26 = vadd.f32 %v6687_v50, %v3617_v38  ;;  %v3618_v44 = vadd.f32 %v3535_v31, %v9234_v10 }
 0x26b   : > { %v4096_v5 = vpop.f32.mrf.mxu0  ;;  %v6639_v23 = vpop.f32.mrf.mxu1 }
 0x26c   : > { %v9336_v41 = vadd.f32 %v4096_v5, %v3615_v12  ;;  %v3621_v30 = vadd.f32 %v6639_v23, %v9237_v63 }
 0x26d   : > { %v6690_v54 = vpop.f32.mrf.mxu0  ;;  %v3538_v49 = vpop.f32.mrf.mxu1 }
 0x26e   : > { %v9339_v35 = vadd.f32 %v6690_v54, %v3620_v22  ;;  %v3619_v43 = vadd.f32 %v3538_v49, %v9240_v21 }
 0x26f   : > { %v4109_v36 = vpop.f32.mrf.mxu0  ;;  %v6642_v1 = vpop.f32.mrf.mxu1 }
 0x270   : > { %v9342_v19 = vadd.f32 %v4109_v36, %v3618_v44  ;;  %v3624_v29 = vadd.f32 %v6642_v1, %v9243_v28 }
 0x271   : > { %v6691_v6 = vpop.f32.mrf.mxu0  ;;  %v3551_v25 = vpop.f32.mrf.mxu1 }
 0x272   : > { %v9345_v10 = vadd.f32 %v6691_v6, %v3621_v30  ;;  %v3622_v33 = vadd.f32 %v3551_v25, %v9246_v14 }
 0x273   : > { %v4112_v40 = vpop.f32.mrf.mxu0  ;;  %v6643_v2 = vpop.f32.mrf.mxu1 }
 0x274   : > { %v9348_v63 = vadd.f32 %v4112_v40, %v3619_v43  ;;  %v3625_v55 = vadd.f32 %v6643_v2, %v9249_v37 }
 0x275   : > { %v6694_v17 = vpop.f32.mrf.mxu0  ;;  %v3554_v51 = vpop.f32.mrf.mxu1 }
 0x276   : > { %v9351_v21 = vadd.f32 %v6694_v17, %v3624_v29  ;;  %v3623_v38 = vadd.f32 %v3554_v51, %v9252_v24 }
 0x277   : > { %v4125_v46 = vpop.f32.mrf.mxu0  ;;  %v6646_v27 = vpop.f32.mrf.mxu1 }
 0x278   : > { %v9354_v28 = vadd.f32 %v4125_v46, %v3622_v33  ;;  %v3628_v12 = vadd.f32 %v6646_v27, %v9255_v4 }
 0x279   : > { %v6695_v8 = vpop.f32.mrf.mxu0  ;;  %v3567_v60 = vpop.f32.mrf.mxu1 }
 0x27a   : > { %v9357_v14 = vadd.f32 %v6695_v8, %v3625_v55  ;;  %v3626_v22 = vadd.f32 %v3567_v60, %v9258_v3 }
 0x27b   : > { %v4128_v50 = vpop.f32.mrf.mxu0  ;;  %v6647_v31 = vpop.f32.mrf.mxu1 }
 0x27c   : > { %v9360_v37 = vadd.f32 %v4128_v50, %v3623_v38  ;;  %v3629_v44 = vadd.f32 %v6647_v31, %v9261_v15 }
 0x27d   : > { %v6698_v5 = vpop.f32.mrf.mxu0  ;;  %v3570_v23 = vpop.f32.mrf.mxu1 }
 0x27e   : > { %v9363_v24 = vadd.f32 %v6698_v5, %v3628_v12  ;;  %v3627_v30 = vadd.f32 %v3570_v23, %v9264_v53 }
 0x27f   : > { %v4141_v54 = vpop.f32.mrf.mxu0  ;;  %v6650_v49 = vpop.f32.mrf.mxu1 }
 0x280   : > { %v9366_v4 = vadd.f32 %v4141_v54, %v3626_v22  ;;  %v3632_v43 = vadd.f32 %v6650_v49, %v9267_v20 }
 0x281   : > { %v6699_v36 = vpop.f32.mrf.mxu0  ;;  %v3583_v1 = vpop.f32.mrf.mxu1 }
 0x282   : > { %v9369_v3 = vadd.f32 %v6699_v36, %v3629_v44  ;;  %v3630_v29 = vadd.f32 %v3583_v1, %v9270_v0 }
 0x283   : > { %v4144_v6 = vpop.f32.mrf.mxu0  ;;  %v6651_v25 = vpop.f32.mrf.mxu1 }
 0x284   : > { %v9372_v15 = vadd.f32 %v4144_v6, %v3627_v30  ;;  %v3633_v33 = vadd.f32 %v6651_v25, %v9273_v57 }
 0x285   : > { %v6702_v40 = vpop.f32.mrf.mxu0  ;;  %v3586_v2 = vpop.f32.mrf.mxu1 }
 0x286   : > { %v9375_v53 = vadd.f32 %v6702_v40, %v3632_v43  ;;  %v3631_v55 = vadd.f32 %v3586_v2, %v9276_v39 }
 0x287   : > { %v4157_v17 = vpop.f32.mrf.mxu0  ;;  %v6722_v51 = vpop.f32.mrf.mxu1 }
 0x288   : > { %v9378_v20 = vadd.f32 %v4157_v17, %v3630_v29  ;;  %v4512_v57 = vadd.f32 %v6722_v51, %v9279_v18 }
 0x289   : > { %v6703_v38 = vpop.f32.mrf.mxu0  ;;  %v4367_v0 = vpop.f32.mrf.mxu1 }
 0x28a   : > { %v9380_v46 = vadd.f32 %v6703_v38, %v3633_v33  ;;  %v4510_v22 = vadd.f32 %v4367_v0, %v9282_v34 }
 0x28b   : > { %v4160_v27 = vpop.f32.mrf.mxu0  ;;  %v6723_v8 = vpop.f32.mrf.mxu1 }
 0x28c   : > { %v9382_v12 = vadd.f32 %v4160_v27, %v3631_v55  ;;  %v4513_v31 = vadd.f32 %v6723_v8, %v9285_v56 }
 0x28d   : > { %v6774_v60 = vpop.f32.mrf.mxu0  ;;  %v4370_v50 = vpop.f32.mrf.mxu1 }
 0x28e   : > { %v4898_v44 = vadd.f32 %v6774_v60, %v4512_v57  ;;  %v4511_v54 = vadd.f32 %v4370_v50, %v9288_v52 }
 0x28f   : > { %v4753_v39 = vpop.f32.mrf.mxu0  ;;  %v6726_v23 = vpop.f32.mrf.mxu1 }
 0x290   : > { %v4896_v5 = vadd.f32 %v4753_v39, %v4510_v22  ;;  %v4934_v29 = vsel %vm645_vm3, %v4898_v44, 0.0  ;;  %v4516_v2 = vadd.f32 %v6726_v23, %v9291_v13 }
 0x291   : > { %v6775_v30 = vpop.f32.mrf.mxu0  ;;  %v4383_v43 = vpop.f32.mrf.mxu1  ;;  %v5192_v44 = vmul.f32 %v4934_v29, %v4934_v29 }
 0x292   : > { %v4899_v49 = vadd.f32 %v6775_v30, %v4513_v31  ;;  %v4932_v18 = vsel %vm643_vm2, %v4896_v5, 0.0  ;;  %v4514_v55 = vadd.f32 %v4383_v43, %v9294_v45 }
 0x293   : > { %v4756_v36 = vpop.f32.mrf.mxu0  ;;  %v6727_v25 = vpop.f32.mrf.mxu1  ;;  %v5190_v0 = vmul.f32 %v4932_v18, %v4932_v18 }
 0x294   : > { %v4935_v56 = vsel %vm646_vm14, %v4899_v49, 0.0  ;;  %v4897_v52 = vadd.f32 %v4756_v36, %v4511_v54  ;;  %v4517_v22 = vadd.f32 %v6727_v25, %v9297_v48 }
 0x295   : > { %v5973_v33 = vpack.c.bf16 %v4935_v56, %v4934_v29  ;;  %v6778_v40 = vpop.f32.mrf.mxu0  ;;  %v4386_v38 = vpop.f32.mrf.mxu1  ;;  %v5193_v36 = vmul.f32 %v4935_v56, %v4935_v56 }
 0x296   : > { %v4933_v51 = vsel %vm644_vm1, %v4897_v52, 0.0  ;;  %v4902_v50 = vadd.f32 %v6778_v40, %v4516_v2  ;;  %v4515_v23 = vadd.f32 %v4386_v38, %v9300_v7 }
 0x297   : > { %6089 = vst [vmem:[%s9397_s25 + $0x8] sm:$0xff] %v5973_v33   ;;  %v5968_v27 = vpack.c.bf16 %v4933_v51, %v4932_v18  ;;  %v5148_v8 = vadd.f32 %v4933_v51, %v4932_v18  ;;  %v5191_v60 = vmul.f32 %v4933_v51, %v4933_v51  ;;  %v4769_v57 = vpop.f32.mrf.mxu0  ;;  %v6730_v31 = vpop.f32.mrf.mxu1 }
 0x298   : > { %v4900_v39 = vadd.f32 %v4769_v57, %v4514_v55  ;;  %v4938_v34 = vsel %vm649_vm9, %v4902_v50, 0.0  ;;  %v4520_v51 = vadd.f32 %v6730_v31, %v9303_v11 }
 0x299   : > { %5969 = vst [vmem:[%s9397_s25] sm:$0xff] %v5968_v27   ;;  %v5149_v13 = vadd.f32 %v5148_v8, %v4934_v29  ;;  %v5226_v5 = vadd.f32 %v5191_v60, %v5190_v0  ;;  %v6779_v45 = vpop.f32.mrf.mxu0  ;;  %v4399_v43 = vpop.f32.mrf.mxu1 }
 0x29a   : > { %v4936_v54 = vsel %vm647_vm11, %v4900_v39, 0.0  ;;  %v4903_v49 = vadd.f32 %v6779_v45, %v4517_v22  ;;  %v5196_v45 = vmul.f32 %v4938_v34, %v4938_v34 }
 0x29b   : > { %v5227_v1 = vadd.f32 %v5226_v5, %v5192_v44  ;;  %v5150_v6 = vadd.f32 %v5149_v13, %v4935_v56  ;;  %v4772_v48 = vpop.f32.mrf.mxu0  ;;  %v6731_v33 = vpop.f32.mrf.mxu1  ;;  %v5194_v7 = vmul.f32 %v4936_v54, %v4936_v54  ;;  %v4518_v56 = vadd.f32 %v4399_v43, %v9306_v32 }
 0x29c   : > { %v4939_v29 = vsel %vm650_vm12, %v4903_v49, 0.0  ;;  %v4901_v25 = vadd.f32 %v4772_v48, %v4515_v23  ;;  %v4521_v39 = vadd.f32 %v6731_v33, %v9309_v42 }
 0x29d   : > { %v5151_v40 = vadd.f32 %v5150_v6, %v4936_v54  ;;  %v5228_v2 = vadd.f32 %v5227_v1, %v5193_v36  ;;  %v5983_v55 = vpack.c.bf16 %v4939_v29, %v4938_v34  ;;  %v6782_v17 = vpop.f32.mrf.mxu0  ;;  %v4402_v27 = vpop.f32.mrf.mxu1  ;;  %v5197_v36 = vmul.f32 %v4939_v29, %v4939_v29 }
 0x29e   : > { %v4937_v0 = vsel %vm648_vm13, %v4901_v25, 0.0  ;;  %v4906_v44 = vadd.f32 %v6782_v17, %v4520_v51  ;;  %v4519_v23 = vadd.f32 %v4402_v27, %v9312_v9  ;;  %v9878_v51 = vld [vmem:[#allocation29_spill] sm:$0xff] }
 0x29f   : > { %v5229_v8 = vadd.f32 %v5228_v2, %v5194_v7  ;;  %6091 = vst [vmem:[%s9397_s25 + $0x18] sm:$0xff] %v5983_v55   ;;  %v5978_v60 = vpack.c.bf16 %v4937_v0, %v4936_v54  ;;  %v5152_v57 = vadd.f32 %v5151_v40, %v4937_v0  ;;  %v5195_v22 = vmul.f32 %v4937_v0, %v4937_v0  ;;  %v4785_v50 = vpop.f32.mrf.mxu0  ;;  %v6734_v5 = vpop.f32.mrf.mxu1 }
 0x2a0   : > { %v4904_v13 = vadd.f32 %v4785_v50, %v4518_v56  ;;  %v4942_v18 = vsel %vm653_vm5, %v4906_v44, 0.0  ;;  %v4524_v17 = vadd.f32 %v6734_v5, %v9315_v61 }
 0x2a1   : > { %6090 = vst [vmem:[%s9397_s25 + $0x10] sm:$0xff] %v5978_v60   ;;  %v5153_v11 = vadd.f32 %v5152_v57, %v4938_v34  ;;  %v5230_v31 = vadd.f32 %v5229_v8, %v5195_v22  ;;  %v6783_v32 = vpop.f32.mrf.mxu0  ;;  %v4415_v54 = vpop.f32.mrf.mxu1 }
 0x2a2   : > { %v4940_v49 = vsel %vm651_vm6, %v4904_v13, 0.0  ;;  %v4907_v43 = vadd.f32 %v6783_v32, %v4521_v39  ;;  %vm9879_vm6 = vcmp.eq.s32.totalorder %v9878_v51, 1  ;;  %v5200_v13 = vmul.f32 %v4942_v18, %v4942_v18 }
 0x2a3   : > { %v5231_v1 = vadd.f32 %v5230_v31, %v5196_v45  ;;  %v5154_v6 = vadd.f32 %v5153_v11, %v4939_v29  ;;  %v4788_v42 = vpop.f32.mrf.mxu0  ;;  %v6735_v33 = vpop.f32.mrf.mxu1  ;;  %v5198_v9 = vmul.f32 %v4940_v49, %v4940_v49  ;;  %v4522_v29 = vadd.f32 %v4415_v54, %v9318_v59  ;;  %v9881_v54 = vld [vmem:[#allocation6_spill] sm:$0xff] }
 0x2a4   : > { %v4943_v34 = vsel %vm654_vm4, %v4907_v43, 0.0  ;;  %v4905_v25 = vadd.f32 %v4788_v42, %v4519_v23  ;;  %v4525_v22 = vadd.f32 %v6735_v33, %v9321_v62  ;;  %vm9882_vm4 = vcmp.eq.s32.totalorder %v9881_v54, 1 }
 0x2a5   : > { %v5155_v40 = vadd.f32 %v5154_v6, %v4940_v49  ;;  %v5232_v7 = vadd.f32 %v5231_v1, %v5197_v36  ;;  %v5993_v2 = vpack.c.bf16 %v4943_v34, %v4942_v18  ;;  %v6786_v55 = vpop.f32.mrf.mxu0  ;;  %v4418_v38 = vpop.f32.mrf.mxu1  ;;  %v5201_v30 = vmul.f32 %v4943_v34, %v4943_v34  ;;  %v9883_v1 = vld [vmem:[#allocation3_spill] sm:$0xff] }
 0x2a6   : > { %v4941_v56 = vsel %vm9879_vm6, %v4905_v25, 0.0  ;;  %v4910_v50 = vadd.f32 %v6786_v55, %v4524_v17  ;;  %v4523_v45 = vadd.f32 %v4418_v38, %v9324_v58  ;;  %vm9884_vm5 = vcmp.eq.s32.totalorder %v9883_v1, 1 }
 0x2a7   : > { %v5233_v0 = vadd.f32 %v5232_v7, %v5198_v9  ;;  %6093 = vst [vmem:[%s9397_s25 + $0x28] sm:$0xff] %v5993_v2   ;;  %v5988_v27 = vpack.c.bf16 %v4941_v56, %v4940_v49  ;;  %v5156_v8 = vadd.f32 %v5155_v40, %v4941_v56  ;;  %v5199_v60 = vmul.f32 %v4941_v56, %v4941_v56  ;;  %v4801_v57 = vpop.f32.mrf.mxu0  ;;  %v6738_v44 = vpop.f32.mrf.mxu1  ;;  %v9885_v9 = vld [vmem:[#allocation4_spill] sm:$0xff] }
 0x2a8   : > { %v4908_v39 = vadd.f32 %v4801_v57, %v4522_v29  ;;  %v4946_v36 = vsel %vm9882_vm4, %v4910_v50, 0.0  ;;  %v4528_v40 = vadd.f32 %v6738_v44, %v9327_v47  ;;  %v9887_v50 = vld [vmem:[#allocation5_spill] sm:$0xff] }
 0x2a9   : > { %6092 = vst [vmem:[%s9397_s25 + $0x20] sm:$0xff] %v5988_v27   ;;  %v5157_v61 = vadd.f32 %v5156_v8, %v4942_v18  ;;  %v5234_v5 = vadd.f32 %v5233_v0, %v5199_v60  ;;  %v6787_v59 = vpop.f32.mrf.mxu0  ;;  %v4431_v23 = vpop.f32.mrf.mxu1  ;;  %v5204_v60 = vmul.f32 %v4946_v36, %v4946_v36  ;;  %vm9888_vm8 = vcmp.eq.s32.totalorder %v9887_v50, 1 }
 0x2aa   : > { %v4944_v31 = vsel %vm655_vm7, %v4908_v39, 0.0  ;;  %v4911_v32 = vadd.f32 %v6787_v59, %v4525_v22  ;;  %vm9886_vm7 = vcmp.eq.s32.totalorder %v9885_v9, 1 }
 0x2ab   : > { %v5235_v49 = vadd.f32 %v5234_v5, %v5200_v13  ;;  %v5158_v43 = vadd.f32 %v5157_v61, %v4943_v34  ;;  %v4804_v62 = vpop.f32.mrf.mxu0  ;;  %v6739_v48 = vpop.f32.mrf.mxu1  ;;  %v5202_v58 = vmul.f32 %v4944_v31, %v4944_v31  ;;  %v4526_v34 = vadd.f32 %v4431_v23, %v9330_v16 }
 0x2ac   : > { %v4947_v6 = vsel %vm9884_vm5, %v4911_v32, 0.0  ;;  %v4909_v42 = vadd.f32 %v4804_v62, %v4523_v45  ;;  %v4529_v38 = vadd.f32 %v6739_v48, %v9333_v26  ;;  %v9889_v45 = vld [vmem:[#allocation7_spill] sm:$0xff] }
 0x2ad   : > { %v5159_v18 = vadd.f32 %v5158_v43, %v4944_v31  ;;  %v5236_v52 = vadd.f32 %v5235_v49, %v5201_v30  ;;  %v6003_v25 = vpack.c.bf16 %v4947_v6, %v4946_v36  ;;  %v6790_v33 = vpop.f32.mrf.mxu0  ;;  %v4434_v2 = vpop.f32.mrf.mxu1  ;;  %v5205_v61 = vmul.f32 %v4947_v6, %v4947_v6 }
 0x2ae   : > { %v4945_v7 = vsel %vm9886_vm7, %v4909_v42, 0.0  ;;  %v4914_v0 = vadd.f32 %v6790_v33, %v4528_v40  ;;  %v4527_v22 = vadd.f32 %v4434_v2, %v9336_v41  ;;  %vm9890_vm9 = vcmp.eq.s32.totalorder %v9889_v45, 1 }
 0x2af   : > { %v5237_v55 = vadd.f32 %v5236_v52, %v5202_v58  ;;  %6095 = vst [vmem:[%s9397_s25 + $0x38] sm:$0xff] %v6003_v25   ;;  %v5998_v17 = vpack.c.bf16 %v4945_v7, %v4944_v31  ;;  %v5160_v29 = vadd.f32 %v5159_v18, %v4945_v7  ;;  %v5203_v51 = vmul.f32 %v4945_v7, %v4945_v7  ;;  %v4817_v56 = vpop.f32.mrf.mxu0  ;;  %v6742_v8 = vpop.f32.mrf.mxu1  ;;  %v9891_v31 = vld [vmem:[#allocation10_spill] sm:$0xff] }
 0x2b0   : > { %v4912_v27 = vadd.f32 %v4817_v56, %v4526_v34  ;;  %v4950_v11 = vsel %vm9890_vm9, %v4914_v0, 0.0  ;;  %vm9892_vm11 = vcmp.eq.s32.totalorder %v9891_v31, 1 }
 0x2b1   : > { %6094 = vst [vmem:[%s9397_s25 + $0x30] sm:$0xff] %v5998_v17   ;;  %v5161_v47 = vadd.f32 %v5160_v29, %v4946_v36  ;;  %v5238_v57 = vadd.f32 %v5237_v55, %v5203_v51  ;;  %v6791_v16 = vpop.f32.mrf.mxu0  ;;  %v4447_v13 = vpop.f32.mrf.mxu1  ;;  %v4532_v36 = vadd.f32 %v6742_v8, %v9339_v35  ;;  %v5208_v2 = vmul.f32 %v4950_v11, %v4950_v11  ;;  %v9895_v29 = vld [vmem:[#allocation9_spill] sm:$0xff] }
 0x2b2   : > { %v4948_v39 = vsel %vm9888_vm8, %v4912_v27, 0.0  ;;  %v4915_v44 = vadd.f32 %v6791_v16, %v4529_v38  ;;  %v4530_v1 = vadd.f32 %v4447_v13, %v9342_v19  ;;  %vm9896_vm13 = vcmp.eq.s32.totalorder %v9895_v29, 1 }
 0x2b3   : > { %v5239_v5 = vadd.f32 %v5238_v57, %v5204_v60  ;;  %v5162_v59 = vadd.f32 %v5161_v47, %v4947_v6  ;;  %v4820_v26 = vpop.f32.mrf.mxu0  ;;  %v6743_v30 = vpop.f32.mrf.mxu1  ;;  %v5206_v41 = vmul.f32 %v4948_v39, %v4948_v39  ;;  %v9893_v6 = vld [vmem:[#allocation8_spill] sm:$0xff]  ;;  %v9897_v60 = vld [vmem:[#allocation11_spill] sm:$0xff] }
 0x2b4   : > { %v4951_v32 = vsel %vm9892_vm11, %v4915_v44, 0.0  ;;  %v4913_v23 = vadd.f32 %v4820_v26, %v4527_v22  ;;  %vm9894_vm12 = vcmp.eq.s32.totalorder %v9893_v6, 1  ;;  %v4533_v40 = vadd.f32 %v6743_v30, %v9345_v10  ;;  %v9899_v57 = vld [vmem:[#allocation15_spill] sm:$0xff]  ;;  %v9901_v26 = vld [vmem:[#allocation12_spill] sm:$0xff] }
 0x2b5   : > { %v5163_v49 = vadd.f32 %v5162_v59, %v4948_v39  ;;  %v5240_v43 = vadd.f32 %v5239_v5, %v5205_v61  ;;  %v6013_v62 = vpack.c.bf16 %v4951_v32, %v4950_v11  ;;  %v6794_v54 = vpop.f32.mrf.mxu0  ;;  %v4450_v48 = vpop.f32.mrf.mxu1  ;;  %v5209_v0 = vmul.f32 %v4951_v32, %v4951_v32 }
 0x2b6   : > { %v4949_v42 = vsel %vm9894_vm12, %v4913_v23, 0.0  ;;  %v4918_v34 = vadd.f32 %v6794_v54, %v4532_v36  ;;  %v4531_v17 = vadd.f32 %v4450_v48, %v9348_v63  ;;  %vm9898_vm14 = vcmp.eq.s32.totalorder %v9897_v60, 1 }
 0x2b7   : > { %v5241_v18 = vadd.f32 %v5240_v43, %v5206_v41  ;;  %6097 = vst [vmem:[%s9397_s25 + $0x48] sm:$0xff] %v6013_v62   ;;  %v6008_v58 = vpack.c.bf16 %v4949_v42, %v4948_v39  ;;  %v5164_v52 = vadd.f32 %v5163_v49, %v4949_v42  ;;  %v5207_v25 = vmul.f32 %v4949_v42, %v4949_v42  ;;  %v4833_v33 = vpop.f32.mrf.mxu0  ;;  %v6746_v7 = vpop.f32.mrf.mxu1  ;;  %v9903_v42 = vld [vmem:[#allocation18_spill] sm:$0xff] }
 0x2b8   : > { %v4916_v9 = vadd.f32 %v4833_v33, %v4530_v1  ;;  %v4954_v47 = vsel %vm9898_vm14, %v4918_v34, 0.0  ;;  %vm9900_vm0 = vcmp.eq.s32.totalorder %v9899_v57, 1  ;;  %v4536_v5 = vadd.f32 %v6746_v7, %v9351_v21 }
 0x2b9   : > { %6096 = vst [vmem:[%s9397_s25 + $0x40] sm:$0xff] %v6008_v58   ;;  %v5165_v35 = vadd.f32 %v5164_v52, %v4950_v11  ;;  %v5242_v55 = vadd.f32 %v5241_v18, %v5207_v25  ;;  %v6795_v19 = vpop.f32.mrf.mxu0  ;;  %v4463_v38 = vpop.f32.mrf.mxu1  ;;  %vm9902_vm1 = vcmp.eq.s32.totalorder %v9901_v26, 1  ;;  %v5212_v36 = vmul.f32 %v4954_v47, %v4954_v47 }
 0x2ba   : > { %v4952_v51 = vsel %vm9896_vm13, %v4916_v9, 0.0  ;;  %v4919_v56 = vadd.f32 %v6795_v19, %v4533_v40  ;;  %v4534_v59 = vadd.f32 %v4463_v38, %v9354_v28  ;;  %vm9904_vm2 = vcmp.eq.s32.totalorder %v9903_v42, 1  ;;  %v9905_v40 = vld [vmem:[#allocation20_spill] sm:$0xff]  ;;  %v9907_v9 = vld [vmem:[#allocation23_spill] sm:$0xff]  ;;  %v9909_v38 = vld [vmem:[#allocation17_spill] sm:$0xff] }
 0x2bb   : > { %v5243_v27 = vadd.f32 %v5242_v55, %v5208_v2  ;;  %v5166_v8 = vadd.f32 %v5165_v35, %v4951_v32  ;;  %v4836_v10 = vpop.f32.mrf.mxu0  ;;  %v6747_v50 = vpop.f32.mrf.mxu1  ;;  %v5210_v63 = vmul.f32 %v4952_v51, %v4952_v51  ;;  %vm9906_vm3 = vcmp.eq.s32.totalorder %v9905_v40, 1 }
 0x2bc   : > { %v4955_v16 = vsel %vm9900_vm0, %v4919_v56, 0.0  ;;  %v4917_v22 = vadd.f32 %v4836_v10, %v4531_v17  ;;  %v4537_v41 = vadd.f32 %v6747_v50, %v9357_v14  ;;  %vm9908_vm10 = vcmp.eq.s32.totalorder %v9907_v9, 1 }
 0x2bd   : > { %v5167_v39 = vadd.f32 %v5166_v8, %v4952_v51  ;;  %v5244_v44 = vadd.f32 %v5243_v27, %v5209_v0  ;;  %v6023_v13 = vpack.c.bf16 %v4955_v16, %v4954_v47  ;;  %v6798_v61 = vpop.f32.mrf.mxu0  ;;  %v4466_v11 = vpop.f32.mrf.mxu1  ;;  %v5213_v52 = vmul.f32 %v4955_v16, %v4955_v16 }
 0x2be   : > { %v4953_v45 = vsel %vm9902_vm1, %v4917_v22, 0.0  ;;  %v4922_v43 = vadd.f32 %v6798_v61, %v4536_v5  ;;  %v4535_v6 = vadd.f32 %v4466_v11, %v9360_v37  ;;  %vm9910_vm15 = vcmp.eq.s32.totalorder %v9909_v38, 1  ;;  %v9911_v61 = vld [vmem:[#allocation26_spill] sm:$0xff]  ;;  %v9923_v38 = vld [vmem:[#allocation37_spill] sm:$0xff] }
 0x2bf   : > { %v5245_v31 = vadd.f32 %v5244_v44, %v5210_v63  ;;  %6099 = vst [vmem:[%s9397_s25 + $0x58] sm:$0xff] %v6023_v13   ;;  %v6018_v32 = vpack.c.bf16 %v4953_v45, %v4952_v51  ;;  %v5168_v23 = vadd.f32 %v5167_v39, %v4953_v45  ;;  %v5211_v30 = vmul.f32 %v4953_v45, %v4953_v45  ;;  %v4849_v49 = vpop.f32.mrf.mxu0  ;;  %v6750_v54 = vpop.f32.mrf.mxu1 }
 0x2c0   : > { %v4920_v62 = vadd.f32 %v4849_v49, %v4534_v59  ;;  %v4958_v34 = vsel %vm9906_vm3, %v4922_v43, 0.0  ;;  %v4540_v51 = vadd.f32 %v6750_v54, %v9363_v24  ;;  %vm9912_vm6 = vcmp.eq.s32.totalorder %v9911_v61, 1 }
 0x2c1   : > { %6098 = vst [vmem:[%s9397_s25 + $0x50] sm:$0xff] %v6018_v32   ;;  %v5169_v21 = vadd.f32 %v5168_v23, %v4954_v47  ;;  %v5246_v1 = vadd.f32 %v5245_v31, %v5211_v30  ;;  %v6799_v28 = vpop.f32.mrf.mxu0  ;;  %v4479_v58 = vpop.f32.mrf.mxu1  ;;  %v5216_v63 = vmul.f32 %v4958_v34, %v4958_v34  ;;  %v9913_v32 = vld [vmem:[#allocation28_spill] sm:$0xff]  ;;  %v9915_v30 = vld [vmem:[#allocation31_spill] sm:$0xff]  ;;  %vm9924_vm11 = vcmp.eq.s32.totalorder %v9923_v38, 1 }
 0x2c2   : > { %v4956_v48 = vsel %vm9904_vm2, %v4920_v62, 0.0  ;;  %v4923_v18 = vadd.f32 %v6799_v28, %v4537_v41  ;;  %v4538_v56 = vadd.f32 %v4479_v58, %v9366_v4  ;;  %vm9914_vm4 = vcmp.eq.s32.totalorder %v9913_v32, 1 }
 0x2c3   : > { %v5247_v25 = vadd.f32 %v5246_v1, %v5212_v36  ;;  %v5170_v33 = vadd.f32 %v5169_v21, %v4955_v16  ;;  %v4852_v14 = vpop.f32.mrf.mxu0  ;;  %v6751_v35 = vpop.f32.mrf.mxu1  ;;  %v5214_v37 = vmul.f32 %v4956_v48, %v4956_v48  ;;  %vm9916_vm5 = vcmp.eq.s32.totalorder %v9915_v30, 1 }
 0x2c4   : > { %v4959_v7 = vsel %vm9908_vm10, %v4923_v18, 0.0  ;;  %v4921_v2 = vadd.f32 %v4852_v14, %v4535_v6  ;;  %v4541_v16 = vadd.f32 %v6751_v35, %v9369_v3  ;;  %v9917_v6 = vld [vmem:[#allocation25_spill] sm:$0xff]  ;;  %v9919_v35 = vld [vmem:[#allocation34_spill] sm:$0xff] }
 0x2c5   : > { %v5171_v55 = vadd.f32 %v5170_v33, %v4956_v48  ;;  %v5248_v19 = vadd.f32 %v5247_v25, %v5213_v52  ;;  %v6033_v17 = vpack.c.bf16 %v4959_v7, %v4958_v34  ;;  %v6802_v29 = vpop.f32.mrf.mxu0  ;;  %v4482_v27 = vpop.f32.mrf.mxu1  ;;  %v5217_v45 = vmul.f32 %v4959_v7, %v4959_v7 }
 0x2c6   : > { %v4957_v0 = vsel %vm9910_vm15, %v4921_v2, 0.0  ;;  %v4926_v22 = vadd.f32 %v6802_v29, %v4540_v51  ;;  %v4539_v13 = vadd.f32 %v4482_v27, %v9372_v15  ;;  %vm9918_vm7 = vcmp.eq.s32.totalorder %v9917_v6, 1 }
 0x2c7   : > { %v5249_v8 = vadd.f32 %v5248_v19, %v5214_v37  ;;  %6101 = vst [vmem:[%s9397_s25 + $0x68] sm:$0xff] %v6033_v17   ;;  %v6028_v10 = vpack.c.bf16 %v4957_v0, %v4956_v48  ;;  %v5172_v60 = vadd.f32 %v5171_v55, %v4957_v0  ;;  %v5215_v47 = vmul.f32 %v4957_v0, %v4957_v0  ;;  %v4865_v57 = vpop.f32.mrf.mxu0  ;;  %v6754_v39 = vpop.f32.mrf.mxu1 }
 0x2c8   : > { %v4924_v50 = vadd.f32 %v4865_v57, %v4538_v56  ;;  %v4962_v23 = vsel %vm9914_vm4, %v4926_v22, 0.0  ;;  %v4544_v1 = vadd.f32 %v6754_v39, %v9375_v53  ;;  %vm9920_vm8 = vcmp.eq.s32.totalorder %v9919_v35, 1 }
 0x2c9   : > { %6100 = vst [vmem:[%s9397_s25 + $0x60] sm:$0xff] %v6028_v10   ;;  %v5173_v24 = vadd.f32 %v5172_v60, %v4958_v34  ;;  %v5250_v44 = vadd.f32 %v5249_v8, %v5215_v47  ;;  %v6803_v4 = vpop.f32.mrf.mxu0  ;;  %v4495_v26 = vpop.f32.mrf.mxu1  ;;  %v5220_v9 = vmul.f32 %v4962_v23, %v4962_v23  ;;  %v9925_v47 = vld [vmem:[#allocation33_spill] sm:$0xff] }
 0x2ca   : > { %v4960_v5 = vsel %vm9912_vm6, %v4924_v50, 0.0  ;;  %v4927_v59 = vadd.f32 %v6803_v4, %v4541_v16  ;;  %v4542_v28 = vadd.f32 %v4495_v26, %v9378_v20  ;;  %vm9926_vm12 = vcmp.eq.s32.totalorder %v9925_v47, 1 }
 0x2cb   : > { %v5251_v11 = vadd.f32 %v5250_v44, %v5216_v63  ;;  %v5174_v31 = vadd.f32 %v5173_v24, %v4959_v7  ;;  %v4868_v3 = vpop.f32.mrf.mxu0  ;;  %v6755_v43 = vpop.f32.mrf.mxu1  ;;  %v5218_v15 = vmul.f32 %v4960_v5, %v4960_v5 }
 0x2cc   : > { %v4963_v49 = vsel %vm9916_vm5, %v4927_v59, 0.0  ;;  %v4925_v41 = vadd.f32 %v4868_v3, %v4539_v13  ;;  %v4545_v14 = vadd.f32 %v6755_v43, %v9380_v46  ;;  %v9921_v46 = vld [vmem:[#allocation36_spill] sm:$0xff] }
 0x2cd   : > { %v5175_v62 = vadd.f32 %v5174_v31, %v4960_v5  ;;  %v5252_v54 = vadd.f32 %v5251_v11, %v5217_v45  ;;  %v6043_v36 = vpack.c.bf16 %v4963_v49, %v4962_v23  ;;  %v6806_v21 = vpop.f32.mrf.mxu0  ;;  %v4498_v25 = vpop.f32.mrf.mxu1  ;;  %v5221_v19 = vmul.f32 %v4963_v49, %v4963_v49 }
 0x2ce   : > { %v4961_v42 = vsel %vm9918_vm7, %v4925_v41, 0.0  ;;  %v4930_v40 = vadd.f32 %v6806_v21, %v4544_v1  ;;  %v4543_v20 = vadd.f32 %v4498_v25, %v9382_v12  ;;  %vm9922_vm9 = vcmp.eq.s32.totalorder %v9921_v46, 1 }
 0x2cf   : > { %v5253_v48 = vadd.f32 %v5252_v54, %v5218_v15  ;;  %6103 = vst [vmem:[%s9397_s25 + $0x78] sm:$0xff] %v6043_v36   ;;  %v6038_v18 = vpack.c.bf16 %v4961_v42, %v4960_v5  ;;  %v5176_v58 = vadd.f32 %v5175_v62, %v4961_v42  ;;  %v5219_v52 = vmul.f32 %v4961_v42, %v4961_v42  ;;  %v4881_v33 = vpop.f32.mrf.mxu0 }
 0x2d0   : > { %v4928_v34 = vadd.f32 %v4881_v33, %v4542_v28  ;;  %v4966_v56 = vsel %vm9922_vm9, %v4930_v40, 0.0 }
 0x2d1   : > { %6102 = vst [vmem:[%s9397_s25 + $0x70] sm:$0xff] %v6038_v18   ;;  %v5177_v7 = vadd.f32 %v5176_v58, %v4962_v23  ;;  %v5254_v53 = vadd.f32 %v5253_v48, %v5219_v52  ;;  %v6807_v2 = vpop.f32.mrf.mxu0  ;;  %v5224_v63 = vmul.f32 %v4966_v56, %v4966_v56 }
 0x2d2   : > { %v4964_v55 = vsel %vm9920_vm8, %v4928_v34, 0.0  ;;  %v4931_v37 = vadd.f32 %v6807_v2, %v4545_v14 }
 0x2d3   : > { %v5255_v17 = vadd.f32 %v5254_v53, %v5220_v9  ;;  %v5178_v29 = vadd.f32 %v5177_v7, %v4963_v49  ;;  %v4884_v51 = vpop.f32.mrf.mxu0  ;;  %v5222_v10 = vmul.f32 %v4964_v55, %v4964_v55 }
 0x2d4   : > { %v4967_v0 = vsel %vm9924_vm11, %v4931_v37, 0.0  ;;  %v4929_v27 = vadd.f32 %v4884_v51, %v4543_v20 }
 0x2d5   : > { %v5179_v8 = vadd.f32 %v5178_v29, %v4964_v55  ;;  %v5256_v12 = vadd.f32 %v5255_v17, %v5221_v19  ;;  %v6053_v60 = vpack.c.bf16 %v4967_v0, %v4966_v56  ;;  %v5225_v4 = vmul.f32 %v4967_v0, %v4967_v0 }
 0x2d6   : > { %v4965_v57 = vsel %vm9926_vm12, %v4929_v27, 0.0 }
 0x2d7   : > { %v5257_v16 = vadd.f32 %v5256_v12, %v5222_v10  ;;  %6105 = vst [vmem:[%s9397_s25 + $0x88] sm:$0xff] %v6053_v60   ;;  %v6048_v22 = vpack.c.bf16 %v4965_v57, %v4964_v55  ;;  %v5180_v50 = vadd.f32 %v5179_v8, %v4965_v57  ;;  %v5223_v39 = vmul.f32 %v4965_v57, %v4965_v57 }
 0x2d9   : > { %6104 = vst [vmem:[%s9397_s25 + $0x80] sm:$0xff] %v6048_v22   ;;  %v5181_v24 = vadd.f32 %v5180_v50, %v4966_v56  ;;  %v5258_v44 = vadd.f32 %v5257_v16, %v5223_v39 }
 0x2db   : > { %v5182_v13 = vadd.f32 %v5181_v24, %v4967_v0  ;;  %v5259_v61 = vadd.f32 %v5258_v44, %v5224_v63 }
 0x2dd   : > { %v5183_v5 = vrot.slane %v5182_v13, 4  ;;  %v5260_v59 = vadd.f32 %v5259_v61, %v5225_v4 }
 0x2df   : > { %v5184_v26 = vadd.f32 %v5183_v5, %v5182_v13  ;;  %v5261_v45 = vrot.slane %v5260_v59, 4 }
 0x2e1   : > { %v5185_v11 = vrot.slane %v5184_v26, 2  ;;  %v5262_v31 = vadd.f32 %v5261_v45, %v5260_v59 }
 0x2e3   : > { %v5186_v3 = vadd.f32 %v5185_v11, %v5184_v26  ;;  %v5263_v32 = vrot.slane %v5262_v31, 2 }
 0x2e5   : > { %v5187_v23 = vrot.slane %v5186_v3, 1  ;;  %v5264_v30 = vadd.f32 %v5263_v32, %v5262_v31 }
 0x2e7   : > { %v5188_v49 = vadd.f32 %v5187_v23, %v5186_v3  ;;  %v5265_v41 = vrot.slane %v5264_v30, 1 }
 0x2e9   : > { %5189 = vst [vmem:[%s235_s28] sm:$0x1] %v5188_v49  ;;  %v5266_v43 = vadd.f32 %v5265_v41, %v5264_v30 }
 0x2eb   : > { %5267 = vst [vmem:[%s235_s28 + $0x1] sm:$0x1] %v5266_v43 }
 0x2ec PF: > { %s16_s18 = sadd.s32 1, %s7013_s18  }
 0x2ed   : > { %p13_p4 = scmp.ge.s32.totalorder %s16_s18, 4  }
 0x2ef   :  { %15 = sbr.rel (!%p13_p4) target bundleno = 1 (0x1), region = 86 }

// kernel: res_block.3
= control target key start
LH: loop header
LB: loop body
LE: loop exit
PB: predicated region body
PF: predicated region fallthrough
CT: control target
= control target key end

     0   :  { %s7252_s24 = smov 0   ;;  %s9287_s0 = inlined_call_operand.vmem [shape: bf16[2,328,128], index: 0, kind: input, shape index: {}]   ;;  %s9288_s1 = inlined_call_operand.vmem [shape: f32[288,1], index: 1, kind: input, shape index: {}]   ;;  %s9289_s2 = inlined_call_operand.vmem [shape: bf16[9,128,128], index: 2, kind: input, shape index: {}]   ;;  %s9290_s3 = inlined_call_operand.vmem [shape: bf16[128,128], index: 3, kind: input, shape index: {}]   ;;  %s9291_s4 = inlined_call_operand.vmem [shape: bf16[2,288,128], index: 4, kind: output, shape index: {0}]   ;;  %s9292_s5 = inlined_call_operand.vmem [shape: bf16[2,288,128], index: 5, kind: output, shape index: {1}]   ;;  %s9293_s6 = inlined_call_operand.vmem [shape: f32[2,2,128], index: 6, kind: output, shape index: {2}]   ;;  %s9294_s7 = inlined_call_operand.vmem [shape: f32[2,2,128], index: 7, kind: output, shape index: {3}]  }
   0x1 LB: > { %s5590_s25 = sadd.s32 4294967295, %s7209_s24   ;;  %p5594_p0 = scmp.ge.s32.totalorder %s7209_s24, 1  ;;  %s7209_s24 = sphi %s7252_s24, %s18_s24  }
   0x2   : > { %p244_p1 = scmp.lt.s32.totalorder %s7209_s24, 3 }
   0x4   : > { %p245_p2 = pnand %p5594_p0, %p244_p1 }
   0x6   : > { %248 = sbr.rel (%p245_p2) target bundleno = 631 (0x277), region = 36 }
   0xb   : > { %v7042_v0 = vld [vmem:[%s9289_s2 + $0x78] sm:$0xff]   ;;  %p289_p3 = scmp.lt.s32.totalorder %s5590_s25, 1  ;;  %v7044_v2 = vld [vmem:[%s9289_s2 + $0x70] sm:$0xff]   ;;  %v7046_v4 = vld [vmem:[%s9289_s2 + $0x68] sm:$0xff]   ;;  %vm548_vm0 = vsmask.f32 7424 }
   0xc   : > { %v7043_v1 = vld [vmem:[%s9289_s2 + $0x38] sm:$0xff]   ;;  %6509 = vmatprep.subr.bf16.mxu0 %v7042_v0  ;;  %v7045_v3 = vld [vmem:[%s9289_s2 + $0x30] sm:$0xff]   ;;  %v7047_v5 = vld [vmem:[%s9289_s2 + $0x28] sm:$0xff]   ;;  %vm1204_vm1 = vcmask 1046528   ;;  %vm2005_vm2 = vsmask.f32 6400 }
   0xd   : > { %6561 = vmatprep.subr.bf16.mxu1 %v7043_v1  ;;  %6510 = vmatpush3.bf16.msra.mxu0 %v7042_v0  ;;  %s9398_s25 = smov (!%p289_p3, %s5590_s25), 1  ;;  %v7048_v6 = vld [vmem:[%s9289_s2 + $0x60] sm:$0xff]   ;;  %v7050_v8 = vld [vmem:[%s9289_s2 + $0x58] sm:$0xff]   ;;  %v7052_v10 = vld [vmem:[%s9289_s2 + $0x50] sm:$0xff]   ;;  %vm2476_vm3 = vcmask 1045504   ;;  %vm3748_vm4 = vcmask 1044480  }
   0xe   : > { %6562 = vmatpush3.bf16.msra.mxu1 %v7043_v1  ;;  %6511 = vmatprep.subr.bf16.mxu0 %v7044_v2  ;;  %v7049_v7 = vld [vmem:[%s9289_s2 + $0x20] sm:$0xff]   ;;  %s7029_s19 = smul.u32 164, %s9398_s25  ;;  %v7051_v9 = vld [vmem:[%s9289_s2 + $0x18] sm:$0xff]   ;;  %v7053_v13 = vld [vmem:[%s9289_s2 + $0x10] sm:$0xff]   ;;  %s5598_s26 = sshll.u32 %s9398_s25, 1 }
   0xf   : > { %6563 = vmatprep.subr.bf16.mxu1 %v7045_v3  ;;  %v7054_v20 = vld [vmem:[%s9289_s2 + $0x48] sm:$0xff]   ;;  %v7056_v25 = vld [vmem:[%s9289_s2 + $0x40] sm:$0xff]   ;;  %v7061_v36 = vld [vmem:[%s9289_s2 + $0xb8] sm:$0xff]   ;;  %s311_s30 = scalar_lea.vmem %s9294_s7, %s5598_s26  ;;  %s307_s10 = scalar_lea.vmem %s9293_s6, %s5598_s26 }
  0x10   : > { %s7296_s28 = scalar_lea.vmem %s9287_s0, %s7029_s19  ;;  %v7055_v21 = vld [vmem:[%s9289_s2 + $0x8] sm:$0xff]   ;;  %v7057_v29 = vld [vmem:[%s9289_s2] sm:$0xff]   ;;  %v7062_v38 = vld [vmem:[%s9289_s2 + $0xf8] sm:$0xff]  }
  0x11   : > { %6512 = vmatpush3.bf16.msra.mxu0 %v7044_v2  ;;  %v385_v11 = vld [vmem:[%s7296_s28] sm:$0xf]  ;;  %v7303_v12 = vld [vmem:[%s7296_s28 + $0x4] sm:$0xf]  ;;  %v7310_v15 = vld [vmem:[%s7296_s28 + $0x8] sm:$0xff]  }
  0x12   : > { %6564 = vmatpush3.bf16.msra.mxu1 %v7045_v3  ;;  %6513 = vmatprep.subr.bf16.mxu0 %v7046_v4  ;;  %v5616_v14 = vcombine.low %v385_v11, %v7303_v12  ;;  %v557_v18 = vshll.u32 %v7310_v15, 16  ;;  %v7314_v19 = vld [vmem:[%s7296_s28 + $0x10] sm:$0xff]   ;;  %v7323_v24 = vld [vmem:[%s7296_s28 + $0x18] sm:$0xff]   ;;  %v561_v27 = vshrl.u32 %v7310_v15, 16  ;;  %v7337_v33 = vld [vmem:[%s7296_s28 + $0x20] sm:$0xff]   ;;  %v1206_v52 = vrot.slane %v7310_v15, 1 }
  0x13   : > { %6565 = vmatprep.subr.bf16.mxu1 %v7047_v5  ;;  %v565_v28 = vshll.u32 %v7314_v19, 16  ;;  %v569_v31 = vshrl.u32 %v7314_v19, 16  ;;  %v573_v32 = vshll.u32 %v7323_v24, 16  ;;  %v7343_v37 = vld [vmem:[%s7296_s28 + $0x28] sm:$0xff]   ;;  %v581_v41 = vshll.u32 %v7337_v33, 16  ;;  %v7354_v46 = vld [vmem:[%s7296_s28 + $0x30] sm:$0xff]  }
  0x14   : > { %v550_v16 = vshrl.u32 %v5616_v14, 16  ;;  %v552_v17 = vshll.u32 %v5616_v14, 16  ;;  %6577 = vmatprep.mubr.bf16.mxu1 %v5616_v14  ;;  %v559_v23 = vrot.slane %v557_v18, 1  ;;  %v577_v43 = vshrl.u32 %v7323_v24, 16  ;;  %v7065_v48 = vld [vmem:[%s9289_s2 + $0xb0] sm:$0xff]   ;;  %v7069_v56 = vld [vmem:[%s9289_s2 + $0xa8] sm:$0xff]  }
  0x15   : > { %6514 = vmatpush3.bf16.msra.mxu0 %v7046_v4  ;;  %v567_v35 = vrot.slane %v565_v28, 1  ;;  %v575_v40 = vrot.slane %v573_v32, 1  ;;  %v585_v44 = vshrl.u32 %v7337_v33, 16  ;;  %v589_v45 = vshll.u32 %v7343_v37, 16  ;;  %v7066_v50 = vld [vmem:[%s9289_s2 + $0xf0] sm:$0xff]   ;;  %v7370_v57 = vld [vmem:[%s7296_s28 + $0x38] sm:$0xff]  }
  0x16   : > { %6566 = vmatpush3.bf16.msra.mxu1 %v7047_v5  ;;  %6515 = vmatprep.subr.bf16.mxu0 %v7048_v6  ;;  %v554_v22 = vrot.slane %v552_v17, 1  ;;  %v563_v34 = vor.u32 %v561_v27, %v559_v23  ;;  %v583_v49 = vrot.slane %v581_v41, 1  ;;  %v597_v55 = vshll.u32 %v7354_v46, 16  ;;  %v7070_v58 = vld [vmem:[%s9289_s2 + $0xe8] sm:$0xff]   ;;  %v7388_v2 = vld [vmem:[%s7296_s28 + $0x40] sm:$0xff]  }
  0x17   : > { %6567 = vmatprep.subr.bf16.mxu1 %v7049_v7  ;;  %v571_v39 = vor.u32 %v569_v31, %v567_v35  ;;  %v579_v51 = vor.u32 %v577_v43, %v575_v40  ;;  %v591_v54 = vrot.slane %v589_v45, 1  ;;  %v1208_v59 = vrot.slane %v7314_v19, 1  ;;  %v7073_v4 = vld [vmem:[%s9289_s2 + $0xa0] sm:$0xff]   ;;  %v7451_v43 = vld [vmem:[%s7296_s28 + $0x68] sm:$0xff]  }
  0x18   : > { %v555_v26 = vor.u32 %v554_v22, %v550_v16  ;;  %v568_v42 = vsel %vm548_vm0, %v563_v34, %v567_v35  ;;  %v587_v53 = vor.u32 %v585_v44, %v583_v49  ;;  %v593_v61 = vshrl.u32 %v7343_v37, 16  ;;  %v7074_v5 = vld [vmem:[%s9289_s2 + $0xe0] sm:$0xff]   ;;  %v7079_v16 = vld [vmem:[%s9289_s2 + $0xd8] sm:$0xff]   ;;  %v7454_v44 = vld [vmem:[%s7296_s28 + $0x70] sm:$0xff]  }
  0x19   : > { %6516 = vmatpush3.bf16.msra.mxu0 %v7048_v6  ;;  %v576_v47 = vsel %vm548_vm0, %v571_v39, %v575_v40  ;;  %v584_v60 = vsel %vm548_vm0, %v579_v51, %v583_v49  ;;  %v601_v62 = vshrl.u32 %v7354_v46, 16  ;;  %v7383_v63 = vsel %vm1204_vm1, %v1206_v52, %v1208_v59  ;;  %v7088_v39 = vld [vmem:[%s9289_s2 + $0xc8] sm:$0xff]   ;;  %v1183_v45 = vld [vmem:[%s7296_s28] sm:$0xe] }
  0x1a   : > { %6568 = vmatpush3.bf16.msra.mxu1 %v7049_v7  ;;  %6517 = vmatprep.subr.bf16.mxu0 %v7050_v8  ;;  %v560_v30 = vsel %vm548_vm0, %v555_v26, %v559_v23  ;;  %v592_v0 = vsel %vm548_vm0, %v587_v53, %v591_v54  ;;  %v605_v1 = vshll.u32 %v7370_v57, 16  ;;  %v599_v3 = vrot.slane %v597_v55, 1  ;;  %v7398_v7 = vld [vmem:[%s7296_s28 + $0x48] sm:$0xff]   ;;  %v7421_v23 = vld [vmem:[%s7296_s28 + $0x58] sm:$0xff]   ;;  %v7084_v26 = vld [vmem:[%s9289_s2 + $0xd0] sm:$0xff]  }
  0x1b   : > { %6569 = vmatprep.subr.bf16.mxu1 %v7051_v9  ;;  %6525 = vmatprep.mubr.bf16.mxu0 %v560_v30  ;;  %v595_v6 = vor.u32 %v593_v61, %v591_v54  ;;  %v613_v11 = vshll.u32 %v7388_v2, 16  ;;  %v609_v14 = vshrl.u32 %v7370_v57, 16  ;;  %v617_v22 = vshrl.u32 %v7388_v2, 16  ;;  %v7432_v30 = vld [vmem:[%s7296_s28 + $0x60] sm:$0xff]  }
  0x1c   : > { %v637_v32 = vshll.u32 %v7421_v23, 16  ;;  %v1212_v34 = vrot.slane %v7337_v33, 1  ;;  %v625_v35 = vshrl.u32 %v7398_v7, 16  ;;  %v641_v49 = vshrl.u32 %v7421_v23, 16  ;;  %v7090_v53 = vld [vmem:[%s9289_s2 + $0x80] sm:$0xff]  }
  0x1d   : > { %6518 = vmatpush3.bf16.msra.mxu0 %v7050_v8  ;;  %v603_v8 = vor.u32 %v601_v62, %v599_v3  ;;  %v600_v18 = vsel %vm548_vm0, %v595_v6, %v599_v3  ;;  %v649_v51 = vshrl.u32 %v7432_v30, 16  ;;  %v7092_v54 = vld [vmem:[%s9289_s2 + $0xc0] sm:$0xff]   ;;  %v7488_v3 = vld [vmem:[%s9289_s2 + $0x178] sm:$0xff]  }
  0x1e   : > { %6570 = vmatpush3.bf16.msra.mxu1 %v7051_v9  ;;  %6519 = vmatprep.subr.bf16.mxu0 %v7052_v10  ;;  %v607_v9 = vrot.slane %v605_v1, 1  ;;  %v1214_v1 = vrot.slane %v7343_v37, 1 }
  0x1f   : > { %6571 = vmatprep.subr.bf16.mxu1 %v7053_v13 }
  0x20   : > { %v611_v27 = vor.u32 %v609_v14, %v607_v9  ;;  %v7494_v6 = vsel %vm1204_vm1, %v1212_v34, %v1214_v1 }
  0x21   : > { %6520 = vmatpush3.bf16.msra.mxu0 %v7052_v10  ;;  %v1210_v10 = vrot.slane %v7323_v24, 1 }
  0x22   : > { %6572 = vmatpush3.bf16.msra.mxu1 %v7053_v13  ;;  %6521 = vmatprep.subr.bf16.mxu0 %v7054_v20  ;;  %v7077_v13 = vld [vmem:[%s9289_s2 + $0x98] sm:$0xff]  }
  0x23   : > { %6573 = vmatprep.subr.bf16.mxu1 %v7055_v21  ;;  %v7411_v17 = vsel %vm1204_vm1, %v1208_v59, %v1210_v10  ;;  %v7446_v40 = vsel %vm1204_vm1, %v1210_v10, %v1212_v34  ;;  %v661_v59 = vshll.u32 %v7454_v44, 16  ;;  %v7502_v10 = vld [vmem:[%s7296_s28 + $0x90] ss:$0 sps:$4 sm:$0x11]  }
  0x25   : > { %6522 = vmatpush3.bf16.msra.mxu0 %v7054_v20  ;;  %v7416_v20 = vld [vmem:[%s7296_s28 + $0x50] sm:$0xff]   ;;  %v663_v14 = vrot.slane %v661_v59, 1  ;;  %v1232_v59 = vrot.slane %v7454_v44, 1 }
  0x26   : > { %6574 = vmatpush3.bf16.msra.mxu1 %v7055_v21  ;;  %6523 = vmatprep.subr.bf16.mxu0 %v7056_v25  ;;  %v608_v21 = vsel %vm548_vm0, %v603_v8, %v607_v9  ;;  %v7499_v9 = vld [vmem:[%s7296_s28 + $0x80] sm:$0xff]  }
  0x27   : > { %6575 = vmatprep.subr.bf16.mxu1 %v7057_v29 }
  0x29   : > { %6524 = vmatpush3.bf16.msra.mxu0 %v7056_v25  ;;  %v7081_v25 = vld [vmem:[%s9289_s2 + $0x90] sm:$0xff]  }
  0x2a   : > { %6576 = vmatpush3.bf16.msra.mxu1 %v7057_v29  ;;  %6613 = vmatprep.subr.bf16.mxu0 %v7061_v36  ;;  %v629_v29 = vshll.u32 %v7416_v20, 16 }
  0x2b   : > { %6665 = vmatprep.subr.bf16.mxu1 %v7062_v38 }
  0x2c   : > { %6526 = vmatmul.mubr.bf16.vlgmr.msra.gmra.mxu0 %v568_v42  ;;  %v631_v41 = vrot.slane %v629_v29, 1  ;;  %v645_v42 = vshll.u32 %v7432_v30, 16  ;;  %v1224_v29 = vrot.slane %v7416_v20, 1 }
  0x2d   : > { %6578 = vmatmul.mubr.bf16.vlgmr.msra.gmra.mxu1 %v7310_v15  ;;  %6614 = vmatpush3.bf16.msra.mxu0 %v7061_v36  ;;  %v7085_v36 = vld [vmem:[%s9289_s2 + $0x88] sm:$0xff]   ;;  %v1216_v15 = vrot.slane %v7354_v46, 1 }
  0x2e   : > { %6666 = vmatpush3.bf16.msra.mxu1 %v7062_v38  ;;  %6529 = vmatprep.mubr.bf16.mxu0 %v576_v47  ;;  %v633_v38 = vshrl.u32 %v7416_v20, 16 }
  0x2f   : > { %6581 = vmatprep.mubr.bf16.mxu1 %v7314_v19  ;;  %6615 = vmatprep.subr.bf16.mxu0 %v7065_v48  ;;  %v621_v19 = vshll.u32 %v7398_v7, 16 }
  0x30   : > { %6667 = vmatprep.subr.bf16.mxu1 %v7066_v50  ;;  %v635_v61 = vor.u32 %v633_v38, %v631_v41 }
  0x31   : > { %6616 = vmatpush3.bf16.msra.mxu0 %v7065_v48  ;;  %v623_v28 = vrot.slane %v621_v19, 1  ;;  %v639_v48 = vrot.slane %v637_v32, 1  ;;  %v665_v19 = vshrl.u32 %v7454_v44, 16  ;;  %v1521_v32 = vld [vmem:[%s7296_s28 + $0x8] sm:$0xe] }
  0x32   : > { %6668 = vmatpush3.bf16.msra.mxu1 %v7066_v50  ;;  %6617 = vmatprep.subr.bf16.mxu0 %v7069_v56  ;;  %v5667_v50 = vcombine.low %v1183_v45, %v7303_v12  ;;  %v647_v12 = vrot.slane %v645_v42, 1 }
  0x33   : > { %6669 = vmatprep.subr.bf16.mxu1 %v7070_v58  ;;  %v640_v8 = vsel %vm548_vm0, %v635_v61, %v639_v48  ;;  %v667_v42 = vor.u32 %v665_v19, %v663_v14 }
  0x34   : > { %6530 = vmatmul.mubr.bf16.gmra.mxu0 %v584_v60  ;;  %v1205_v55 = vrot.slane %v5667_v50, 1  ;;  %v7471_v60 = vld [vmem:[%s7296_s28 + $0x78] sm:$0xff]  }
  0x35   : > { %6582 = vmatmul.mubr.bf16.gmra.mxu1 %v7323_v24  ;;  %6533 = vmatprep.mubr.bf16.mxu0 %v592_v0  ;;  %v615_v24 = vrot.slane %v613_v11, 1  ;;  %v7482_v0 = vld [vmem:[%s9289_s2 + $0x138] sm:$0xff]   ;;  %v7505_v11 = vsel %vm1204_vm1, %v1214_v1, %v1216_v15 }
  0x36   : > { %6585 = vmatprep.mubr.bf16.mxu1 %v7337_v33  ;;  %6618 = vmatpush3.bf16.msra.mxu0 %v7069_v56  ;;  %v627_v56 = vor.u32 %v625_v35, %v623_v28  ;;  %v7477_v62 = vsel %vm1204_vm1, %v1205_v55, %v1206_v52 }
  0x37   : > { %6670 = vmatpush3.bf16.msra.mxu1 %v7070_v58  ;;  %6619 = vmatprep.subr.bf16.mxu0 %v7073_v4  ;;  %v619_v31 = vor.u32 %v617_v22, %v615_v24  ;;  %v616_v33 = vsel %vm548_vm0, %v611_v27, %v615_v24  ;;  %v653_v58 = vshll.u32 %v7451_v43, 16  ;;  %v1222_v27 = vrot.slane %v7398_v7, 1 }
  0x38   : > { %6671 = vmatprep.subr.bf16.mxu1 %v7074_v5  ;;  %v632_v52 = vsel %vm548_vm0, %v627_v56, %v631_v41  ;;  %v1228_v41 = vrot.slane %v7432_v30, 1  ;;  %v7563_v56 = vld [vmem:[%s7296_s28 + $0x20] sm:$0xff]  }
  0x39   : > { %v624_v47 = vsel %vm548_vm0, %v619_v31, %v623_v28  ;;  %v693_v28 = vshll.u32 %v7502_v10, 16  ;;  %v7539_v38 = vsel %vm1204_vm1, %v1222_v27, %v1224_v29 }
  0x3a   : > { %6620 = vmatpush3.bf16.msra.mxu0 %v7073_v4  ;;  %v655_v4 = vrot.slane %v653_v58, 1  ;;  %v7567_v58 = vld [vmem:[%s7296_s28 + $0x28] sm:$0xff]  }
  0x3b   : > { %6672 = vmatpush3.bf16.msra.mxu1 %v7074_v5  ;;  %6621 = vmatprep.subr.bf16.mxu0 %v7077_v13  ;;  %v657_v5 = vshrl.u32 %v7451_v43, 16  ;;  %v695_v50 = vrot.slane %v693_v28, 1 }
  0x3c   : > { %6534 = vmatmul.mubr.bf16.gmra.mxu0 %v600_v18  ;;  %6673 = vmatprep.subr.bf16.mxu1 %v7079_v16  ;;  %v643_v18 = vor.u32 %v641_v49, %v639_v48 }
  0x3d   : > { %6586 = vmatmul.mubr.bf16.gmra.mxu1 %v7343_v37  ;;  %6537 = vmatprep.mubr.bf16.mxu0 %v608_v21  ;;  %v669_v37 = vshll.u32 %v7471_v60, 16  ;;  %v673_v21 = vshrl.u32 %v7471_v60, 16 }
  0x3e   : > { %6589 = vmatprep.mubr.bf16.mxu1 %v7354_v46  ;;  %6622 = vmatpush3.bf16.msra.mxu0 %v7077_v13  ;;  %v7508_v46 = vld [vmem:[%s7296_s28 + $0x88] sm:$0xff]   ;;  %v1218_v13 = vrot.slane %v7370_v57, 1  ;;  %v648_v31 = vsel %vm548_vm0, %v643_v18, %v647_v12  ;;  %v7589_v18 = vld [vmem:[%s7296_s28 + $0x40] sm:$0xff]  }
  0x3f   : > { %6674 = vmatpush3.bf16.msra.mxu1 %v7079_v16  ;;  %6623 = vmatprep.subr.bf16.mxu0 %v7081_v25  ;;  %v1220_v16 = vrot.slane %v7388_v2, 1  ;;  %v671_v24 = vrot.slane %v669_v37, 1  ;;  %v1673_v37 = vrot.slane %v7563_v56, 1 }
  0x40   : > { %6675 = vmatprep.subr.bf16.mxu1 %v7084_v26  ;;  %v7518_v22 = vsel %vm1204_vm1, %v1216_v15, %v1218_v13  ;;  %v7575_v15 = vld [vmem:[%s7296_s28 + $0x30] sm:$0xff]  }
  0x41   : > { %v7532_v34 = vsel %vm1204_vm1, %v1220_v16, %v1222_v27  ;;  %v672_v61 = vsel %vm548_vm0, %v667_v42, %v671_v24 }
  0x42   : > { %6624 = vmatpush3.bf16.msra.mxu0 %v7081_v25  ;;  %v677_v25 = vshll.u32 %v7499_v9, 16 }
  0x43   : > { %6676 = vmatpush3.bf16.msra.mxu1 %v7084_v26  ;;  %6625 = vmatprep.subr.bf16.mxu0 %v7085_v36  ;;  %v685_v26 = vshll.u32 %v7508_v46, 16 }
  0x44   : > { %6538 = vmatmul.mubr.bf16.gmra.mxu0 %v616_v33  ;;  %6677 = vmatprep.subr.bf16.mxu1 %v7088_v39  ;;  %v7544_v33 = vld [vmem:[%s7296_s28 + $0x10] sm:$0xff]   ;;  %v679_v45 = vrot.slane %v677_v25, 1  ;;  %v1677_v25 = vrot.slane %v7575_v15, 1 }
  0x45   : > { %6590 = vmatmul.mubr.bf16.gmra.mxu1 %v7370_v57  ;;  %6541 = vmatprep.mubr.bf16.mxu0 %v624_v47  ;;  %v651_v57 = vor.u32 %v649_v51, %v647_v12  ;;  %v689_v47 = vshrl.u32 %v7508_v46, 16  ;;  %v687_v49 = vrot.slane %v685_v26, 1  ;;  %v1669_v55 = vrot.slane %v7544_v33, 1 }
  0x46   : > { %6593 = vmatprep.mubr.bf16.mxu1 %v7388_v2  ;;  %6626 = vmatpush3.bf16.msra.mxu0 %v7085_v36  ;;  %v7523_v2 = vsel %vm1204_vm1, %v1218_v13, %v1220_v16  ;;  %v7536_v36 = vld [vmem:[%s7296_s28 + $0xc] sm:$0xf]  ;;  %v675_v13 = vor.u32 %v673_v21, %v671_v24  ;;  %v1675_v16 = vrot.slane %v7567_v58, 1  ;;  %v1236_v26 = vrot.slane %v7499_v9, 1 }
  0x47   : > { %6678 = vmatpush3.bf16.msra.mxu1 %v7088_v39  ;;  %6627 = vmatprep.subr.bf16.mxu0 %v7090_v53  ;;  %v656_v35 = vsel %vm548_vm0, %v651_v57, %v655_v4  ;;  %v681_v39 = vshrl.u32 %v7499_v9, 16  ;;  %v5692_v51 = vcombine.low %v1521_v32, %v7536_v36  ;;  %v691_v57 = vor.u32 %v689_v47, %v687_v49  ;;  %v7600_v24 = vld [vmem:[%s7296_s28 + $0x48] sm:$0xff]  }
  0x48   : > { %6679 = vmatprep.subr.bf16.mxu1 %v7092_v54  ;;  %v1238_v21 = vrot.slane %v7508_v46, 1  ;;  %v680_v28 = vsel %vm548_vm0, %v675_v13, %v679_v45  ;;  %v7624_v42 = vsel %vm1204_vm1, %v1673_v37, %v1675_v16  ;;  %v2478_v13 = vrot.slane %v7544_v33, 2 }
  0x49   : > { %v1668_v1 = vrot.slane %v5692_v51, 1 }
  0x4a   : > { %6628 = vmatpush3.bf16.msra.mxu0 %v7090_v53  ;;  %v7612_v32 = vsel %vm1204_vm1, %v1236_v26, %v1238_v21 }
  0x4b   : > { %6680 = vmatpush3.bf16.msra.mxu1 %v7092_v54  ;;  %6717 = vmatprep.subr.bf16.mxu0 %v7482_v0  ;;  %v1230_v54 = vrot.slane %v7451_v43, 1 }
  0x4c   : > { %6542 = vmatmul.mubr.bf16.gmra.mxu0 %v632_v52  ;;  %6769 = vmatprep.subr.bf16.mxu1 %v7488_v3  ;;  %v7578_v52 = vld [vmem:[%s7296_s28 + $0x38] sm:$0xff]  }
  0x4d   : > { %6594 = vmatmul.mubr.bf16.gmra.mxu1 %v7398_v7  ;;  %6545 = vmatprep.mubr.bf16.mxu0 %v640_v8  ;;  %v1226_v7 = vrot.slane %v7421_v23, 1 }
  0x4e   : > { %6597 = vmatprep.mubr.bf16.mxu1 %v7416_v20  ;;  %v659_v20 = vor.u32 %v657_v5, %v655_v4  ;;  %v7581_v4 = vsel %vm1204_vm1, %v1230_v54, %v1232_v59  ;;  %v1234_v5 = vrot.slane %v7471_v60, 1 }
  0x4f   : > { %v7550_v48 = vsel %vm1204_vm1, %v1224_v29, %v1226_v7  ;;  %v7555_v53 = vsel %vm1204_vm1, %v1226_v7, %v1228_v41 }
  0x50   : > { %v664_v12 = vsel %vm548_vm0, %v659_v20, %v663_v14  ;;  %v683_v14 = vor.u32 %v681_v39, %v679_v45  ;;  %v7592_v19 = vsel %vm1204_vm1, %v1232_v59, %v1234_v5  ;;  %v7603_v27 = vsel %vm1204_vm1, %v1234_v5, %v1236_v26 }
  0x51   : > { %v1670_v39 = vsel %vm1204_vm1, %v1668_v1, %v1669_v55  ;;  %v1240_v20 = vrot.slane %v7502_v10, 1  ;;  %v7627_v45 = vsel %vm1204_vm1, %v1675_v16, %v1677_v25  ;;  %v2007_v10 = vshrl.u32 %v5692_v51, 16  ;;  %v2455_v1 = vld [vmem:[%s7296_s28 + $0x8] sm:$0xc] }
  0x52   : > { %v688_v29 = vsel %vm548_vm0, %v683_v14, %v687_v49  ;;  %v2015_v59 = vshrl.u32 %v7544_v33, 16 }
  0x53   : > { %v2009_v5 = vrot.slane %v2007_v10, 1 }
  0x54   : > { %6546 = vmatmul.mubr.bf16.gmra.mxu0 %v648_v31  ;;  %v7609_v31 = vld [vmem:[%s7296_s28 + $0x50] sm:$0xff]  }
  0x55   : > { %6598 = vmatmul.mubr.bf16.gmra.mxu1 %v7421_v23  ;;  %6549 = vmatprep.mubr.bf16.mxu0 %v656_v35  ;;  %v7558_v23 = vld [vmem:[%s7296_s28 + $0x18] sm:$0xff]   ;;  %v696_v35 = vsel %vm548_vm0, %v691_v57, %v695_v50  ;;  %v7634_v50 = vsel %vm1204_vm1, %v1238_v21, %v1240_v20  ;;  %v2036_v21 = vshll.u32 %v7563_v56, 16 }
  0x56   : > { %6601 = vmatprep.mubr.bf16.mxu1 %v7432_v30  ;;  %v7570_v30 = vsel %vm1204_vm1, %v1228_v41, %v1230_v54  ;;  %v1671_v8 = vrot.slane %v7558_v23, 1  ;;  %v2010_v54 = vshll.u32 %v5692_v51, 16  ;;  %v2024_v57 = vshrl.u32 %v7558_v23, 16 }
  0x58   : > { %v7617_v7 = vsel %vm1204_vm1, %v1669_v55, %v1671_v8  ;;  %v7621_v41 = vsel %vm1204_vm1, %v1671_v8, %v1673_v37  ;;  %v2012_v51 = vrot.slane %v2010_v54, 2  ;;  %v2017_v8 = vrot.slane %v2015_v59, 1 }
  0x59   : > { %v2038_v59 = vrot.slane %v2036_v21, 2  ;;  %v2069_v21 = vshrl.u32 %v7589_v18, 16 }
  0x5a   : > { %v2013_v14 = vor.u32 %v2012_v51, %v2009_v5  ;;  %v2045_v5 = vshll.u32 %v7567_v58, 16  ;;  %v2484_v51 = vrot.slane %v7567_v58, 2 }
  0x5c   : > { %6550 = vmatmul.mubr.bf16.gmra.mxu0 %v664_v12 }
  0x5d   : > { %6602 = vmatmul.mubr.bf16.gmra.mxu1 %v7451_v43  ;;  %6553 = vmatprep.mubr.bf16.mxu0 %v672_v61  ;;  %v1679_v43 = vrot.slane %v7578_v52, 1  ;;  %v2018_v61 = vshll.u32 %v7544_v33, 16  ;;  %v2482_v33 = vrot.slane %v7563_v56, 2 }
  0x5e   : > { %6605 = vmatprep.mubr.bf16.mxu1 %v7454_v44  ;;  %v9295_v44 = vrot.slane %v7589_v18, 1 }
  0x5f   : > { %v7630_v47 = vsel %vm1204_vm1, %v1677_v25, %v1679_v43  ;;  %v2020_v37 = vrot.slane %v2018_v61, 2  ;;  %v2027_v25 = vshll.u32 %v7558_v23, 16 }
  0x60   : > { %v7640_v55 = vsel %vm1204_vm1, %v1679_v43, %v9295_v44  ;;  %v2480_v43 = vrot.slane %v7558_v23, 2 }
  0x61   : > { %v2021_v26 = vor.u32 %v2020_v37, %v2017_v8  ;;  %v2054_v8 = vshll.u32 %v7575_v15, 16 }
  0x62   : > { %v7662_v10 = vsel %vm2476_vm3, %v2478_v13, %v2480_v43  ;;  %v7665_v61 = vsel %vm2476_vm3, %v2480_v43, %v2482_v33 }
  0x63   : > { %v7659_v20 = vsel %vm2005_vm2, %v2013_v14, %v2021_v26  ;;  %v2486_v14 = vrot.slane %v7575_v15, 2 }
  0x64   : > { %6554 = vmatmul.mubr.bf16.gmra.mxu0 %v680_v28  ;;  %v2026_v28 = vrot.slane %v2024_v57, 1 }
  0x65   : > { %6606 = vmatmul.mubr.bf16.gmra.mxu1 %v7471_v60  ;;  %6557 = vmatprep.mubr.bf16.mxu0 %v688_v29  ;;  %v5760_v60 = vcombine.low %v2455_v1, %v7536_v36  ;;  %v2029_v29 = vrot.slane %v2027_v25, 2  ;;  %v2042_v1 = vshrl.u32 %v7567_v58, 16  ;;  %v2056_v58 = vrot.slane %v2054_v8, 2 }
  0x66   : > { %6609 = vmatprep.mubr.bf16.mxu1 %v7499_v9  ;;  %v2033_v9 = vshrl.u32 %v7563_v56, 16  ;;  %v7685_v25 = vsel %vm2476_vm3, %v2484_v51, %v2486_v14 }
  0x67   : > { %v2477_v16 = vrot.slane %v5760_v60, 2  ;;  %v2030_v23 = vor.u32 %v2029_v29, %v2026_v28  ;;  %v2051_v60 = vshrl.u32 %v7575_v15, 16  ;;  %v2044_v37 = vrot.slane %v2042_v1, 1  ;;  %v7101_v15 = vld [vmem:[%s9289_s2 + $0x130] sm:$0xff]  }
  0x68   : > { %v2035_v54 = vrot.slane %v2033_v9, 1  ;;  %v2488_v9 = vrot.slane %v7578_v52, 2  ;;  %v2072_v28 = vshll.u32 %v7589_v18, 16  ;;  %v7102_v29 = vld [vmem:[%s9289_s2 + $0x170] sm:$0xff]  }
  0x69   : > { %v7655_v36 = vsel %vm2476_vm3, %v2477_v16, %v2478_v13  ;;  %v2047_v13 = vrot.slane %v2045_v5, 2  ;;  %v2071_v5 = vrot.slane %v2069_v21, 1  ;;  %v2494_v21 = vrot.slane %v7609_v31, 2 }
  0x6a   : > { %v2039_v56 = vor.u32 %v2038_v59, %v2035_v54 }
  0x6b   : > { %v2048_v57 = vor.u32 %v2047_v13, %v2044_v37  ;;  %v2078_v37 = vshrl.u32 %v7600_v24, 16  ;;  %v2081_v13 = vshll.u32 %v7600_v24, 16 }
  0x6c   : > { %6558 = vmatmul.mubr.bf16.gmra.mxu0 %v696_v35  ;;  %v7675_v35 = vsel %vm2005_vm2, %v2021_v26, %v2030_v23  ;;  %v7679_v16 = vsel %vm2005_vm2, %v2030_v23, %v2039_v56  ;;  %v2063_v26 = vshll.u32 %v7578_v52, 16  ;;  %v2490_v23 = vrot.slane %v7589_v18, 2 }
  0x6d   : > { %6610 = vmatmul.mubr.bf16.gmra.mxu1 %v7508_v46  ;;  %6629 = vmatprep.mubr.bf16.mxu0 %v7477_v62  ;;  %v7682_v62 = vsel %vm2476_vm3, %v2482_v33, %v2484_v51  ;;  %v2053_v46 = vrot.slane %v2051_v60, 1  ;;  %v7699_v33 = vsel %vm2005_vm2, %v2039_v56, %v2048_v57  ;;  %v2074_v51 = vrot.slane %v2072_v28, 2  ;;  %v7105_v56 = vld [vmem:[%s9289_s2 + $0x128] sm:$0xff]  }
  0x6e   : > { %6681 = vmatprep.mubr.bf16.mxu1 %v1670_v39  ;;  %v2060_v39 = vshrl.u32 %v7578_v52, 16  ;;  %v2065_v59 = vrot.slane %v2063_v26, 2  ;;  %v7706_v52 = vsel %vm2476_vm3, %v2486_v14, %v2488_v9  ;;  %v7713_v8 = vsel %vm2476_vm3, %v2488_v9, %v2490_v23  ;;  %v7723_v14 = vld [vmem:[%s7296_s28 + $0x58] sm:$0xff]  }
  0x6f   : > { %v2057_v43 = vor.u32 %v2056_v58, %v2053_v46  ;;  %v2075_v46 = vor.u32 %v2074_v51, %v2071_v5  ;;  %v2492_v58 = vrot.slane %v7600_v24, 2  ;;  %v2080_v26 = vrot.slane %v2078_v37, 1 }
  0x70   : > { %v2062_v54 = vrot.slane %v2060_v39, 1  ;;  %v2090_v39 = vshll.u32 %v7609_v31, 16  ;;  %v2083_v9 = vrot.slane %v2081_v13, 2  ;;  %v2096_v5 = vshrl.u32 %v7723_v14, 16 }
  0x71   : > { %v7703_v1 = vsel %vm2005_vm2, %v2048_v57, %v2057_v43  ;;  %v2087_v57 = vshrl.u32 %v7609_v31, 16  ;;  %v2099_v51 = vshll.u32 %v7723_v14, 16  ;;  %v2496_v37 = vrot.slane %v7723_v14, 2 }
  0x72   : > { %v2066_v60 = vor.u32 %v2065_v59, %v2062_v54  ;;  %v2092_v54 = vrot.slane %v2090_v39, 2  ;;  %v7745_v59 = vsel %vm2476_vm3, %v2492_v58, %v2494_v21 }
  0x73   : > { %9308 = vst [vmem:[#allocation3_spill] sm:$0xff] %v7745_v59 }
  0x74   : > { %6630 = vmatmul.mubr.bf16.vlgmr.msra.gmra.mxu0 %v7383_v63  ;;  %v7106_v63 = vld [vmem:[%s9289_s2 + $0x168] sm:$0xff]   ;;  %v7739_v28 = vsel %vm2005_vm2, %v2066_v60, %v2075_v46 }
  0x75   : > { %6682 = vmatmul.mubr.bf16.vlgmr.msra.gmra.mxu1 %v7617_v7  ;;  %6718 = vmatpush3.bf16.msra.mxu0 %v7482_v0  ;;  %v7731_v7 = vld [vmem:[%s7296_s28 + $0x60] sm:$0xff]   ;;  %v7734_v0 = vsel %vm2005_vm2, %v2057_v43, %v2066_v60  ;;  %v2084_v43 = vor.u32 %v2083_v9, %v2080_v26  ;;  %v7753_v60 = vld [vmem:[%s7296_s28 + $0x68] sm:$0xff]   ;;  %v2101_v26 = vrot.slane %v2099_v51, 2 }
  0x76   : > { %6770 = vmatpush3.bf16.msra.mxu1 %v7488_v3  ;;  %6633 = vmatprep.mubr.bf16.mxu0 %v7411_v17  ;;  %v7742_v3 = vsel %vm2476_vm3, %v2490_v23, %v2492_v58  ;;  %v2089_v17 = vrot.slane %v2087_v57, 1  ;;  %v2105_v13 = vshrl.u32 %v7731_v7, 16  ;;  %v2108_v57 = vshll.u32 %v7731_v7, 16  ;;  %v7759_v58 = vld [vmem:[%s7296_s28 + $0x70] sm:$0xff]  }
  0x77   : > { %6685 = vmatprep.mubr.bf16.mxu1 %v7621_v41  ;;  %6719 = vmatprep.subr.bf16.mxu0 %v7101_v15  ;;  %9307 = vst [vmem:[#allocation2_spill] sm:$0xff] %v7742_v3  ;;  %v7109_v41 = vld [vmem:[%s9289_s2 + $0x120] sm:$0xff]   ;;  %v7762_v39 = vsel %vm2005_vm2, %v2075_v46, %v2084_v43  ;;  %v2498_v9 = vrot.slane %v7731_v7, 2  ;;  %v2114_v44 = vshrl.u32 %v7753_v60, 16  ;;  %v2502_v49 = vrot.slane %v7759_v58, 2 }
  0x78   : > { %6771 = vmatprep.subr.bf16.mxu1 %v7102_v29  ;;  %v2093_v23 = vor.u32 %v2092_v54, %v2089_v17  ;;  %v7769_v54 = vsel %vm2476_vm3, %v2494_v21, %v2496_v37  ;;  %v2107_v12 = vrot.slane %v2105_v13, 1  ;;  %v7110_v46 = vld [vmem:[%s9289_s2 + $0x160] sm:$0xff]   ;;  %v2123_v13 = vshrl.u32 %v7759_v58, 16 }
  0x79   : > { %6720 = vmatpush3.bf16.msra.mxu0 %v7101_v15  ;;  %v2098_v15 = vrot.slane %v2096_v5, 1  ;;  %9310 = vst [vmem:[#allocation5_spill] sm:$0xff] %v7769_v54  ;;  %v7776_v51 = vsel %vm2476_vm3, %v2496_v37, %v2498_v9  ;;  %v7787_v37 = vld [vmem:[%s7296_s28 + $0x78] sm:$0xff]  }
  0x7a   : > { %6772 = vmatpush3.bf16.msra.mxu1 %v7102_v29  ;;  %6721 = vmatprep.subr.bf16.mxu0 %v7105_v56  ;;  %v7766_v17 = vsel %vm2005_vm2, %v2084_v43, %v2093_v23  ;;  %v2110_v29 = vrot.slane %v2108_v57, 2  ;;  %9311 = vst [vmem:[#allocation6_spill] sm:$0xff] %v7776_v51  ;;  %v2117_v43 = vshll.u32 %v7753_v60, 16  ;;  %v2126_v57 = vshll.u32 %v7759_v58, 16 }
  0x7b   : > { %6773 = vmatprep.subr.bf16.mxu1 %v7106_v63  ;;  %9309 = vst [vmem:[#allocation4_spill] sm:$0xff] %v7766_v17  ;;  %v2102_v5 = vor.u32 %v2101_v26, %v2098_v15  ;;  %v2116_v26 = vrot.slane %v2114_v44, 1  ;;  %v2132_v51 = vshrl.u32 %v7787_v37, 16 }
  0x7c   : > { %6634 = vmatmul.mubr.bf16.gmra.mxu0 %v7446_v40  ;;  %v2111_v21 = vor.u32 %v2110_v29, %v2107_v12  ;;  %v2500_v40 = vrot.slane %v7753_v60, 2  ;;  %v7797_v12 = vld [vmem:[%s7296_s28 + $0x80] sm:$0xff]   ;;  %v2128_v44 = vrot.slane %v2126_v57, 2 }
  0x7d   : > { %6686 = vmatmul.mubr.bf16.gmra.mxu1 %v7624_v42  ;;  %6637 = vmatprep.mubr.bf16.mxu0 %v7494_v6  ;;  %v7790_v15 = vsel %vm2005_vm2, %v2093_v23, %v2102_v5  ;;  %v2119_v42 = vrot.slane %v2117_v43, 2  ;;  %v7113_v6 = vld [vmem:[%s9289_s2 + $0x118] sm:$0xff]   ;;  %v2125_v23 = vrot.slane %v2123_v13, 1  ;;  %v7817_v13 = vld [vmem:[%s7296_s28 + $0x88] sm:$0xff]   ;;  %v2134_v54 = vrot.slane %v2132_v51, 1 }
  0x7e   : > { %6689 = vmatprep.mubr.bf16.mxu1 %v7627_v45  ;;  %6722 = vmatpush3.bf16.msra.mxu0 %v7105_v56  ;;  %9312 = vst [vmem:[#allocation7_spill] sm:$0xff] %v7790_v15  ;;  %v7800_v45 = vsel %vm2005_vm2, %v2102_v5, %v2111_v21  ;;  %v7803_v56 = vsel %vm2476_vm3, %v2498_v9, %v2500_v40  ;;  %v2135_v5 = vshll.u32 %v7787_v37, 16  ;;  %v7117_v9 = vld [vmem:[%s9289_s2 + $0x110] sm:$0xff]   ;;  %v2150_v51 = vshrl.u32 %v7817_v13, 16 }
  0x7f   : > { %6774 = vmatpush3.bf16.msra.mxu1 %v7106_v63  ;;  %6723 = vmatprep.subr.bf16.mxu0 %v7109_v41  ;;  %9313 = vst [vmem:[#allocation8_spill] sm:$0xff] %v7800_v45  ;;  %9314 = vst [vmem:[#allocation9_spill] sm:$0xff] %v7803_v56  ;;  %v7115_v63 = vld [vmem:[%s9289_s2 + $0x158] sm:$0xff]   ;;  %v2120_v29 = vor.u32 %v2119_v42, %v2116_v26  ;;  %v7809_v43 = vsel %vm2476_vm3, %v2500_v40, %v2502_v49  ;;  %v2504_v56 = vrot.slane %v7787_v37, 2  ;;  %v7120_v40 = vld [vmem:[%s9289_s2 + $0x150] sm:$0xff]  }
  0x80   : > { %6775 = vmatprep.subr.bf16.mxu1 %v7110_v46  ;;  %9315 = vst [vmem:[#allocation10_spill] sm:$0xff] %v7809_v43  ;;  %v2129_v57 = vor.u32 %v2128_v44, %v2125_v23  ;;  %v2141_v45 = vshrl.u32 %v7797_v12, 16  ;;  %v2144_v26 = vshll.u32 %v7797_v12, 16  ;;  %v7826_v42 = vld [vmem:[%s7296_s28 + $0x90] sm:$0xff]   ;;  %v2137_v15 = vrot.slane %v2135_v5, 2  ;;  %v7124_v5 = vld [vmem:[%s9289_s2 + $0x148] sm:$0xff]  }
  0x81   : > { %v7829_v43 = vsel %vm2005_vm2, %v2111_v21, %v2120_v29  ;;  %v2506_v23 = vrot.slane %v7797_v12, 2 }
  0x82   : > { %6724 = vmatpush3.bf16.msra.mxu0 %v7109_v41  ;;  %v7833_v44 = vsel %vm2005_vm2, %v2120_v29, %v2129_v57  ;;  %v7836_v41 = vsel %vm2476_vm3, %v2502_v49, %v2504_v56  ;;  %v2143_v59 = vrot.slane %v2141_v45, 1  ;;  %v2146_v17 = vrot.slane %v2144_v26, 2 }
  0x83   : > { %6776 = vmatpush3.bf16.msra.mxu1 %v7110_v46  ;;  %6725 = vmatprep.subr.bf16.mxu0 %v7113_v6  ;;  %v2138_v3 = vor.u32 %v2137_v15, %v2134_v54  ;;  %v7840_v21 = vsel %vm2476_vm3, %v2504_v56, %v2506_v23  ;;  %v2153_v46 = vshll.u32 %v7817_v13, 16  ;;  %v2508_v49 = vrot.slane %v7817_v13, 2  ;;  %v7121_v54 = vld [vmem:[%s9289_s2 + $0x108] sm:$0xff]  }
  0x84   : > { %6638 = vmatmul.mubr.bf16.gmra.mxu0 %v7505_v11  ;;  %6777 = vmatprep.subr.bf16.mxu1 %v7115_v63  ;;  %v2147_v29 = vor.u32 %v2146_v17, %v2143_v59  ;;  %v2159_v45 = vshrl.u32 %v7826_v42, 16  ;;  %v2162_v11 = vshll.u32 %v7826_v42, 16 }
  0x85   : > { %6690 = vmatmul.mubr.bf16.gmra.mxu1 %v7630_v47  ;;  %6641 = vmatprep.mubr.bf16.mxu0 %v7518_v22  ;;  %v7854_v15 = vsel %vm2005_vm2, %v2129_v57, %v2138_v3  ;;  %v2152_v47 = vrot.slane %v2150_v51, 1  ;;  %v2155_v56 = vrot.slane %v2153_v46, 2  ;;  %v2510_v22 = vrot.slane %v7826_v42, 2 }
  0x86   : > { %6693 = vmatprep.mubr.bf16.mxu1 %v7640_v55  ;;  %6726 = vmatpush3.bf16.msra.mxu0 %v7113_v6  ;;  %v7858_v59 = vsel %vm2005_vm2, %v2138_v3, %v2147_v29  ;;  %v7861_v17 = vsel %vm2476_vm3, %v2506_v23, %v2508_v49  ;;  %v2161_v55 = vrot.slane %v2159_v45, 1  ;;  %v2164_v6 = vrot.slane %v2162_v11, 2 }
  0x87   : > { %6778 = vmatpush3.bf16.msra.mxu1 %v7115_v63  ;;  %6727 = vmatprep.subr.bf16.mxu0 %v7117_v9  ;;  %v2156_v57 = vor.u32 %v2155_v56, %v2152_v47  ;;  %v7869_v26 = vsel %vm2476_vm3, %v2508_v49, %v2510_v22  ;;  %v9316_v3 = vrot.slane %v7600_v24, 1  ;;  %v9317_v23 = vrot.slane %v7589_v18, 1  ;;  %v7126_v49 = vld [vmem:[%s9289_s2 + $0x100] sm:$0xff]  }
  0x88   : > { %6779 = vmatprep.subr.bf16.mxu1 %v7120_v40  ;;  %v7871_v63 = vor.u32 %v2164_v6, %v2161_v55  ;;  %v9318_v45 = vrot.slane %v7609_v31, 1  ;;  %v1687_v24 = vrot.slane %v7723_v14, 1 }
  0x89   : > { %v1684_v51 = vsel %vm1204_vm1, %v9317_v23, %v9316_v3  ;;  %v7879_v46 = vsel %vm2005_vm2, %v2147_v29, %v2156_v57  ;;  %v9319_v11 = vmov %v9316_v3  ;;  %v7131_v29 = vld [vmem:[%s9289_s2 + $0x1f8] sm:$0xff]   ;;  %v7140_v3 = vld [vmem:[%s9289_s2 + $0x190] sm:$0xff]  }
  0x8a   : > { %6728 = vmatpush3.bf16.msra.mxu0 %v7117_v9  ;;  %v1686_v47 = vsel %vm1204_vm1, %v9319_v11, %v9318_v45  ;;  %v7891_v18 = vsel %vm2005_vm2, %v2156_v57, %v7871_v63  ;;  %v7128_v9 = vld [vmem:[%s9289_s2 + $0x140] sm:$0xff]   ;;  %v9320_v56 = vmov %v9318_v45  ;;  %v7142_v11 = vld [vmem:[%s9289_s2 + $0x188] sm:$0xff]  }
  0x8b   : > { %6780 = vmatpush3.bf16.msra.mxu1 %v7120_v40  ;;  %6729 = vmatprep.subr.bf16.mxu0 %v7121_v54  ;;  %v1689_v40 = vrot.slane %v7731_v7, 1  ;;  %v1691_v7 = vrot.slane %v7753_v60, 1 }
  0x8c   : > { %6642 = vmatmul.mubr.bf16.gmra.mxu0 %v7523_v2  ;;  %6781 = vmatprep.subr.bf16.mxu1 %v7124_v5  ;;  %v7130_v2 = vld [vmem:[%s9289_s2 + $0x1b8] sm:$0xff]  }
  0x8d   : > { %6694 = vmatmul.mubr.bf16.gmra.mxu1 %v1684_v51  ;;  %6645 = vmatprep.mubr.bf16.mxu0 %v7532_v34  ;;  %v1688_v34 = vsel %vm1204_vm1, %v9320_v56, %v1687_v24  ;;  %v1690_v14 = vsel %vm1204_vm1, %v1687_v24, %v1689_v40  ;;  %v1692_v31 = vsel %vm1204_vm1, %v1689_v40, %v1691_v7  ;;  %v7141_v51 = vld [vmem:[%s9289_s2 + $0x1d0] sm:$0xff]   ;;  %v7146_v24 = vld [vmem:[%s9289_s2 + $0x1c0] sm:$0xff]   ;;  %v9323_v56 = vld [vmem:[#allocation3_spill] sm:$0xff] }
  0x8e   : > { %6697 = vmatprep.mubr.bf16.mxu1 %v1686_v47  ;;  %6730 = vmatpush3.bf16.msra.mxu0 %v7121_v54  ;;  %v1693_v54 = vrot.slane %v7759_v58, 1  ;;  %v1701_v58 = vrot.slane %v7826_v42, 1  ;;  %v315_v47 = vld [vmem:[%s9288_s1 + $0x10] sm:$0xff]  ;;  %v9321_v40 = vld [vmem:[#allocation2_spill] sm:$0xff] }
  0x8f   : > { %6782 = vmatpush3.bf16.msra.mxu1 %v7124_v5  ;;  %6731 = vmatprep.subr.bf16.mxu0 %v7126_v49  ;;  %vm351_vm6 = vcmp.gt.f32.partialorder %v315_v47, 0.0  ;;  %v335_v42 = vld [vmem:[%s9288_s1 + $0xb0] sm:$0xff] }
  0x90   : > { %6783 = vmatprep.subr.bf16.mxu1 %v7128_v9  ;;  %v1694_v55 = vsel %vm1204_vm1, %v1691_v7, %v1693_v54  ;;  %v8037_v7 = vld [vmem:[%s9289_s2 + $0x238] sm:$0xff]  }
  0x92   : > { %6732 = vmatpush3.bf16.msra.mxu0 %v7126_v49  ;;  %v314_v49 = vld [vmem:[%s9288_s1 + $0x8] sm:$0xff] }
  0x93   : > { %6784 = vmatpush3.bf16.msra.mxu1 %v7128_v9  ;;  %6821 = vmatprep.subr.bf16.mxu0 %v7130_v2  ;;  %v7144_v9 = vld [vmem:[%s9289_s2 + $0x180] sm:$0xff]   ;;  %vm350_vm7 = vcmp.gt.f32.partialorder %v314_v49, 0.0  ;;  %v328_v49 = vld [vmem:[%s9288_s1 + $0x78] sm:$0xff] }
  0x94   : > { %6646 = vmatmul.mubr.bf16.gmra.mxu0 %v7539_v38  ;;  %6873 = vmatprep.subr.bf16.mxu1 %v7131_v29  ;;  %v1695_v38 = vrot.slane %v7787_v37, 1 }
  0x95   : > { %6698 = vmatmul.mubr.bf16.gmra.mxu1 %v1688_v34  ;;  %6649 = vmatprep.mubr.bf16.mxu0 %v7550_v48  ;;  %v1697_v48 = vrot.slane %v7797_v12, 1 }
  0x96   : > { %6701 = vmatprep.mubr.bf16.mxu1 %v1690_v14  ;;  %v1696_v6 = vsel %vm1204_vm1, %v1693_v54, %v1695_v38  ;;  %v317_v14 = vld [vmem:[%s9288_s1 + $0x20] sm:$0xff]  ;;  %v8042_v54 = vld [vmem:[%s9290_s3 + $0x38] sm:$0xff]  }
  0x97   : > { %v1698_v60 = vsel %vm1204_vm1, %v1695_v38, %v1697_v48  ;;  %vm353_vm9 = vcmp.gt.f32.partialorder %v317_v14, 0.0 }
  0x9c   : > { %6650 = vmatmul.mubr.bf16.gmra.mxu0 %v7555_v53  ;;  %v1699_v53 = vrot.slane %v7817_v13, 1 }
  0x9d   : > { %6702 = vmatmul.mubr.bf16.gmra.mxu1 %v1692_v31  ;;  %6653 = vmatprep.mubr.bf16.mxu0 %v7570_v30  ;;  %v7127_v30 = vld [vmem:[%s7296_s28 + $0x98] ss:$0 sps:$4 sm:$0x11]   ;;  %v318_v31 = vld [vmem:[%s9288_s1 + $0x28] sm:$0xff] }
  0x9e   : > { %6705 = vmatprep.mubr.bf16.mxu1 %v1694_v55  ;;  %v1700_v5 = vsel %vm1204_vm1, %v1697_v48, %v1699_v53  ;;  %v1702_v37 = vsel %vm1204_vm1, %v1699_v53, %v1701_v58  ;;  %v319_v55 = vld [vmem:[%s9288_s1 + $0x30] sm:$0xff]  ;;  %v9324_v48 = vld [vmem:[#allocation7_spill] sm:$0xff]  ;;  %vm354_vm10 = vcmp.gt.f32.partialorder %v318_v31, 0.0 }
  0x9f   : > { %v9326_v53 = vld [vmem:[#allocation8_spill] sm:$0xff]  ;;  %vm355_vm11 = vcmp.gt.f32.partialorder %v319_v55, 0.0 }
  0xa4   : > { %6654 = vmatmul.mubr.bf16.gmra.mxu0 %v7581_v4  ;;  %v1703_v4 = vrot.slane %v7127_v30, 1  ;;  %v320_v30 = vld [vmem:[%s9288_s1 + $0x38] sm:$0xff] }
  0xa5   : > { %6706 = vmatmul.mubr.bf16.gmra.mxu1 %v1696_v6  ;;  %6657 = vmatprep.mubr.bf16.mxu0 %v7592_v19  ;;  %v7132_v19 = vld [vmem:[%s9289_s2 + $0x1b0] sm:$0xff]   ;;  %vm356_vm12 = vcmp.gt.f32.partialorder %v320_v30, 0.0 }
  0xa6   : > { %6709 = vmatprep.mubr.bf16.mxu1 %v1698_v60  ;;  %v1704_v12 = vsel %vm1204_vm1, %v1701_v58, %v1703_v4  ;;  %v9325_v60 = vld [vmem:[#allocation5_spill] sm:$0xff]  ;;  %v9327_v58 = vld [vmem:[#allocation6_spill] sm:$0xff] }
  0xac   : > { %6658 = vmatmul.mubr.bf16.gmra.mxu0 %v7603_v27  ;;  %v7133_v27 = vld [vmem:[%s9289_s2 + $0x1f0] sm:$0xff]  }
  0xad   : > { %6710 = vmatmul.mubr.bf16.gmra.mxu1 %v1700_v5  ;;  %6661 = vmatprep.mubr.bf16.mxu0 %v7612_v32  ;;  %v7134_v32 = vld [vmem:[%s9289_s2 + $0x1a8] sm:$0xff]   ;;  %v321_v5 = vld [vmem:[%s9288_s1 + $0x40] sm:$0xff] }
  0xae   : > { %6713 = vmatprep.mubr.bf16.mxu1 %v1702_v37  ;;  %vm357_vm13 = vcmp.gt.f32.partialorder %v321_v5, 0.0  ;;  %v8134_v5 = vld [vmem:[%s7296_s28 + $0x28] sm:$0xff]  }
  0xb4   : > { %6662 = vmatmul.mubr.bf16.gmra.mxu0 %v7634_v50  ;;  %v7135_v50 = vld [vmem:[%s9289_s2 + $0x1e8] sm:$0xff]  }
  0xb5   : > { %6714 = vmatmul.mubr.bf16.gmra.mxu1 %v1704_v12  ;;  %6733 = vmatprep.mubr.bf16.mxu0 %v7659_v20  ;;  %v7137_v20 = vld [vmem:[%s9289_s2 + $0x1e0] sm:$0xff]   ;;  %v322_v12 = vld [vmem:[%s9288_s1 + $0x48] sm:$0xff] }
  0xb6   : > { %6785 = vmatprep.mubr.bf16.mxu1 %v7655_v36  ;;  %v7136_v36 = vld [vmem:[%s9289_s2 + $0x1a0] sm:$0xff]   ;;  %vm358_vm14 = vcmp.gt.f32.partialorder %v322_v12, 0.0 }
  0xbc   : > { %6734 = vmatmul.mubr.bf16.vlgmr.msra.gmra.mxu0 %v7675_v35  ;;  %v7138_v35 = vld [vmem:[%s9289_s2 + $0x198] sm:$0xff]  }
  0xbd   : > { %6786 = vmatmul.mubr.bf16.vlgmr.msra.gmra.mxu1 %v7662_v10  ;;  %6822 = vmatpush3.bf16.msra.mxu0 %v7130_v2  ;;  %v7962_v10 = vld [vmem:[%s7296_s28 + $0x14] sm:$0xf] }
  0xbe   : > { %6874 = vmatpush3.bf16.msra.mxu1 %v7131_v29  ;;  %6737 = vmatprep.mubr.bf16.mxu0 %v7679_v16  ;;  %v7969_v16 = vld [vmem:[%s7296_s28 + $0x18] sm:$0xff]   ;;  %v9322_v2 = vld [vmem:[#allocation4_spill] sm:$0xff] }
  0xbf   : > { %6789 = vmatprep.mubr.bf16.mxu1 %v7665_v61  ;;  %6823 = vmatprep.subr.bf16.mxu0 %v7132_v19  ;;  %v3727_v61 = vld [vmem:[%s7296_s28 + $0x10] sm:$0x8]  ;;  %v3750_v13 = vrot.slane %v7969_v16, 3 }
  0xc0   : > { %6875 = vmatprep.subr.bf16.mxu1 %v7133_v27 }
  0xc1   : > { %6824 = vmatpush3.bf16.msra.mxu0 %v7132_v19  ;;  %v323_v19 = vld [vmem:[%s9288_s1 + $0x50] sm:$0xff] }
  0xc2   : > { %6876 = vmatpush3.bf16.msra.mxu1 %v7133_v27  ;;  %6825 = vmatprep.subr.bf16.mxu0 %v7134_v32  ;;  %vm359_vm15 = vcmp.gt.f32.partialorder %v323_v19, 0.0 }
  0xc3   : > { %6877 = vmatprep.subr.bf16.mxu1 %v7135_v50 }
  0xc4   : > { %6738 = vmatmul.mubr.bf16.gmra.mxu0 %v7699_v33  ;;  %v5853_v33 = vcombine.low %v3727_v61, %v7962_v10  ;;  %v325_v61 = vld [vmem:[%s9288_s1 + $0x60] sm:$0xff] }
  0xc5   : > { %6790 = vmatmul.mubr.bf16.gmra.mxu1 %v7682_v62  ;;  %6741 = vmatprep.mubr.bf16.mxu0 %v7703_v1  ;;  %v7139_v62 = vld [vmem:[%s9289_s2 + $0x1d8] sm:$0xff]   ;;  %vm361_vm1 = vcmp.gt.f32.partialorder %v325_v61, 0.0 }
  0xc6   : > { %6793 = vmatprep.mubr.bf16.mxu1 %v7685_v25  ;;  %6826 = vmatpush3.bf16.msra.mxu0 %v7134_v32  ;;  %v7976_v25 = vld [vmem:[%s7296_s28 + $0x20] sm:$0xff]   ;;  %v3749_v1 = vrot.slane %v5853_v33, 3 }
  0xc7   : > { %6878 = vmatpush3.bf16.msra.mxu1 %v7135_v50  ;;  %6827 = vmatprep.subr.bf16.mxu0 %v7136_v36  ;;  %v9296_v57 = vrot.slane %v7976_v25, 3  ;;  %v9328_v50 = vld [vmem:[#allocation9_spill] sm:$0xff] }
  0xc8   : > { %6879 = vmatprep.subr.bf16.mxu1 %v7137_v20  ;;  %v7984_v23 = vsel %vm3748_vm4, %v3749_v1, %v3750_v13  ;;  %v326_v1 = vld [vmem:[%s9288_s1 + $0x68] sm:$0xff] }
  0xc9   : > { %v7993_v45 = vsel %vm3748_vm4, %v3750_v13, %v9296_v57  ;;  %v327_v13 = vld [vmem:[%s9288_s1 + $0x70] sm:$0xff]  ;;  %v8406_v57 = vld [vmem:[%s7296_s28 + $0x78] sm:$0xff]  }
  0xca   : > { %6828 = vmatpush3.bf16.msra.mxu0 %v7136_v36  ;;  %v9329_v36 = vld [vmem:[#allocation10_spill] sm:$0xff]  ;;  %9332 = vst [vmem:[#allocation3_spill] sm:$0xff] %v8406_v57 }
  0xcb   : > { %6880 = vmatpush3.bf16.msra.mxu1 %v7137_v20  ;;  %6829 = vmatprep.subr.bf16.mxu0 %v7138_v35  ;;  %v324_v20 = vld [vmem:[%s9288_s1 + $0x58] sm:$0xff] }
  0xcc   : > { %6742 = vmatmul.mubr.bf16.gmra.mxu0 %v7734_v0  ;;  %6881 = vmatprep.subr.bf16.mxu1 %v7139_v62  ;;  %v313_v0 = vld [vmem:[%s9288_s1] sm:$0xff]  ;;  %vm360_vm0 = vcmp.gt.f32.partialorder %v324_v20, 0.0 }
  0xcd   : > { %6794 = vmatmul.mubr.bf16.gmra.mxu1 %v7706_v52  ;;  %6745 = vmatprep.mubr.bf16.mxu0 %v7739_v28  ;;  %vm349_vm5 = vcmp.gt.f32.partialorder %v313_v0, 0.0  ;;  %v7143_v52 = vld [vmem:[%s9289_s2 + $0x1c8] sm:$0xff]   ;;  %v9299_v28 = vmov 0  }
  0xce   : > { %6797 = vmatprep.mubr.bf16.mxu1 %v7713_v8  ;;  %6830 = vmatpush3.bf16.msra.mxu0 %v7138_v35  ;;  %v4065_v8 = vsel %vm349_vm5, 1, %v9299_v28  ;;  %v4067_v29 = vsel %vm351_vm6, 1, %v9299_v28  ;;  %v4066_v34 = vsel %vm350_vm7, 1, %v9299_v28  ;;  %v4069_v6 = vsel %vm353_vm9, 1, %v9299_v28 }
  0xcf   : > { %6882 = vmatpush3.bf16.msra.mxu1 %v7139_v62  ;;  %6831 = vmatprep.subr.bf16.mxu0 %v7140_v3  ;;  %v4070_v37 = vsel %vm354_vm10, 1, %v9299_v28  ;;  %v4071_v4 = vsel %vm355_vm11, 1, %v9299_v28  ;;  %v4072_v27 = vsel %vm356_vm12, 1, %v9299_v28  ;;  %v4073_v32 = vsel %vm357_vm13, 1, %v9299_v28 }
  0xd0   : > { %6883 = vmatprep.subr.bf16.mxu1 %v7141_v51  ;;  %7040 = vset.pattern.permute.xlu0 %v9299_v28  ;;  %v4074_v35 = vsel %vm358_vm14, 1, %v9299_v28  ;;  %v4075_v33 = vsel %vm359_vm15, 1, %v9299_v28  ;;  %v4077_v0 = vsel %vm361_vm1, 1, %v9299_v28  ;;  %vm362_vm5 = vcmp.gt.f32.partialorder %v326_v1, 0.0 }
  0xd1   : > { %4102 = vperm.xlu0 %7040, %v4065_v8   ;;  %7041 = vset.pattern.permute.xlu1 %v9299_v28  ;;  %vm363_vm6 = vcmp.gt.f32.partialorder %v327_v13, 0.0  ;;  %vm364_vm7 = vcmp.gt.f32.partialorder %v328_v49, 0.0  ;;  %vm3277_vm10 = vsmask.f32 5376  ;;  %vm371_vm15 = vcmp.gt.f32.partialorder %v335_v42, 0.0 }
  0xd2   : > { %6832 = vmatpush3.bf16.msra.mxu0 %v7140_v3  ;;  %4108 = vperm.xlu1 %7041, %v4067_v29   ;;  %v4076_v3 = vsel %vm360_vm0, 1, %v9299_v28 }
  0xd3   : > { %6884 = vmatpush3.bf16.msra.mxu1 %v7141_v51  ;;  %6833 = vmatprep.subr.bf16.mxu0 %v7142_v11 }
  0xd4   : > { %6746 = vmatmul.mubr.bf16.gmra.mxu0 %v7762_v39  ;;  %6885 = vmatprep.subr.bf16.mxu1 %v7143_v52  ;;  %v316_v39 = vld [vmem:[%s9288_s1 + $0x18] sm:$0xff] }
  0xd5   : > { %6798 = vmatmul.mubr.bf16.gmra.mxu1 %v9321_v40  ;;  %6749 = vmatprep.mubr.bf16.mxu0 %v9322_v2  ;;  %vm352_vm8 = vcmp.gt.f32.partialorder %v316_v39, 0.0  ;;  %v3290_v40 = vshll.u32 %v7969_v16, 16 }
  0xd6   : > { %6801 = vmatprep.mubr.bf16.mxu1 %v9323_v56  ;;  %6834 = vmatpush3.bf16.msra.mxu0 %v7142_v11  ;;  %v4068_v38 = vsel %vm352_vm8, 1, %v9299_v28  ;;  %v4079_v56 = vsel %vm363_vm6, 1, %v9299_v28 }
  0xd7   : > { %6886 = vmatpush3.bf16.msra.mxu1 %v7143_v52  ;;  %6835 = vmatprep.subr.bf16.mxu0 %v7144_v9  ;;  %v3292_v30 = vrot.slane %v3290_v40, 3 }
  0xd8   : > { %6887 = vmatprep.subr.bf16.mxu1 %v7146_v24  ;;  %4105 = vperm.xlu0 %7040, %v4066_v34  }
  0xd9   : > { %4111 = vperm.xlu1 %7041, %v4068_v38  }
  0xda   : > { %6836 = vmatpush3.bf16.msra.mxu0 %v7144_v9 }
  0xdb   : > { %6888 = vmatpush3.bf16.msra.mxu1 %v7146_v24  ;;  %6925 = vmatprep.subr.bf16.mxu0 %v8037_v7  ;;  %v3287_v24 = vshrl.u32 %v7969_v16, 16 }
  0xdc   : > { %6750 = vmatmul.mubr.bf16.gmra.mxu0 %v9324_v48  ;;  %6977 = vmatprep.subr.bf16.mxu1 %v8042_v54  ;;  %v330_v48 = vld [vmem:[%s9288_s1 + $0x88] sm:$0xff] }
  0xdd   : > { %6802 = vmatmul.mubr.bf16.gmra.mxu1 %v9325_v60  ;;  %6753 = vmatprep.mubr.bf16.mxu0 %v9326_v53  ;;  %vm366_vm9 = vcmp.gt.f32.partialorder %v330_v48, 0.0 }
  0xde   : > { %6805 = vmatprep.mubr.bf16.mxu1 %v9327_v58  ;;  %4114 = vperm.xlu0 %7040, %v4069_v6   ;;  %v331_v6 = vld [vmem:[%s9288_s1 + $0x90] sm:$0xff]  ;;  %v3289_v58 = vrot.slane %v3287_v24, 2 }
  0xdf   : > { %4117 = vperm.xlu1 %7041, %v4070_v37   ;;  %v4080_v37 = vsel %vm364_vm7, 1, %v9299_v28  ;;  %vm367_vm11 = vcmp.gt.f32.partialorder %v331_v6, 0.0 }
  0xe0   : > { %v8159_v1 = vor.u32 %v3292_v30, %v3289_v58 }
  0xe2   : > { %4120 = vperm.xlu0 %7040, %v4071_v4  }
  0xe3   : > { %4123 = vperm.xlu1 %7041, %v4072_v27  }
  0xe4   : > { %6754 = vmatmul.mubr.bf16.gmra.mxu0 %v7829_v43  ;;  %v2793_v43 = vld [vmem:[%s7296_s28 + $0x10] sm:$0xc] }
  0xe5   : > { %6806 = vmatmul.mubr.bf16.gmra.mxu1 %v9328_v50  ;;  %6757 = vmatprep.mubr.bf16.mxu0 %v7833_v44  ;;  %v8088_v44 = vld [vmem:[%s7296_s28 + $0x98] ss:$0 sps:$4 sm:$0x33]   ;;  %v8091_v62 = vcombine.low %v2793_v43, %v7962_v10  ;;  %v3296_v43 = vshrl.u32 %v7976_v25, 16 }
  0xe6   : > { %6809 = vmatprep.mubr.bf16.mxu1 %v9329_v36  ;;  %4126 = vperm.xlu0 %7040, %v4073_v32   ;;  %v2168_v11 = vshrl.u32 %v8088_v44, 16  ;;  %v2171_v52 = vshll.u32 %v8088_v44, 16  ;;  %v2512_v19 = vrot.slane %v8088_v44, 2  ;;  %v2941_v36 = vrot.slane %v7969_v16, 2  ;;  %v7154_v16 = vld [vmem:[%s9289_s2 + $0x230] sm:$0xff]  }
  0xe7   : > { %4129 = vperm.xlu1 %7041, %v4074_v35   ;;  %v3282_v9 = vshll.u32 %v8091_v62, 16  ;;  %v3299_v35 = vshll.u32 %v7976_v25, 16 }
  0xe8   : > { %v2170_v39 = vrot.slane %v2168_v11, 1  ;;  %v2173_v14 = vrot.slane %v2171_v52, 2  ;;  %v2513_v52 = vsel %vm2476_vm3, %v2510_v22, %v2512_v19 }
  0xe9   : > { %v3284_v53 = vrot.slane %v3282_v9, 3  ;;  %v3301_v9 = vrot.slane %v3299_v35, 3  ;;  %v337_v35 = vld [vmem:[%s9288_s1 + $0xc0] sm:$0xff] }
  0xea   : > { %4132 = vperm.xlu0 %7040, %v4075_v33   ;;  %v2174_v50 = vor.u32 %v2173_v14, %v2170_v39  ;;  %vm373_vm1 = vcmp.gt.f32.partialorder %v337_v35, 0.0  ;;  %v8287_v35 = vld [vmem:[%s7296_s28 + $0x50] sm:$0xff]  }
  0xeb   : > { %4135 = vperm.xlu1 %7041, %v4076_v3  }
  0xec   : > { %v6527_v51 = vpop.f32.mrf.mxu0  ;;  %6758 = vmatmul.mubr.bf16.gmra.mxu0 %v7854_v15  ;;  %v3279_v15 = vshrl.u32 %v8091_v62, 16  ;;  %v2175_v11 = vsel %vm2005_vm2, %v7871_v63, %v2174_v50  ;;  %v334_v63 = vld [vmem:[%s9288_s1 + $0xa8] sm:$0xff] }
  0xed   : > { %v6579_v10 = vpop.f32.mrf.mxu1  ;;  %6810 = vmatmul.mubr.bf16.gmra.mxu1 %v7836_v41  ;;  %6761 = vmatprep.mubr.bf16.mxu0 %v7858_v59  ;;  %v329_v41 = vld [vmem:[%s9288_s1 + $0x80] sm:$0xff]  ;;  %vm370_vm14 = vcmp.gt.f32.partialorder %v334_v63, 0.0  ;;  %v7155_v63 = vld [vmem:[%s9290_s3 + $0x30] sm:$0xff]  }
  0xee   : > { %v8106_v8 = vadd.f32 %v6579_v10, %v6527_v51  ;;  %v797_v47 = vpop.f32.mrf.mxu0  ;;  %6813 = vmatprep.mubr.bf16.mxu1 %v7840_v21  ;;  %4138 = vperm.xlu0 %7040, %v4077_v0   ;;  %v4078_v21 = vsel %vm362_vm5, 1, %v9299_v28  ;;  %vm365_vm8 = vcmp.gt.f32.partialorder %v329_v41, 0.0  ;;  %v3281_v38 = vrot.slane %v3279_v15, 2 }
  0xef   : > { %v1040_v59 = vpop.f32.mrf.mxu1  ;;  %4141 = vperm.xlu1 %7041, %v4078_v21   ;;  %v4081_v27 = vsel %vm365_vm8, 1, %v9299_v28  ;;  %v3308_v51 = vshll.u32 %v8134_v5, 16  ;;  %v4083_v0 = vsel %vm367_vm11, 1, %v9299_v28  ;;  %v8191_v21 = vld [vmem:[%s7296_s28 + $0x38] sm:$0xff]  }
  0xf0   : > { %v8121_v2 = vadd.f32 %v1040_v59, %v797_v47  ;;  %v6528_v29 = vpop.f32.mrf.mxu0  ;;  %v3285_v44 = vor.u32 %v3284_v53, %v3281_v38  ;;  %v8175_v47 = vld [vmem:[%s7296_s28 + $0x30] sm:$0xff]   ;;  %v3298_v59 = vrot.slane %v3296_v43, 2  ;;  %v2943_v38 = vrot.slane %v7976_v25, 2 }
  0xf1   : > { %v6580_v34 = vpop.f32.mrf.mxu1  ;;  %v3310_v39 = vrot.slane %v3308_v51, 3  ;;  %v3314_v48 = vshrl.u32 %v8175_v47, 16  ;;  %v3317_v6 = vshll.u32 %v8175_v47, 16  ;;  %v3326_v19 = vshll.u32 %v8191_v21, 16 }
  0xf2   : > { %v8125_v31 = vadd.f32 %v6580_v34, %v6528_v29  ;;  %v800_v55 = vpop.f32.mrf.mxu0  ;;  %4144 = vperm.xlu0 %7040, %v4079_v56   ;;  %v3294_v24 = vsel %vm3277_vm10, %v3285_v44, %v8159_v1  ;;  %v3302_v58 = vor.u32 %v3301_v9, %v3298_v59  ;;  %v4087_v43 = vsel %vm371_vm15, 1, %v9299_v28 }
  0xf3   : > { %v1043_v60 = vpop.f32.mrf.mxu1  ;;  %4147 = vperm.xlu1 %7041, %v4080_v37   ;;  %v2945_v37 = vrot.slane %v8134_v5, 2  ;;  %v3319_v44 = vrot.slane %v3317_v6, 3  ;;  %v2947_v9 = vrot.slane %v8175_v47, 2 }
  0xf4   : > { %v8138_v4 = vadd.f32 %v1043_v60, %v800_v55  ;;  %v6531_v12 = vpop.f32.mrf.mxu0  ;;  %6762 = vmatmul.mubr.bf16.gmra.mxu0 %v7879_v46  ;;  %v2940_v46 = vrot.slane %v8091_v62, 2  ;;  %v4082_v62 = vsel %vm366_vm9, 1, %v9299_v28  ;;  %v3303_v51 = vsel %vm3277_vm10, %v8159_v1, %v3302_v58  ;;  %v338_v1 = vld [vmem:[%s9288_s1 + $0xc8] sm:$0xff] }
  0xf5   : > { %v6583_v32 = vpop.f32.mrf.mxu1  ;;  %6814 = vmatmul.mubr.bf16.gmra.mxu1 %v7861_v17  ;;  %6765 = vmatprep.mubr.bf16.mxu0 %v7891_v18  ;;  %v332_v17 = vld [vmem:[%s9288_s1 + $0x98] sm:$0xff]  ;;  %v333_v18 = vld [vmem:[%s9288_s1 + $0xa0] sm:$0xff]  ;;  %vm374_vm5 = vcmp.gt.f32.partialorder %v338_v1, 0.0 }
  0xf6   : > { %v8147_v20 = vadd.f32 %v6583_v32, %v6531_v12  ;;  %v813_v61 = vpop.f32.mrf.mxu0  ;;  %6817 = vmatprep.mubr.bf16.mxu1 %v7869_v26  ;;  %v3305_v26 = vshrl.u32 %v8134_v5, 16  ;;  %4150 = vperm.xlu0 %7040, %v4081_v27   ;;  %vm368_vm12 = vcmp.gt.f32.partialorder %v332_v17, 0.0  ;;  %vm369_vm13 = vcmp.gt.f32.partialorder %v333_v18, 0.0  ;;  %v336_v32 = vld [vmem:[%s9288_s1 + $0xb8] sm:$0xff]  ;;  %v7163_v1 = vld [vmem:[%s9290_s3 + $0x20] sm:$0xff]  }
  0xf7   : > { %v1056_v33 = vpop.f32.mrf.mxu1  ;;  %v2942_v41 = vsel %vm2476_vm3, %v2940_v46, %v2941_v36  ;;  %4153 = vperm.xlu1 %7041, %v4082_v62   ;;  %v4084_v29 = vsel %vm368_vm12, 1, %v9299_v28  ;;  %v4085_v14 = vsel %vm369_vm13, 1, %v9299_v28  ;;  %v3323_v12 = vshrl.u32 %v8191_v21, 16 }
  0xf8   : > { %v8164_v13 = vadd.f32 %v1056_v33, %v813_v61  ;;  %v6532_v3 = vpop.f32.mrf.mxu0  ;;  %v3307_v40 = vrot.slane %v3305_v26, 2  ;;  %v4086_v27 = vsel %vm370_vm14, 1, %v9299_v28  ;;  %v2944_v18 = vsel %vm2476_vm3, %v2941_v36, %v2943_v38  ;;  %v8225_v26 = vld [vmem:[%s7296_s28 + $0x40] sm:$0xff]  }
  0xf9   : > { %v6584_v10 = vpop.f32.mrf.mxu1  ;;  %v3316_v33 = vrot.slane %v3314_v48, 2  ;;  %vm372_vm0 = vcmp.gt.f32.partialorder %v336_v32, 0.0  ;;  %v3325_v36 = vrot.slane %v3323_v12, 2  ;;  %v2948_v32 = vsel %vm2476_vm3, %v2945_v37, %v2947_v9 }
  0xfa   : > { %v8177_v15 = vadd.f32 %v6584_v10, %v6532_v3  ;;  %v816_v49 = vpop.f32.mrf.mxu0  ;;  %4156 = vperm.xlu0 %7040, %v4083_v0   ;;  %v8214_v46 = vor.u32 %v3310_v39, %v3307_v40  ;;  %v2946_v10 = vsel %vm2476_vm3, %v2943_v38, %v2945_v37  ;;  %v3332_v40 = vshrl.u32 %v8225_v26, 16 }
  0xfb   : > { %v1059_v22 = vpop.f32.mrf.mxu1  ;;  %4159 = vperm.xlu1 %7041, %v4084_v29   ;;  %v4088_v29 = vsel %vm372_vm0, 1, %v9299_v28 }
  0xfc   : > { %v8195_v56 = vadd.f32 %v1059_v22, %v816_v49  ;;  %v6535_v34 = vpop.f32.mrf.mxu0  ;;  %6766 = vmatmul.mubr.bf16.gmra.mxu0 %v2175_v11  ;;  %v3328_v11 = vrot.slane %v3326_v19, 3  ;;  %v3312_v59 = vsel %vm3277_vm10, %v3302_v58, %v8214_v46  ;;  %v3320_v22 = vor.u32 %v3319_v44, %v3316_v33  ;;  %v339_v58 = vld [vmem:[%s9288_s1 + $0xd0] sm:$0xff]  ;;  %v340_v19 = vld [vmem:[%s9288_s1 + $0xd8] sm:$0xff] }
  0xfd   : > { %v6587_v55 = vpop.f32.mrf.mxu1  ;;  %6818 = vmatmul.mubr.bf16.gmra.mxu1 %v2513_v52  ;;  %6837 = vmatprep.mubr.bf16.mxu0 %v2942_v41  ;;  %v8238_v52 = vld [vmem:[%s7296_s28 + $0x48] sm:$0xff]   ;;  %vm375_vm6 = vcmp.gt.f32.partialorder %v339_v58, 0.0  ;;  %vm376_vm7 = vcmp.gt.f32.partialorder %v340_v19, 0.0  ;;  %v7166_v58 = vld [vmem:[%s9289_s2 + $0x218] sm:$0xff]  }
  0xfe   : > { %v8202_v60 = vadd.f32 %v6587_v55, %v6535_v34  ;;  %v829_v53 = vpop.f32.mrf.mxu0  ;;  %6889 = vmatprep.mubr.bf16.mxu1 %v3294_v24  ;;  %4162 = vperm.xlu0 %7040, %v4085_v14   ;;  %v2949_v24 = vrot.slane %v8191_v21, 2  ;;  %v3335_v14 = vshll.u32 %v8225_v26, 16  ;;  %v4089_v55 = vsel %vm373_vm1, 1, %v9299_v28 }
  0xff   : > { %v1072_v30 = vpop.f32.mrf.mxu1  ;;  %4165 = vperm.xlu1 %7041, %v4086_v27   ;;  %v8265_v48 = vor.u32 %v3328_v11, %v3325_v36  ;;  %v3341_v6 = vshrl.u32 %v8238_v52, 16  ;;  %v3321_v44 = vsel %vm3277_vm10, %v8214_v46, %v3320_v22  ;;  %v8301_v36 = vld [vmem:[%s7296_s28 + $0x58] sm:$0xff]  }
 0x100   : > { %v8212_v50 = vadd.f32 %v1072_v30, %v829_v53  ;;  %v6536_v61 = vpop.f32.mrf.mxu0  ;;  %v3344_v53 = vshll.u32 %v8238_v52, 16  ;;  %v3337_v37 = vrot.slane %v3335_v14, 3  ;;  %v4092_v14 = vsel %vm376_vm7, 1, %v9299_v28 }
 0x101   : > { %v6588_v17 = vpop.f32.mrf.mxu1 }
 0x102   : > { %v8227_v62 = vadd.f32 %v6588_v17, %v6536_v61  ;;  %v832_v3 = vpop.f32.mrf.mxu0  ;;  %4168 = vperm.xlu0 %7040, %v4087_v43   ;;  %v2950_v61 = vsel %vm2476_vm3, %v2947_v9, %v2949_v24  ;;  %v3334_v43 = vrot.slane %v3332_v40, 2  ;;  %v4090_v17 = vsel %vm374_vm5, 1, %v9299_v28 }
 0x103   : > { %v1075_v0 = vpop.f32.mrf.mxu1  ;;  %4171 = vperm.xlu1 %7041, %v4088_v29   ;;  %v2953_v9 = vrot.slane %v8238_v52, 2 }
 0x104   : > { %v8243_v49 = vadd.f32 %v1075_v0, %v832_v3  ;;  %v6539_v41 = vpop.f32.mrf.mxu0  ;;  %6838 = vmatmul.mubr.bf16.vlgmr.msra.gmra.mxu0 %v2944_v18  ;;  %v3343_v0 = vrot.slane %v3341_v6, 2  ;;  %v3338_v29 = vor.u32 %v3337_v37, %v3334_v43  ;;  %v3359_v6 = vshrl.u32 %v8301_v36, 16 }
 0x105   : > { %v6591_v42 = vpop.f32.mrf.mxu1  ;;  %6890 = vmatmul.mubr.bf16.vlgmr.msra.gmra.mxu1 %v3303_v51  ;;  %6926 = vmatpush3.bf16.msra.mxu0 %v8037_v7  ;;  %v7158_v7 = vld [vmem:[%s9289_s2 + $0x228] sm:$0xff]   ;;  %v3330_v51 = vsel %vm3277_vm10, %v3320_v22, %v8265_v48 }
 0x106   : > { %v8256_v34 = vadd.f32 %v6591_v42, %v6539_v41  ;;  %v845_v39 = vpop.f32.mrf.mxu0  ;;  %6978 = vmatpush3.bf16.msra.mxu1 %v8042_v54  ;;  %6841 = vmatprep.mubr.bf16.mxu0 %v2946_v10  ;;  %v7159_v54 = vld [vmem:[%s9290_s3 + $0x28] sm:$0xff]   ;;  %v3346_v10 = vrot.slane %v3344_v53, 3  ;;  %v4091_v42 = vsel %vm375_vm6, 1, %v9299_v28  ;;  %v3362_v53 = vshll.u32 %v8301_v36, 16 }
 0x107   : > { %v1088_v38 = vpop.f32.mrf.mxu1  ;;  %6893 = vmatprep.mubr.bf16.mxu1 %v3312_v59  ;;  %6927 = vmatprep.subr.bf16.mxu0 %v7154_v16  ;;  %v2951_v59 = vrot.slane %v8225_v26, 2 }
 0x108   : > { %v8275_v30 = vadd.f32 %v1088_v38, %v845_v39  ;;  %v6540_v12 = vpop.f32.mrf.mxu0  ;;  %6979 = vmatprep.subr.bf16.mxu1 %v7155_v63  ;;  %4174 = vperm.xlu0 %7040, %v4089_v55   ;;  %v3353_v39 = vshll.u32 %v8287_v35, 16  ;;  %v8318_v38 = vor.u32 %v3346_v10, %v3343_v0  ;;  %v3361_v10 = vrot.slane %v3359_v6, 2 }
 0x109   : > { %v6592_v27 = vpop.f32.mrf.mxu1  ;;  %6928 = vmatpush3.bf16.msra.mxu0 %v7154_v16  ;;  %v7162_v16 = vld [vmem:[%s9289_s2 + $0x220] sm:$0xff]   ;;  %4177 = vperm.xlu1 %7041, %v4090_v17   ;;  %v2954_v43 = vsel %vm2476_vm3, %v2951_v59, %v2953_v9 }
 0x10a   : > { %v8291_v18 = vadd.f32 %v6592_v27, %v6540_v12  ;;  %v848_v33 = vpop.f32.mrf.mxu0  ;;  %6980 = vmatpush3.bf16.msra.mxu1 %v7155_v63  ;;  %6929 = vmatprep.subr.bf16.mxu0 %v7158_v7  ;;  %v3350_v63 = vshrl.u32 %v8287_v35, 16  ;;  %v342_v27 = vld [vmem:[%s9288_s1 + $0xe8] sm:$0xff] }
 0x10b   : > { %v1091_v3 = vpop.f32.mrf.mxu1  ;;  %6981 = vmatprep.subr.bf16.mxu1 %v7159_v54  ;;  %vm378_vm9 = vcmp.gt.f32.partialorder %v342_v27, 0.0 }
 0x10c   : > { %v8303_v11 = vadd.f32 %v1091_v3, %v848_v33  ;;  %v6543_v46 = vpop.f32.mrf.mxu0  ;;  %6842 = vmatmul.mubr.bf16.gmra.mxu0 %v2948_v32  ;;  %4180 = vperm.xlu0 %7040, %v4091_v42   ;;  %v3352_v17 = vrot.slane %v3350_v63, 2  ;;  %v8343_v33 = vld [vmem:[%s7296_s28 + $0x60] sm:$0xff]   ;;  %v3339_v3 = vsel %vm3277_vm10, %v8265_v48, %v3338_v29 }
 0x10d   : > { %v6595_v41 = vpop.f32.mrf.mxu1  ;;  %6894 = vmatmul.mubr.bf16.gmra.mxu1 %v3321_v44  ;;  %6845 = vmatprep.mubr.bf16.mxu0 %v2950_v61  ;;  %v2952_v61 = vsel %vm2476_vm3, %v2949_v24, %v2951_v59  ;;  %9330 = vst [vmem:[#allocation2_spill] sm:$0xff] %v8343_v33  ;;  %v3348_v24 = vsel %vm3277_vm10, %v3338_v29, %v8318_v38  ;;  %v7170_v59 = vld [vmem:[%s9289_s2 + $0x210] sm:$0xff]   ;;  %v3371_v29 = vshll.u32 %v8343_v33, 16 }
 0x10e   : > { %v8313_v22 = vadd.f32 %v6595_v41, %v6543_v46  ;;  %v861_v40 = vpop.f32.mrf.mxu0  ;;  %6897 = vmatprep.mubr.bf16.mxu1 %v3330_v51  ;;  %6930 = vmatpush3.bf16.msra.mxu0 %v7158_v7  ;;  %v341_v7 = vld [vmem:[%s9288_s1 + $0xe0] sm:$0xff]  ;;  %v3355_v51 = vrot.slane %v3353_v39, 3  ;;  %v3364_v46 = vrot.slane %v3362_v53, 3  ;;  %v8352_v41 = vld [vmem:[%s7296_s28 + $0x68] sm:$0xff]   ;;  %v9297_v53 = vrot.slane %v8301_v36, 2 }
 0x10f   : > { %v1104_v55 = vpop.f32.mrf.mxu1  ;;  %6982 = vmatpush3.bf16.msra.mxu1 %v7159_v54  ;;  %6931 = vmatprep.subr.bf16.mxu0 %v7162_v16  ;;  %v7168_v54 = vld [vmem:[%s9290_s3 + $0x18] sm:$0xff]   ;;  %vm377_vm8 = vcmp.gt.f32.partialorder %v341_v7, 0.0  ;;  %v3380_v7 = vshll.u32 %v8352_v41, 16 }
 0x110   : > { %v8328_v12 = vadd.f32 %v1104_v55, %v861_v40  ;;  %v6544_v19 = vpop.f32.mrf.mxu0  ;;  %6983 = vmatprep.subr.bf16.mxu1 %v7163_v1  ;;  %4183 = vperm.xlu1 %7041, %v4092_v14   ;;  %v3368_v40 = vshrl.u32 %v8343_v33, 16  ;;  %v4093_v39 = vsel %vm377_vm8, 1, %v9299_v28  ;;  %v3356_v6 = vor.u32 %v3355_v51, %v3352_v17  ;;  %v7174_v17 = vld [vmem:[%s9289_s2 + $0x208] sm:$0xff]  }
 0x111   : > { %v6596_v32 = vpop.f32.mrf.mxu1  ;;  %4186 = vperm.xlu0 %7040, %v4093_v39  }
 0x112   : > { %v8345_v44 = vadd.f32 %v6596_v32, %v6544_v19  ;;  %v864_v37 = vpop.f32.mrf.mxu0  ;;  %6932 = vmatpush3.bf16.msra.mxu0 %v7162_v16  ;;  %v7173_v16 = vld [vmem:[%s9290_s3 + $0x10] sm:$0xff]   ;;  %v4094_v19 = vsel %vm378_vm9, 1, %v9299_v28  ;;  %v3357_v39 = vsel %vm3277_vm10, %v8318_v38, %v3356_v6  ;;  %v7179_v38 = vld [vmem:[%s9289_s2 + $0x200] sm:$0xff]  }
 0x113   : > { %v1107_v0 = vpop.f32.mrf.mxu1  ;;  %6984 = vmatpush3.bf16.msra.mxu1 %v7163_v1  ;;  %6933 = vmatprep.subr.bf16.mxu0 %v7166_v58  ;;  %v2955_v1 = vrot.slane %v8287_v35, 2 }
 0x114   : > { %v8357_v63 = vadd.f32 %v1107_v0, %v864_v37  ;;  %v6547_v48 = vpop.f32.mrf.mxu0  ;;  %6846 = vmatmul.mubr.bf16.gmra.mxu0 %v2952_v61  ;;  %6985 = vmatprep.subr.bf16.mxu1 %v7168_v54  ;;  %v8372_v61 = vor.u32 %v3364_v46, %v3361_v10  ;;  %v3373_v10 = vrot.slane %v3371_v29, 3  ;;  %v8394_v46 = vld [vmem:[%s7296_s28 + $0x70] sm:$0xff]   ;;  %v3382_v29 = vrot.slane %v3380_v7, 3 }
 0x115   : > { %v6599_v42 = vpop.f32.mrf.mxu1  ;;  %6898 = vmatmul.mubr.bf16.gmra.mxu1 %v3339_v3  ;;  %6849 = vmatprep.mubr.bf16.mxu0 %v2954_v43  ;;  %v3377_v43 = vshrl.u32 %v8352_v41, 16  ;;  %v7177_v3 = vld [vmem:[%s9290_s3 + $0x8] sm:$0xff]   ;;  %v2956_v0 = vsel %vm2476_vm3, %v2953_v9, %v2955_v1 }
 0x116   : > { %v8367_v14 = vadd.f32 %v6599_v42, %v6547_v48  ;;  %v877_v55 = vpop.f32.mrf.mxu0  ;;  %6901 = vmatprep.mubr.bf16.mxu1 %v3348_v24  ;;  %6934 = vmatpush3.bf16.msra.mxu0 %v7166_v58  ;;  %v343_v58 = vld [vmem:[%s9288_s1 + $0xf0] sm:$0xff]  ;;  %v3370_v24 = vrot.slane %v3368_v40, 2  ;;  %v3366_v9 = vsel %vm3277_vm10, %v3356_v6, %v8372_v61  ;;  %v2959_v6 = vrot.slane %v8343_v33, 2  ;;  %v8447_v33 = vld [vmem:[%s7296_s28 + $0x80] sm:$0xff]  }
 0x117   : > { %v1120_v32 = vpop.f32.mrf.mxu1  ;;  %6986 = vmatpush3.bf16.msra.mxu1 %v7168_v54  ;;  %6935 = vmatprep.subr.bf16.mxu0 %v7170_v59  ;;  %v344_v54 = vld [vmem:[%s9288_s1 + $0xf8] sm:$0xff]  ;;  %vm379_vm11 = vcmp.gt.f32.partialorder %v343_v58, 0.0  ;;  %v3379_v40 = vrot.slane %v3377_v43, 2  ;;  %v3395_v58 = vshrl.u32 %v8406_v57, 16  ;;  %9337 = vst [vmem:[#allocation6_spill] sm:$0xff] %v8447_v33 }
 0x118   : > { %v8382_v27 = vadd.f32 %v1120_v32, %v877_v55  ;;  %v6548_v37 = vpop.f32.mrf.mxu0  ;;  %6987 = vmatprep.subr.bf16.mxu1 %v7173_v16  ;;  %4189 = vperm.xlu1 %7041, %v4094_v19   ;;  %v2958_v55 = vsel %vm2476_vm3, %v2955_v1, %v9297_v53  ;;  %vm380_vm12 = vcmp.gt.f32.partialorder %v344_v54, 0.0  ;;  %v3374_v7 = vor.u32 %v3373_v10, %v3370_v24 }
 0x119   : > { %v6600_v51 = vpop.f32.mrf.mxu1  ;;  %v4096_v24 = vsel %vm380_vm12, 1, %v9299_v28 }
 0x11a   : > { %v8396_v48 = vadd.f32 %v6600_v51, %v6548_v37  ;;  %v880_v42 = vpop.f32.mrf.mxu0  ;;  %6936 = vmatpush3.bf16.msra.mxu0 %v7170_v59  ;;  %v345_v59 = vld [vmem:[%s9288_s1 + $0x100] sm:$0xff]  ;;  %v3386_v37 = vshrl.u32 %v8394_v46, 16  ;;  %v3389_v51 = vshll.u32 %v8394_v46, 16 }
 0x11b   : > { %v1123_v32 = vpop.f32.mrf.mxu1  ;;  %6988 = vmatpush3.bf16.msra.mxu1 %v7173_v16  ;;  %6937 = vmatprep.subr.bf16.mxu0 %v7174_v17  ;;  %v7182_v16 = vld [vmem:[%s9290_s3] sm:$0xff]   ;;  %vm381_vm13 = vcmp.gt.f32.partialorder %v345_v59, 0.0  ;;  %v3397_v59 = vrot.slane %v3395_v58, 2 }
 0x11c   : > { %9331 = vst [vmem:[#allocation4_spill] sm:$0xff] %v8396_v48  ;;  %v8414_v1 = vadd.f32 %v1123_v32, %v880_v42  ;;  %v6551_v19 = vpop.f32.mrf.mxu0  ;;  %6850 = vmatmul.mubr.bf16.gmra.mxu0 %v2956_v0  ;;  %6989 = vmatprep.subr.bf16.mxu1 %v7177_v3  ;;  %v4095_v42 = vsel %vm379_vm11, 1, %v9299_v28  ;;  %v346_v0 = vld [vmem:[%s9288_s1 + $0x108] sm:$0xff]  ;;  %v9341_v48 = vmov 0  }
 0x11d   : > { %v6603_v43 = vpop.f32.mrf.mxu1  ;;  %6902 = vmatmul.mubr.bf16.gmra.mxu1 %v3357_v39  ;;  %6853 = vmatprep.mubr.bf16.mxu0 %v2958_v55  ;;  %v8432_v39 = vor.u32 %v3382_v29, %v3379_v40  ;;  %v3398_v55 = vshll.u32 %v8406_v57, 16  ;;  %vm382_vm14 = vcmp.gt.f32.partialorder %v346_v0, 0.0  ;;  %v9336_v40 = vrot.slane %v8301_v36, 2 }
 0x11e   : > { %9333 = vst [vmem:[#allocation7_spill] sm:$0xff] %v8414_v1  ;;  %v8427_v32 = vadd.f32 %v6603_v43, %v6551_v19  ;;  %v893_v53 = vpop.f32.mrf.mxu0  ;;  %6905 = vmatprep.mubr.bf16.mxu1 %v3366_v9  ;;  %6938 = vmatpush3.bf16.msra.mxu0 %v7174_v17  ;;  %v347_v9 = vld [vmem:[%s9288_s1 + $0x110] sm:$0xff]  ;;  %v3375_v43 = vsel %vm3277_vm10, %v8372_v61, %v3374_v7  ;;  %v3391_v61 = vrot.slane %v3389_v51, 3  ;;  %v8462_v1 = vld [vmem:[%s7296_s28 + $0x88] sm:$0xff]   ;;  %v3407_v51 = vshll.u32 %v8447_v33, 16 }
 0x11f   : > { %v1136_v10 = vpop.f32.mrf.mxu1  ;;  %6990 = vmatpush3.bf16.msra.mxu1 %v7177_v3  ;;  %6939 = vmatprep.subr.bf16.mxu0 %v7179_v38  ;;  %v2960_v29 = vsel %vm2476_vm3, %v9336_v40, %v2959_v6  ;;  %v3388_v3 = vrot.slane %v3386_v37, 2  ;;  %v9339_v40 = vrot.slane %v8352_v41, 2  ;;  %vm383_vm15 = vcmp.gt.f32.partialorder %v347_v9, 0.0  ;;  %9340 = vst [vmem:[#allocation10_spill] sm:$0xff] %v8462_v1 }
 0x120   : > { %9334 = vst [vmem:[#allocation5_spill] sm:$0xff] %v8427_v32  ;;  %v8439_v19 = vadd.f32 %v1136_v10, %v893_v53  ;;  %v6552_v17 = vpop.f32.mrf.mxu0  ;;  %6991 = vmatprep.subr.bf16.mxu1 %v7182_v16  ;;  %4192 = vperm.xlu0 %7040, %v4095_v42   ;;  %v4097_v53 = vsel %vm381_vm13, 1, %v9299_v28  ;;  %v348_v42 = vld [vmem:[%s9288_s1 + $0x118] sm:$0xff]  ;;  %v3400_v28 = vrot.slane %v3398_v55, 3 }
 0x121   : > { %v6604_v54 = vpop.f32.mrf.mxu1  ;;  %4195 = vperm.xlu1 %7041, %v4096_v24   ;;  %v2962_v32 = vsel %vm2476_vm3, %v2959_v6, %v9339_v40  ;;  %v3384_v24 = vsel %vm3277_vm10, %v3374_v7, %v8432_v39  ;;  %vm384_vm0 = vcmp.gt.f32.partialorder %v348_v42, 0.0  ;;  %v2963_v6 = vrot.slane %v8394_v46, 2 }
 0x122   : > { %9335 = vst [vmem:[#allocation8_spill] sm:$0xff] %v8439_v19  ;;  %v8454_v10 = vadd.f32 %v6604_v54, %v6552_v17  ;;  %v896_v19 = vpop.f32.mrf.mxu0  ;;  %6940 = vmatpush3.bf16.msra.mxu0 %v7179_v38  ;;  %v4098_v17 = vsel %vm382_vm14, 1, %v9341_v48  ;;  %v3404_v7 = vshrl.u32 %v8447_v33, 16  ;;  %v3392_v55 = vor.u32 %v3391_v61, %v3388_v3 }
 0x123   : > { %v1139_v37 = vpop.f32.mrf.mxu1  ;;  %6992 = vmatpush3.bf16.msra.mxu1 %v7182_v16  ;;  %v4099_v16 = vsel %vm383_vm15, 1, %v9341_v48  ;;  %v4100_v40 = vsel %vm384_vm0, 1, %v9341_v48  ;;  %v9345_v61 = vrot.slane %v8352_v41, 2 }
 0x124   : > { %9338 = vst [vmem:[#allocation9_spill] sm:$0xff] %v8454_v10  ;;  %v8466_v54 = vadd.f32 %v1139_v37, %v896_v19  ;;  %v6555_v10 = vpop.f32.mrf.mxu0  ;;  %6854 = vmatmul.mubr.bf16.gmra.mxu0 %v2960_v29  ;;  %4198 = vperm.xlu0 %7040, %v4097_v53   ;;  %v2965_v19 = vrot.slane %v8406_v57, 2  ;;  %v3416_v53 = vshll.u32 %v8462_v1, 16  ;;  %v8483_v37 = vld [vmem:[%s7296_s28 + $0x90] sm:$0xff]   ;;  %v3393_v42 = vsel %vm3277_vm10, %v8432_v39, %v3392_v55 }
 0x125   : > { %v6607_v38 = vpop.f32.mrf.mxu1  ;;  %6906 = vmatmul.mubr.bf16.gmra.mxu1 %v3375_v43  ;;  %6857 = vmatprep.mubr.bf16.mxu0 %v2962_v32  ;;  %v3401_v32 = vor.u32 %v3400_v28, %v3397_v59  ;;  %v3413_v43 = vshrl.u32 %v8462_v1, 16  ;;  %9344 = vst [vmem:[#allocation13_spill] sm:$0xff] %v8483_v37  ;;  %v3406_v28 = vrot.slane %v3404_v7, 2  ;;  %v3409_v59 = vrot.slane %v3407_v51, 3 }
 0x126   : > { %v8473_v0 = vadd.f32 %v6607_v38, %v6555_v10  ;;  %v909_v58 = vpop.f32.mrf.mxu0  ;;  %6909 = vmatprep.mubr.bf16.mxu1 %v3384_v24  ;;  %4201 = vperm.xlu1 %7041, %v4098_v17   ;;  %v2964_v24 = vsel %vm2476_vm3, %v9345_v61, %v2963_v6  ;;  %v2966_v48 = vsel %vm2476_vm3, %v2963_v6, %v2965_v19  ;;  %v3418_v57 = vrot.slane %v3416_v53, 3 }
 0x127   : > { %v1152_v29 = vpop.f32.mrf.mxu1  ;;  %v3422_v51 = vshrl.u32 %v8483_v37, 16  ;;  %v2967_v39 = vrot.slane %v8447_v33, 2  ;;  %v3410_v6 = vor.u32 %v3409_v59, %v3406_v28 }
 0x128   : > { %9342 = vst [vmem:[#allocation11_spill] sm:$0xff] %v8473_v0  ;;  %v8480_v9 = vadd.f32 %v1152_v29, %v909_v58  ;;  %v6556_v10 = vpop.f32.mrf.mxu0  ;;  %4204 = vperm.xlu0 %7040, %v4099_v16   ;;  %v8494_v58 = vld [vmem:[%s7296_s28 + $0x98] sm:$0xff]   ;;  %v3402_v16 = vsel %vm3277_vm10, %v3392_v55, %v3401_v32 }
 0x129   : > { %v6608_v3 = vpop.f32.mrf.mxu1  ;;  %9346 = vst [vmem:[#allocation14_spill] sm:$0xff] %v8494_v58  ;;  %v3431_v53 = vshrl.u32 %v8494_v58, 16  ;;  %v3434_v61 = vshll.u32 %v8494_v58, 16 }
 0x12a   : > { %9343 = vst [vmem:[#allocation12_spill] sm:$0xff] %v8480_v9  ;;  %v8488_v17 = vadd.f32 %v6608_v3, %v6556_v10  ;;  %v912_v38 = vpop.f32.mrf.mxu0  ;;  %4207 = vperm.xlu1 %7041, %v4100_v40   ;;  %v3415_v9 = vrot.slane %v3413_v43, 2  ;;  %v3425_v10 = vshll.u32 %v8483_v37, 16  ;;  %v2969_v43 = vrot.slane %v8462_v1, 2 }
 0x12b   : > { %v1155_v29 = vpop.f32.mrf.mxu1 }
 0x12c   : > { %v8497_v0 = vadd.f32 %v1155_v29, %v912_v38  ;;  %v6559_v7 = vpop.f32.mrf.mxu0  ;;  %6858 = vmatmul.mubr.bf16.gmra.mxu0 %v2964_v24  ;;  %v3419_v38 = vor.u32 %v3418_v57, %v3415_v9  ;;  %v3427_v28 = vrot.slane %v3425_v10, 3  ;;  %v3436_v57 = vrot.slane %v3434_v61, 3  ;;  %v7184_v9 = vld [vmem:[%s7296_s28 + $0x8] sm:$0xfe]  }
 0x12d   : > { %v6611_v3 = vpop.f32.mrf.mxu1  ;;  %6910 = vmatmul.mubr.bf16.gmra.mxu1 %v3393_v42  ;;  %6861 = vmatprep.mubr.bf16.mxu0 %v2966_v48  ;;  %v3424_v48 = vrot.slane %v3422_v51, 2  ;;  %v7185_v51 = vld [vmem:[%s7296_s28 + $0x10] sm:$0xff]  }
 0x12e   : > { %9347 = vst [vmem:[#allocation15_spill] sm:$0xff] %v8497_v0  ;;  %v8502_v40 = vadd.f32 %v6611_v3, %v6559_v7  ;;  %v925_v55 = vpop.f32.mrf.mxu0  ;;  %6913 = vmatprep.mubr.bf16.mxu1 %v3402_v16  ;;  %v2968_v7 = vsel %vm2476_vm3, %v2965_v19, %v2967_v39  ;;  %v3411_v16 = vsel %vm3277_vm10, %v3401_v32, %v3410_v6  ;;  %v8512_v3 = vld [vmem:[%s7296_s28 + $0xa0] ss:$0 sps:$4 sm:$0x77]   ;;  %v3433_v0 = vrot.slane %v3431_v53, 2 }
 0x12f   : > { %v1168_v24 = vpop.f32.mrf.mxu1  ;;  %9350 = vst [vmem:[#allocation18_spill] sm:$0xff] %v8512_v3  ;;  %v2971_v19 = vrot.slane %v8483_v37, 2  ;;  %v3428_v32 = vor.u32 %v3427_v28, %v3424_v48  ;;  %v3443_v53 = vshll.u32 %v8512_v3, 16  ;;  %v4736_v48 = vshrl.u32 %v7185_v51, 16 }
 0x130   : > { %9348 = vst [vmem:[#allocation16_spill] sm:$0xff] %v8502_v40  ;;  %v8507_v29 = vadd.f32 %v1168_v24, %v925_v55  ;;  %v6560_v42 = vpop.f32.mrf.mxu0  ;;  %v2970_v40 = vsel %vm2476_vm3, %v2967_v39, %v2969_v43  ;;  %v3420_v24 = vsel %vm3277_vm10, %v3410_v6, %v3419_v38  ;;  %v3440_v39 = vshrl.u32 %v8512_v3, 16 }
 0x131   : > { %v6612_v59 = vpop.f32.mrf.mxu1  ;;  %v3437_v6 = vor.u32 %v3436_v57, %v3433_v0  ;;  %v3429_v3 = vsel %vm3277_vm10, %v3419_v38, %v3428_v32 }
 0x132   : > { %9349 = vst [vmem:[#allocation17_spill] sm:$0xff] %v8507_v29  ;;  %v8514_v1 = vadd.f32 %v6612_v59, %v6560_v42  ;;  %v928_v33 = vpop.f32.mrf.mxu0 }
 0x133   : > { %v1171_v55 = vpop.f32.mrf.mxu1 }
 0x134   : > { %9351 = vst [vmem:[#allocation19_spill] sm:$0xff] %v8514_v1  ;;  %v8520_v10 = vadd.f32 %v1171_v55, %v928_v33  ;;  %v6631_v29 = vpop.f32.mrf.mxu0  ;;  %6862 = vmatmul.mubr.bf16.gmra.mxu0 %v2968_v7  ;;  %v2973_v33 = vrot.slane %v8494_v58, 2  ;;  %v4728_v55 = vshrl.u32 %v7184_v9, 16  ;;  %v4731_v7 = vshll.u32 %v7184_v9, 16  ;;  %v7187_v1 = vld [vmem:[%s7296_s28 + $0x20] sm:$0xff]  }
 0x135   : > { %v1487_v42 = vadd.f32 %v6631_v29, %v8106_v8  ;;  %v6683_v59 = vpop.f32.mrf.mxu1  ;;  %6914 = vmatmul.mubr.bf16.gmra.mxu1 %v3411_v16  ;;  %6865 = vmatprep.mubr.bf16.mxu0 %v2970_v40  ;;  %v4739_v40 = vshll.u32 %v7185_v51, 16  ;;  %v2972_v16 = vsel %vm2476_vm3, %v2969_v43, %v2971_v19  ;;  %v3442_v9 = vrot.slane %v3440_v39, 2 }
 0x136   : > { %9352 = vst [vmem:[#allocation20_spill] sm:$0xff] %v8520_v10  ;;  %v1342_v61 = vpop.f32.mrf.mxu0  ;;  %6917 = vmatprep.mubr.bf16.mxu1 %v3420_v24  ;;  %v7180_v24 = vld [vmem:[%s7296_s28 + $0xa0] ss:$0 sps:$4 sm:$0x33]   ;;  %v3438_v51 = vsel %vm3277_vm10, %v3428_v32, %v3437_v6 }
 0x137   : > { %v8527_v37 = vadd.f32 %v6683_v59, %v1487_v42  ;;  %v1485_v8 = vadd.f32 %v1342_v61, %v8121_v2  ;;  %v1805_v29 = vpop.f32.mrf.mxu1  ;;  %v3445_v42 = vrot.slane %v3443_v53, 3  ;;  %v7186_v59 = vld [vmem:[%s7296_s28 + $0x18] sm:$0xff]   ;;  %v2974_v2 = vsel %vm2476_vm3, %v2971_v19, %v2973_v33 }
 0x138   : > { %v6632_v28 = vpop.f32.mrf.mxu0  ;;  %v4730_v61 = vrot.slane %v4728_v55, 1  ;;  %v2975_v39 = vrot.slane %v7180_v24, 2  ;;  %v4745_v32 = vshrl.u32 %v7186_v59, 16  ;;  %v4748_v55 = vshll.u32 %v7186_v59, 16 }
 0x139   : > { %9353 = vst [vmem:[#allocation21_spill] sm:$0xff] %v8527_v37  ;;  %v8533_v10 = vadd.f32 %v1805_v29, %v1485_v8  ;;  %v1488_v0 = vadd.f32 %v6632_v28, %v8125_v31  ;;  %v6684_v57 = vpop.f32.mrf.mxu1  ;;  %v4733_v37 = vrot.slane %v4731_v7, 2  ;;  %v4738_v29 = vrot.slane %v4736_v48, 1 }
 0x13a   : > { %v1345_v58 = vpop.f32.mrf.mxu0 }
 0x13b   : > { %9354 = vst [vmem:[#allocation22_spill] sm:$0xff] %v8533_v10  ;;  %v8540_v43 = vadd.f32 %v6684_v57, %v1488_v0  ;;  %v1486_v38 = vadd.f32 %v1345_v58, %v8138_v4  ;;  %v1808_v8 = vpop.f32.mrf.mxu1  ;;  %v4741_v10 = vrot.slane %v4739_v40, 2  ;;  %v3446_v0 = vor.u32 %v3445_v42, %v3442_v9 }
 0x13c   : > { %v6635_v31 = vpop.f32.mrf.mxu0  ;;  %6866 = vmatmul.mubr.bf16.gmra.mxu0 %v2972_v16  ;;  %v4754_v57 = vshrl.u32 %v7187_v1, 16  ;;  %v4757_v4 = vshll.u32 %v7187_v1, 16  ;;  %v4734_v16 = vor.u32 %v4733_v37, %v4730_v61  ;;  %v4747_v9 = vrot.slane %v4745_v32, 1  ;;  %v7189_v61 = vld [vmem:[%s7296_s28 + $0x30] sm:$0xff]  }
 0x13d   : > { %v8543_v53 = vadd.f32 %v1808_v8, %v1486_v38  ;;  %v1491_v28 = vadd.f32 %v6635_v31, %v8147_v20  ;;  %v6687_v19 = vpop.f32.mrf.mxu1  ;;  %6918 = vmatmul.mubr.bf16.gmra.mxu1 %v3429_v3  ;;  %6869 = vmatprep.mubr.bf16.mxu0 %v2974_v2  ;;  %v4742_v24 = vor.u32 %v4741_v10, %v4738_v29  ;;  %v4750_v42 = vrot.slane %v4748_v55, 2 }
 0x13e   : > { %v1358_v7 = vpop.f32.mrf.mxu0  ;;  %6921 = vmatprep.mubr.bf16.mxu1 %v3438_v51  ;;  %v2976_v20 = vsel %vm2476_vm3, %v2973_v33, %v2975_v39  ;;  %v3447_v51 = vsel %vm3277_vm10, %v3437_v6, %v3446_v0  ;;  %v4756_v8 = vrot.slane %v4754_v57, 1  ;;  %v4759_v31 = vrot.slane %v4757_v4, 2 }
 0x13f   : > { %v8546_v58 = vadd.f32 %v6687_v19, %v1491_v28  ;;  %v1489_v48 = vadd.f32 %v1358_v7, %v8164_v13  ;;  %v1821_v40 = vpop.f32.mrf.mxu1  ;;  %v7188_v13 = vld [vmem:[%s7296_s28 + $0x28] sm:$0xff]   ;;  %v4743_v33 = vsel %vm2005_vm2, %v4734_v16, %v4742_v24  ;;  %v4751_v6 = vor.u32 %v4750_v42, %v4747_v9 }
 0x140   : > { %v6636_v38 = vpop.f32.mrf.mxu0  ;;  %v4760_v55 = vor.u32 %v4759_v31, %v4756_v8  ;;  %v4763_v7 = vshrl.u32 %v7188_v13, 16  ;;  %v4766_v0 = vshll.u32 %v7188_v13, 16  ;;  %v9355_v9 = vrot.slane %v7976_v25, 3  ;;  %v7191_v8 = vld [vmem:[%s7296_s28 + $0x40] sm:$0xff]  }
 0x141   : > { %v8550_v3 = vadd.f32 %v1821_v40, %v1489_v48  ;;  %v1492_v59 = vadd.f32 %v6636_v38, %v8177_v15  ;;  %v6688_v2 = vpop.f32.mrf.mxu1  ;;  %v4775_v40 = vshll.u32 %v7189_v61, 16 }
 0x142   : > { %v1361_v1 = vpop.f32.mrf.mxu0 }
 0x143   : > { %v8555_v28 = vadd.f32 %v6688_v2, %v1492_v59  ;;  %v1490_v37 = vadd.f32 %v1361_v1, %v8195_v56  ;;  %v1824_v10 = vpop.f32.mrf.mxu1  ;;  %v3754_v56 = vrot.slane %v8134_v5, 3  ;;  %v4752_v59 = vsel %vm2005_vm2, %v4742_v24, %v4751_v6  ;;  %v7190_v5 = vld [vmem:[%s7296_s28 + $0x38] sm:$0xff]  }
 0x144   : > { %v6639_v29 = vpop.f32.mrf.mxu0  ;;  %6870 = vmatmul.mubr.bf16.gmra.mxu0 %v2976_v20  ;;  %v4761_v1 = vsel %vm2005_vm2, %v4751_v6, %v4760_v55  ;;  %v3756_v24 = vrot.slane %v8175_v47, 3 }
 0x145   : > { %v8560_v15 = vadd.f32 %v1824_v10, %v1490_v37  ;;  %v1495_v39 = vadd.f32 %v6639_v29, %v8202_v60  ;;  %v6691_v19 = vpop.f32.mrf.mxu1  ;;  %6922 = vmatmul.mubr.bf16.gmra.mxu1 %v3447_v51  ;;  %6941 = vmatprep.mubr.bf16.mxu0 %v7984_v23  ;;  %v4772_v60 = vshrl.u32 %v7189_v61, 16  ;;  %v3755_v42 = vsel %vm3748_vm4, %v9355_v9, %v3754_v56 }
 0x146   : > { %v1374_v32 = vpop.f32.mrf.mxu0  ;;  %6993 = vmatprep.mubr.bf16.mxu1 %v4743_v33  ;;  %v4768_v51 = vrot.slane %v4766_v0, 2  ;;  %v4777_v10 = vrot.slane %v4775_v40, 2  ;;  %v4793_v0 = vshll.u32 %v7191_v8, 16 }
 0x147   : > { %v8565_v57 = vadd.f32 %v6691_v19, %v1495_v39  ;;  %v1493_v4 = vadd.f32 %v1374_v32, %v8212_v50  ;;  %v1837_v48 = vpop.f32.mrf.mxu1  ;;  %v4765_v50 = vrot.slane %v4763_v7, 1  ;;  %v4781_v39 = vshrl.u32 %v7190_v5, 16 }
 0x148   : > { %v6640_v16 = vpop.f32.mrf.mxu0  ;;  %v4784_v19 = vshll.u32 %v7190_v5, 16  ;;  %v3758_v32 = vrot.slane %v8191_v21, 3  ;;  %v4790_v7 = vshrl.u32 %v7191_v8, 16  ;;  %v7193_v8 = vld [vmem:[%s7296_s28 + $0x50] sm:$0xff]  }
 0x149   : > { %v8568_v38 = vadd.f32 %v1837_v48, %v1493_v4  ;;  %v1496_v23 = vadd.f32 %v6640_v16, %v8227_v62  ;;  %v6692_v20 = vpop.f32.mrf.mxu1  ;;  %v4774_v62 = vrot.slane %v4772_v60, 1  ;;  %v3757_v60 = vsel %vm3748_vm4, %v3754_v56, %v3756_v24 }
 0x14a   : > { %v1377_v2 = vpop.f32.mrf.mxu0  ;;  %v4786_v21 = vrot.slane %v4784_v19, 2  ;;  %v4792_v9 = vrot.slane %v4790_v7, 1 }
 0x14b   : > { %v8578_v31 = vadd.f32 %v6692_v20, %v1496_v23  ;;  %v1494_v13 = vadd.f32 %v1377_v2, %v8243_v49  ;;  %v1840_v37 = vpop.f32.mrf.mxu1  ;;  %v4769_v49 = vor.u32 %v4768_v51, %v4765_v50  ;;  %v4778_v48 = vor.u32 %v4777_v10, %v4774_v62 }
 0x14c   : > { %v6643_v33 = vpop.f32.mrf.mxu0  ;;  %6942 = vmatmul.mubr.bf16.vlgmr.msra.gmra.mxu0 %v7993_v45  ;;  %v4783_v20 = vrot.slane %v4781_v39, 1  ;;  %v3759_v2 = vsel %vm3748_vm4, %v3756_v24, %v3758_v32  ;;  %v3760_v62 = vrot.slane %v8225_v26, 3 }
 0x14d   : > { %v8583_v25 = vadd.f32 %v1840_v37, %v1494_v13  ;;  %v1499_v61 = vadd.f32 %v6643_v33, %v8256_v34  ;;  %v6695_v29 = vpop.f32.mrf.mxu1  ;;  %6994 = vmatmul.mubr.bf16.vlgmr.msra.gmra.mxu1 %v4752_v59  ;;  %6945 = vmatprep.mubr.bf16.mxu0 %v3755_v42  ;;  %v4770_v5 = vsel %vm2005_vm2, %v4760_v55, %v4769_v49  ;;  %v7192_v42 = vld [vmem:[%s7296_s28 + $0x48] sm:$0xff]  }
 0x14e   : > { %v1390_v6 = vpop.f32.mrf.mxu0  ;;  %6997 = vmatprep.mubr.bf16.mxu1 %v4761_v1  ;;  %v4779_v51 = vsel %vm2005_vm2, %v4769_v49, %v4778_v48  ;;  %v4787_v10 = vor.u32 %v4786_v21, %v4783_v20  ;;  %v4811_v49 = vshll.u32 %v7193_v8, 16  ;;  %v7195_v21 = vld [vmem:[%s7296_s28 + $0x60] sm:$0xff]  }
 0x14f   : > { %v8587_v4 = vadd.f32 %v6695_v29, %v1499_v61  ;;  %v1497_v45 = vadd.f32 %v1390_v6, %v8275_v30  ;;  %v1853_v47 = vpop.f32.mrf.mxu1  ;;  %v4795_v30 = vrot.slane %v4793_v0, 2  ;;  %v4799_v61 = vshrl.u32 %v7192_v42, 16 }
 0x150   : > { %v6644_v34 = vpop.f32.mrf.mxu0  ;;  %v4802_v29 = vshll.u32 %v7192_v42, 16  ;;  %v4808_v6 = vshrl.u32 %v7193_v8, 16 }
 0x151   : > { %v8591_v40 = vadd.f32 %v1853_v47, %v1497_v45  ;;  %v1500_v16 = vadd.f32 %v6644_v34, %v8291_v18  ;;  %v6696_v23 = vpop.f32.mrf.mxu1  ;;  %v4796_v24 = vor.u32 %v4795_v30, %v4792_v9  ;;  %v3761_v47 = vsel %vm3748_vm4, %v3758_v32, %v3760_v62  ;;  %v7194_v34 = vld [vmem:[%s7296_s28 + $0x58] sm:$0xff]  }
 0x152   : > { %v1393_v59 = vpop.f32.mrf.mxu0  ;;  %v4804_v20 = vrot.slane %v4802_v29, 2  ;;  %v4813_v9 = vrot.slane %v4811_v49, 2  ;;  %v3764_v32 = vrot.slane %v8287_v35, 3 }
 0x153   : > { %v8597_v1 = vadd.f32 %v6696_v23, %v1500_v16  ;;  %v1498_v56 = vadd.f32 %v1393_v59, %v8303_v11  ;;  %v1856_v50 = vpop.f32.mrf.mxu1  ;;  %v3762_v11 = vrot.slane %v8238_v52, 3  ;;  %v4788_v52 = vsel %vm2005_vm2, %v4778_v48, %v4787_v10 }
 0x154   : > { %v6647_v18 = vpop.f32.mrf.mxu0  ;;  %6946 = vmatmul.mubr.bf16.gmra.mxu0 %v3757_v60  ;;  %v4801_v23 = vrot.slane %v4799_v61, 1 }
 0x155   : > { %v8602_v13 = vadd.f32 %v1856_v50, %v1498_v56  ;;  %v1503_v37 = vadd.f32 %v6647_v18, %v8313_v22  ;;  %v6699_v55 = vpop.f32.mrf.mxu1  ;;  %6998 = vmatmul.mubr.bf16.gmra.mxu1 %v4770_v5  ;;  %6949 = vmatprep.mubr.bf16.mxu0 %v3759_v2  ;;  %v3763_v16 = vsel %vm3748_vm4, %v3760_v62, %v3762_v11  ;;  %v4817_v50 = vshrl.u32 %v7194_v34, 16 }
 0x156   : > { %v1406_v33 = vpop.f32.mrf.mxu0  ;;  %7001 = vmatprep.mubr.bf16.mxu1 %v4779_v51  ;;  %v4820_v51 = vshll.u32 %v7194_v34, 16  ;;  %v4805_v18 = vor.u32 %v4804_v20, %v4801_v23  ;;  %v3765_v61 = vsel %vm3748_vm4, %v3762_v11, %v3764_v32  ;;  %v7197_v23 = vld [vmem:[%s7296_s28 + $0x70] sm:$0xff]  }
 0x157   : > { %v8607_v39 = vadd.f32 %v6699_v55, %v1503_v37  ;;  %v1501_v19 = vadd.f32 %v1406_v33, %v8328_v12  ;;  %v1869_v22 = vpop.f32.mrf.mxu1  ;;  %v4797_v12 = vsel %vm2005_vm2, %v4787_v10, %v4796_v24  ;;  %v4826_v37 = vshrl.u32 %v7195_v21, 16 }
 0x158   : > { %v6648_v7 = vpop.f32.mrf.mxu0  ;;  %v4829_v55 = vshll.u32 %v7195_v21, 16  ;;  %v4819_v49 = vrot.slane %v4817_v50, 1 }
 0x159   : > { %v8610_v0 = vadd.f32 %v1869_v22, %v1501_v19  ;;  %v1504_v26 = vadd.f32 %v6648_v7, %v8345_v44  ;;  %v6700_v45 = vpop.f32.mrf.mxu1  ;;  %v4810_v44 = vrot.slane %v4808_v6, 1  ;;  %v9356_v19 = vld [vmem:[#allocation4_spill] sm:$0xff] }
 0x15a   : > { %v1409_v60 = vpop.f32.mrf.mxu0 }
 0x15b   : > { %v8619_v59 = vadd.f32 %v6700_v45, %v1504_v26  ;;  %v1502_v5 = vadd.f32 %v1409_v60, %v8357_v63  ;;  %v1872_v2 = vpop.f32.mrf.mxu1  ;;  %v3766_v63 = vrot.slane %v8301_v36, 3  ;;  %v4814_v33 = vor.u32 %v4813_v9, %v4810_v44  ;;  %v9357_v60 = vld [vmem:[#allocation7_spill] sm:$0xff]  ;;  %v9359_v44 = vld [vmem:[#allocation2_spill] sm:$0xff] }
 0x15c   : > { %v6651_v30 = vpop.f32.mrf.mxu0  ;;  %6950 = vmatmul.mubr.bf16.gmra.mxu0 %v3761_v47  ;;  %v4822_v36 = vrot.slane %v4820_v51, 2  ;;  %v4806_v26 = vsel %vm2005_vm2, %v4796_v24, %v4805_v18  ;;  %v4828_v47 = vrot.slane %v4826_v37, 1  ;;  %v3768_v9 = vrot.slane %v9359_v44, 3 }
 0x15d   : > { %v8623_v48 = vadd.f32 %v1872_v2, %v1502_v5  ;;  %v1507_v42 = vadd.f32 %v6651_v30, %v8367_v14  ;;  %v6703_v56 = vpop.f32.mrf.mxu1  ;;  %7002 = vmatmul.mubr.bf16.gmra.mxu1 %v4788_v52  ;;  %6953 = vmatprep.mubr.bf16.mxu0 %v3763_v16  ;;  %v3767_v45 = vsel %vm3748_vm4, %v3764_v32, %v3766_v63  ;;  %v7196_v52 = vld [vmem:[%s7296_s28 + $0x68] sm:$0xff]   ;;  %v9358_v5 = vld [vmem:[#allocation5_spill] sm:$0xff] }
 0x15e   : > { %v1422_v8 = vpop.f32.mrf.mxu0  ;;  %7005 = vmatprep.mubr.bf16.mxu1 %v4797_v12  ;;  %v4815_v12 = vsel %vm2005_vm2, %v4805_v18, %v4814_v33  ;;  %v4823_v30 = vor.u32 %v4822_v36, %v4819_v49  ;;  %v4835_v50 = vshrl.u32 %v7196_v52, 16  ;;  %v4838_v51 = vshll.u32 %v7196_v52, 16  ;;  %v9360_v18 = vld [vmem:[#allocation8_spill] sm:$0xff]  ;;  %v7198_v36 = vld [vmem:[%s7296_s28 + $0x78] sm:$0xff]   ;;  %v7199_v52 = vld [vmem:[%s7296_s28 + $0x80] sm:$0xff]  }
 0x15f   : > { %v8627_v62 = vadd.f32 %v6703_v56, %v1507_v42  ;;  %v1505_v35 = vadd.f32 %v1422_v8, %v8382_v27  ;;  %v1885_v10 = vpop.f32.mrf.mxu1  ;;  %v4831_v27 = vrot.slane %v4829_v55, 2  ;;  %v3770_v42 = vrot.slane %v8352_v41, 3 }
 0x160   : > { %v6652_v14 = vpop.f32.mrf.mxu0  ;;  %v3769_v49 = vsel %vm3748_vm4, %v3766_v63, %v3768_v9  ;;  %v4824_v41 = vsel %vm2005_vm2, %v4814_v33, %v4823_v30  ;;  %v3772_v63 = vrot.slane %v8394_v46, 3  ;;  %v4853_v44 = vshrl.u32 %v7198_v36, 16 }
 0x161   : > { %v8631_v29 = vadd.f32 %v1885_v10, %v1505_v35  ;;  %v1508_v22 = vadd.f32 %v6652_v14, %v9356_v19  ;;  %v6704_v6 = vpop.f32.mrf.mxu1  ;;  %v4832_v56 = vor.u32 %v4831_v27, %v4828_v47  ;;  %v4844_v35 = vshrl.u32 %v7197_v23, 16  ;;  %v9361_v19 = vld [vmem:[#allocation9_spill] sm:$0xff] }
 0x162   : > { %v1425_v7 = vpop.f32.mrf.mxu0  ;;  %v4847_v10 = vshll.u32 %v7197_v23, 16  ;;  %v4837_v47 = vrot.slane %v4835_v50, 1  ;;  %v4840_v27 = vrot.slane %v4838_v51, 2  ;;  %v4862_v51 = vshrl.u32 %v7199_v52, 16 }
 0x163   : > { %v8637_v34 = vadd.f32 %v6704_v6, %v1508_v22  ;;  %v1506_v11 = vadd.f32 %v1425_v7, %v9357_v60  ;;  %v1888_v16 = vpop.f32.mrf.mxu1 }
 0x164   : > { %v6655_v20 = vpop.f32.mrf.mxu0  ;;  %6954 = vmatmul.mubr.bf16.gmra.mxu0 %v3765_v61  ;;  %v4849_v23 = vrot.slane %v4847_v10, 2 }
 0x165   : > { %v8642_v21 = vadd.f32 %v1888_v16, %v1506_v11  ;;  %v1511_v2 = vadd.f32 %v6655_v20, %v9358_v5  ;;  %v6707_v24 = vpop.f32.mrf.mxu1  ;;  %7006 = vmatmul.mubr.bf16.gmra.mxu1 %v4806_v26  ;;  %6957 = vmatprep.mubr.bf16.mxu0 %v3767_v45  ;;  %v3771_v26 = vsel %vm3748_vm4, %v3768_v9, %v3770_v42  ;;  %v9362_v5 = vld [vmem:[#allocation11_spill] sm:$0xff]  ;;  %v4856_v9 = vshll.u32 %v7198_v36, 16 }
 0x166   : > { %v1438_v32 = vpop.f32.mrf.mxu0  ;;  %7009 = vmatprep.mubr.bf16.mxu1 %v4815_v12  ;;  %v4833_v45 = vsel %vm2005_vm2, %v4823_v30, %v4832_v56  ;;  %v4846_v12 = vrot.slane %v4844_v35, 1 }
 0x167   : > { %v8647_v8 = vadd.f32 %v6707_v24, %v1511_v2  ;;  %v1509_v37 = vadd.f32 %v1438_v32, %v9360_v18  ;;  %v1901_v55 = vpop.f32.mrf.mxu1  ;;  %v4841_v32 = vor.u32 %v4840_v27, %v4837_v47  ;;  %v4865_v18 = vshll.u32 %v7199_v52, 16  ;;  %v7200_v52 = vld [vmem:[%s7296_s28 + $0x88] sm:$0xff]  }
 0x168   : > { %v6656_v14 = vpop.f32.mrf.mxu0  ;;  %v4850_v10 = vor.u32 %v4849_v23, %v4846_v12  ;;  %v4858_v36 = vrot.slane %v4856_v9, 2  ;;  %v4864_v47 = vrot.slane %v4862_v51, 1 }
 0x169   : > { %v8650_v61 = vadd.f32 %v1901_v55, %v1509_v37  ;;  %v1512_v22 = vadd.f32 %v6656_v14, %v9361_v19  ;;  %v6708_v6 = vpop.f32.mrf.mxu1  ;;  %v9364_v55 = vld [vmem:[#allocation12_spill] sm:$0xff]  ;;  %v3773_v19 = vsel %vm3748_vm4, %v3770_v42, %v3772_v63  ;;  %v4867_v27 = vrot.slane %v4865_v18, 2 }
 0x16a   : > { %v1441_v7 = vpop.f32.mrf.mxu0  ;;  %v4851_v23 = vsel %vm2005_vm2, %v4841_v32, %v4850_v10 }
 0x16b   : > { %v8659_v60 = vadd.f32 %v6708_v6, %v1512_v22  ;;  %v1510_v11 = vadd.f32 %v1441_v7, %v8466_v54  ;;  %v1904_v16 = vpop.f32.mrf.mxu1  ;;  %v9363_v54 = vld [vmem:[#allocation3_spill] sm:$0xff]  ;;  %v4868_v18 = vor.u32 %v4867_v27, %v4864_v47 }
 0x16c   : > { %v6659_v20 = vpop.f32.mrf.mxu0  ;;  %6958 = vmatmul.mubr.bf16.gmra.mxu0 %v3769_v49  ;;  %v3774_v50 = vrot.slane %v9363_v54, 3  ;;  %v9368_v54 = vld [vmem:[#allocation10_spill] sm:$0xff] }
 0x16d   : > { %v8663_v33 = vadd.f32 %v1904_v16, %v1510_v11  ;;  %v1515_v2 = vadd.f32 %v6659_v20, %v9362_v5  ;;  %v6711_v24 = vpop.f32.mrf.mxu1  ;;  %7010 = vmatmul.mubr.bf16.gmra.mxu1 %v4824_v41  ;;  %6961 = vmatprep.mubr.bf16.mxu0 %v3771_v26  ;;  %v4855_v41 = vrot.slane %v4853_v44, 1  ;;  %v4842_v26 = vsel %vm2005_vm2, %v4832_v56, %v4841_v32  ;;  %v9365_v16 = vld [vmem:[#allocation15_spill] sm:$0xff]  ;;  %v7201_v20 = vld [vmem:[%s7296_s28 + $0x90] sm:$0xff]  }
 0x16e   : > { %v1454_v30 = vpop.f32.mrf.mxu0  ;;  %7013 = vmatprep.mubr.bf16.mxu1 %v4833_v45  ;;  %v3775_v45 = vsel %vm3748_vm4, %v3772_v63, %v3774_v50  ;;  %v9367_v63 = vld [vmem:[#allocation6_spill] sm:$0xff]  ;;  %v3778_v51 = vrot.slane %v9368_v54, 3  ;;  %v4874_v32 = vshll.u32 %v7200_v52, 16 }
 0x16f   : > { %v8667_v37 = vadd.f32 %v6711_v24, %v1515_v2  ;;  %v1513_v46 = vadd.f32 %v1454_v30, %v9364_v55  ;;  %v1917_v35 = vpop.f32.mrf.mxu1  ;;  %v9366_v2 = vld [vmem:[#allocation16_spill] sm:$0xff]  ;;  %v3776_v44 = vrot.slane %v9367_v63, 3  ;;  %v4859_v9 = vor.u32 %v4858_v36, %v4855_v41 }
 0x170   : > { %v6660_v14 = vpop.f32.mrf.mxu0  ;;  %v4871_v55 = vshrl.u32 %v7200_v52, 16 }
 0x171   : > { %v8671_v22 = vadd.f32 %v1917_v35, %v1513_v46  ;;  %v1516_v6 = vadd.f32 %v6660_v14, %v8488_v17  ;;  %v6712_v49 = vpop.f32.mrf.mxu1  ;;  %v9369_v35 = vld [vmem:[#allocation17_spill] sm:$0xff]  ;;  %v4860_v47 = vsel %vm2005_vm2, %v4850_v10, %v4859_v9  ;;  %v3779_v52 = vsel %vm3748_vm4, %v3776_v44, %v3778_v51 }
 0x172   : > { %v1457_v7 = vpop.f32.mrf.mxu0  ;;  %v9372_v10 = vld [vmem:[#allocation21_spill] sm:$0xff] }
 0x173   : > { %v8677_v11 = vadd.f32 %v6712_v49, %v1516_v6  ;;  %v1514_v42 = vadd.f32 %v1457_v7, %v9365_v16  ;;  %v1920_v12 = vpop.f32.mrf.mxu1  ;;  %v4880_v6 = vshrl.u32 %v7201_v20, 16  ;;  %v4883_v49 = vshll.u32 %v7201_v20, 16  ;;  %v9371_v20 = vld [vmem:[#allocation20_spill] sm:$0xff] }
 0x174   : > { %v6663_v17 = vpop.f32.mrf.mxu0  ;;  %6962 = vmatmul.mubr.bf16.gmra.mxu0 %v3773_v19  ;;  %v3777_v16 = vsel %vm3748_vm4, %v3774_v50, %v3776_v44  ;;  %v9373_v44 = vld [vmem:[#allocation13_spill] sm:$0xff] }
 0x175   : > { %v8682_v5 = vadd.f32 %v1920_v12, %v1514_v42  ;;  %v1519_v24 = vadd.f32 %v6663_v17, %v9366_v2  ;;  %v6715_v56 = vpop.f32.mrf.mxu1  ;;  %7014 = vmatmul.mubr.bf16.gmra.mxu1 %v4842_v26  ;;  %6965 = vmatprep.mubr.bf16.mxu0 %v3775_v45  ;;  %v9370_v45 = vld [vmem:[#allocation19_spill] sm:$0xff]  ;;  %v4869_v42 = vsel %vm2005_vm2, %v4859_v9, %v4868_v18  ;;  %v4873_v12 = vrot.slane %v4871_v55, 1  ;;  %v7202_v17 = vld [vmem:[%s7296_s28 + $0x98] ss:$0 sps:$4 sm:$0x33]   ;;  %s7030_s28 = smul.u32 144, %s9398_s25 }
 0x176   : > { %v1470_v30 = vpop.f32.mrf.mxu0  ;;  %7017 = vmatprep.mubr.bf16.mxu1 %v4851_v23  ;;  %v4876_v23 = vrot.slane %v4874_v32, 2  ;;  %v4882_v63 = vrot.slane %v4880_v6, 1  ;;  %v3780_v9 = vrot.slane %v9373_v44, 3 }
 0x177   : > { %v8687_v46 = vadd.f32 %v6715_v56, %v1519_v24  ;;  %v1517_v14 = vadd.f32 %v1470_v30, %v9369_v35  ;;  %v1933_v19 = vpop.f32.mrf.mxu1  ;;  %v4885_v30 = vrot.slane %v4883_v49, 2  ;;  %v9375_v49 = vld [vmem:[#allocation22_spill] sm:$0xff]  ;;  %s8969_s20 = scalar_lea.vmem %s9292_s5, %s7030_s28  ;;  %s8977_s23 = scalar_lea.vmem %s9291_s4, %s7030_s28 }
 0x178   : > { %v6664_v7 = vpop.f32.mrf.mxu0  ;;  %v4877_v32 = vor.u32 %v4876_v23, %v4873_v12 }
 0x179   : > { %v8690_v26 = vadd.f32 %v1933_v19, %v1517_v14  ;;  %v1520_v41 = vadd.f32 %v6664_v7, %v9370_v45  ;;  %v6716_v36 = vpop.f32.mrf.mxu1  ;;  %v9374_v19 = vld [vmem:[#allocation14_spill] sm:$0xff]  ;;  %v4889_v45 = vshrl.u32 %v7202_v17, 16 }
 0x17a   : > { %v1473_v27 = vpop.f32.mrf.mxu0  ;;  %v3782_v7 = vrot.slane %v9374_v19, 3  ;;  %v4878_v12 = vsel %vm2005_vm2, %v4868_v18, %v4877_v32  ;;  %v9376_v18 = vld [vmem:[#allocation18_spill] sm:$0xff] }
 0x17b   : > { %v8698_v2 = vadd.f32 %v6716_v36, %v1520_v41  ;;  %v1518_v24 = vadd.f32 %v1473_v27, %v9371_v20  ;;  %v1936_v56 = vpop.f32.mrf.mxu1  ;;  %v4892_v41 = vshll.u32 %v7202_v17, 16  ;;  %v4886_v27 = vor.u32 %v4885_v30, %v4882_v63 }
 0x17c   : > { %v6735_v54 = vpop.f32.mrf.mxu0  ;;  %6966 = vmatmul.mubr.bf16.gmra.mxu0 %v3777_v16  ;;  %v3783_v23 = vsel %vm3748_vm4, %v3780_v9, %v3782_v7  ;;  %v4891_v17 = vrot.slane %v4889_v45, 1 }
 0x17d   : > { %v8701_v50 = vadd.f32 %v1936_v56, %v1518_v24  ;;  %v2421_v35 = vadd.f32 %v6735_v54, %v9372_v10  ;;  %v6787_v14 = vpop.f32.mrf.mxu1  ;;  %7018 = vmatmul.mubr.bf16.gmra.mxu1 %v4860_v47  ;;  %6969 = vmatprep.mubr.bf16.mxu0 %v3779_v52  ;;  %v3781_v56 = vsel %vm3748_vm4, %v3778_v51, %v3780_v9  ;;  %v4894_v54 = vrot.slane %v4892_v41, 2 }
 0x17e   : > { %v2276_v55 = vpop.f32.mrf.mxu0  ;;  %7021 = vmatprep.mubr.bf16.mxu1 %v4869_v42  ;;  %v4887_v30 = vsel %vm2005_vm2, %v4877_v32, %v4886_v27  ;;  %v3784_v9 = vrot.slane %v9376_v18, 3 }
 0x17f   : > { %v8706_v6 = vadd.f32 %v6787_v14, %v2421_v35  ;;  %v2419_v36 = vadd.f32 %v2276_v55, %v9375_v49  ;;  %v2614_v16 = vpop.f32.mrf.mxu1  ;;  %v4895_v19 = vor.u32 %v4894_v54, %v4891_v17 }
 0x180   : > { %v6736_v20 = vpop.f32.mrf.mxu0 }
 0x181   : > { %v8709_v24 = vadd.f32 %v2614_v16, %v2419_v36  ;;  %v2422_v47 = vadd.f32 %v6736_v20, %v8540_v43  ;;  %v6788_v52 = vpop.f32.mrf.mxu1 }
 0x182   : > { %v2279_v42 = vpop.f32.mrf.mxu0 }
 0x183   : > { %v8715_v10 = vadd.f32 %v6788_v52, %v2422_v47  ;;  %v2420_v35 = vadd.f32 %v2279_v42, %v8543_v53  ;;  %v2617_v63 = vpop.f32.mrf.mxu1  ;;  %v4896_v47 = vsel %vm2005_vm2, %v4886_v27, %v4895_v19 }
 0x184   : > { %v6739_v14 = vpop.f32.mrf.mxu0  ;;  %6970 = vmatmul.mubr.bf16.gmra.mxu0 %v3781_v56 }
 0x185   : > { %v8719_v43 = vadd.f32 %v2617_v63, %v2420_v35  ;;  %v2425_v51 = vadd.f32 %v6739_v14, %v8546_v58  ;;  %v6791_v44 = vpop.f32.mrf.mxu1  ;;  %7022 = vmatmul.mubr.bf16.gmra.mxu1 %v4878_v12  ;;  %6973 = vmatprep.mubr.bf16.mxu0 %v3783_v23  ;;  %v3785_v58 = vsel %vm3748_vm4, %v3782_v7, %v3784_v9 }
 0x186   : > { %v2292_v55 = vpop.f32.mrf.mxu0  ;;  %7025 = vmatprep.mubr.bf16.mxu1 %v4887_v30 }
 0x187   : > { %v8723_v45 = vadd.f32 %v6791_v44, %v2425_v51  ;;  %v2423_v53 = vadd.f32 %v2292_v55, %v8550_v3  ;;  %v2630_v41 = vpop.f32.mrf.mxu1 }
 0x188   : > { %v6740_v32 = vpop.f32.mrf.mxu0 }
 0x189   : > { %v8726_v49 = vadd.f32 %v2630_v41, %v2423_v53  ;;  %v2426_v36 = vadd.f32 %v6740_v32, %v8555_v28  ;;  %v6792_v16 = vpop.f32.mrf.mxu1 }
 0x18a   : > { %v2295_v20 = vpop.f32.mrf.mxu0 }
 0x18b   : > { %v8731_v52 = vadd.f32 %v6792_v16, %v2426_v36  ;;  %v2424_v56 = vadd.f32 %v2295_v20, %v8560_v15  ;;  %v2633_v42 = vpop.f32.mrf.mxu1 }
 0x18c   : > { %v6743_v12 = vpop.f32.mrf.mxu0  ;;  %6974 = vmatmul.mubr.bf16.gmra.mxu0 %v3785_v58 }
 0x18d   : > { %v8734_v3 = vadd.f32 %v2633_v42, %v2424_v56  ;;  %v2429_v23 = vadd.f32 %v6743_v12, %v8565_v57  ;;  %v6795_v17 = vpop.f32.mrf.mxu1  ;;  %7026 = vmatmul.mubr.bf16.gmra.mxu1 %v4896_v47 }
 0x18e   : > { %v2308_v28 = vpop.f32.mrf.mxu0 }
 0x18f   : > { %v8737_v54 = vadd.f32 %v6795_v17, %v2429_v23  ;;  %v2427_v7 = vadd.f32 %v2308_v28, %v8568_v38  ;;  %v2646_v35 = vpop.f32.mrf.mxu1 }
 0x190   : > { %v6744_v27 = vpop.f32.mrf.mxu0 }
 0x191   : > { %v8740_v63 = vadd.f32 %v2646_v35, %v2427_v7  ;;  %v2430_v15 = vadd.f32 %v6744_v27, %v8578_v31  ;;  %v6796_v30 = vpop.f32.mrf.mxu1 }
 0x192   : > { %v2311_v14 = vpop.f32.mrf.mxu0 }
 0x193   : > { %v8743_v51 = vadd.f32 %v6796_v30, %v2430_v15  ;;  %v2428_v44 = vadd.f32 %v2311_v14, %v8583_v25  ;;  %v2649_v57 = vpop.f32.mrf.mxu1 }
 0x194   : > { %v6747_v18 = vpop.f32.mrf.mxu0 }
 0x195   : > { %v8746_v9 = vadd.f32 %v2649_v57, %v2428_v44  ;;  %v2433_v55 = vadd.f32 %v6747_v18, %v8587_v4  ;;  %v6799_v19 = vpop.f32.mrf.mxu1 }
 0x196   : > { %v2324_v38 = vpop.f32.mrf.mxu0 }
 0x197   : > { %v8749_v53 = vadd.f32 %v6799_v19, %v2433_v55  ;;  %v2431_v41 = vadd.f32 %v2324_v38, %v8591_v40  ;;  %v2662_v32 = vpop.f32.mrf.mxu1 }
 0x198   : > { %v6748_v31 = vpop.f32.mrf.mxu0 }
 0x199   : > { %v8752_v36 = vadd.f32 %v2662_v32, %v2431_v41  ;;  %v2434_v16 = vadd.f32 %v6748_v31, %v8597_v1  ;;  %v6800_v58 = vpop.f32.mrf.mxu1 }
 0x19a   : > { %v2327_v25 = vpop.f32.mrf.mxu0 }
 0x19b   : > { %v8755_v20 = vadd.f32 %v6800_v58, %v2434_v16  ;;  %v2432_v47 = vadd.f32 %v2327_v25, %v8602_v13  ;;  %v2665_v56 = vpop.f32.mrf.mxu1 }
 0x19c   : > { %v6751_v4 = vpop.f32.mrf.mxu0 }
 0x19d   : > { %v8758_v42 = vadd.f32 %v2665_v56, %v2432_v47  ;;  %v2437_v12 = vadd.f32 %v6751_v4, %v8607_v39  ;;  %v6803_v23 = vpop.f32.mrf.mxu1 }
 0x19e   : > { %v2340_v40 = vpop.f32.mrf.mxu0 }
 0x19f   : > { %v8761_v17 = vadd.f32 %v6803_v23, %v2437_v12  ;;  %v2435_v28 = vadd.f32 %v2340_v40, %v8610_v0  ;;  %v2678_v7 = vpop.f32.mrf.mxu1 }
 0x1a0   : > { %v6752_v1 = vpop.f32.mrf.mxu0 }
 0x1a1   : > { %v8764_v35 = vadd.f32 %v2678_v7, %v2435_v28  ;;  %v2438_v27 = vadd.f32 %v6752_v1, %v8619_v59  ;;  %v6804_v15 = vpop.f32.mrf.mxu1 }
 0x1a2   : > { %v2343_v13 = vpop.f32.mrf.mxu0 }
 0x1a3   : > { %v8767_v30 = vadd.f32 %v6804_v15, %v2438_v27  ;;  %v2436_v14 = vadd.f32 %v2343_v13, %v8623_v48  ;;  %v2681_v44 = vpop.f32.mrf.mxu1 }
 0x1a4   : > { %v6755_v39 = vpop.f32.mrf.mxu0 }
 0x1a5   : > { %v8770_v57 = vadd.f32 %v2681_v44, %v2436_v14  ;;  %v2441_v18 = vadd.f32 %v6755_v39, %v8627_v62  ;;  %v6807_v55 = vpop.f32.mrf.mxu1 }
 0x1a6   : > { %v2356_v0 = vpop.f32.mrf.mxu0 }
 0x1a7   : > { %v8773_v19 = vadd.f32 %v6807_v55, %v2441_v18  ;;  %v2439_v38 = vadd.f32 %v2356_v0, %v8631_v29  ;;  %v2694_v41 = vpop.f32.mrf.mxu1 }
 0x1a8   : > { %v6756_v59 = vpop.f32.mrf.mxu0 }
 0x1a9   : > { %v8776_v32 = vadd.f32 %v2694_v41, %v2439_v38  ;;  %v2442_v31 = vadd.f32 %v6756_v59, %v8637_v34  ;;  %v6808_v16 = vpop.f32.mrf.mxu1 }
 0x1aa   : > { %v2359_v48 = vpop.f32.mrf.mxu0 }
 0x1ab   : > { %v8779_v58 = vadd.f32 %v6808_v16, %v2442_v31  ;;  %v2440_v25 = vadd.f32 %v2359_v48, %v8642_v21  ;;  %v2697_v47 = vpop.f32.mrf.mxu1 }
 0x1ac   : > { %v6759_v62 = vpop.f32.mrf.mxu0 }
 0x1ad   : > { %v8782_v56 = vadd.f32 %v2697_v47, %v2440_v25  ;;  %v2445_v4 = vadd.f32 %v6759_v62, %v8647_v8  ;;  %v6811_v12 = vpop.f32.mrf.mxu1 }
 0x1ae   : > { %v2372_v29 = vpop.f32.mrf.mxu0 }
 0x1af   : > { %v8785_v23 = vadd.f32 %v6811_v12, %v2445_v4  ;;  %v2443_v40 = vadd.f32 %v2372_v29, %v8650_v61  ;;  %v2710_v28 = vpop.f32.mrf.mxu1 }
 0x1b0   : > { %v6760_v34 = vpop.f32.mrf.mxu0 }
 0x1b1   : > { %v8788_v7 = vadd.f32 %v2710_v28, %v2443_v40  ;;  %v2446_v1 = vadd.f32 %v6760_v34, %v8659_v60  ;;  %v6812_v27 = vpop.f32.mrf.mxu1 }
 0x1b2   : > { %v2375_v21 = vpop.f32.mrf.mxu0 }
 0x1b3   : > { %v8791_v15 = vadd.f32 %v6812_v27, %v2446_v1  ;;  %v2444_v13 = vadd.f32 %v2375_v21, %v8663_v33  ;;  %v2713_v14 = vpop.f32.mrf.mxu1 }
 0x1b4   : > { %v6763_v8 = vpop.f32.mrf.mxu0 }
 0x1b5   : > { %v8794_v44 = vadd.f32 %v2713_v14, %v2444_v13  ;;  %v2449_v39 = vadd.f32 %v6763_v8, %v8667_v37  ;;  %v6815_v18 = vpop.f32.mrf.mxu1 }
 0x1b6   : > { %v2388_v61 = vpop.f32.mrf.mxu0 }
 0x1b7   : > { %v8797_v55 = vadd.f32 %v6815_v18, %v2449_v39  ;;  %v2447_v0 = vadd.f32 %v2388_v61, %v8671_v22  ;;  %v2726_v38 = vpop.f32.mrf.mxu1 }
 0x1b8   : > { %v6764_v60 = vpop.f32.mrf.mxu0 }
 0x1b9   : > { %v8800_v41 = vadd.f32 %v2726_v38, %v2447_v0  ;;  %v2450_v59 = vadd.f32 %v6764_v60, %v8677_v11  ;;  %v6816_v31 = vpop.f32.mrf.mxu1 }
 0x1ba   : > { %v2391_v33 = vpop.f32.mrf.mxu0 }
 0x1bb   : > { %v8803_v16 = vadd.f32 %v6816_v31, %v2450_v59  ;;  %v2448_v48 = vadd.f32 %v2391_v33, %v8682_v5  ;;  %v2729_v25 = vpop.f32.mrf.mxu1 }
 0x1bc   : > { %v6767_v37 = vpop.f32.mrf.mxu0 }
 0x1bd   : > { %v8806_v47 = vadd.f32 %v2729_v25, %v2448_v48  ;;  %v2453_v62 = vadd.f32 %v6767_v37, %v8687_v46  ;;  %v6819_v4 = vpop.f32.mrf.mxu1 }
 0x1be   : > { %v2404_v22 = vpop.f32.mrf.mxu0 }
 0x1bf   : > { %v8809_v12 = vadd.f32 %v6819_v4, %v2453_v62  ;;  %v2451_v29 = vadd.f32 %v2404_v22, %v8690_v26  ;;  %v2742_v40 = vpop.f32.mrf.mxu1 }
 0x1c0   : > { %v6768_v11 = vpop.f32.mrf.mxu0 }
 0x1c1   : > { %v8812_v28 = vadd.f32 %v2742_v40, %v2451_v29  ;;  %v2454_v34 = vadd.f32 %v6768_v11, %v8698_v2  ;;  %v6820_v1 = vpop.f32.mrf.mxu1 }
 0x1c2   : > { %v2407_v5 = vpop.f32.mrf.mxu0 }
 0x1c3   : > { %v8815_v27 = vadd.f32 %v6820_v1, %v2454_v34  ;;  %v2452_v21 = vadd.f32 %v2407_v5, %v8701_v50  ;;  %v2745_v13 = vpop.f32.mrf.mxu1 }
 0x1c4   : > { %v6839_v46 = vpop.f32.mrf.mxu0 }
 0x1c5   : > { %v8818_v14 = vadd.f32 %v2745_v13, %v2452_v21  ;;  %v3222_v8 = vadd.f32 %v6839_v46, %v8706_v6  ;;  %v6891_v39 = vpop.f32.mrf.mxu1 }
 0x1c6   : > { %v3077_v26 = vpop.f32.mrf.mxu0 }
 0x1c7   : > { %v8821_v18 = vadd.f32 %v6891_v39, %v3222_v8  ;;  %v3220_v61 = vadd.f32 %v3077_v26, %v8709_v24  ;;  %v3548_v0 = vpop.f32.mrf.mxu1 }
 0x1c8   : > { %v6840_v2 = vpop.f32.mrf.mxu0 }
 0x1c9   : > { %v8824_v38 = vadd.f32 %v3548_v0, %v3220_v61  ;;  %v3223_v60 = vadd.f32 %v6840_v2, %v8715_v10  ;;  %v6892_v59 = vpop.f32.mrf.mxu1 }
 0x1ca   : > { %v3080_v50 = vpop.f32.mrf.mxu0 }
 0x1cb   : > { %v8827_v31 = vadd.f32 %v6892_v59, %v3223_v60  ;;  %v3221_v33 = vadd.f32 %v3080_v50, %v8719_v43  ;;  %v3551_v48 = vpop.f32.mrf.mxu1 }
 0x1cc   : > { %v6843_v6 = vpop.f32.mrf.mxu0 }
 0x1cd   : > { %v8830_v25 = vadd.f32 %v3551_v48, %v3221_v33  ;;  %v3226_v37 = vadd.f32 %v6843_v6, %v8723_v45  ;;  %v6895_v62 = vpop.f32.mrf.mxu1 }
 0x1ce   : > { %v3093_v24 = vpop.f32.mrf.mxu0 }
 0x1cf   : > { %v8833_v4 = vadd.f32 %v6895_v62, %v3226_v37  ;;  %v3224_v22 = vadd.f32 %v3093_v24, %v8726_v49  ;;  %v3564_v29 = vpop.f32.mrf.mxu1 }
 0x1d0   : > { %v6844_v10 = vpop.f32.mrf.mxu0 }
 0x1d1   : > { %v8836_v40 = vadd.f32 %v3564_v29, %v3224_v22  ;;  %v3227_v11 = vadd.f32 %v6844_v10, %v8731_v52  ;;  %v6896_v34 = vpop.f32.mrf.mxu1 }
 0x1d2   : > { %v3096_v43 = vpop.f32.mrf.mxu0 }
 0x1d3   : > { %v8839_v1 = vadd.f32 %v6896_v34, %v3227_v11  ;;  %v3225_v5 = vadd.f32 %v3096_v43, %v8734_v3  ;;  %v3567_v21 = vpop.f32.mrf.mxu1 }
 0x1d4   : > { %v6847_v45 = vpop.f32.mrf.mxu0 }
 0x1d5   : > { %v8842_v13 = vadd.f32 %v3567_v21, %v3225_v5  ;;  %v3230_v46 = vadd.f32 %v6847_v45, %v8737_v54  ;;  %v6899_v8 = vpop.f32.mrf.mxu1 }
 0x1d6   : > { %v3109_v49 = vpop.f32.mrf.mxu0 }
 0x1d7   : > { %v8845_v39 = vadd.f32 %v6899_v8, %v3230_v46  ;;  %v3228_v26 = vadd.f32 %v3109_v49, %v8740_v63  ;;  %v3580_v61 = vpop.f32.mrf.mxu1 }
 0x1d8   : > { %v6848_v52 = vpop.f32.mrf.mxu0 }
 0x1d9   : > { %v8848_v0 = vadd.f32 %v3580_v61, %v3228_v26  ;;  %v3231_v2 = vadd.f32 %v6848_v52, %v8743_v51  ;;  %v6900_v60 = vpop.f32.mrf.mxu1 }
 0x1da   : > { %v3112_v3 = vpop.f32.mrf.mxu0 }
 0x1db   : > { %v8851_v59 = vadd.f32 %v6900_v60, %v3231_v2  ;;  %v3229_v50 = vadd.f32 %v3112_v3, %v8746_v9  ;;  %v3583_v33 = vpop.f32.mrf.mxu1  ;;  %v8877_v60 = vpop.permute.xlu1 %4108 }
 0x1dc   : > { %v6851_v54 = vpop.f32.mrf.mxu0  ;;  %vm4211_vm3 = vcmp.eq.s32.totalorder %v8877_v60, 1 }
 0x1dd   : > { %v8854_v48 = vadd.f32 %v3583_v33, %v3229_v50  ;;  %v3234_v6 = vadd.f32 %v6851_v54, %v8749_v53  ;;  %v6903_v37 = vpop.f32.mrf.mxu1 }
 0x1de   : > { %v3125_v63 = vpop.f32.mrf.mxu0 }
 0x1df   : > { %v8857_v62 = vadd.f32 %v6903_v37, %v3234_v6  ;;  %v3232_v24 = vadd.f32 %v3125_v63, %v8752_v36  ;;  %v3596_v22 = vpop.f32.mrf.mxu1  ;;  %v8869_v36 = vpop.permute.xlu0 %4102 }
 0x1e0   : > { %v6852_v51 = vpop.f32.mrf.mxu0  ;;  %vm4209_vm2 = vcmp.eq.s32.totalorder %v8869_v36, 1 }
 0x1e1   : > { %v8860_v29 = vadd.f32 %v3596_v22, %v3232_v24  ;;  %v3235_v10 = vadd.f32 %v6852_v51, %v8755_v20  ;;  %v6904_v11 = vpop.f32.mrf.mxu1 }
 0x1e2   : > { %v3128_v9 = vpop.f32.mrf.mxu0 }
 0x1e3   : > { %v8863_v34 = vadd.f32 %v6904_v11, %v3235_v10  ;;  %v3233_v43 = vadd.f32 %v3128_v9, %v8758_v42  ;;  %v3599_v5 = vpop.f32.mrf.mxu1  ;;  %v8882_v54 = vpop.permute.xlu0 %4105 }
 0x1e4   : > { %v6855_v53 = vpop.f32.mrf.mxu0  ;;  %v8890_v10 = vpop.permute.xlu1 %4111  ;;  %vm4210_vm10 = vcmp.eq.s32.totalorder %v8882_v54, 1 }
 0x1e5   : > { %v8866_v21 = vadd.f32 %v3599_v5, %v3233_v43  ;;  %v3238_v45 = vadd.f32 %v6855_v53, %v8761_v17  ;;  %v6907_v46 = vpop.f32.mrf.mxu1  ;;  %vm4212_vm4 = vcmp.eq.s32.totalorder %v8890_v10, 1 }
 0x1e6   : > { %v3141_v8 = vpop.f32.mrf.mxu0 }
 0x1e7   : > { %v8871_v49 = vadd.f32 %v6907_v46, %v3238_v45  ;;  %v3236_v20 = vadd.f32 %v3141_v8, %v8764_v35  ;;  %v3612_v26 = vpop.f32.mrf.mxu1  ;;  %v8895_v5 = vpop.permute.xlu0 %4114 }
 0x1e8   : > { %v6856_v61 = vpop.f32.mrf.mxu0  ;;  %vm4213_vm1 = vcmp.eq.s32.totalorder %v8895_v5, 1 }
 0x1e9   : > { %v8874_v52 = vadd.f32 %v3612_v26, %v3236_v20  ;;  %v3239_v42 = vadd.f32 %v6856_v61, %v8767_v30  ;;  %v6908_v2 = vpop.f32.mrf.mxu1  ;;  %v8903_v61 = vpop.permute.xlu1 %4117 }
 0x1ea   : > { %v3144_v3 = vpop.f32.mrf.mxu0  ;;  %vm4214_vm7 = vcmp.eq.s32.totalorder %v8903_v61, 1 }
 0x1eb   : > { %v8879_v50 = vadd.f32 %v6908_v2, %v3239_v42  ;;  %v3237_v17 = vadd.f32 %v3144_v3, %v8770_v57  ;;  %v3615_v33 = vpop.f32.mrf.mxu1 }
 0x1ec   : > { %v6859_v6 = vpop.f32.mrf.mxu0 }
 0x1ed   : > { %v8884_v37 = vadd.f32 %v3615_v33, %v3237_v17  ;;  %v3242_v35 = vadd.f32 %v6859_v6, %v8773_v19  ;;  %v6911_v63 = vpop.f32.mrf.mxu1  ;;  %v8908_v17 = vpop.permute.xlu0 %4120 }
 0x1ee   : > { %v3157_v24 = vpop.f32.mrf.mxu0  ;;  %vm4215_vm5 = vcmp.eq.s32.totalorder %v8908_v17, 1 }
 0x1ef   : > { %v8887_v22 = vadd.f32 %v6911_v63, %v3242_v35  ;;  %v3240_v30 = vadd.f32 %v3157_v24, %v8776_v32  ;;  %v3628_v51 = vpop.f32.mrf.mxu1 }
 0x1f0   : > { %v6860_v11 = vpop.f32.mrf.mxu0 }
 0x1f1   : > { %v8892_v9 = vadd.f32 %v3628_v51, %v3240_v30  ;;  %v3243_v57 = vadd.f32 %v6860_v11, %v8779_v58  ;;  %v6912_v43 = vpop.f32.mrf.mxu1  ;;  %v8916_v51 = vpop.permute.xlu1 %4123 }
 0x1f2   : > { %v3160_v53 = vpop.f32.mrf.mxu0  ;;  %vm4216_vm6 = vcmp.eq.s32.totalorder %v8916_v51, 1 }
 0x1f3   : > { %v8897_v45 = vadd.f32 %v6912_v43, %v3243_v57  ;;  %v3241_v19 = vadd.f32 %v3160_v53, %v8782_v56  ;;  %v3631_v46 = vpop.f32.mrf.mxu1  ;;  %v8921_v53 = vpop.permute.xlu0 %4126 }
 0x1f4   : > { %v6863_v8 = vpop.f32.mrf.mxu0  ;;  %vm4217_vm8 = vcmp.eq.s32.totalorder %v8921_v53, 1 }
 0x1f5   : > { %v8900_v20 = vadd.f32 %v3631_v46, %v3241_v19  ;;  %v3246_v32 = vadd.f32 %v6863_v8, %v8785_v23  ;;  %v6915_v26 = vpop.f32.mrf.mxu1 }
 0x1f6   : > { %v3173_v42 = vpop.f32.mrf.mxu0 }
 0x1f7   : > { %v8905_v2 = vadd.f32 %v6915_v26, %v3246_v32  ;;  %v3244_v58 = vadd.f32 %v3173_v42, %v8788_v7  ;;  %v3644_v3 = vpop.f32.mrf.mxu1 }
 0x1f8   : > { %v6864_v33 = vpop.f32.mrf.mxu0 }
 0x1f9   : > { %v8910_v6 = vadd.f32 %v3644_v3, %v3244_v58  ;;  %v3247_v56 = vadd.f32 %v6864_v33, %v8791_v15  ;;  %v6916_v35 = vpop.f32.mrf.mxu1  ;;  %v8929_v58 = vpop.permute.xlu1 %4129 }
 0x1fa   : > { %v3176_v63 = vpop.f32.mrf.mxu0  ;;  %vm4218_vm12 = vcmp.eq.s32.totalorder %v8929_v58, 1 }
 0x1fb   : > { %v8913_v24 = vadd.f32 %v6916_v35, %v3247_v56  ;;  %v3245_v23 = vadd.f32 %v3176_v63, %v8794_v44  ;;  %v3647_v30 = vpop.f32.mrf.mxu1  ;;  %v8934_v35 = vpop.permute.xlu0 %4132 }
 0x1fc   : > { %v6867_v11 = vpop.f32.mrf.mxu0  ;;  %vm4219_vm9 = vcmp.eq.s32.totalorder %v8934_v35, 1 }
 0x1fd   : > { %9377 = vst [vmem:[#allocation4_spill] sm:$0xff] %v8913_v24  ;;  %v8918_v57 = vadd.f32 %v3647_v30, %v3245_v23  ;;  %v3250_v7 = vadd.f32 %v6867_v11, %v8797_v55  ;;  %v6919_v43 = vpop.f32.mrf.mxu1 }
 0x1fe   : > { %v3189_v19 = vpop.f32.mrf.mxu0 }
 0x1ff   : > { %9378 = vst [vmem:[#allocation7_spill] sm:$0xff] %v8918_v57  ;;  %v8923_v46 = vadd.f32 %v6919_v43, %v3250_v7  ;;  %v3248_v15 = vadd.f32 %v3189_v19, %v8800_v41  ;;  %v3660_v8 = vpop.f32.mrf.mxu1  ;;  %v8942_v19 = vpop.permute.xlu1 %4135 }
 0x200   : > { %v6868_v32 = vpop.f32.mrf.mxu0  ;;  %vm4220_vm11 = vcmp.eq.s32.totalorder %v8942_v19, 1 }
 0x201   : > { %9379 = vst [vmem:[#allocation5_spill] sm:$0xff] %v8923_v46  ;;  %v8926_v26 = vadd.f32 %v3660_v8, %v3248_v15  ;;  %v3251_v44 = vadd.f32 %v6868_v32, %v8803_v16  ;;  %v6920_v42 = vpop.f32.mrf.mxu1 }
 0x202   : > { %v3192_v3 = vpop.f32.mrf.mxu0 }
 0x203   : > { %9380 = vst [vmem:[#allocation2_spill] sm:$0xff] %v8926_v26  ;;  %v8931_v33 = vadd.f32 %v6920_v42, %v3251_v44  ;;  %v3249_v55 = vadd.f32 %v3192_v3, %v8806_v47  ;;  %v3663_v56 = vpop.f32.mrf.mxu1  ;;  %v8947_v44 = vpop.permute.xlu0 %4138 }
 0x204   : > { %v6871_v63 = vpop.f32.mrf.mxu0  ;;  %vm4221_vm13 = vcmp.eq.s32.totalorder %v8947_v44, 1 }
 0x205   : > { %9381 = vst [vmem:[#allocation8_spill] sm:$0xff] %v8931_v33  ;;  %v8936_v23 = vadd.f32 %v3663_v56, %v3249_v55  ;;  %v3254_v41 = vadd.f32 %v6871_v63, %v8809_v12  ;;  %v6923_v30 = vpop.f32.mrf.mxu1 }
 0x206   : > { %v3205_v11 = vpop.f32.mrf.mxu0 }
 0x207   : > { %9382 = vst [vmem:[#allocation9_spill] sm:$0xff] %v8936_v23  ;;  %v8939_v7 = vadd.f32 %v6923_v30, %v3254_v41  ;;  %v3252_v16 = vadd.f32 %v3205_v11, %v8812_v28  ;;  %v3676_v43 = vpop.f32.mrf.mxu1  ;;  %v8955_v41 = vpop.permute.xlu1 %4141 }
 0x208   : > { %v6872_v15 = vpop.f32.mrf.mxu0  ;;  %vm4222_vm0 = vcmp.eq.s32.totalorder %v8955_v41, 1 }
 0x209   : > { %9383 = vst [vmem:[#allocation11_spill] sm:$0xff] %v8939_v7  ;;  %v8944_v47 = vadd.f32 %v3676_v43, %v3252_v16  ;;  %v3255_v8 = vadd.f32 %v6872_v15, %v8815_v27  ;;  %v6924_v32 = vpop.f32.mrf.mxu1 }
 0x20a   : > { %v3208_v42 = vpop.f32.mrf.mxu0 }
 0x20b   : > { %9384 = vst [vmem:[#allocation3_spill] sm:$0xff] %v8944_v47  ;;  %v8949_v12 = vadd.f32 %v6924_v32, %v3255_v8  ;;  %v3253_v3 = vadd.f32 %v3208_v42, %v8818_v14  ;;  %v3679_v55 = vpop.f32.mrf.mxu1  ;;  %v8962_v14 = vpop.permute.xlu0 %4144 }
 0x20c   : > { %v6943_v56 = vpop.f32.mrf.mxu0  ;;  %v8980_v42 = vpop.permute.xlu1 %4147  ;;  %vm4223_vm14 = vcmp.eq.s32.totalorder %v8962_v14, 1 }
 0x20d   : > { %9385 = vst [vmem:[#allocation12_spill] sm:$0xff] %v8949_v12  ;;  %v8952_v63 = vadd.f32 %v3679_v55, %v3253_v3  ;;  %v6995_v28 = vpop.f32.mrf.mxu1  ;;  %v4031_v27 = vadd.f32 %v6943_v56, %v8821_v18  ;;  %vm4224_vm15 = vcmp.eq.s32.totalorder %v8980_v42, 1 }
 0x20e   : > { %v3886_v30 = vpop.f32.mrf.mxu0  ;;  %v5364_v3 = vmul.f32 %v6995_v28, %v6995_v28 }
 0x20f   : > { %9386 = vst [vmem:[#allocation15_spill] sm:$0xff] %v8952_v63  ;;  %v4029_v11 = vadd.f32 %v3886_v30, %v8824_v38  ;;  %v4997_v16 = vpop.f32.mrf.mxu1  ;;  %v4247_v10 = vsel %vm4211_vm3, %v4031_v27, 0.0 }
 0x210   : > { %v6944_v43 = vpop.f32.mrf.mxu0  ;;  %v4505_v33 = vmul.f32 %v4247_v10, %v4247_v10 }
 0x211   : > { %v4032_v15 = vadd.f32 %v6944_v43, %v8827_v31  ;;  %v6996_v18 = vpop.f32.mrf.mxu1  ;;  %v4245_v38 = vsel %vm4209_vm2, %v4029_v11, 0.0  ;;  %v5362_v43 = vmul.f32 %v4997_v16, %v4997_v16 }
 0x212   : > { %v6133_v36 = vpack.c.bf16 %v6996_v18, %v6995_v28  ;;  %v3889_v60 = vpop.f32.mrf.mxu0  ;;  %v4503_v27 = vmul.f32 %v4245_v38, %v4245_v38 }
 0x213   : > { %v4248_v31 = vsel %vm4212_vm4, %v4032_v15, 0.0  ;;  %v4030_v8 = vadd.f32 %v3889_v60, %v8830_v25  ;;  %v5000_v32 = vpop.f32.mrf.mxu1  ;;  %v8986_v25 = vpop.permute.xlu0 %4150 }
 0x214   : > { %v6043_v55 = vpack.c.bf16 %v4248_v31, %v4247_v10  ;;  %6232 = vst [vmem:[%s8969_s20 + $0x8] sm:$0xff] %v6133_v36   ;;  %v6128_v56 = vpack.c.bf16 %v5000_v32, %v4997_v16  ;;  %v5320_v30 = vadd.f32 %v5000_v32, %v4997_v16  ;;  %v6947_v11 = vpop.f32.mrf.mxu0  ;;  %v5363_v12 = vmul.f32 %v5000_v32, %v5000_v32 }
 0x215   : > { %v4246_v63 = vsel %vm4210_vm10, %v4030_v8, 0.0  ;;  %v6999_v15 = vpop.f32.mrf.mxu1  ;;  %v4035_v16 = vadd.f32 %v6947_v11, %v8833_v4  ;;  %v5365_v32 = vmul.f32 %v6996_v18, %v6996_v18  ;;  %v8998_v4 = vpop.permute.xlu1 %4153  ;;  %vm4225_vm2 = vcmp.eq.s32.totalorder %v8986_v25, 1 }
 0x216   : > { %6215 = vst [vmem:[%s8977_s23 + $0x8] sm:$0xff] %v6043_v55   ;;  %v6038_v60 = vpack.c.bf16 %v4246_v63, %v4245_v38  ;;  %v4461_v47 = vadd.f32 %v4246_v63, %v4245_v38  ;;  %v4504_v7 = vmul.f32 %v4246_v63, %v4246_v63  ;;  %6129 = vst [vmem:[%s8969_s20] sm:$0xff] %v6128_v56   ;;  %v3902_v23 = vpop.f32.mrf.mxu0  ;;  %vm4226_vm10 = vcmp.eq.s32.totalorder %v8998_v4, 1 }
 0x217   : > { %v5321_v36 = vadd.f32 %v6995_v28, %v5320_v30  ;;  %v5398_v26 = vadd.f32 %v5363_v12, %v5362_v43  ;;  %v4033_v54 = vadd.f32 %v3902_v23, %v8836_v40  ;;  %v5013_v8 = vpop.f32.mrf.mxu1  ;;  %v4506_v40 = vmul.f32 %v4248_v31, %v4248_v31 }
 0x218   : > { %6039 = vst [vmem:[%s8977_s23] sm:$0xff] %v6038_v60   ;;  %v4462_v46 = vadd.f32 %v4461_v47, %v4247_v10  ;;  %v4539_v57 = vadd.f32 %v4504_v7, %v4503_v27  ;;  %v6948_v24 = vpop.f32.mrf.mxu0  ;;  %v5366_v28 = vmul.f32 %v5013_v8, %v5013_v8 }
 0x219   : > { %v5322_v55 = vadd.f32 %v6996_v18, %v5321_v36  ;;  %v5399_v38 = vadd.f32 %v5398_v26, %v5364_v3  ;;  %v4249_v63 = vsel %vm4213_vm1, %v4033_v54, 0.0  ;;  %v4036_v12 = vadd.f32 %v6948_v24, %v8839_v1  ;;  %v7000_v56 = vpop.f32.mrf.mxu1  ;;  %v9005_v24 = vpop.permute.xlu0 %4156 }
 0x21a   : > { %v4540_v23 = vadd.f32 %v4539_v57, %v4505_v33  ;;  %v4463_v30 = vadd.f32 %v4462_v46, %v4248_v31  ;;  %v3905_v7 = vpop.f32.mrf.mxu0  ;;  %v4251_v26 = vsel %vm4215_vm5, %v4035_v16, 0.0  ;;  %v6143_v10 = vpack.c.bf16 %v7000_v56, %v6999_v15 }
 0x21b   : > { %v5323_v47 = vadd.f32 %v5322_v55, %v5013_v8  ;;  %v5400_v18 = vadd.f32 %v5399_v38, %v5365_v32  ;;  %v4252_v5 = vsel %vm4216_vm6, %v4036_v12, 0.0  ;;  %v5016_v1 = vpop.f32.mrf.mxu1  ;;  %v4507_v57 = vmul.f32 %v4249_v63, %v4249_v63  ;;  %v9016_v12 = vpop.permute.xlu1 %4159 }
 0x21c   : > { %v4464_v3 = vadd.f32 %v4463_v30, %v4249_v63  ;;  %v4541_v46 = vadd.f32 %v4540_v23, %v4506_v40  ;;  %v6053_v33 = vpack.c.bf16 %v4252_v5, %v4251_v26  ;;  %v6951_v31 = vpop.f32.mrf.mxu0  ;;  %6234 = vst [vmem:[%s8969_s20 + $0x18] sm:$0xff] %v6143_v10   ;;  %v4034_v17 = vadd.f32 %v3905_v7, %v8842_v13 }
 0x21d   : > { %v5401_v11 = vadd.f32 %v5400_v18, %v5366_v28  ;;  %v6138_v27 = vpack.c.bf16 %v5016_v1, %v5013_v8  ;;  %v5324_v51 = vadd.f32 %v5323_v47, %v5016_v1  ;;  %v7003_v43 = vpop.f32.mrf.mxu1  ;;  %v4509_v60 = vmul.f32 %v4251_v26, %v4251_v26 }
 0x21e   : > { %v5368_v36 = vmul.f32 %v6999_v15, %v6999_v15  ;;  %v4542_v16 = vadd.f32 %v4541_v46, %v4507_v57  ;;  %6217 = vst [vmem:[%s8977_s23 + $0x18] sm:$0xff] %v6053_v33   ;;  %v5367_v54 = vmul.f32 %v5016_v1, %v5016_v1  ;;  %v3918_v32 = vpop.f32.mrf.mxu0  ;;  %v4250_v55 = vsel %vm4214_vm7, %v4034_v17, 0.0 }
 0x21f   : > { %6233 = vst [vmem:[%s8969_s20 + $0x10] sm:$0xff] %v6138_v27   ;;  %v5325_v38 = vadd.f32 %v6999_v15, %v5324_v51  ;;  %v4039_v28 = vadd.f32 %v6951_v31, %v8845_v39  ;;  %v4037_v13 = vadd.f32 %v3918_v32, %v8848_v0  ;;  %v5029_v8 = vpop.f32.mrf.mxu1  ;;  %v6048_v40 = vpack.c.bf16 %v4250_v55, %v4249_v63  ;;  %v9021_v39 = vpop.permute.xlu0 %4162 }
 0x220   : > { %v4465_v23 = vadd.f32 %v4464_v3, %v4250_v55  ;;  %v4508_v30 = vmul.f32 %v4250_v55, %v4250_v55  ;;  %v5402_v47 = vadd.f32 %v5401_v11, %v5367_v54  ;;  %v6952_v7 = vpop.f32.mrf.mxu0  ;;  %v4510_v18 = vmul.f32 %v4252_v5, %v4252_v5 }
 0x221   : > { %v5369_v10 = vmul.f32 %v7000_v56, %v7000_v56  ;;  %v4253_v61 = vsel %vm4217_vm8, %v4037_v13, 0.0  ;;  %v5326_v1 = vadd.f32 %v7000_v56, %v5325_v38  ;;  %v7004_v15 = vpop.f32.mrf.mxu1  ;;  %6216 = vst [vmem:[%s8977_s23 + $0x10] sm:$0xff] %v6048_v40   ;;  %v5370_v63 = vmul.f32 %v5029_v8, %v5029_v8 }
 0x222   : > { %v4466_v0 = vadd.f32 %v4465_v23, %v4251_v26  ;;  %v4543_v57 = vadd.f32 %v4542_v16, %v4508_v30  ;;  %v5403_v46 = vadd.f32 %v5402_v47, %v5368_v36  ;;  %v3921_v3 = vpop.f32.mrf.mxu0  ;;  %v4255_v33 = vsel %vm4219_vm9, %v4039_v28, 0.0 }
 0x223   : > { %v5327_v53 = vadd.f32 %v5326_v1, %v5029_v8  ;;  %v4040_v56 = vadd.f32 %v6952_v7, %v8851_v59  ;;  %v6153_v31 = vpack.c.bf16 %v7004_v15, %v7003_v43  ;;  %v5032_v11 = vpop.f32.mrf.mxu1  ;;  %v4511_v26 = vmul.f32 %v4253_v61, %v4253_v61  ;;  %v9035_v59 = vpop.permute.xlu1 %4165 }
 0x224   : > { %v4544_v17 = vadd.f32 %v4543_v57, %v4509_v60  ;;  %v4467_v27 = vadd.f32 %v4466_v0, %v4252_v5  ;;  %v5404_v51 = vadd.f32 %v5403_v46, %v5369_v10  ;;  %v6955_v36 = vpop.f32.mrf.mxu0  ;;  %v4038_v35 = vadd.f32 %v3921_v3, %v8854_v48 }
 0x225   : > { %v4256_v16 = vsel %vm4220_vm11, %v4040_v56, 0.0  ;;  %6236 = vst [vmem:[%s8969_s20 + $0x28] sm:$0xff] %v6153_v31   ;;  %v6148_v54 = vpack.c.bf16 %v5032_v11, %v5029_v8  ;;  %v5328_v32 = vadd.f32 %v5327_v53, %v5032_v11  ;;  %v9033_v55 = vpop.f32.mrf.mxu1  ;;  %v5372_v40 = vmul.f32 %v7003_v43, %v7003_v43  ;;  %v9041_v8 = vpop.permute.xlu0 %4168 }
 0x226   : > { %v4468_v38 = vadd.f32 %v4467_v27, %v4253_v61  ;;  %v4545_v60 = vadd.f32 %v4544_v17, %v4510_v18  ;;  %v5405_v5 = vadd.f32 %v5404_v51, %v5370_v63  ;;  %v6063_v28 = vpack.c.bf16 %v4256_v16, %v4255_v33  ;;  %v3934_v13 = vpop.f32.mrf.mxu0 }
 0x227   : > { %v4254_v19 = vsel %vm4218_vm12, %v4038_v35, 0.0  ;;  %6235 = vst [vmem:[%s8969_s20 + $0x20] sm:$0xff] %v6148_v54   ;;  %v5329_v23 = vadd.f32 %v7003_v43, %v5328_v32  ;;  %v5371_v30 = vmul.f32 %v5032_v11, %v5032_v11  ;;  %v5045_v48 = vpop.f32.mrf.mxu1  ;;  %v4513_v0 = vmul.f32 %v4255_v33, %v4255_v33  ;;  %v9055_v27 = vpop.permute.xlu1 %4171 }
 0x228   : > { %v4546_v47 = vadd.f32 %v4545_v60, %v4511_v26  ;;  %6219 = vst [vmem:[%s8977_s23 + $0x28] sm:$0xff] %v6063_v28   ;;  %v6058_v7 = vpack.c.bf16 %v4254_v19, %v4253_v61  ;;  %v4469_v18 = vadd.f32 %v4468_v38, %v4254_v19  ;;  %v4512_v10 = vmul.f32 %v4254_v19, %v4254_v19  ;;  %v6956_v1 = vpop.f32.mrf.mxu0 }
 0x229   : > { %v5406_v57 = vadd.f32 %v5405_v5, %v5371_v30  ;;  %v4043_v58 = vadd.f32 %v6955_v36, %v8857_v62  ;;  %v4041_v46 = vadd.f32 %v3934_v13, %v8860_v29  ;;  %v9046_v43 = vpop.f32.mrf.mxu1  ;;  %v5373_v63 = vmul.f32 %v7004_v15, %v7004_v15  ;;  %v9065_v38 = vpop.permute.xlu0 %4174 }
 0x22a   : > { %6218 = vst [vmem:[%s8977_s23 + $0x20] sm:$0xff] %v6058_v7   ;;  %v4470_v3 = vadd.f32 %v4469_v18, %v4255_v33  ;;  %v4547_v53 = vadd.f32 %v4546_v47, %v4512_v10  ;;  %v5330_v56 = vadd.f32 %v7004_v15, %v5329_v23  ;;  %v3937_v31 = vpop.f32.mrf.mxu0  ;;  %vm4227_vm3 = vcmp.eq.s32.totalorder %v9005_v24, 1 }
 0x22b   : > { %v5407_v61 = vadd.f32 %v5406_v57, %v5372_v40  ;;  %v4257_v11 = vsel %vm4221_vm13, %v4041_v46, 0.0  ;;  %v5374_v17 = vmul.f32 %v5045_v48, %v5045_v48  ;;  %v4044_v62 = vadd.f32 %v6956_v1, %v8863_v34  ;;  %v5048_v29 = vpop.f32.mrf.mxu1 }
 0x22c   : > { %vm4228_vm4 = vcmp.eq.s32.totalorder %v9016_v12, 1  ;;  %v4514_v33 = vmul.f32 %v4256_v16, %v4256_v16  ;;  %v4548_v26 = vadd.f32 %v4547_v53, %v4513_v0  ;;  %v4259_v15 = vsel %vm4223_vm14, %v4043_v58, 0.0  ;;  %v6959_v36 = vpop.f32.mrf.mxu0  ;;  %v9082_v58 = vpop.permute.xlu1 %4177 }
 0x22d   : > { %v4471_v51 = vadd.f32 %v4470_v3, %v4256_v16  ;;  %v5331_v35 = vadd.f32 %v5330_v56, %v5045_v48  ;;  %v5408_v54 = vadd.f32 %v5407_v61, %v5373_v63  ;;  %v4260_v44 = vsel %vm4224_vm15, %v4044_v62, 0.0  ;;  %v9063_v32 = vpop.f32.mrf.mxu1 }
 0x22e   : > { %v6163_v34 = vpack.c.bf16 %v9046_v43, %v9033_v55  ;;  %v4515_v5 = vmul.f32 %v4257_v11, %v4257_v11  ;;  %v4549_v14 = vadd.f32 %v4548_v26, %v4514_v33  ;;  %v6073_v28 = vpack.c.bf16 %v4260_v44, %v4259_v15  ;;  %v3950_v13 = vpop.f32.mrf.mxu0 }
 0x22f   : > { %v4472_v60 = vadd.f32 %v4471_v51, %v4257_v11  ;;  %v5376_v16 = vmul.f32 %v9033_v55, %v9033_v55  ;;  %v5409_v40 = vadd.f32 %v5408_v54, %v5374_v17  ;;  %v4042_v42 = vadd.f32 %v3937_v31, %v8866_v21  ;;  %v9071_v23 = vpop.f32.mrf.mxu1  ;;  %v9090_v17 = vpop.permute.xlu0 %4180 }
 0x230   : > { %6238 = vst [vmem:[%s8969_s20 + $0x38] sm:$0xff] %v6163_v34   ;;  %v6158_v19 = vpack.c.bf16 %v5048_v29, %v5045_v48  ;;  %v4550_v30 = vadd.f32 %v4549_v14, %v4515_v5  ;;  %6221 = vst [vmem:[%s8977_s23 + $0x38] sm:$0xff] %v6073_v28   ;;  %v5332_v47 = vadd.f32 %v5331_v35, %v5048_v29  ;;  %v6960_v10 = vpop.f32.mrf.mxu0  ;;  %vm4229_vm1 = vcmp.eq.s32.totalorder %v9021_v39, 1  ;;  %v9114_v28 = vpop.permute.xlu1 %4183 }
 0x231   : > { %v5375_v7 = vmul.f32 %v5048_v29, %v5048_v29  ;;  %v4047_v18 = vadd.f32 %v6959_v36, %v8871_v49  ;;  %v4517_v1 = vmul.f32 %v4259_v15, %v4259_v15  ;;  %v4518_v0 = vmul.f32 %v4260_v44, %v4260_v44  ;;  %v9080_v48 = vpop.f32.mrf.mxu1 }
 0x232   : > { %v4258_v57 = vsel %vm4222_vm0, %v4042_v42, 0.0  ;;  %6237 = vst [vmem:[%s8969_s20 + $0x30] sm:$0xff] %v6158_v19   ;;  %v4045_v21 = vadd.f32 %v3950_v13, %v8874_v52  ;;  %v5333_v53 = vadd.f32 %v9033_v55, %v5332_v47  ;;  %v3953_v49 = vpop.f32.mrf.mxu0  ;;  %v5377_v56 = vmul.f32 %v9046_v43, %v9046_v43 }
 0x233   : > { %v6068_v46 = vpack.c.bf16 %v4258_v57, %v4257_v11  ;;  %v4473_v63 = vadd.f32 %v4472_v60, %v4258_v57  ;;  %v4516_v3 = vmul.f32 %v4258_v57, %v4258_v57  ;;  %v5410_v31 = vadd.f32 %v5409_v40, %v5375_v7  ;;  %v5064_v52 = vpop.f32.mrf.mxu1 }
 0x234   : > { %v5378_v41 = vmul.f32 %v9071_v23, %v9071_v23  ;;  %v4048_v61 = vadd.f32 %v6960_v10, %v8879_v50  ;;  %v4263_v29 = vsel %vm4227_vm3, %v4047_v18, 0.0  ;;  %v4261_v55 = vsel %vm4225_vm2, %v4045_v21, 0.0  ;;  %v6963_v33 = vpop.f32.mrf.mxu0  ;;  %v9123_v18 = vpop.permute.xlu0 %4186 }
 0x235   : > { %6220 = vst [vmem:[%s8977_s23 + $0x30] sm:$0xff] %v6068_v46   ;;  %v4474_v62 = vadd.f32 %v4473_v63, %v4259_v15  ;;  %v4551_v11 = vadd.f32 %v4550_v30, %v4516_v3  ;;  %v5411_v26 = vadd.f32 %v5410_v31, %v5376_v16  ;;  %v5334_v51 = vadd.f32 %v9046_v43, %v5333_v53  ;;  %v9103_v36 = vpop.f32.mrf.mxu1 }
 0x236   : > { %v4264_v50 = vsel %vm4228_vm4, %v4048_v61, 0.0  ;;  %v6173_v15 = vpack.c.bf16 %v9080_v48, %v9063_v32  ;;  %vm4231_vm5 = vcmp.eq.s32.totalorder %v9041_v8, 1  ;;  %vm4232_vm6 = vcmp.eq.s32.totalorder %v9055_v27, 1  ;;  %v3966_v43 = vpop.f32.mrf.mxu0 }
 0x237   : > { %v4552_v25 = vadd.f32 %v4551_v11, %v4517_v1  ;;  %v5380_v24 = vmul.f32 %v9063_v32, %v9063_v32  ;;  %v4475_v35 = vadd.f32 %v4474_v62, %v4260_v44  ;;  %v6083_v54 = vpack.c.bf16 %v4264_v50, %v4263_v29  ;;  %v9112_v14 = vpop.f32.mrf.mxu1  ;;  %v9141_v11 = vpop.permute.xlu1 %4189 }
 0x238   : > { %v4519_v34 = vmul.f32 %v4261_v55, %v4261_v55  ;;  %v5335_v12 = vadd.f32 %v5334_v51, %v9071_v23  ;;  %v5412_v60 = vadd.f32 %v5411_v26, %v5377_v56  ;;  %6240 = vst [vmem:[%s8969_s20 + $0x48] sm:$0xff] %v6173_v15   ;;  %v4046_v5 = vadd.f32 %v3953_v49, %v8884_v37  ;;  %v6964_v42 = vpop.f32.mrf.mxu0 }
 0x239   : > { %v4476_v13 = vadd.f32 %v4475_v35, %v4261_v55  ;;  %v4553_v16 = vadd.f32 %v4552_v25, %v4518_v0  ;;  %6223 = vst [vmem:[%s8977_s23 + $0x48] sm:$0xff] %v6083_v54   ;;  %v6168_v40 = vpack.c.bf16 %v5064_v52, %v9071_v23  ;;  %v5379_v44 = vmul.f32 %v5064_v52, %v5064_v52  ;;  %v9120_v37 = vpop.f32.mrf.mxu1 }
 0x23a   : > { %v4521_v19 = vmul.f32 %v4263_v29, %v4263_v29  ;;  %v5413_v30 = vadd.f32 %v5412_v60, %v5378_v41  ;;  %v4262_v47 = vsel %vm4226_vm10, %v4046_v5, 0.0  ;;  %v5336_v7 = vadd.f32 %v5335_v12, %v5064_v52  ;;  %v3969_v23 = vpop.f32.mrf.mxu0 }
 0x23b   : > { %vm4230_vm7 = vcmp.eq.s32.totalorder %v9035_v59, 1  ;;  %v4554_v10 = vadd.f32 %v4553_v16, %v4519_v34  ;;  %v6078_v1 = vpack.c.bf16 %v4262_v47, %v4261_v55  ;;  %v4477_v0 = vadd.f32 %v4476_v13, %v4262_v47  ;;  %6239 = vst [vmem:[%s8969_s20 + $0x40] sm:$0xff] %v6168_v40   ;;  %v5080_v3 = vpop.f32.mrf.mxu1 }
 0x23c   : > { %v4520_v57 = vmul.f32 %v4262_v47, %v4262_v47  ;;  %v4522_v21 = vmul.f32 %v4264_v50, %v4264_v50  ;;  %v5337_v46 = vadd.f32 %v9063_v32, %v5336_v7  ;;  %v5414_v63 = vadd.f32 %v5413_v30, %v5379_v44  ;;  %v6967_v41 = vpop.f32.mrf.mxu0  ;;  %v9170_v47 = vpop.permute.xlu1 %4195 }
 0x23d   : > { %v4051_v4 = vadd.f32 %v6963_v33, %v8887_v22  ;;  %v5381_v53 = vmul.f32 %v9080_v48, %v9080_v48  ;;  %6222 = vst [vmem:[%s8977_s23 + $0x40] sm:$0xff] %v6078_v1   ;;  %v4478_v49 = vadd.f32 %v4477_v0, %v4263_v29  ;;  %v4049_v31 = vadd.f32 %v3966_v43, %v8892_v9  ;;  %v9138_v62 = vpop.f32.mrf.mxu1 }
 0x23e   : > { %v4555_v56 = vadd.f32 %v4554_v10, %v4520_v57  ;;  %vm4233_vm8 = vcmp.eq.s32.totalorder %v9065_v38, 1  ;;  %vm4235_vm9 = vcmp.eq.s32.totalorder %v9090_v17, 1  ;;  %v5415_v61 = vadd.f32 %v5414_v63, %v5380_v24  ;;  %v3982_v33 = vpop.f32.mrf.mxu0  ;;  %v9154_v24 = vpop.permute.xlu0 %4192 }
 0x23f   : > { %v5338_v32 = vadd.f32 %v9080_v48, %v5337_v46  ;;  %v5382_v22 = vmul.f32 %v9112_v14, %v9112_v14  ;;  %v4052_v52 = vadd.f32 %v6964_v42, %v8897_v45  ;;  %vm4236_vm11 = vcmp.eq.s32.totalorder %v9114_v28, 1  ;;  %v9152_v25 = vpop.f32.mrf.mxu1 }
 0x240   : > { %v4556_v9 = vadd.f32 %v4555_v56, %v4521_v19  ;;  %v4265_v29 = vsel %vm4229_vm1, %v4049_v31, 0.0  ;;  %v4479_v55 = vadd.f32 %v4478_v49, %v4264_v50  ;;  %v6183_v48 = vpack.c.bf16 %v9120_v37, %v9103_v36  ;;  %v6968_v43 = vpop.f32.mrf.mxu0 }
 0x241   : > { %v4267_v26 = vsel %vm4231_vm5, %v4051_v4, 0.0  ;;  %v5339_v45 = vadd.f32 %v5338_v32, %v9112_v14  ;;  %v5416_v51 = vadd.f32 %v5415_v61, %v5381_v53  ;;  %v4268_v15 = vsel %vm4232_vm6, %v4052_v52, 0.0  ;;  %v9161_v60 = vpop.f32.mrf.mxu1 }
 0x242   : > { %v4480_v39 = vadd.f32 %v4479_v55, %v4265_v29  ;;  %v4523_v50 = vmul.f32 %v4265_v29, %v4265_v29  ;;  %v4557_v35 = vadd.f32 %v4556_v9, %v4522_v21  ;;  %v6093_v54 = vpack.c.bf16 %v4268_v15, %v4267_v26  ;;  %6242 = vst [vmem:[%s8969_s20 + $0x58] sm:$0xff] %v6183_v48   ;;  %v3985_v44 = vpop.f32.mrf.mxu0  ;;  %v9387_v21 = vld [vmem:[#allocation4_spill] sm:$0xff]  ;;  %v9388_v55 = vld [vmem:[#allocation7_spill] sm:$0xff] }
 0x243   : > { %v5384_v8 = vmul.f32 %v9103_v36, %v9103_v36  ;;  %v5417_v34 = vadd.f32 %v5416_v51, %v5382_v22  ;;  %v4050_v12 = vadd.f32 %v3969_v23, %v8900_v20  ;;  %v6178_v27 = vpack.c.bf16 %v5080_v3, %v9112_v14  ;;  %v5096_v14 = vpop.f32.mrf.mxu1 }
 0x244   : > { %vm4234_vm12 = vcmp.eq.s32.totalorder %v9082_v58, 1  ;;  %v4558_v5 = vadd.f32 %v4557_v35, %v4523_v50  ;;  %6225 = vst [vmem:[%s8977_s23 + $0x58] sm:$0xff] %v6093_v54   ;;  %v5340_v13 = vadd.f32 %v5339_v45, %v5080_v3  ;;  %v5383_v16 = vmul.f32 %v5080_v3, %v5080_v3  ;;  %v6971_v57 = vpop.f32.mrf.mxu0 }
 0x245   : > { %v4055_v40 = vadd.f32 %v6967_v41, %v8905_v2  ;;  %v4525_v42 = vmul.f32 %v4267_v26, %v4267_v26  ;;  %v4526_v19 = vmul.f32 %v4268_v15, %v4268_v15  ;;  %v4266_v30 = vsel %vm4230_vm7, %v4050_v12, 0.0  ;;  %6241 = vst [vmem:[%s8969_s20 + $0x50] sm:$0xff] %v6178_v27   ;;  %v9178_v63 = vpop.f32.mrf.mxu1 }
 0x246   : > { %v4053_v20 = vadd.f32 %v3982_v33, %v8910_v6  ;;  %v6088_v7 = vpack.c.bf16 %v4266_v30, %v4265_v29  ;;  %v4481_v10 = vadd.f32 %v4480_v39, %v4266_v30  ;;  %v4524_v1 = vmul.f32 %v4266_v30, %v4266_v30  ;;  %v9180_v6 = vpop.permute.xlu0 %4198  ;;  %v3998_v49 = vpop.f32.mrf.mxu0 }
 0x247   : > { %v5341_v0 = vadd.f32 %v9103_v36, %v5340_v13  ;;  %v5385_v2 = vmul.f32 %v9120_v37, %v9120_v37  ;;  %v5418_v23 = vadd.f32 %v5417_v34, %v5383_v16  ;;  %v5386_v59 = vmul.f32 %v9152_v25, %v9152_v25  ;;  %v9193_v32 = vpop.f32.mrf.mxu1 }
 0x248   : > { %v4056_v46 = vadd.f32 %v6968_v43, %v9387_v21  ;;  %6224 = vst [vmem:[%s8977_s23 + $0x50] sm:$0xff] %v6088_v7   ;;  %v4482_v4 = vadd.f32 %v4481_v10, %v4267_v26  ;;  %v4559_v3 = vadd.f32 %v4558_v5, %v4524_v1  ;;  %v4271_v36 = vsel %vm4235_vm9, %v4055_v40, 0.0  ;;  %v9204_v26 = vpop.permute.xlu1 %4201  ;;  %v9390_v10 = vld [vmem:[#allocation2_spill] sm:$0xff] }
 0x249   : > { %v4269_v53 = vsel %vm4233_vm8, %v4053_v20, 0.0  ;;  %vm4237_vm13 = vcmp.eq.s32.totalorder %v9123_v18, 1  ;;  %v5419_v56 = vadd.f32 %v5418_v23, %v5384_v8  ;;  %v5342_v31 = vadd.f32 %v9120_v37, %v5341_v0  ;;  %v6972_v37 = vpop.f32.mrf.mxu0  ;;  %v9202_v33 = vpop.f32.mrf.mxu1 }
 0x24a   : > { %v4272_v41 = vsel %vm4236_vm11, %v4056_v46, 0.0  ;;  %v6193_v61 = vpack.c.bf16 %v9161_v60, %v9138_v62  ;;  %vm4239_vm14 = vcmp.eq.s32.totalorder %v9154_v24, 1  ;;  %vm4240_vm15 = vcmp.eq.s32.totalorder %v9170_v47, 1  ;;  %v9211_v12 = vpop.permute.xlu0 %4204 }
 0x24b   : > { %v4560_v38 = vadd.f32 %v4559_v3, %v4525_v42  ;;  %v5388_v17 = vmul.f32 %v9138_v62, %v9138_v62  ;;  %v4483_v22 = vadd.f32 %v4482_v4, %v4268_v15  ;;  %v6103_v52 = vpack.c.bf16 %v4272_v41, %v4271_v36  ;;  %v4001_v50 = vpop.f32.mrf.mxu0  ;;  %v5112_v34 = vpop.f32.mrf.mxu1 }
 0x24c   : > { %v4527_v9 = vmul.f32 %v4269_v53, %v4269_v53  ;;  %v5343_v28 = vadd.f32 %v5342_v31, %v9152_v25  ;;  %v5420_v29 = vadd.f32 %v5419_v56, %v5385_v2  ;;  %6244 = vst [vmem:[%s8969_s20 + $0x68] sm:$0xff] %v6193_v61   ;;  %v4054_v48 = vadd.f32 %v3985_v44, %v9388_v55  ;;  %v9391_v2 = vld [vmem:[#allocation8_spill] sm:$0xff] }
 0x24d   : > { %v4484_v45 = vadd.f32 %v4483_v22, %v4269_v53  ;;  %v4561_v51 = vadd.f32 %v4560_v38, %v4526_v19  ;;  %6227 = vst [vmem:[%s8977_s23 + $0x68] sm:$0xff] %v6103_v52   ;;  %v6188_v39 = vpack.c.bf16 %v5096_v14, %v9152_v25  ;;  %v5387_v15 = vmul.f32 %v5096_v14, %v5096_v14  ;;  %v6975_v25 = vpop.f32.mrf.mxu0  ;;  %v9389_v19 = vld [vmem:[#allocation5_spill] sm:$0xff]  ;;  %v9216_v30 = vpop.f32.mrf.mxu1 }
 0x24e   : > { %v4529_v35 = vmul.f32 %v4271_v36, %v4271_v36  ;;  %v5421_v54 = vadd.f32 %v5420_v29, %v5386_v59  ;;  %v4270_v43 = vsel %vm4234_vm12, %v4054_v48, 0.0  ;;  %v5344_v8 = vadd.f32 %v5343_v28, %v5096_v14  ;;  %v4208_v59 = vpop.permute.xlu1 %4207  ;;  %v9392_v22 = vld [vmem:[#allocation9_spill] sm:$0xff]  ;;  %v9393_v28 = vld [vmem:[#allocation11_spill] sm:$0xff] }
 0x24f   : > { %vm4238_vm0 = vcmp.eq.s32.totalorder %v9141_v11, 1  ;;  %v4562_v27 = vadd.f32 %v4561_v51, %v4527_v9  ;;  %v6098_v5 = vpack.c.bf16 %v4270_v43, %v4269_v53  ;;  %v4485_v13 = vadd.f32 %v4484_v45, %v4270_v43  ;;  %6243 = vst [vmem:[%s8969_s20 + $0x60] sm:$0xff] %v6188_v39   ;;  %v9237_v31 = vpop.f32.mrf.mxu1  ;;  %v9394_v39 = vld [vmem:[#allocation3_spill] sm:$0xff] }
 0x250   : > { %v4528_v16 = vmul.f32 %v4270_v43, %v4270_v43  ;;  %v4530_v40 = vmul.f32 %v4272_v41, %v4272_v41  ;;  %v5345_v44 = vadd.f32 %v9138_v62, %v5344_v8  ;;  %v5422_v42 = vadd.f32 %v5421_v54, %v5387_v15 }
 0x251   : > { %v4059_v58 = vadd.f32 %v6971_v57, %v9389_v19  ;;  %v5389_v20 = vmul.f32 %v9161_v60, %v9161_v60  ;;  %6226 = vst [vmem:[%s8977_s23 + $0x60] sm:$0xff] %v6098_v5   ;;  %v4486_v14 = vadd.f32 %v4485_v13, %v4271_v36  ;;  %v4057_v1 = vadd.f32 %v3998_v49, %v9390_v10  ;;  %v4014_v36 = vpop.f32.mrf.mxu0  ;;  %v7028_v15 = vpop.f32.mrf.mxu1  ;;  %v9395_v5 = vld [vmem:[#allocation12_spill] sm:$0xff] }
 0x252   : > { %v4563_v7 = vadd.f32 %v4562_v27, %v4528_v16  ;;  %vm4241_vm2 = vcmp.eq.s32.totalorder %v9180_v6, 1  ;;  %vm4243_vm3 = vcmp.eq.s32.totalorder %v9211_v12, 1  ;;  %v5423_v0 = vadd.f32 %v5422_v42, %v5388_v17 }
 0x253   : > { %v5346_v62 = vadd.f32 %v9161_v60, %v5345_v44  ;;  %v5390_v57 = vmul.f32 %v9193_v32, %v9193_v32  ;;  %v4060_v23 = vadd.f32 %v6972_v37, %v9391_v2  ;;  %v4273_v46 = vsel %vm4237_vm13, %v4057_v1, 0.0  ;;  %v6976_v55 = vpop.f32.mrf.mxu0 }
 0x254   : > { %v4564_v21 = vadd.f32 %v4563_v7, %v4529_v35  ;;  %v4487_v4 = vadd.f32 %v4486_v14, %v4272_v41  ;;  %v6203_v3 = vpack.c.bf16 %v9202_v33, %v9178_v63  ;;  %v4275_v53 = vsel %vm4239_vm14, %v4059_v58, 0.0 }
 0x255   : > { %v5347_v60 = vadd.f32 %v5346_v62, %v9193_v32  ;;  %v5424_v49 = vadd.f32 %v5423_v0, %v5389_v20  ;;  %v4276_v56 = vsel %vm4240_vm15, %v4060_v23, 0.0  ;;  %v4531_v18 = vmul.f32 %v4273_v46, %v4273_v46  ;;  %v5128_v20 = vpop.f32.mrf.mxu1  ;;  %v9396_v62 = vld [vmem:[#allocation15_spill] sm:$0xff] }
 0x256   : > { %v4488_v61 = vadd.f32 %v4487_v4, %v4273_v46  ;;  %v4565_v38 = vadd.f32 %v4564_v21, %v4530_v40  ;;  %v6113_v41 = vpack.c.bf16 %v4276_v56, %v4275_v53  ;;  %6246 = vst [vmem:[%s8969_s20 + $0x78] sm:$0xff] %v6203_v3   ;;  %vm4244_vm4 = vcmp.eq.s32.totalorder %v4208_v59, 1 }
 0x257   : > { %v5425_v17 = vadd.f32 %v5424_v49, %v5390_v57  ;;  %v4058_v24 = vadd.f32 %v4001_v50, %v9392_v22  ;;  %v6198_v52 = vpack.c.bf16 %v5112_v34, %v9193_v32  ;;  %vm4242_vm10 = vcmp.eq.s32.totalorder %v9204_v26, 1 }
 0x258   : > { %v4566_v37 = vadd.f32 %v4565_v38, %v4531_v18  ;;  %6229 = vst [vmem:[%s8977_s23 + $0x78] sm:$0xff] %v6113_v41   ;;  %v5348_v47 = vadd.f32 %v5347_v60, %v5112_v34  ;;  %v5391_v9 = vmul.f32 %v5112_v34, %v5112_v34  ;;  %v4063_v29 = vadd.f32 %v6975_v25, %v9393_v28 }
 0x259   : > { %v4533_v48 = vmul.f32 %v4275_v53, %v4275_v53  ;;  %v5392_v45 = vmul.f32 %v9178_v63, %v9178_v63  ;;  %v4274_v51 = vsel %vm4238_vm0, %v4058_v24, 0.0  ;;  %6245 = vst [vmem:[%s8969_s20 + $0x70] sm:$0xff] %v6198_v52   ;;  %v4061_v32 = vadd.f32 %v4014_v36, %v9394_v39 }
 0x25a   : > { %v6108_v50 = vpack.c.bf16 %v4274_v51, %v4273_v46  ;;  %v4489_v35 = vadd.f32 %v4488_v61, %v4274_v51  ;;  %v4532_v54 = vmul.f32 %v4274_v51, %v4274_v51  ;;  %v5349_v43 = vadd.f32 %v9178_v63, %v5348_v47  ;;  %v4017_v63 = vpop.f32.mrf.mxu0 }
 0x25b   : > { %v5393_v8 = vmul.f32 %v9202_v33, %v9202_v33  ;;  %v5426_v34 = vadd.f32 %v5425_v17, %v5391_v9  ;;  %v5394_v27 = vmul.f32 %v9237_v31, %v9237_v31  ;;  %v4064_v13 = vadd.f32 %v6976_v55, %v9395_v5 }
 0x25c   : > { %6228 = vst [vmem:[%s8977_s23 + $0x70] sm:$0xff] %v6108_v50   ;;  %v4490_v11 = vadd.f32 %v4489_v35, %v4275_v53  ;;  %v4567_v16 = vadd.f32 %v4566_v37, %v4532_v54  ;;  %v4279_v25 = vsel %vm4243_vm3, %v4063_v29, 0.0  ;;  %v4277_v40 = vsel %vm4241_vm2, %v4061_v32, 0.0 }
 0x25d   : > { %v5427_v44 = vadd.f32 %v5426_v34, %v5392_v45  ;;  %v5350_v42 = vadd.f32 %v9202_v33, %v5349_v43  ;;  %v4280_v19 = vsel %vm4244_vm4, %v4064_v13, 0.0  ;;  %v6213_v58 = vpack.c.bf16 %v7028_v15, %v9216_v30 }
 0x25e   : > { %v4534_v14 = vmul.f32 %v4276_v56, %v4276_v56  ;;  %v4568_v7 = vadd.f32 %v4567_v16, %v4533_v48  ;;  %v4491_v10 = vadd.f32 %v4490_v11, %v4276_v56  ;;  %v6123_v1 = vpack.c.bf16 %v4280_v19, %v4279_v25 }
 0x25f   : > { %v4535_v12 = vmul.f32 %v4277_v40, %v4277_v40  ;;  %v5351_v0 = vadd.f32 %v5350_v42, %v9237_v31  ;;  %v5428_v6 = vadd.f32 %v5427_v44, %v5393_v8  ;;  %6248 = vst [vmem:[%s8969_s20 + $0x88] sm:$0xff] %v6213_v58   ;;  %v4062_v57 = vadd.f32 %v4017_v63, %v9396_v62 }
 0x260   : > { %v4492_v2 = vadd.f32 %v4491_v10, %v4277_v40  ;;  %v4569_v23 = vadd.f32 %v4568_v7, %v4534_v14  ;;  %6231 = vst [vmem:[%s8977_s23 + $0x88] sm:$0xff] %v6123_v1   ;;  %v6208_v33 = vpack.c.bf16 %v5128_v20, %v9237_v31  ;;  %v5395_v59 = vmul.f32 %v5128_v20, %v5128_v20 }
 0x261   : > { %v5429_v21 = vadd.f32 %v5428_v6, %v5394_v27  ;;  %v4278_v46 = vsel %vm4242_vm10, %v4062_v57, 0.0  ;;  %v5352_v4 = vadd.f32 %v5351_v0, %v5128_v20  ;;  %v5396_v49 = vmul.f32 %v9216_v30, %v9216_v30 }
 0x262   : > { %v4570_v3 = vadd.f32 %v4569_v23, %v4535_v12  ;;  %v6118_v36 = vpack.c.bf16 %v4278_v46, %v4277_v40  ;;  %v4493_v53 = vadd.f32 %v4492_v2, %v4278_v46  ;;  %v4536_v60 = vmul.f32 %v4278_v46, %v4278_v46  ;;  %6247 = vst [vmem:[%s8969_s20 + $0x80] sm:$0xff] %v6208_v33  }
 0x263   : > { %v5353_v56 = vadd.f32 %v9216_v30, %v5352_v4  ;;  %v5430_v61 = vadd.f32 %v5429_v21, %v5395_v59  ;;  %v4537_v18 = vmul.f32 %v4279_v25, %v4279_v25  ;;  %v5397_v41 = vmul.f32 %v7028_v15, %v7028_v15 }
 0x264   : > { %6230 = vst [vmem:[%s8977_s23 + $0x80] sm:$0xff] %v6118_v36   ;;  %v4494_v31 = vadd.f32 %v4493_v53, %v4279_v25  ;;  %v4571_v38 = vadd.f32 %v4570_v3, %v4536_v60  ;;  %v4538_v22 = vmul.f32 %v4280_v19, %v4280_v19 }
 0x265   : > { %v5354_v17 = vadd.f32 %v7028_v15, %v5353_v56  ;;  %v5431_v26 = vadd.f32 %v5430_v61, %v5396_v49 }
 0x266   : > { %v4495_v24 = vadd.f32 %v4494_v31, %v4280_v19  ;;  %v4572_v52 = vadd.f32 %v4571_v38, %v4537_v18 }
 0x267   : > { %v5355_v37 = vrot.slane %v5354_v17, 4  ;;  %v5432_v47 = vadd.f32 %v5431_v26, %v5397_v41 }
 0x268   : > { %v4496_v9 = vrot.slane %v4495_v24, 4  ;;  %v4573_v28 = vadd.f32 %v4572_v52, %v4538_v22 }
 0x269   : > { %v5356_v29 = vadd.f32 %v5355_v37, %v5354_v17  ;;  %v5433_v55 = vrot.slane %v5432_v47, 4 }
 0x26a   : > { %v4497_v48 = vadd.f32 %v4496_v9, %v4495_v24  ;;  %v4574_v30 = vrot.slane %v4573_v28, 4 }
 0x26b   : > { %v5357_v45 = vrot.slane %v5356_v29, 2  ;;  %v5434_v51 = vadd.f32 %v5433_v55, %v5432_v47 }
 0x26c   : > { %v4498_v39 = vrot.slane %v4497_v48, 2  ;;  %v4575_v32 = vadd.f32 %v4574_v30, %v4573_v28 }
 0x26d   : > { %v5358_v50 = vadd.f32 %v5357_v45, %v5356_v29  ;;  %v5435_v15 = vrot.slane %v5434_v51, 2 }
 0x26e   : > { %v4499_v35 = vadd.f32 %v4498_v39, %v4497_v48  ;;  %v4576_v54 = vrot.slane %v4575_v32, 2 }
 0x26f   : > { %v5359_v43 = vrot.slane %v5358_v50, 1  ;;  %v5436_v8 = vadd.f32 %v5435_v15, %v5434_v51 }
 0x270   : > { %v4500_v34 = vrot.slane %v4499_v35, 1  ;;  %v4577_v27 = vadd.f32 %v4576_v54, %v4575_v32 }
 0x271   : > { %v5360_v5 = vadd.f32 %v5359_v43, %v5358_v50  ;;  %v5437_v13 = vrot.slane %v5436_v8, 1 }
 0x272   : > { %v4501_v11 = vadd.f32 %v4500_v34, %v4499_v35  ;;  %v4578_v16 = vrot.slane %v4577_v27, 1 }
 0x273   : > { %5361 = vst [vmem:[%s311_s30] sm:$0x1] %v5360_v5  ;;  %v5438_v25 = vadd.f32 %v5437_v13, %v5436_v8 }
 0x274   : > { %v4579_v40 = vadd.f32 %v4578_v16, %v4577_v27  ;;  %4502 = vst [vmem:[%s307_s10] sm:$0x1] %v4501_v11 }
 0x275   : > { %5439 = vst [vmem:[%s311_s30 + $0x1] sm:$0x1] %v5438_v25 }
 0x276   : > { %4580 = vst [vmem:[%s307_s10 + $0x1] sm:$0x1] %v4579_v40 }
 0x277 PF: > { %s18_s24 = sadd.s32 1, %s7209_s24  }
 0x278   : > { %p15_p4 = scmp.ge.s32.totalorder %s18_s24, 4  }
 0x27a   :  { %17 = sbr.rel (!%p15_p4) target bundleno = 1 (0x1), region = 110 }

</bundles_post_ra>
